<compile_context>
chip_gen: v7x
topology: tpu7x:2x2x1
jax: 0.10.0
libtpu: 0.0.40
codegen_flags: <defaults>
</compile_context>

<pallas_src>
import jax
import jax.numpy as jnp
from jax.experimental import pallas as pl
from jax.experimental.pallas import tpu as pltpu

# ----------------------------- configuration --------------------------------
INPUT_KEYS = ['goal', 'hand_state', 'robot_state', 'previous_action']
SHAPES = {'goal': 9, 'hand_state': 16, 'robot_state': 32, 'previous_action': 20}
NUM_CTX = len(INPUT_KEYS)          # 4 ctx tokens
CTX_DIM = sum(SHAPES.values())     # 77
CTX_PAD = 128                      # padded contraction dim for the ctx matmul
EMBED = 128                        # cfg.embed_size
NQ = 4                             # cfg.num_query
PATCH_SIZE = 32                    # cfg.patch_size[0]
NUM_POINTS = 128                   # small synthetic cloud -> G = 4 patches
NUM_GROUPS = NUM_POINTS // PATCH_SIZE
NUM_TOKENS = NUM_CTX + NUM_GROUPS  # 8 encoder tokens
NUM_ENC_LAYERS = 2                 # cfg.encoder.num_hidden_layers
NUM_HEADS = 4
HEAD_DIM = EMBED // NUM_HEADS
FFN = 256
STATE = 128                        # cfg.state_size
NUM_GRU_LAYERS = 2                 # cfg.num_layer (DeepGRU)
POSE_DIM = 9                       # cfg.pose_dim
POS_HID = 64                       # positional-MLP hidden size

TOK_EPS = 1e-5                     # nn.LayerNorm default (ctx tokenizer MLP)
ENC_EPS = 1e-12                    # HF-BERT-style encoder LayerNorm default


# ------------------------------ fused kernel ---------------------------------
def _forward_kernel(*refs):
    (ctx_x_ref, pts_ref, mem_ref,
     ctx_w_ref, ctx_b_ref, ctx_g_ref, ctx_be_ref,
     patch1_w_ref, patch1_b_ref, patch2_w_ref, patch2_b_ref,
     pos1_w_ref, pos1_b_ref, pos2_w_ref, pos2_b_ref,
     enc_wqkv_ref, enc_bqkv_ref, enc_wo_ref, enc_bo_ref,
     enc_ln1g_ref, enc_ln1b_ref, enc_w1_ref, enc_b1_ref,
     enc_w2_ref, enc_b2_ref, enc_ln2g_ref, enc_ln2b_ref,
     wkv_ref, bkv_ref, query_ref,
     gru_wih0_ref, gru_wih1_ref, gru_whh_ref, gru_bih_ref, gru_bhh_ref,
     whead_ref, bhead_ref,
     out_ref, newmem_ref) = refs

    f32 = jnp.float32
    E, DH, H = EMBED, HEAD_DIM, NUM_HEADS
    G, P, S = NUM_GROUPS, PATCH_SIZE, STATE

    def mm(a, w):
        return jnp.dot(a, w, preferred_element_type=f32)

    def ln(x, g, b, eps):
        mu = jnp.mean(x, axis=-1, keepdims=True)
        var = jnp.mean(jnp.square(x - mu), axis=-1, keepdims=True)
        return (x - mu) * jax.lax.rsqrt(var + eps) * g + b

    def fma3(x3, w_ref, b_ref):
        # (M, 3) x (3, N) as 3 VPU FMAs -- avoids a K=3 MXU pass.
        w = w_ref[...]
        acc = (x3[:, 0:1] * w[0:1, :]
               + x3[:, 1:2] * w[1:2, :]
               + x3[:, 2:3] * w[2:3, :])
        return acc + b_ref[...]

    # TODO(synk): jax.nn.gelu uses the tanh approximation; PyTorch nn.GELU
    # defaults to exact erf (small numeric drift).
    gelu = jax.nn.gelu

    # ---- 1. ctx tokens: fused block-diagonal Linear + LayerNorm -------------
    cx = ctx_x_ref[0]                                          # (1, 128) padded
    ctx_flat = mm(cx, ctx_w_ref[...]) + ctx_b_ref[...]         # (1, 4*E)
    ctx_tok = jnp.concatenate(
        [ctx_flat[:, i * E:(i + 1) * E] for i in range(NUM_CTX)], axis=0)
    ctx_tok = ln(ctx_tok, ctx_g_ref[...], ctx_be_ref[...], TOK_EPS)   # (4, E)

    # ---- 2. point-cloud patch tokens (grouping + MLP + maxpool + pos MLP) ---
    # TODO(synk): FPS + KNN grouping ('fps' group module) has no clean Pallas
    # equivalent; deterministic contiguous grouping is used instead.
    pts = pts_ref[0]                                           # (N, 3)
    rels, centers = [], []
    for g in range(G):
        pg = pts[g * P:(g + 1) * P, :]                         # (P, 3)
        cg = jnp.mean(pg, axis=0, keepdims=True)               # (1, 3)
        rels.append(pg - cg)
        centers.append(cg)
    rel = jnp.concatenate(rels, axis=0)                        # (G*P, 3)
    cen = jnp.concatenate(centers, axis=0)                     # (G, 3)

    h1 = gelu(fma3(rel, patch1_w_ref, patch1_b_ref))           # (G*P, E)
    h2 = mm(h1, patch2_w_ref[...]) + patch2_b_ref[...]         # (G*P, E)
    pooled = [jnp.max(h2[g * P:(g + 1) * P, :], axis=0, keepdims=True)
              for g in range(G)]                               # PointNet max-pool
    zc = jnp.concatenate(pooled, axis=0)                       # (G, E)

    pe = gelu(fma3(cen, pos1_w_ref, pos1_b_ref))               # (G, 64)
    pe = mm(pe, pos2_w_ref[...]) + pos2_b_ref[...]             # (G, E)
    z = zc + pe

    # ---- 3. transformer encoder (MHA + FFN, post-LN), 2 layers --------------
    x = jnp.concatenate([ctx_tok, z], axis=0)                  # (T, E)
    scale = 1.0 / (DH ** 0.5)
    for l in range(NUM_ENC_LAYERS):
        wqkv = enc_wqkv_ref[l]
        wo = enc_wo_ref[l]
        qkv = mm(x, wqkv) + enc_bqkv_ref[l]                    # (T, 3E) fused QKV
        q, k, v = qkv[:, :E], qkv[:, E:2 * E], qkv[:, 2 * E:]
        acc = None
        for h in range(H):
            sl = slice(h * DH, (h + 1) * DH)
            qh, kh, vh = q[:, sl], k[:, sl], v[:, sl]
            sc = jax.lax.dot_general(qh, kh, (((1,), (1,)), ((), ())),
                                     preferred_element_type=f32) * scale  # (T,T)
            pr = jax.nn.softmax(sc, axis=-1)
            oh = mm(pr, vh)                                    # (T, DH)
            contrib = mm(oh, wo[sl, :])                        # fold O-proj per head
            acc = contrib if acc is None else acc + contrib
        attn = acc + enc_bo_ref[l]
        x = ln(x + attn, enc_ln1g_ref[l], enc_ln1b_ref[l], ENC_EPS)
        f = gelu(mm(x, enc_w1_ref[l]) + enc_b1_ref[l])         # (T, FFN)
        f = mm(f, enc_w2_ref[l]) + enc_b2_ref[l]               # (T, E)
        x = ln(x + f, enc_ln2g_ref[l], enc_ln2b_ref[l], ENC_EPS)

    # ---- 4. to_kv (fused) + learned-query cross attention --------------------
    kv = mm(x, wkv_ref[...]) + bkv_ref[...]                    # (T, 2E)
    kk, vv = kv[:, :E], kv[:, E:]
    qt = query_ref[...]                                        # (NQ, E)
    sc = jax.lax.dot_general(qt, kk, (((1,), (1,)), ((), ())),
                             preferred_element_type=f32) * (1.0 / (E ** 0.5))
    pr = jax.nn.softmax(sc, axis=-1)                           # (NQ, T)
    cross = mm(pr, vv)                                         # (NQ, E)

    # ---- 5. DeepGRU (2 stacked GRU cells, seq len 1) -------------------------
    mem = mem_ref[0]                                           # (2, S)
    h0, h1r = mem[0:1, :], mem[1:2, :]

    # layer 0: input = flatten(cross) (NQ*E,), contracted without a reshape by
    # accumulating per-query matmuls against the (NQ, E, 3S) reshaped W_ih.
    gi0 = gru_bih_ref[0]                                       # (1, 3S)
    for qx in range(NQ):
        gi0 = gi0 + mm(cross[qx:qx + 1, :], gru_wih0_ref[qx])
    gh0 = mm(h0, gru_whh_ref[0]) + gru_bhh_ref[0]
    r = jax.nn.sigmoid(gi0[:, :S] + gh0[:, :S])
    zg = jax.nn.sigmoid(gi0[:, S:2 * S] + gh0[:, S:2 * S])
    n = jnp.tanh(gi0[:, 2 * S:] + r * gh0[:, 2 * S:])
    h0n = (1.0 - zg) * n + zg * h0

    # layer 1
    gi1 = mm(h0n, gru_wih1_ref[...]) + gru_bih_ref[1]
    gh1 = mm(h1r, gru_whh_ref[1]) + gru_bhh_ref[1]
    r = jax.nn.sigmoid(gi1[:, :S] + gh1[:, :S])
    zg = jax.nn.sigmoid(gi1[:, S:2 * S] + gh1[:, S:2 * S])
    n = jnp.tanh(gi1[:, 2 * S:] + r * gh1[:, 2 * S:])
    h1n = (1.0 - zg) * n + zg * h1r

    # ---- 6. fused heads: [project(128) | pred_pose(9) | zero pad] ------------
    y = mm(h1n, whead_ref[...]) + bhead_ref[...]               # (1, 2S) lane-dense
    out_ref[0] = y
    newmem_ref[0] = jnp.concatenate([h0n, h1n], axis=0)        # (2, S)


# ------------------------------ model wrapper --------------------------------
_WEIGHT_ORDER = [
    'ctx_w', 'ctx_b', 'ctx_g', 'ctx_be',
    'patch1_w', 'patch1_b', 'patch2_w', 'patch2_b',
    'pos1_w', 'pos1_b', 'pos2_w', 'pos2_b',
    'enc_wqkv', 'enc_bqkv', 'enc_wo', 'enc_bo',
    'enc_ln1g', 'enc_ln1b', 'enc_w1', 'enc_b1',
    'enc_w2', 'enc_b2', 'enc_ln2g', 'enc_ln2b',
    'wkv', 'bkv', 'query',
    'gru_wih0', 'gru_wih1', 'gru_whh', 'gru_bih', 'gru_bhh',
    'whead', 'bhead',
]


def _wspec(arr):
    nd = arr.ndim
    return pl.BlockSpec(arr.shape, lambda b, _nd=nd: (0,) * _nd)


def forward(params, obs, memory):
    B = obs['goal'].shape[0]

    # pack + pad the 4 ctx observations for the block-diagonal tokenizer matmul
    ctx = jnp.concatenate([obs[k] for k in INPUT_KEYS], axis=-1)       # (B, 77)
    ctx = jnp.pad(ctx, ((0, 0), (0, CTX_PAD - CTX_DIM)))[:, None, :]   # (B, 1, 128)
    pts = obs['partial_cloud']                                          # (B, N, 3)
    mem = jnp.transpose(memory, (1, 0, 2))                              # (B, L, S)

    weights = [params[k] for k in _WEIGHT_ORDER]
    inputs = [ctx, pts, mem] + weights

    in_specs = [
        pl.BlockSpec((1, 1, CTX_PAD), lambda b: (b, 0, 0)),
        pl.BlockSpec((1, NUM_POINTS, 3), lambda b: (b, 0, 0)),
        pl.BlockSpec((1, NUM_GRU_LAYERS, STATE), lambda b: (b, 0, 0)),
    ] + [_wspec(w) for w in weights]

    out_shape = (
        jax.ShapeDtypeStruct((B, 1, 2 * STATE), jnp.float32),           # heads
        jax.ShapeDtypeStruct((B, NUM_GRU_LAYERS, STATE), jnp.float32),  # memory
    )
    out_specs = (
        pl.BlockSpec((1, 1, 2 * STATE), lambda b: (b, 0, 0)),
        pl.BlockSpec((1, NUM_GRU_LAYERS, STATE), lambda b: (b, 0, 0)),
    )

    y, newmem = pl.pallas_call(
        _forward_kernel,
        out_shape=out_shape,
        grid=(B,),
        in_specs=in_specs,
        out_specs=out_specs,
        compiler_params=pltpu.CompilerParams(
            dimension_semantics=("parallel",)),   # lets v7x split batch over 2 TCs
    )(*inputs)

    y = y[:, 0, :]
    output = y[:, :STATE]                     # estimate_level == 'state'
    pose = y[:, STATE:STATE + POSE_DIM]
    new_memory = jnp.transpose(newmem, (1, 0, 2))   # back to (L, B, S)
    return output, pose, new_memory


# ------------------------------ param init -----------------------------------
def init_params(key):
    keys = iter(jax.random.split(key, 64))

    def nrm(shape, scale=0.02):
        return jax.random.normal(next(keys), shape, jnp.float32) * scale

    p = {}
    # ctx tokenizers fused into one block-diagonal weight (128 -> 4 tokens)
    ctx_w = jnp.zeros((CTX_PAD, NUM_CTX * EMBED), jnp.float32)
    off = 0
    for i, k in enumerate(INPUT_KEYS):
        d = SHAPES[k]
        ctx_w = ctx_w.at[off:off + d, i * EMBED:(i + 1) * EMBED].set(nrm((d, EMBED)))
        off += d
    p['ctx_w'] = ctx_w
    p['ctx_b'] = jnp.zeros((1, NUM_CTX * EMBED), jnp.float32)
    p['ctx_g'] = jnp.ones((NUM_CTX, EMBED), jnp.float32)
    p['ctx_be'] = jnp.zeros((NUM_CTX, EMBED), jnp.float32)

    # patch encoder (per-point MLP) + positional MLP
    p['patch1_w'] = nrm((3, EMBED))
    p['patch1_b'] = jnp.zeros((1, EMBED), jnp.float32)
    p['patch2_w'] = nrm((EMBED, EMBED))
    p['patch2_b'] = jnp.zeros((1, EMBED), jnp.float32)
    p['pos1_w'] = nrm((3, POS_HID))
    p['pos1_b'] = jnp.zeros((1, POS_HID), jnp.float32)
    p['pos2_w'] = nrm((POS_HID, EMBED))
    p['pos2_b'] = jnp.zeros((1, EMBED), jnp.float32)

    # transformer encoder, layer-stacked params (fused QKV weight per layer)
    L = NUM_ENC_LAYERS
    p['enc_wqkv'] = jnp.stack([nrm((EMBED, 3 * EMBED)) for _ in range(L)])
    p['enc_bqkv'] = jnp.zeros((L, 1, 3 * EMBED), jnp.float32)
    p['enc_wo'] = jnp.stack([nrm((EMBED, EMBED)) for _ in range(L)])
    p['enc_bo'] = jnp.zeros((L, 1, EMBED), jnp.float32)
    p['enc_ln1g'] = jnp.ones((L, 1, EMBED), jnp.float32)
    p['enc_ln1b'] = jnp.zeros((L, 1, EMBED), jnp.float32)
    p['enc_w1'] = jnp.stack([nrm((EMBED, FFN)) for _ in range(L)])
    p['enc_b1'] = jnp.zeros((L, 1, FFN), jnp.float32)
    p['enc_w2'] = jnp.stack([nrm((FFN, EMBED)) for _ in range(L)])
    p['enc_b2'] = jnp.zeros((L, 1, EMBED), jnp.float32)
    p['enc_ln2g'] = jnp.ones((L, 1, EMBED), jnp.float32)
    p['enc_ln2b'] = jnp.zeros((L, 1, EMBED), jnp.float32)

    # to_kv fused (K | V) and learned query tokens (nn.Parameter(zeros))
    p['wkv'] = nrm((EMBED, 2 * EMBED))
    p['bkv'] = jnp.zeros((1, 2 * EMBED), jnp.float32)
    p['query'] = jnp.zeros((NQ, EMBED), jnp.float32)

    # DeepGRU (2 layers).  Layer-0 W_ih stored pre-reshaped as (NQ, E, 3S) so
    # the kernel can contract the flattened query embedding without a reshape.
    p['gru_wih0'] = nrm((NQ, EMBED, 3 * STATE))
    p['gru_wih1'] = nrm((STATE, 3 * STATE))
    p['gru_whh'] = jnp.stack([nrm((STATE, 3 * STATE)) for _ in range(NUM_GRU_LAYERS)])
    p['gru_bih'] = jnp.zeros((NUM_GRU_LAYERS, 1, 3 * STATE), jnp.float32)
    p['gru_bhh'] = jnp.zeros((NUM_GRU_LAYERS, 1, 3 * STATE), jnp.float32)

    # heads fused: cols [0:128] = project, cols [128:137] = pred_pose
    whead = jnp.zeros((STATE, 2 * STATE), jnp.float32)
    whead = whead.at[:, :STATE].set(nrm((STATE, STATE)))
    whead = whead.at[:, STATE:STATE + POSE_DIM].set(nrm((STATE, POSE_DIM)))
    p['whead'] = whead
    p['bhead'] = jnp.zeros((1, 2 * STATE), jnp.float32)
    return p


# --------------------------------- main ---------------------------------------
if __name__ == "__main__":
    key = jax.random.PRNGKey(0)
    kp, kg, kh, kr, ka, kc = jax.random.split(key, 6)
    params = init_params(kp)

    B = 2
    obs = {
        'goal': jax.random.normal(kg, (B, SHAPES['goal']), jnp.float32),
        'hand_state': jax.random.normal(kh, (B, SHAPES['hand_state']), jnp.float32),
        'robot_state': jax.random.normal(kr, (B, SHAPES['robot_state']), jnp.float32),
        'previous_action': jax.random.normal(ka, (B, SHAPES['previous_action']), jnp.float32),
        'partial_cloud': jax.random.normal(kc, (B, NUM_POINTS, 3), jnp.float32),
    }
    # DeepGRU.init_memory((B,)) -> zeros(num_layer, B, state_size)
    memory = jnp.zeros((NUM_GRU_LAYERS, B, STATE), jnp.float32)

    fwd = jax.jit(forward)
    output, pose, new_memory = fwd(params, obs, memory)
    jax.block_until_ready((output, pose, new_memory))

    assert output.shape == (B, STATE)
    assert pose.shape == (B, POSE_DIM)
    assert new_memory.shape == (NUM_GRU_LAYERS, B, STATE)
    print("KERNEL_OK")
</pallas_src>

<mosaic_0001>
module attributes {stable_mosaic.version = 11 : i64} {
  func.func @_forward_kernel(%arg0: i32, %arg1: memref<1x1x128xf32, #tpu.memory_space<vmem>>, %arg2: memref<1x128x3xf32, #tpu.memory_space<vmem>>, %arg3: memref<1x2x128xf32, #tpu.memory_space<vmem>>, %arg4: memref<128x512xf32, #tpu.memory_space<vmem>>, %arg5: memref<1x512xf32, #tpu.memory_space<vmem>>, %arg6: memref<4x128xf32, #tpu.memory_space<vmem>>, %arg7: memref<4x128xf32, #tpu.memory_space<vmem>>, %arg8: memref<3x128xf32, #tpu.memory_space<vmem>>, %arg9: memref<1x128xf32, #tpu.memory_space<vmem>>, %arg10: memref<128x128xf32, #tpu.memory_space<vmem>>, %arg11: memref<1x128xf32, #tpu.memory_space<vmem>>, %arg12: memref<3x64xf32, #tpu.memory_space<vmem>>, %arg13: memref<1x64xf32, #tpu.memory_space<vmem>>, %arg14: memref<64x128xf32, #tpu.memory_space<vmem>>, %arg15: memref<1x128xf32, #tpu.memory_space<vmem>>, %arg16: memref<2x128x384xf32, #tpu.memory_space<vmem>>, %arg17: memref<2x1x384xf32, #tpu.memory_space<vmem>>, %arg18: memref<2x128x128xf32, #tpu.memory_space<vmem>>, %arg19: memref<2x1x128xf32, #tpu.memory_space<vmem>>, %arg20: memref<2x1x128xf32, #tpu.memory_space<vmem>>, %arg21: memref<2x1x128xf32, #tpu.memory_space<vmem>>, %arg22: memref<2x128x256xf32, #tpu.memory_space<vmem>>, %arg23: memref<2x1x256xf32, #tpu.memory_space<vmem>>, %arg24: memref<2x256x128xf32, #tpu.memory_space<vmem>>, %arg25: memref<2x1x128xf32, #tpu.memory_space<vmem>>, %arg26: memref<2x1x128xf32, #tpu.memory_space<vmem>>, %arg27: memref<2x1x128xf32, #tpu.memory_space<vmem>>, %arg28: memref<128x256xf32, #tpu.memory_space<vmem>>, %arg29: memref<1x256xf32, #tpu.memory_space<vmem>>, %arg30: memref<4x128xf32, #tpu.memory_space<vmem>>, %arg31: memref<4x128x384xf32, #tpu.memory_space<vmem>>, %arg32: memref<128x384xf32, #tpu.memory_space<vmem>>, %arg33: memref<2x128x384xf32, #tpu.memory_space<vmem>>, %arg34: memref<2x1x384xf32, #tpu.memory_space<vmem>>, %arg35: memref<2x1x384xf32, #tpu.memory_space<vmem>>, %arg36: memref<128x256xf32, #tpu.memory_space<vmem>>, %arg37: memref<1x256xf32, #tpu.memory_space<vmem>>, %arg38: memref<1x1x256xf32, #tpu.memory_space<vmem>>, %arg39: memref<1x2x128xf32, #tpu.memory_space<vmem>>) attributes {dimension_semantics = [#tpu.dimension_semantics<parallel>], iteration_bounds = array<i64: 2>, scalar_prefetch = 0 : i64, scratch_operands = 0 : i64, tpu.core_type = #tpu.core_type<tc>, window_params = [{transform_indices = @transform_0, window_bounds = array<i64: 1, 1, 128>}, {transform_indices = @transform_1, window_bounds = array<i64: 1, 128, 3>}, {transform_indices = @transform_2, window_bounds = array<i64: 1, 2, 128>}, {pipeline_mode = #tpu.pipeline_mode<synchronous>, transform_indices = @transform_3, window_bounds = array<i64: 128, 512>}, {pipeline_mode = #tpu.pipeline_mode<synchronous>, transform_indices = @transform_4, window_bounds = array<i64: 1, 512>}, {pipeline_mode = #tpu.pipeline_mode<synchronous>, transform_indices = @transform_5, window_bounds = array<i64: 4, 128>}, {pipeline_mode = #tpu.pipeline_mode<synchronous>, transform_indices = @transform_6, window_bounds = array<i64: 4, 128>}, {pipeline_mode = #tpu.pipeline_mode<synchronous>, transform_indices = @transform_7, window_bounds = array<i64: 3, 128>}, {pipeline_mode = #tpu.pipeline_mode<synchronous>, transform_indices = @transform_8, window_bounds = array<i64: 1, 128>}, {pipeline_mode = #tpu.pipeline_mode<synchronous>, transform_indices = @transform_9, window_bounds = array<i64: 128, 128>}, {pipeline_mode = #tpu.pipeline_mode<synchronous>, transform_indices = @transform_10, window_bounds = array<i64: 1, 128>}, {pipeline_mode = #tpu.pipeline_mode<synchronous>, transform_indices = @transform_11, window_bounds = array<i64: 3, 64>}, {pipeline_mode = #tpu.pipeline_mode<synchronous>, transform_indices = @transform_12, window_bounds = array<i64: 1, 64>}, {pipeline_mode = #tpu.pipeline_mode<synchronous>, transform_indices = @transform_13, window_bounds = array<i64: 64, 128>}, {pipeline_mode = #tpu.pipeline_mode<synchronous>, transform_indices = @transform_14, window_bounds = array<i64: 1, 128>}, {pipeline_mode = #tpu.pipeline_mode<synchronous>, transform_indices = @transform_15, window_bounds = array<i64: 2, 128, 384>}, {pipeline_mode = #tpu.pipeline_mode<synchronous>, transform_indices = @transform_16, window_bounds = array<i64: 2, 1, 384>}, {pipeline_mode = #tpu.pipeline_mode<synchronous>, transform_indices = @transform_17, window_bounds = array<i64: 2, 128, 128>}, {pipeline_mode = #tpu.pipeline_mode<synchronous>, transform_indices = @transform_18, window_bounds = array<i64: 2, 1, 128>}, {pipeline_mode = #tpu.pipeline_mode<synchronous>, transform_indices = @transform_19, window_bounds = array<i64: 2, 1, 128>}, {pipeline_mode = #tpu.pipeline_mode<synchronous>, transform_indices = @transform_20, window_bounds = array<i64: 2, 1, 128>}, {pipeline_mode = #tpu.pipeline_mode<synchronous>, transform_indices = @transform_21, window_bounds = array<i64: 2, 128, 256>}, {pipeline_mode = #tpu.pipeline_mode<synchronous>, transform_indices = @transform_22, window_bounds = array<i64: 2, 1, 256>}, {pipeline_mode = #tpu.pipeline_mode<synchronous>, transform_indices = @transform_23, window_bounds = array<i64: 2, 256, 128>}, {pipeline_mode = #tpu.pipeline_mode<synchronous>, transform_indices = @transform_24, window_bounds = array<i64: 2, 1, 128>}, {pipeline_mode = #tpu.pipeline_mode<synchronous>, transform_indices = @transform_25, window_bounds = array<i64: 2, 1, 128>}, {pipeline_mode = #tpu.pipeline_mode<synchronous>, transform_indices = @transform_26, window_bounds = array<i64: 2, 1, 128>}, {pipeline_mode = #tpu.pipeline_mode<synchronous>, transform_indices = @transform_27, window_bounds = array<i64: 128, 256>}, {pipeline_mode = #tpu.pipeline_mode<synchronous>, transform_indices = @transform_28, window_bounds = array<i64: 1, 256>}, {pipeline_mode = #tpu.pipeline_mode<synchronous>, transform_indices = @transform_29, window_bounds = array<i64: 4, 128>}, {pipeline_mode = #tpu.pipeline_mode<synchronous>, transform_indices = @transform_30, window_bounds = array<i64: 4, 128, 384>}, {pipeline_mode = #tpu.pipeline_mode<synchronous>, transform_indices = @transform_31, window_bounds = array<i64: 128, 384>}, {pipeline_mode = #tpu.pipeline_mode<synchronous>, transform_indices = @transform_32, window_bounds = array<i64: 2, 128, 384>}, {pipeline_mode = #tpu.pipeline_mode<synchronous>, transform_indices = @transform_33, window_bounds = array<i64: 2, 1, 384>}, {pipeline_mode = #tpu.pipeline_mode<synchronous>, transform_indices = @transform_34, window_bounds = array<i64: 2, 1, 384>}, {pipeline_mode = #tpu.pipeline_mode<synchronous>, transform_indices = @transform_35, window_bounds = array<i64: 128, 256>}, {pipeline_mode = #tpu.pipeline_mode<synchronous>, transform_indices = @transform_36, window_bounds = array<i64: 1, 256>}, {transform_indices = @transform_37, window_bounds = array<i64: 1, 1, 256>}, {transform_indices = @transform_38, window_bounds = array<i64: 1, 2, 128>}]} {
    %c0 = arith.constant 0 : index
    %c0_0 = arith.constant 0 : index
    %c0_1 = arith.constant 0 : index
    %0 = vector.load %arg1[%c0, %c0_0, %c0_1] : memref<1x1x128xf32, #tpu.memory_space<vmem>>, vector<1x1x128xf32>
    %1 = vector.shape_cast %0 : vector<1x1x128xf32> to vector<1x128xf32>
    %c0_2 = arith.constant 0 : index
    %c0_3 = arith.constant 0 : index
    %2 = vector.load %arg4[%c0_2, %c0_3] : memref<128x512xf32, #tpu.memory_space<vmem>>, vector<128x512xf32>
    %cst = arith.constant dense<0.000000e+00> : vector<1x512xf32>
    %3 = tpu.matmul %1, %2, %cst {dimension_numbers = #tpu.dot_dimension_numbers<[1], [0], [0], [1], [0, 0, 1, 1], [], []>} : vector<1x128xf32>, vector<128x512xf32>, vector<1x512xf32> -> vector<1x512xf32>
    %c0_4 = arith.constant 0 : index
    %c0_5 = arith.constant 0 : index
    %4 = vector.load %arg5[%c0_4, %c0_5] : memref<1x512xf32, #tpu.memory_space<vmem>>, vector<1x512xf32>
    %5 = arith.addf %3, %4 : vector<1x512xf32>
    %6 = vector.extract_strided_slice %5 {offsets = [0, 0], sizes = [1, 128], strides = [1, 1]} : vector<1x512xf32> to vector<1x128xf32>
    %7 = vector.extract_strided_slice %5 {offsets = [0, 128], sizes = [1, 128], strides = [1, 1]} : vector<1x512xf32> to vector<1x128xf32>
    %8 = vector.extract_strided_slice %5 {offsets = [0, 256], sizes = [1, 128], strides = [1, 1]} : vector<1x512xf32> to vector<1x128xf32>
    %9 = vector.extract_strided_slice %5 {offsets = [0, 384], sizes = [1, 128], strides = [1, 1]} : vector<1x512xf32> to vector<1x128xf32>
    %10 = tpu.concatenate %6, %7, %8, %9 in 0 : vector<1x128xf32>, vector<1x128xf32>, vector<1x128xf32>, vector<1x128xf32> -> vector<4x128xf32>
    %c0_6 = arith.constant 0 : index
    %c0_7 = arith.constant 0 : index
    %11 = vector.load %arg6[%c0_6, %c0_7] : memref<4x128xf32, #tpu.memory_space<vmem>>, vector<4x128xf32>
    %c0_8 = arith.constant 0 : index
    %c0_9 = arith.constant 0 : index
    %12 = vector.load %arg7[%c0_8, %c0_9] : memref<4x128xf32, #tpu.memory_space<vmem>>, vector<4x128xf32>
    %cst_10 = arith.constant dense<0.000000e+00> : vector<4xf32>
    %13 = vector.multi_reduction <add>, %10, %cst_10 [1] : vector<4x128xf32> to vector<4xf32>
    %14 = vector.shape_cast %13 : vector<4xf32> to vector<4x1xf32>
    %cst_11 = arith.constant 1.280000e+02 : f32
    %15 = vector.broadcast %cst_11 : f32 to vector<4x1xf32>
    %16 = arith.divf %14, %15 : vector<4x1xf32>
    %17 = vector.broadcast %16 : vector<4x1xf32> to vector<4x128xf32>
    %18 = arith.subf %10, %17 : vector<4x128xf32>
    %19 = arith.mulf %18, %18 : vector<4x128xf32>
    %cst_12 = arith.constant dense<0.000000e+00> : vector<4xf32>
    %20 = vector.multi_reduction <add>, %19, %cst_12 [1] : vector<4x128xf32> to vector<4xf32>
    %21 = vector.shape_cast %20 : vector<4xf32> to vector<4x1xf32>
    %cst_13 = arith.constant 1.280000e+02 : f32
    %22 = vector.broadcast %cst_13 : f32 to vector<4x1xf32>
    %23 = arith.divf %21, %22 : vector<4x1xf32>
    %24 = vector.broadcast %16 : vector<4x1xf32> to vector<4x128xf32>
    %25 = arith.subf %10, %24 : vector<4x128xf32>
    %cst_14 = arith.constant 9.99999974E-6 : f32
    %26 = vector.broadcast %cst_14 : f32 to vector<4x1xf32>
    %27 = arith.addf %23, %26 : vector<4x1xf32>
    %28 = math.rsqrt %27 : vector<4x1xf32>
    %29 = vector.broadcast %28 : vector<4x1xf32> to vector<4x128xf32>
    %30 = arith.mulf %25, %29 : vector<4x128xf32>
    %31 = arith.mulf %30, %11 : vector<4x128xf32>
    %32 = arith.addf %31, %12 : vector<4x128xf32>
    %c0_15 = arith.constant 0 : index
    %c0_16 = arith.constant 0 : index
    %c0_17 = arith.constant 0 : index
    %33 = vector.load %arg2[%c0_15, %c0_16, %c0_17] : memref<1x128x3xf32, #tpu.memory_space<vmem>>, vector<1x128x3xf32>
    %34 = vector.shape_cast %33 : vector<1x128x3xf32> to vector<128x3xf32>
    %35 = vector.extract_strided_slice %34 {offsets = [0, 0], sizes = [32, 3], strides = [1, 1]} : vector<128x3xf32> to vector<32x3xf32>
    %cst_18 = arith.constant dense<0.000000e+00> : vector<3xf32>
    %36 = vector.multi_reduction <add>, %35, %cst_18 [0] : vector<32x3xf32> to vector<3xf32>
    %37 = vector.shape_cast %36 : vector<3xf32> to vector<1x3xf32>
    %cst_19 = arith.constant 3.200000e+01 : f32
    %38 = vector.broadcast %cst_19 : f32 to vector<1x3xf32>
    %39 = arith.divf %37, %38 : vector<1x3xf32>
    %40 = vector.broadcast %39 : vector<1x3xf32> to vector<32x3xf32>
    %41 = arith.subf %35, %40 : vector<32x3xf32>
    %42 = vector.extract_strided_slice %34 {offsets = [32, 0], sizes = [32, 3], strides = [1, 1]} : vector<128x3xf32> to vector<32x3xf32>
    %cst_20 = arith.constant dense<0.000000e+00> : vector<3xf32>
    %43 = vector.multi_reduction <add>, %42, %cst_20 [0] : vector<32x3xf32> to vector<3xf32>
    %44 = vector.shape_cast %43 : vector<3xf32> to vector<1x3xf32>
    %cst_21 = arith.constant 3.200000e+01 : f32
    %45 = vector.broadcast %cst_21 : f32 to vector<1x3xf32>
    %46 = arith.divf %44, %45 : vector<1x3xf32>
    %47 = vector.broadcast %46 : vector<1x3xf32> to vector<32x3xf32>
    %48 = arith.subf %42, %47 : vector<32x3xf32>
    %49 = vector.extract_strided_slice %34 {offsets = [64, 0], sizes = [32, 3], strides = [1, 1]} : vector<128x3xf32> to vector<32x3xf32>
    %cst_22 = arith.constant dense<0.000000e+00> : vector<3xf32>
    %50 = vector.multi_reduction <add>, %49, %cst_22 [0] : vector<32x3xf32> to vector<3xf32>
    %51 = vector.shape_cast %50 : vector<3xf32> to vector<1x3xf32>
    %cst_23 = arith.constant 3.200000e+01 : f32
    %52 = vector.broadcast %cst_23 : f32 to vector<1x3xf32>
    %53 = arith.divf %51, %52 : vector<1x3xf32>
    %54 = vector.broadcast %53 : vector<1x3xf32> to vector<32x3xf32>
    %55 = arith.subf %49, %54 : vector<32x3xf32>
    %56 = vector.extract_strided_slice %34 {offsets = [96, 0], sizes = [32, 3], strides = [1, 1]} : vector<128x3xf32> to vector<32x3xf32>
    %cst_24 = arith.constant dense<0.000000e+00> : vector<3xf32>
    %57 = vector.multi_reduction <add>, %56, %cst_24 [0] : vector<32x3xf32> to vector<3xf32>
    %58 = vector.shape_cast %57 : vector<3xf32> to vector<1x3xf32>
    %cst_25 = arith.constant 3.200000e+01 : f32
    %59 = vector.broadcast %cst_25 : f32 to vector<1x3xf32>
    %60 = arith.divf %58, %59 : vector<1x3xf32>
    %61 = vector.broadcast %60 : vector<1x3xf32> to vector<32x3xf32>
    %62 = arith.subf %56, %61 : vector<32x3xf32>
    %63 = tpu.concatenate %41, %48, %55, %62 in 0 : vector<32x3xf32>, vector<32x3xf32>, vector<32x3xf32>, vector<32x3xf32> -> vector<128x3xf32>
    %64 = tpu.concatenate %39, %46, %53, %60 in 0 : vector<1x3xf32>, vector<1x3xf32>, vector<1x3xf32>, vector<1x3xf32> -> vector<4x3xf32>
    %c0_26 = arith.constant 0 : index
    %c0_27 = arith.constant 0 : index
    %65 = vector.load %arg8[%c0_26, %c0_27] : memref<3x128xf32, #tpu.memory_space<vmem>>, vector<3x128xf32>
    %66 = vector.extract_strided_slice %63 {offsets = [0, 0], sizes = [128, 1], strides = [1, 1]} : vector<128x3xf32> to vector<128x1xf32>
    %67 = vector.extract_strided_slice %65 {offsets = [0, 0], sizes = [1, 128], strides = [1, 1]} : vector<3x128xf32> to vector<1x128xf32>
    %68 = vector.broadcast %66 : vector<128x1xf32> to vector<128x128xf32>
    %69 = vector.broadcast %67 : vector<1x128xf32> to vector<128x128xf32>
    %70 = arith.mulf %68, %69 : vector<128x128xf32>
    %71 = vector.extract_strided_slice %63 {offsets = [0, 1], sizes = [128, 1], strides = [1, 1]} : vector<128x3xf32> to vector<128x1xf32>
    %72 = vector.extract_strided_slice %65 {offsets = [1, 0], sizes = [1, 128], strides = [1, 1]} : vector<3x128xf32> to vector<1x128xf32>
    %73 = vector.broadcast %71 : vector<128x1xf32> to vector<128x128xf32>
    %74 = vector.broadcast %72 : vector<1x128xf32> to vector<128x128xf32>
    %75 = arith.mulf %73, %74 : vector<128x128xf32>
    %76 = arith.addf %70, %75 : vector<128x128xf32>
    %77 = vector.extract_strided_slice %63 {offsets = [0, 2], sizes = [128, 1], strides = [1, 1]} : vector<128x3xf32> to vector<128x1xf32>
    %78 = vector.extract_strided_slice %65 {offsets = [2, 0], sizes = [1, 128], strides = [1, 1]} : vector<3x128xf32> to vector<1x128xf32>
    %79 = vector.broadcast %77 : vector<128x1xf32> to vector<128x128xf32>
    %80 = vector.broadcast %78 : vector<1x128xf32> to vector<128x128xf32>
    %81 = arith.mulf %79, %80 : vector<128x128xf32>
    %82 = arith.addf %76, %81 : vector<128x128xf32>
    %c0_28 = arith.constant 0 : index
    %c0_29 = arith.constant 0 : index
    %83 = vector.load %arg9[%c0_28, %c0_29] : memref<1x128xf32, #tpu.memory_space<vmem>>, vector<1x128xf32>
    %84 = vector.broadcast %83 : vector<1x128xf32> to vector<128x128xf32>
    %85 = arith.addf %82, %84 : vector<128x128xf32>
    %86 = arith.mulf %85, %85 : vector<128x128xf32>
    %87 = arith.mulf %85, %86 : vector<128x128xf32>
    %cst_30 = arith.constant 4.471500e-02 : f32
    %88 = vector.broadcast %cst_30 : f32 to vector<128x128xf32>
    %89 = arith.mulf %88, %87 : vector<128x128xf32>
    %90 = arith.addf %85, %89 : vector<128x128xf32>
    %cst_31 = arith.constant 0.797884583 : f32
    %91 = vector.broadcast %cst_31 : f32 to vector<128x128xf32>
    %92 = arith.mulf %91, %90 : vector<128x128xf32>
    %93 = math.tanh %92 : vector<128x128xf32>
    %cst_32 = arith.constant 1.000000e+00 : f32
    %94 = vector.broadcast %cst_32 : f32 to vector<128x128xf32>
    %95 = arith.addf %94, %93 : vector<128x128xf32>
    %cst_33 = arith.constant 5.000000e-01 : f32
    %96 = vector.broadcast %cst_33 : f32 to vector<128x128xf32>
    %97 = arith.mulf %96, %95 : vector<128x128xf32>
    %98 = arith.mulf %85, %97 : vector<128x128xf32>
    %c0_34 = arith.constant 0 : index
    %c0_35 = arith.constant 0 : index
    %99 = vector.load %arg10[%c0_34, %c0_35] : memref<128x128xf32, #tpu.memory_space<vmem>>, vector<128x128xf32>
    %cst_36 = arith.constant dense<0.000000e+00> : vector<128x128xf32>
    %100 = tpu.matmul %98, %99, %cst_36 {dimension_numbers = #tpu.dot_dimension_numbers<[1], [0], [0], [1], [0, 0, 1, 1], [], []>} : vector<128x128xf32>, vector<128x128xf32>, vector<128x128xf32> -> vector<128x128xf32>
    %c0_37 = arith.constant 0 : index
    %c0_38 = arith.constant 0 : index
    %101 = vector.load %arg11[%c0_37, %c0_38] : memref<1x128xf32, #tpu.memory_space<vmem>>, vector<1x128xf32>
    %102 = vector.broadcast %101 : vector<1x128xf32> to vector<128x128xf32>
    %103 = arith.addf %100, %102 : vector<128x128xf32>
    %104 = vector.extract_strided_slice %103 {offsets = [0, 0], sizes = [32, 128], strides = [1, 1]} : vector<128x128xf32> to vector<32x128xf32>
    %cst_39 = arith.constant dense<0xFF800000> : vector<128xf32>
    %105 = vector.multi_reduction <maximumf>, %104, %cst_39 [0] : vector<32x128xf32> to vector<128xf32>
    %106 = vector.shape_cast %105 : vector<128xf32> to vector<1x128xf32>
    %107 = vector.extract_strided_slice %103 {offsets = [32, 0], sizes = [32, 128], strides = [1, 1]} : vector<128x128xf32> to vector<32x128xf32>
    %cst_40 = arith.constant dense<0xFF800000> : vector<128xf32>
    %108 = vector.multi_reduction <maximumf>, %107, %cst_40 [0] : vector<32x128xf32> to vector<128xf32>
    %109 = vector.shape_cast %108 : vector<128xf32> to vector<1x128xf32>
    %110 = vector.extract_strided_slice %103 {offsets = [64, 0], sizes = [32, 128], strides = [1, 1]} : vector<128x128xf32> to vector<32x128xf32>
    %cst_41 = arith.constant dense<0xFF800000> : vector<128xf32>
    %111 = vector.multi_reduction <maximumf>, %110, %cst_41 [0] : vector<32x128xf32> to vector<128xf32>
    %112 = vector.shape_cast %111 : vector<128xf32> to vector<1x128xf32>
    %113 = vector.extract_strided_slice %103 {offsets = [96, 0], sizes = [32, 128], strides = [1, 1]} : vector<128x128xf32> to vector<32x128xf32>
    %cst_42 = arith.constant dense<0xFF800000> : vector<128xf32>
    %114 = vector.multi_reduction <maximumf>, %113, %cst_42 [0] : vector<32x128xf32> to vector<128xf32>
    %115 = vector.shape_cast %114 : vector<128xf32> to vector<1x128xf32>
    %116 = tpu.concatenate %106, %109, %112, %115 in 0 : vector<1x128xf32>, vector<1x128xf32>, vector<1x128xf32>, vector<1x128xf32> -> vector<4x128xf32>
    %c0_43 = arith.constant 0 : index
    %c0_44 = arith.constant 0 : index
    %117 = vector.load %arg12[%c0_43, %c0_44] : memref<3x64xf32, #tpu.memory_space<vmem>>, vector<3x64xf32>
    %118 = vector.extract_strided_slice %64 {offsets = [0, 0], sizes = [4, 1], strides = [1, 1]} : vector<4x3xf32> to vector<4x1xf32>
    %119 = vector.extract_strided_slice %117 {offsets = [0, 0], sizes = [1, 64], strides = [1, 1]} : vector<3x64xf32> to vector<1x64xf32>
    %120 = vector.broadcast %118 : vector<4x1xf32> to vector<4x64xf32>
    %121 = vector.broadcast %119 : vector<1x64xf32> to vector<4x64xf32>
    %122 = arith.mulf %120, %121 : vector<4x64xf32>
    %123 = vector.extract_strided_slice %64 {offsets = [0, 1], sizes = [4, 1], strides = [1, 1]} : vector<4x3xf32> to vector<4x1xf32>
    %124 = vector.extract_strided_slice %117 {offsets = [1, 0], sizes = [1, 64], strides = [1, 1]} : vector<3x64xf32> to vector<1x64xf32>
    %125 = vector.broadcast %123 : vector<4x1xf32> to vector<4x64xf32>
    %126 = vector.broadcast %124 : vector<1x64xf32> to vector<4x64xf32>
    %127 = arith.mulf %125, %126 : vector<4x64xf32>
    %128 = arith.addf %122, %127 : vector<4x64xf32>
    %129 = vector.extract_strided_slice %64 {offsets = [0, 2], sizes = [4, 1], strides = [1, 1]} : vector<4x3xf32> to vector<4x1xf32>
    %130 = vector.extract_strided_slice %117 {offsets = [2, 0], sizes = [1, 64], strides = [1, 1]} : vector<3x64xf32> to vector<1x64xf32>
    %131 = vector.broadcast %129 : vector<4x1xf32> to vector<4x64xf32>
    %132 = vector.broadcast %130 : vector<1x64xf32> to vector<4x64xf32>
    %133 = arith.mulf %131, %132 : vector<4x64xf32>
    %134 = arith.addf %128, %133 : vector<4x64xf32>
    %c0_45 = arith.constant 0 : index
    %c0_46 = arith.constant 0 : index
    %135 = vector.load %arg13[%c0_45, %c0_46] : memref<1x64xf32, #tpu.memory_space<vmem>>, vector<1x64xf32>
    %136 = vector.broadcast %135 : vector<1x64xf32> to vector<4x64xf32>
    %137 = arith.addf %134, %136 : vector<4x64xf32>
    %138 = arith.mulf %137, %137 : vector<4x64xf32>
    %139 = arith.mulf %137, %138 : vector<4x64xf32>
    %cst_47 = arith.constant 4.471500e-02 : f32
    %140 = vector.broadcast %cst_47 : f32 to vector<4x64xf32>
    %141 = arith.mulf %140, %139 : vector<4x64xf32>
    %142 = arith.addf %137, %141 : vector<4x64xf32>
    %cst_48 = arith.constant 0.797884583 : f32
    %143 = vector.broadcast %cst_48 : f32 to vector<4x64xf32>
    %144 = arith.mulf %143, %142 : vector<4x64xf32>
    %145 = math.tanh %144 : vector<4x64xf32>
    %cst_49 = arith.constant 1.000000e+00 : f32
    %146 = vector.broadcast %cst_49 : f32 to vector<4x64xf32>
    %147 = arith.addf %146, %145 : vector<4x64xf32>
    %cst_50 = arith.constant 5.000000e-01 : f32
    %148 = vector.broadcast %cst_50 : f32 to vector<4x64xf32>
    %149 = arith.mulf %148, %147 : vector<4x64xf32>
    %150 = arith.mulf %137, %149 : vector<4x64xf32>
    %c0_51 = arith.constant 0 : index
    %c0_52 = arith.constant 0 : index
    %151 = vector.load %arg14[%c0_51, %c0_52] : memref<64x128xf32, #tpu.memory_space<vmem>>, vector<64x128xf32>
    %cst_53 = arith.constant dense<0.000000e+00> : vector<4x128xf32>
    %152 = tpu.matmul %150, %151, %cst_53 {dimension_numbers = #tpu.dot_dimension_numbers<[1], [0], [0], [1], [0, 0, 1, 1], [], []>} : vector<4x64xf32>, vector<64x128xf32>, vector<4x128xf32> -> vector<4x128xf32>
    %c0_54 = arith.constant 0 : index
    %c0_55 = arith.constant 0 : index
    %153 = vector.load %arg15[%c0_54, %c0_55] : memref<1x128xf32, #tpu.memory_space<vmem>>, vector<1x128xf32>
    %154 = vector.broadcast %153 : vector<1x128xf32> to vector<4x128xf32>
    %155 = arith.addf %152, %154 : vector<4x128xf32>
    %156 = arith.addf %116, %155 : vector<4x128xf32>
    %157 = tpu.concatenate %32, %156 in 0 : vector<4x128xf32>, vector<4x128xf32> -> vector<8x128xf32>
    %c0_56 = arith.constant 0 : index
    %c0_57 = arith.constant 0 : index
    %c0_58 = arith.constant 0 : index
    %158 = vector.load %arg16[%c0_56, %c0_57, %c0_58] : memref<2x128x384xf32, #tpu.memory_space<vmem>>, vector<1x128x384xf32>
    %159 = vector.shape_cast %158 : vector<1x128x384xf32> to vector<128x384xf32>
    %c0_59 = arith.constant 0 : index
    %c0_60 = arith.constant 0 : index
    %c0_61 = arith.constant 0 : index
    %160 = vector.load %arg18[%c0_59, %c0_60, %c0_61] : memref<2x128x128xf32, #tpu.memory_space<vmem>>, vector<1x128x128xf32>
    %161 = vector.shape_cast %160 : vector<1x128x128xf32> to vector<128x128xf32>
    %cst_62 = arith.constant dense<0.000000e+00> : vector<8x384xf32>
    %162 = tpu.matmul %157, %159, %cst_62 {dimension_numbers = #tpu.dot_dimension_numbers<[1], [0], [0], [1], [0, 0, 1, 1], [], []>} : vector<8x128xf32>, vector<128x384xf32>, vector<8x384xf32> -> vector<8x384xf32>
    %c0_63 = arith.constant 0 : index
    %c0_64 = arith.constant 0 : index
    %c0_65 = arith.constant 0 : index
    %163 = vector.load %arg17[%c0_63, %c0_64, %c0_65] : memref<2x1x384xf32, #tpu.memory_space<vmem>>, vector<1x1x384xf32>
    %164 = vector.shape_cast %163 : vector<1x1x384xf32> to vector<1x384xf32>
    %165 = vector.broadcast %164 : vector<1x384xf32> to vector<8x384xf32>
    %166 = arith.addf %162, %165 : vector<8x384xf32>
    %167 = vector.extract_strided_slice %166 {offsets = [0, 0], sizes = [8, 128], strides = [1, 1]} : vector<8x384xf32> to vector<8x128xf32>
    %168 = vector.extract_strided_slice %166 {offsets = [0, 128], sizes = [8, 128], strides = [1, 1]} : vector<8x384xf32> to vector<8x128xf32>
    %169 = vector.extract_strided_slice %166 {offsets = [0, 256], sizes = [8, 128], strides = [1, 1]} : vector<8x384xf32> to vector<8x128xf32>
    %170 = vector.extract_strided_slice %167 {offsets = [0, 0], sizes = [8, 32], strides = [1, 1]} : vector<8x128xf32> to vector<8x32xf32>
    %171 = vector.extract_strided_slice %168 {offsets = [0, 0], sizes = [8, 32], strides = [1, 1]} : vector<8x128xf32> to vector<8x32xf32>
    %172 = vector.extract_strided_slice %169 {offsets = [0, 0], sizes = [8, 32], strides = [1, 1]} : vector<8x128xf32> to vector<8x32xf32>
    %cst_66 = arith.constant dense<0.000000e+00> : vector<8x8xf32>
    %173 = tpu.matmul %170, %171, %cst_66 {dimension_numbers = #tpu.dot_dimension_numbers<[1], [1], [0], [0], [0, 0, 1, 0], [], []>} : vector<8x32xf32>, vector<8x32xf32>, vector<8x8xf32> -> vector<8x8xf32>
    %cst_67 = arith.constant 0.176776692 : f32
    %174 = vector.broadcast %cst_67 : f32 to vector<8x8xf32>
    %175 = arith.mulf %173, %174 : vector<8x8xf32>
    %cst_68 = arith.constant dense<0xFF800000> : vector<8xf32>
    %176 = vector.multi_reduction <maximumf>, %175, %cst_68 [1] : vector<8x8xf32> to vector<8xf32>
    %cst_69 = arith.constant 0xFF800000 : f32
    %177 = vector.broadcast %cst_69 : f32 to vector<8xf32>
    %178 = arith.maximumf %177, %176 : vector<8xf32>
    %179 = vector.shape_cast %178 : vector<8xf32> to vector<8x1xf32>
    %180 = vector.broadcast %179 : vector<8x1xf32> to vector<8x8xf32>
    %181 = arith.subf %175, %180 : vector<8x8xf32>
    %182 = math.exp %181 : vector<8x8xf32>
    %cst_70 = arith.constant dense<0.000000e+00> : vector<8xf32>
    %183 = vector.multi_reduction <add>, %182, %cst_70 [1] : vector<8x8xf32> to vector<8xf32>
    %184 = vector.shape_cast %183 : vector<8xf32> to vector<8x1xf32>
    %185 = vector.broadcast %184 : vector<8x1xf32> to vector<8x8xf32>
    %186 = arith.divf %182, %185 : vector<8x8xf32>
    %cst_71 = arith.constant dense<0.000000e+00> : vector<8x32xf32>
    %187 = tpu.matmul %186, %172, %cst_71 {dimension_numbers = #tpu.dot_dimension_numbers<[1], [0], [0], [1], [0, 0, 1, 1], [], []>} : vector<8x8xf32>, vector<8x32xf32>, vector<8x32xf32> -> vector<8x32xf32>
    %188 = vector.extract_strided_slice %161 {offsets = [0, 0], sizes = [32, 128], strides = [1, 1]} : vector<128x128xf32> to vector<32x128xf32>
    %cst_72 = arith.constant dense<0.000000e+00> : vector<8x128xf32>
    %189 = tpu.matmul %187, %188, %cst_72 {dimension_numbers = #tpu.dot_dimension_numbers<[1], [0], [0], [1], [0, 0, 1, 1], [], []>} : vector<8x32xf32>, vector<32x128xf32>, vector<8x128xf32> -> vector<8x128xf32>
    %190 = vector.extract_strided_slice %167 {offsets = [0, 32], sizes = [8, 32], strides = [1, 1]} : vector<8x128xf32> to vector<8x32xf32>
    %191 = vector.extract_strided_slice %168 {offsets = [0, 32], sizes = [8, 32], strides = [1, 1]} : vector<8x128xf32> to vector<8x32xf32>
    %192 = vector.extract_strided_slice %169 {offsets = [0, 32], sizes = [8, 32], strides = [1, 1]} : vector<8x128xf32> to vector<8x32xf32>
    %cst_73 = arith.constant dense<0.000000e+00> : vector<8x8xf32>
    %193 = tpu.matmul %190, %191, %cst_73 {dimension_numbers = #tpu.dot_dimension_numbers<[1], [1], [0], [0], [0, 0, 1, 0], [], []>} : vector<8x32xf32>, vector<8x32xf32>, vector<8x8xf32> -> vector<8x8xf32>
    %cst_74 = arith.constant 0.176776692 : f32
    %194 = vector.broadcast %cst_74 : f32 to vector<8x8xf32>
    %195 = arith.mulf %193, %194 : vector<8x8xf32>
    %cst_75 = arith.constant dense<0xFF800000> : vector<8xf32>
    %196 = vector.multi_reduction <maximumf>, %195, %cst_75 [1] : vector<8x8xf32> to vector<8xf32>
    %cst_76 = arith.constant 0xFF800000 : f32
    %197 = vector.broadcast %cst_76 : f32 to vector<8xf32>
    %198 = arith.maximumf %197, %196 : vector<8xf32>
    %199 = vector.shape_cast %198 : vector<8xf32> to vector<8x1xf32>
    %200 = vector.broadcast %199 : vector<8x1xf32> to vector<8x8xf32>
    %201 = arith.subf %195, %200 : vector<8x8xf32>
    %202 = math.exp %201 : vector<8x8xf32>
    %cst_77 = arith.constant dense<0.000000e+00> : vector<8xf32>
    %203 = vector.multi_reduction <add>, %202, %cst_77 [1] : vector<8x8xf32> to vector<8xf32>
    %204 = vector.shape_cast %203 : vector<8xf32> to vector<8x1xf32>
    %205 = vector.broadcast %204 : vector<8x1xf32> to vector<8x8xf32>
    %206 = arith.divf %202, %205 : vector<8x8xf32>
    %cst_78 = arith.constant dense<0.000000e+00> : vector<8x32xf32>
    %207 = tpu.matmul %206, %192, %cst_78 {dimension_numbers = #tpu.dot_dimension_numbers<[1], [0], [0], [1], [0, 0, 1, 1], [], []>} : vector<8x8xf32>, vector<8x32xf32>, vector<8x32xf32> -> vector<8x32xf32>
    %208 = vector.extract_strided_slice %161 {offsets = [32, 0], sizes = [32, 128], strides = [1, 1]} : vector<128x128xf32> to vector<32x128xf32>
    %cst_79 = arith.constant dense<0.000000e+00> : vector<8x128xf32>
    %209 = tpu.matmul %207, %208, %cst_79 {dimension_numbers = #tpu.dot_dimension_numbers<[1], [0], [0], [1], [0, 0, 1, 1], [], []>} : vector<8x32xf32>, vector<32x128xf32>, vector<8x128xf32> -> vector<8x128xf32>
    %210 = arith.addf %189, %209 : vector<8x128xf32>
    %211 = vector.extract_strided_slice %167 {offsets = [0, 64], sizes = [8, 32], strides = [1, 1]} : vector<8x128xf32> to vector<8x32xf32>
    %212 = vector.extract_strided_slice %168 {offsets = [0, 64], sizes = [8, 32], strides = [1, 1]} : vector<8x128xf32> to vector<8x32xf32>
    %213 = vector.extract_strided_slice %169 {offsets = [0, 64], sizes = [8, 32], strides = [1, 1]} : vector<8x128xf32> to vector<8x32xf32>
    %cst_80 = arith.constant dense<0.000000e+00> : vector<8x8xf32>
    %214 = tpu.matmul %211, %212, %cst_80 {dimension_numbers = #tpu.dot_dimension_numbers<[1], [1], [0], [0], [0, 0, 1, 0], [], []>} : vector<8x32xf32>, vector<8x32xf32>, vector<8x8xf32> -> vector<8x8xf32>
    %cst_81 = arith.constant 0.176776692 : f32
    %215 = vector.broadcast %cst_81 : f32 to vector<8x8xf32>
    %216 = arith.mulf %214, %215 : vector<8x8xf32>
    %cst_82 = arith.constant dense<0xFF800000> : vector<8xf32>
    %217 = vector.multi_reduction <maximumf>, %216, %cst_82 [1] : vector<8x8xf32> to vector<8xf32>
    %cst_83 = arith.constant 0xFF800000 : f32
    %218 = vector.broadcast %cst_83 : f32 to vector<8xf32>
    %219 = arith.maximumf %218, %217 : vector<8xf32>
    %220 = vector.shape_cast %219 : vector<8xf32> to vector<8x1xf32>
    %221 = vector.broadcast %220 : vector<8x1xf32> to vector<8x8xf32>
    %222 = arith.subf %216, %221 : vector<8x8xf32>
    %223 = math.exp %222 : vector<8x8xf32>
    %cst_84 = arith.constant dense<0.000000e+00> : vector<8xf32>
    %224 = vector.multi_reduction <add>, %223, %cst_84 [1] : vector<8x8xf32> to vector<8xf32>
    %225 = vector.shape_cast %224 : vector<8xf32> to vector<8x1xf32>
    %226 = vector.broadcast %225 : vector<8x1xf32> to vector<8x8xf32>
    %227 = arith.divf %223, %226 : vector<8x8xf32>
    %cst_85 = arith.constant dense<0.000000e+00> : vector<8x32xf32>
    %228 = tpu.matmul %227, %213, %cst_85 {dimension_numbers = #tpu.dot_dimension_numbers<[1], [0], [0], [1], [0, 0, 1, 1], [], []>} : vector<8x8xf32>, vector<8x32xf32>, vector<8x32xf32> -> vector<8x32xf32>
    %229 = vector.extract_strided_slice %161 {offsets = [64, 0], sizes = [32, 128], strides = [1, 1]} : vector<128x128xf32> to vector<32x128xf32>
    %cst_86 = arith.constant dense<0.000000e+00> : vector<8x128xf32>
    %230 = tpu.matmul %228, %229, %cst_86 {dimension_numbers = #tpu.dot_dimension_numbers<[1], [0], [0], [1], [0, 0, 1, 1], [], []>} : vector<8x32xf32>, vector<32x128xf32>, vector<8x128xf32> -> vector<8x128xf32>
    %231 = arith.addf %210, %230 : vector<8x128xf32>
    %232 = vector.extract_strided_slice %167 {offsets = [0, 96], sizes = [8, 32], strides = [1, 1]} : vector<8x128xf32> to vector<8x32xf32>
    %233 = vector.extract_strided_slice %168 {offsets = [0, 96], sizes = [8, 32], strides = [1, 1]} : vector<8x128xf32> to vector<8x32xf32>
    %234 = vector.extract_strided_slice %169 {offsets = [0, 96], sizes = [8, 32], strides = [1, 1]} : vector<8x128xf32> to vector<8x32xf32>
    %cst_87 = arith.constant dense<0.000000e+00> : vector<8x8xf32>
    %235 = tpu.matmul %232, %233, %cst_87 {dimension_numbers = #tpu.dot_dimension_numbers<[1], [1], [0], [0], [0, 0, 1, 0], [], []>} : vector<8x32xf32>, vector<8x32xf32>, vector<8x8xf32> -> vector<8x8xf32>
    %cst_88 = arith.constant 0.176776692 : f32
    %236 = vector.broadcast %cst_88 : f32 to vector<8x8xf32>
    %237 = arith.mulf %235, %236 : vector<8x8xf32>
    %cst_89 = arith.constant dense<0xFF800000> : vector<8xf32>
    %238 = vector.multi_reduction <maximumf>, %237, %cst_89 [1] : vector<8x8xf32> to vector<8xf32>
    %cst_90 = arith.constant 0xFF800000 : f32
    %239 = vector.broadcast %cst_90 : f32 to vector<8xf32>
    %240 = arith.maximumf %239, %238 : vector<8xf32>
    %241 = vector.shape_cast %240 : vector<8xf32> to vector<8x1xf32>
    %242 = vector.broadcast %241 : vector<8x1xf32> to vector<8x8xf32>
    %243 = arith.subf %237, %242 : vector<8x8xf32>
    %244 = math.exp %243 : vector<8x8xf32>
    %cst_91 = arith.constant dense<0.000000e+00> : vector<8xf32>
    %245 = vector.multi_reduction <add>, %244, %cst_91 [1] : vector<8x8xf32> to vector<8xf32>
    %246 = vector.shape_cast %245 : vector<8xf32> to vector<8x1xf32>
    %247 = vector.broadcast %246 : vector<8x1xf32> to vector<8x8xf32>
    %248 = arith.divf %244, %247 : vector<8x8xf32>
    %cst_92 = arith.constant dense<0.000000e+00> : vector<8x32xf32>
    %249 = tpu.matmul %248, %234, %cst_92 {dimension_numbers = #tpu.dot_dimension_numbers<[1], [0], [0], [1], [0, 0, 1, 1], [], []>} : vector<8x8xf32>, vector<8x32xf32>, vector<8x32xf32> -> vector<8x32xf32>
    %250 = vector.extract_strided_slice %161 {offsets = [96, 0], sizes = [32, 128], strides = [1, 1]} : vector<128x128xf32> to vector<32x128xf32>
    %cst_93 = arith.constant dense<0.000000e+00> : vector<8x128xf32>
    %251 = tpu.matmul %249, %250, %cst_93 {dimension_numbers = #tpu.dot_dimension_numbers<[1], [0], [0], [1], [0, 0, 1, 1], [], []>} : vector<8x32xf32>, vector<32x128xf32>, vector<8x128xf32> -> vector<8x128xf32>
    %252 = arith.addf %231, %251 : vector<8x128xf32>
    %c0_94 = arith.constant 0 : index
    %c0_95 = arith.constant 0 : index
    %c0_96 = arith.constant 0 : index
    %253 = vector.load %arg19[%c0_94, %c0_95, %c0_96] : memref<2x1x128xf32, #tpu.memory_space<vmem>>, vector<1x1x128xf32>
    %254 = vector.shape_cast %253 : vector<1x1x128xf32> to vector<1x128xf32>
    %255 = vector.broadcast %254 : vector<1x128xf32> to vector<8x128xf32>
    %256 = arith.addf %252, %255 : vector<8x128xf32>
    %257 = arith.addf %157, %256 : vector<8x128xf32>
    %c0_97 = arith.constant 0 : index
    %c0_98 = arith.constant 0 : index
    %c0_99 = arith.constant 0 : index
    %258 = vector.load %arg20[%c0_97, %c0_98, %c0_99] : memref<2x1x128xf32, #tpu.memory_space<vmem>>, vector<1x1x128xf32>
    %259 = vector.shape_cast %258 : vector<1x1x128xf32> to vector<1x128xf32>
    %c0_100 = arith.constant 0 : index
    %c0_101 = arith.constant 0 : index
    %c0_102 = arith.constant 0 : index
    %260 = vector.load %arg21[%c0_100, %c0_101, %c0_102] : memref<2x1x128xf32, #tpu.memory_space<vmem>>, vector<1x1x128xf32>
    %261 = vector.shape_cast %260 : vector<1x1x128xf32> to vector<1x128xf32>
    %cst_103 = arith.constant dense<0.000000e+00> : vector<8xf32>
    %262 = vector.multi_reduction <add>, %257, %cst_103 [1] : vector<8x128xf32> to vector<8xf32>
    %263 = vector.shape_cast %262 : vector<8xf32> to vector<8x1xf32>
    %cst_104 = arith.constant 1.280000e+02 : f32
    %264 = vector.broadcast %cst_104 : f32 to vector<8x1xf32>
    %265 = arith.divf %263, %264 : vector<8x1xf32>
    %266 = vector.broadcast %265 : vector<8x1xf32> to vector<8x128xf32>
    %267 = arith.subf %257, %266 : vector<8x128xf32>
    %268 = arith.mulf %267, %267 : vector<8x128xf32>
    %cst_105 = arith.constant dense<0.000000e+00> : vector<8xf32>
    %269 = vector.multi_reduction <add>, %268, %cst_105 [1] : vector<8x128xf32> to vector<8xf32>
    %270 = vector.shape_cast %269 : vector<8xf32> to vector<8x1xf32>
    %cst_106 = arith.constant 1.280000e+02 : f32
    %271 = vector.broadcast %cst_106 : f32 to vector<8x1xf32>
    %272 = arith.divf %270, %271 : vector<8x1xf32>
    %273 = vector.broadcast %265 : vector<8x1xf32> to vector<8x128xf32>
    %274 = arith.subf %257, %273 : vector<8x128xf32>
    %cst_107 = arith.constant 9.99999996E-13 : f32
    %275 = vector.broadcast %cst_107 : f32 to vector<8x1xf32>
    %276 = arith.addf %272, %275 : vector<8x1xf32>
    %277 = math.rsqrt %276 : vector<8x1xf32>
    %278 = vector.broadcast %277 : vector<8x1xf32> to vector<8x128xf32>
    %279 = arith.mulf %274, %278 : vector<8x128xf32>
    %280 = vector.broadcast %259 : vector<1x128xf32> to vector<8x128xf32>
    %281 = arith.mulf %279, %280 : vector<8x128xf32>
    %282 = vector.broadcast %261 : vector<1x128xf32> to vector<8x128xf32>
    %283 = arith.addf %281, %282 : vector<8x128xf32>
    %c0_108 = arith.constant 0 : index
    %c0_109 = arith.constant 0 : index
    %c0_110 = arith.constant 0 : index
    %284 = vector.load %arg22[%c0_108, %c0_109, %c0_110] : memref<2x128x256xf32, #tpu.memory_space<vmem>>, vector<1x128x256xf32>
    %285 = vector.shape_cast %284 : vector<1x128x256xf32> to vector<128x256xf32>
    %cst_111 = arith.constant dense<0.000000e+00> : vector<8x256xf32>
    %286 = tpu.matmul %283, %285, %cst_111 {dimension_numbers = #tpu.dot_dimension_numbers<[1], [0], [0], [1], [0, 0, 1, 1], [], []>} : vector<8x128xf32>, vector<128x256xf32>, vector<8x256xf32> -> vector<8x256xf32>
    %c0_112 = arith.constant 0 : index
    %c0_113 = arith.constant 0 : index
    %c0_114 = arith.constant 0 : index
    %287 = vector.load %arg23[%c0_112, %c0_113, %c0_114] : memref<2x1x256xf32, #tpu.memory_space<vmem>>, vector<1x1x256xf32>
    %288 = vector.shape_cast %287 : vector<1x1x256xf32> to vector<1x256xf32>
    %289 = vector.broadcast %288 : vector<1x256xf32> to vector<8x256xf32>
    %290 = arith.addf %286, %289 : vector<8x256xf32>
    %291 = arith.mulf %290, %290 : vector<8x256xf32>
    %292 = arith.mulf %290, %291 : vector<8x256xf32>
    %cst_115 = arith.constant 4.471500e-02 : f32
    %293 = vector.broadcast %cst_115 : f32 to vector<8x256xf32>
    %294 = arith.mulf %293, %292 : vector<8x256xf32>
    %295 = arith.addf %290, %294 : vector<8x256xf32>
    %cst_116 = arith.constant 0.797884583 : f32
    %296 = vector.broadcast %cst_116 : f32 to vector<8x256xf32>
    %297 = arith.mulf %296, %295 : vector<8x256xf32>
    %298 = math.tanh %297 : vector<8x256xf32>
    %cst_117 = arith.constant 1.000000e+00 : f32
    %299 = vector.broadcast %cst_117 : f32 to vector<8x256xf32>
    %300 = arith.addf %299, %298 : vector<8x256xf32>
    %cst_118 = arith.constant 5.000000e-01 : f32
    %301 = vector.broadcast %cst_118 : f32 to vector<8x256xf32>
    %302 = arith.mulf %301, %300 : vector<8x256xf32>
    %303 = arith.mulf %290, %302 : vector<8x256xf32>
    %c0_119 = arith.constant 0 : index
    %c0_120 = arith.constant 0 : index
    %c0_121 = arith.constant 0 : index
    %304 = vector.load %arg24[%c0_119, %c0_120, %c0_121] : memref<2x256x128xf32, #tpu.memory_space<vmem>>, vector<1x256x128xf32>
    %305 = vector.shape_cast %304 : vector<1x256x128xf32> to vector<256x128xf32>
    %cst_122 = arith.constant dense<0.000000e+00> : vector<8x128xf32>
    %306 = tpu.matmul %303, %305, %cst_122 {dimension_numbers = #tpu.dot_dimension_numbers<[1], [0], [0], [1], [0, 0, 1, 1], [], []>} : vector<8x256xf32>, vector<256x128xf32>, vector<8x128xf32> -> vector<8x128xf32>
    %c0_123 = arith.constant 0 : index
    %c0_124 = arith.constant 0 : index
    %c0_125 = arith.constant 0 : index
    %307 = vector.load %arg25[%c0_123, %c0_124, %c0_125] : memref<2x1x128xf32, #tpu.memory_space<vmem>>, vector<1x1x128xf32>
    %308 = vector.shape_cast %307 : vector<1x1x128xf32> to vector<1x128xf32>
    %309 = vector.broadcast %308 : vector<1x128xf32> to vector<8x128xf32>
    %310 = arith.addf %306, %309 : vector<8x128xf32>
    %311 = arith.addf %283, %310 : vector<8x128xf32>
    %c0_126 = arith.constant 0 : index
    %c0_127 = arith.constant 0 : index
    %c0_128 = arith.constant 0 : index
    %312 = vector.load %arg26[%c0_126, %c0_127, %c0_128] : memref<2x1x128xf32, #tpu.memory_space<vmem>>, vector<1x1x128xf32>
    %313 = vector.shape_cast %312 : vector<1x1x128xf32> to vector<1x128xf32>
    %c0_129 = arith.constant 0 : index
    %c0_130 = arith.constant 0 : index
    %c0_131 = arith.constant 0 : index
    %314 = vector.load %arg27[%c0_129, %c0_130, %c0_131] : memref<2x1x128xf32, #tpu.memory_space<vmem>>, vector<1x1x128xf32>
    %315 = vector.shape_cast %314 : vector<1x1x128xf32> to vector<1x128xf32>
    %cst_132 = arith.constant dense<0.000000e+00> : vector<8xf32>
    %316 = vector.multi_reduction <add>, %311, %cst_132 [1] : vector<8x128xf32> to vector<8xf32>
    %317 = vector.shape_cast %316 : vector<8xf32> to vector<8x1xf32>
    %cst_133 = arith.constant 1.280000e+02 : f32
    %318 = vector.broadcast %cst_133 : f32 to vector<8x1xf32>
    %319 = arith.divf %317, %318 : vector<8x1xf32>
    %320 = vector.broadcast %319 : vector<8x1xf32> to vector<8x128xf32>
    %321 = arith.subf %311, %320 : vector<8x128xf32>
    %322 = arith.mulf %321, %321 : vector<8x128xf32>
    %cst_134 = arith.constant dense<0.000000e+00> : vector<8xf32>
    %323 = vector.multi_reduction <add>, %322, %cst_134 [1] : vector<8x128xf32> to vector<8xf32>
    %324 = vector.shape_cast %323 : vector<8xf32> to vector<8x1xf32>
    %cst_135 = arith.constant 1.280000e+02 : f32
    %325 = vector.broadcast %cst_135 : f32 to vector<8x1xf32>
    %326 = arith.divf %324, %325 : vector<8x1xf32>
    %327 = vector.broadcast %319 : vector<8x1xf32> to vector<8x128xf32>
    %328 = arith.subf %311, %327 : vector<8x128xf32>
    %cst_136 = arith.constant 9.99999996E-13 : f32
    %329 = vector.broadcast %cst_136 : f32 to vector<8x1xf32>
    %330 = arith.addf %326, %329 : vector<8x1xf32>
    %331 = math.rsqrt %330 : vector<8x1xf32>
    %332 = vector.broadcast %331 : vector<8x1xf32> to vector<8x128xf32>
    %333 = arith.mulf %328, %332 : vector<8x128xf32>
    %334 = vector.broadcast %313 : vector<1x128xf32> to vector<8x128xf32>
    %335 = arith.mulf %333, %334 : vector<8x128xf32>
    %336 = vector.broadcast %315 : vector<1x128xf32> to vector<8x128xf32>
    %337 = arith.addf %335, %336 : vector<8x128xf32>
    %c1 = arith.constant 1 : index
    %c0_137 = arith.constant 0 : index
    %c0_138 = arith.constant 0 : index
    %338 = vector.load %arg16[%c1, %c0_137, %c0_138] : memref<2x128x384xf32, #tpu.memory_space<vmem>>, vector<1x128x384xf32>
    %339 = vector.shape_cast %338 : vector<1x128x384xf32> to vector<128x384xf32>
    %c1_139 = arith.constant 1 : index
    %c0_140 = arith.constant 0 : index
    %c0_141 = arith.constant 0 : index
    %340 = vector.load %arg18[%c1_139, %c0_140, %c0_141] : memref<2x128x128xf32, #tpu.memory_space<vmem>>, vector<1x128x128xf32>
    %341 = vector.shape_cast %340 : vector<1x128x128xf32> to vector<128x128xf32>
    %cst_142 = arith.constant dense<0.000000e+00> : vector<8x384xf32>
    %342 = tpu.matmul %337, %339, %cst_142 {dimension_numbers = #tpu.dot_dimension_numbers<[1], [0], [0], [1], [0, 0, 1, 1], [], []>} : vector<8x128xf32>, vector<128x384xf32>, vector<8x384xf32> -> vector<8x384xf32>
    %c1_143 = arith.constant 1 : index
    %c0_144 = arith.constant 0 : index
    %c0_145 = arith.constant 0 : index
    %343 = vector.load %arg17[%c1_143, %c0_144, %c0_145] : memref<2x1x384xf32, #tpu.memory_space<vmem>>, vector<1x1x384xf32>
    %344 = vector.shape_cast %343 : vector<1x1x384xf32> to vector<1x384xf32>
    %345 = vector.broadcast %344 : vector<1x384xf32> to vector<8x384xf32>
    %346 = arith.addf %342, %345 : vector<8x384xf32>
    %347 = vector.extract_strided_slice %346 {offsets = [0, 0], sizes = [8, 128], strides = [1, 1]} : vector<8x384xf32> to vector<8x128xf32>
    %348 = vector.extract_strided_slice %346 {offsets = [0, 128], sizes = [8, 128], strides = [1, 1]} : vector<8x384xf32> to vector<8x128xf32>
    %349 = vector.extract_strided_slice %346 {offsets = [0, 256], sizes = [8, 128], strides = [1, 1]} : vector<8x384xf32> to vector<8x128xf32>
    %350 = vector.extract_strided_slice %347 {offsets = [0, 0], sizes = [8, 32], strides = [1, 1]} : vector<8x128xf32> to vector<8x32xf32>
    %351 = vector.extract_strided_slice %348 {offsets = [0, 0], sizes = [8, 32], strides = [1, 1]} : vector<8x128xf32> to vector<8x32xf32>
    %352 = vector.extract_strided_slice %349 {offsets = [0, 0], sizes = [8, 32], strides = [1, 1]} : vector<8x128xf32> to vector<8x32xf32>
    %cst_146 = arith.constant dense<0.000000e+00> : vector<8x8xf32>
    %353 = tpu.matmul %350, %351, %cst_146 {dimension_numbers = #tpu.dot_dimension_numbers<[1], [1], [0], [0], [0, 0, 1, 0], [], []>} : vector<8x32xf32>, vector<8x32xf32>, vector<8x8xf32> -> vector<8x8xf32>
    %cst_147 = arith.constant 0.176776692 : f32
    %354 = vector.broadcast %cst_147 : f32 to vector<8x8xf32>
    %355 = arith.mulf %353, %354 : vector<8x8xf32>
    %cst_148 = arith.constant dense<0xFF800000> : vector<8xf32>
    %356 = vector.multi_reduction <maximumf>, %355, %cst_148 [1] : vector<8x8xf32> to vector<8xf32>
    %cst_149 = arith.constant 0xFF800000 : f32
    %357 = vector.broadcast %cst_149 : f32 to vector<8xf32>
    %358 = arith.maximumf %357, %356 : vector<8xf32>
    %359 = vector.shape_cast %358 : vector<8xf32> to vector<8x1xf32>
    %360 = vector.broadcast %359 : vector<8x1xf32> to vector<8x8xf32>
    %361 = arith.subf %355, %360 : vector<8x8xf32>
    %362 = math.exp %361 : vector<8x8xf32>
    %cst_150 = arith.constant dense<0.000000e+00> : vector<8xf32>
    %363 = vector.multi_reduction <add>, %362, %cst_150 [1] : vector<8x8xf32> to vector<8xf32>
    %364 = vector.shape_cast %363 : vector<8xf32> to vector<8x1xf32>
    %365 = vector.broadcast %364 : vector<8x1xf32> to vector<8x8xf32>
    %366 = arith.divf %362, %365 : vector<8x8xf32>
    %cst_151 = arith.constant dense<0.000000e+00> : vector<8x32xf32>
    %367 = tpu.matmul %366, %352, %cst_151 {dimension_numbers = #tpu.dot_dimension_numbers<[1], [0], [0], [1], [0, 0, 1, 1], [], []>} : vector<8x8xf32>, vector<8x32xf32>, vector<8x32xf32> -> vector<8x32xf32>
    %368 = vector.extract_strided_slice %341 {offsets = [0, 0], sizes = [32, 128], strides = [1, 1]} : vector<128x128xf32> to vector<32x128xf32>
    %cst_152 = arith.constant dense<0.000000e+00> : vector<8x128xf32>
    %369 = tpu.matmul %367, %368, %cst_152 {dimension_numbers = #tpu.dot_dimension_numbers<[1], [0], [0], [1], [0, 0, 1, 1], [], []>} : vector<8x32xf32>, vector<32x128xf32>, vector<8x128xf32> -> vector<8x128xf32>
    %370 = vector.extract_strided_slice %347 {offsets = [0, 32], sizes = [8, 32], strides = [1, 1]} : vector<8x128xf32> to vector<8x32xf32>
    %371 = vector.extract_strided_slice %348 {offsets = [0, 32], sizes = [8, 32], strides = [1, 1]} : vector<8x128xf32> to vector<8x32xf32>
    %372 = vector.extract_strided_slice %349 {offsets = [0, 32], sizes = [8, 32], strides = [1, 1]} : vector<8x128xf32> to vector<8x32xf32>
    %cst_153 = arith.constant dense<0.000000e+00> : vector<8x8xf32>
    %373 = tpu.matmul %370, %371, %cst_153 {dimension_numbers = #tpu.dot_dimension_numbers<[1], [1], [0], [0], [0, 0, 1, 0], [], []>} : vector<8x32xf32>, vector<8x32xf32>, vector<8x8xf32> -> vector<8x8xf32>
    %cst_154 = arith.constant 0.176776692 : f32
    %374 = vector.broadcast %cst_154 : f32 to vector<8x8xf32>
    %375 = arith.mulf %373, %374 : vector<8x8xf32>
    %cst_155 = arith.constant dense<0xFF800000> : vector<8xf32>
    %376 = vector.multi_reduction <maximumf>, %375, %cst_155 [1] : vector<8x8xf32> to vector<8xf32>
    %cst_156 = arith.constant 0xFF800000 : f32
    %377 = vector.broadcast %cst_156 : f32 to vector<8xf32>
    %378 = arith.maximumf %377, %376 : vector<8xf32>
    %379 = vector.shape_cast %378 : vector<8xf32> to vector<8x1xf32>
    %380 = vector.broadcast %379 : vector<8x1xf32> to vector<8x8xf32>
    %381 = arith.subf %375, %380 : vector<8x8xf32>
    %382 = math.exp %381 : vector<8x8xf32>
    %cst_157 = arith.constant dense<0.000000e+00> : vector<8xf32>
    %383 = vector.multi_reduction <add>, %382, %cst_157 [1] : vector<8x8xf32> to vector<8xf32>
    %384 = vector.shape_cast %383 : vector<8xf32> to vector<8x1xf32>
    %385 = vector.broadcast %384 : vector<8x1xf32> to vector<8x8xf32>
    %386 = arith.divf %382, %385 : vector<8x8xf32>
    %cst_158 = arith.constant dense<0.000000e+00> : vector<8x32xf32>
    %387 = tpu.matmul %386, %372, %cst_158 {dimension_numbers = #tpu.dot_dimension_numbers<[1], [0], [0], [1], [0, 0, 1, 1], [], []>} : vector<8x8xf32>, vector<8x32xf32>, vector<8x32xf32> -> vector<8x32xf32>
    %388 = vector.extract_strided_slice %341 {offsets = [32, 0], sizes = [32, 128], strides = [1, 1]} : vector<128x128xf32> to vector<32x128xf32>
    %cst_159 = arith.constant dense<0.000000e+00> : vector<8x128xf32>
    %389 = tpu.matmul %387, %388, %cst_159 {dimension_numbers = #tpu.dot_dimension_numbers<[1], [0], [0], [1], [0, 0, 1, 1], [], []>} : vector<8x32xf32>, vector<32x128xf32>, vector<8x128xf32> -> vector<8x128xf32>
    %390 = arith.addf %369, %389 : vector<8x128xf32>
    %391 = vector.extract_strided_slice %347 {offsets = [0, 64], sizes = [8, 32], strides = [1, 1]} : vector<8x128xf32> to vector<8x32xf32>
    %392 = vector.extract_strided_slice %348 {offsets = [0, 64], sizes = [8, 32], strides = [1, 1]} : vector<8x128xf32> to vector<8x32xf32>
    %393 = vector.extract_strided_slice %349 {offsets = [0, 64], sizes = [8, 32], strides = [1, 1]} : vector<8x128xf32> to vector<8x32xf32>
    %cst_160 = arith.constant dense<0.000000e+00> : vector<8x8xf32>
    %394 = tpu.matmul %391, %392, %cst_160 {dimension_numbers = #tpu.dot_dimension_numbers<[1], [1], [0], [0], [0, 0, 1, 0], [], []>} : vector<8x32xf32>, vector<8x32xf32>, vector<8x8xf32> -> vector<8x8xf32>
    %cst_161 = arith.constant 0.176776692 : f32
    %395 = vector.broadcast %cst_161 : f32 to vector<8x8xf32>
    %396 = arith.mulf %394, %395 : vector<8x8xf32>
    %cst_162 = arith.constant dense<0xFF800000> : vector<8xf32>
    %397 = vector.multi_reduction <maximumf>, %396, %cst_162 [1] : vector<8x8xf32> to vector<8xf32>
    %cst_163 = arith.constant 0xFF800000 : f32
    %398 = vector.broadcast %cst_163 : f32 to vector<8xf32>
    %399 = arith.maximumf %398, %397 : vector<8xf32>
    %400 = vector.shape_cast %399 : vector<8xf32> to vector<8x1xf32>
    %401 = vector.broadcast %400 : vector<8x1xf32> to vector<8x8xf32>
    %402 = arith.subf %396, %401 : vector<8x8xf32>
    %403 = math.exp %402 : vector<8x8xf32>
    %cst_164 = arith.constant dense<0.000000e+00> : vector<8xf32>
    %404 = vector.multi_reduction <add>, %403, %cst_164 [1] : vector<8x8xf32> to vector<8xf32>
    %405 = vector.shape_cast %404 : vector<8xf32> to vector<8x1xf32>
    %406 = vector.broadcast %405 : vector<8x1xf32> to vector<8x8xf32>
    %407 = arith.divf %403, %406 : vector<8x8xf32>
    %cst_165 = arith.constant dense<0.000000e+00> : vector<8x32xf32>
    %408 = tpu.matmul %407, %393, %cst_165 {dimension_numbers = #tpu.dot_dimension_numbers<[1], [0], [0], [1], [0, 0, 1, 1], [], []>} : vector<8x8xf32>, vector<8x32xf32>, vector<8x32xf32> -> vector<8x32xf32>
    %409 = vector.extract_strided_slice %341 {offsets = [64, 0], sizes = [32, 128], strides = [1, 1]} : vector<128x128xf32> to vector<32x128xf32>
    %cst_166 = arith.constant dense<0.000000e+00> : vector<8x128xf32>
    %410 = tpu.matmul %408, %409, %cst_166 {dimension_numbers = #tpu.dot_dimension_numbers<[1], [0], [0], [1], [0, 0, 1, 1], [], []>} : vector<8x32xf32>, vector<32x128xf32>, vector<8x128xf32> -> vector<8x128xf32>
    %411 = arith.addf %390, %410 : vector<8x128xf32>
    %412 = vector.extract_strided_slice %347 {offsets = [0, 96], sizes = [8, 32], strides = [1, 1]} : vector<8x128xf32> to vector<8x32xf32>
    %413 = vector.extract_strided_slice %348 {offsets = [0, 96], sizes = [8, 32], strides = [1, 1]} : vector<8x128xf32> to vector<8x32xf32>
    %414 = vector.extract_strided_slice %349 {offsets = [0, 96], sizes = [8, 32], strides = [1, 1]} : vector<8x128xf32> to vector<8x32xf32>
    %cst_167 = arith.constant dense<0.000000e+00> : vector<8x8xf32>
    %415 = tpu.matmul %412, %413, %cst_167 {dimension_numbers = #tpu.dot_dimension_numbers<[1], [1], [0], [0], [0, 0, 1, 0], [], []>} : vector<8x32xf32>, vector<8x32xf32>, vector<8x8xf32> -> vector<8x8xf32>
    %cst_168 = arith.constant 0.176776692 : f32
    %416 = vector.broadcast %cst_168 : f32 to vector<8x8xf32>
    %417 = arith.mulf %415, %416 : vector<8x8xf32>
    %cst_169 = arith.constant dense<0xFF800000> : vector<8xf32>
    %418 = vector.multi_reduction <maximumf>, %417, %cst_169 [1] : vector<8x8xf32> to vector<8xf32>
    %cst_170 = arith.constant 0xFF800000 : f32
    %419 = vector.broadcast %cst_170 : f32 to vector<8xf32>
    %420 = arith.maximumf %419, %418 : vector<8xf32>
    %421 = vector.shape_cast %420 : vector<8xf32> to vector<8x1xf32>
    %422 = vector.broadcast %421 : vector<8x1xf32> to vector<8x8xf32>
    %423 = arith.subf %417, %422 : vector<8x8xf32>
    %424 = math.exp %423 : vector<8x8xf32>
    %cst_171 = arith.constant dense<0.000000e+00> : vector<8xf32>
    %425 = vector.multi_reduction <add>, %424, %cst_171 [1] : vector<8x8xf32> to vector<8xf32>
    %426 = vector.shape_cast %425 : vector<8xf32> to vector<8x1xf32>
    %427 = vector.broadcast %426 : vector<8x1xf32> to vector<8x8xf32>
    %428 = arith.divf %424, %427 : vector<8x8xf32>
    %cst_172 = arith.constant dense<0.000000e+00> : vector<8x32xf32>
    %429 = tpu.matmul %428, %414, %cst_172 {dimension_numbers = #tpu.dot_dimension_numbers<[1], [0], [0], [1], [0, 0, 1, 1], [], []>} : vector<8x8xf32>, vector<8x32xf32>, vector<8x32xf32> -> vector<8x32xf32>
    %430 = vector.extract_strided_slice %341 {offsets = [96, 0], sizes = [32, 128], strides = [1, 1]} : vector<128x128xf32> to vector<32x128xf32>
    %cst_173 = arith.constant dense<0.000000e+00> : vector<8x128xf32>
    %431 = tpu.matmul %429, %430, %cst_173 {dimension_numbers = #tpu.dot_dimension_numbers<[1], [0], [0], [1], [0, 0, 1, 1], [], []>} : vector<8x32xf32>, vector<32x128xf32>, vector<8x128xf32> -> vector<8x128xf32>
    %432 = arith.addf %411, %431 : vector<8x128xf32>
    %c1_174 = arith.constant 1 : index
    %c0_175 = arith.constant 0 : index
    %c0_176 = arith.constant 0 : index
    %433 = vector.load %arg19[%c1_174, %c0_175, %c0_176] : memref<2x1x128xf32, #tpu.memory_space<vmem>>, vector<1x1x128xf32>
    %434 = vector.shape_cast %433 : vector<1x1x128xf32> to vector<1x128xf32>
    %435 = vector.broadcast %434 : vector<1x128xf32> to vector<8x128xf32>
    %436 = arith.addf %432, %435 : vector<8x128xf32>
    %437 = arith.addf %337, %436 : vector<8x128xf32>
    %c1_177 = arith.constant 1 : index
    %c0_178 = arith.constant 0 : index
    %c0_179 = arith.constant 0 : index
    %438 = vector.load %arg20[%c1_177, %c0_178, %c0_179] : memref<2x1x128xf32, #tpu.memory_space<vmem>>, vector<1x1x128xf32>
    %439 = vector.shape_cast %438 : vector<1x1x128xf32> to vector<1x128xf32>
    %c1_180 = arith.constant 1 : index
    %c0_181 = arith.constant 0 : index
    %c0_182 = arith.constant 0 : index
    %440 = vector.load %arg21[%c1_180, %c0_181, %c0_182] : memref<2x1x128xf32, #tpu.memory_space<vmem>>, vector<1x1x128xf32>
    %441 = vector.shape_cast %440 : vector<1x1x128xf32> to vector<1x128xf32>
    %cst_183 = arith.constant dense<0.000000e+00> : vector<8xf32>
    %442 = vector.multi_reduction <add>, %437, %cst_183 [1] : vector<8x128xf32> to vector<8xf32>
    %443 = vector.shape_cast %442 : vector<8xf32> to vector<8x1xf32>
    %cst_184 = arith.constant 1.280000e+02 : f32
    %444 = vector.broadcast %cst_184 : f32 to vector<8x1xf32>
    %445 = arith.divf %443, %444 : vector<8x1xf32>
    %446 = vector.broadcast %445 : vector<8x1xf32> to vector<8x128xf32>
    %447 = arith.subf %437, %446 : vector<8x128xf32>
    %448 = arith.mulf %447, %447 : vector<8x128xf32>
    %cst_185 = arith.constant dense<0.000000e+00> : vector<8xf32>
    %449 = vector.multi_reduction <add>, %448, %cst_185 [1] : vector<8x128xf32> to vector<8xf32>
    %450 = vector.shape_cast %449 : vector<8xf32> to vector<8x1xf32>
    %cst_186 = arith.constant 1.280000e+02 : f32
    %451 = vector.broadcast %cst_186 : f32 to vector<8x1xf32>
    %452 = arith.divf %450, %451 : vector<8x1xf32>
    %453 = vector.broadcast %445 : vector<8x1xf32> to vector<8x128xf32>
    %454 = arith.subf %437, %453 : vector<8x128xf32>
    %cst_187 = arith.constant 9.99999996E-13 : f32
    %455 = vector.broadcast %cst_187 : f32 to vector<8x1xf32>
    %456 = arith.addf %452, %455 : vector<8x1xf32>
    %457 = math.rsqrt %456 : vector<8x1xf32>
    %458 = vector.broadcast %457 : vector<8x1xf32> to vector<8x128xf32>
    %459 = arith.mulf %454, %458 : vector<8x128xf32>
    %460 = vector.broadcast %439 : vector<1x128xf32> to vector<8x128xf32>
    %461 = arith.mulf %459, %460 : vector<8x128xf32>
    %462 = vector.broadcast %441 : vector<1x128xf32> to vector<8x128xf32>
    %463 = arith.addf %461, %462 : vector<8x128xf32>
    %c1_188 = arith.constant 1 : index
    %c0_189 = arith.constant 0 : index
    %c0_190 = arith.constant 0 : index
    %464 = vector.load %arg22[%c1_188, %c0_189, %c0_190] : memref<2x128x256xf32, #tpu.memory_space<vmem>>, vector<1x128x256xf32>
    %465 = vector.shape_cast %464 : vector<1x128x256xf32> to vector<128x256xf32>
    %cst_191 = arith.constant dense<0.000000e+00> : vector<8x256xf32>
    %466 = tpu.matmul %463, %465, %cst_191 {dimension_numbers = #tpu.dot_dimension_numbers<[1], [0], [0], [1], [0, 0, 1, 1], [], []>} : vector<8x128xf32>, vector<128x256xf32>, vector<8x256xf32> -> vector<8x256xf32>
    %c1_192 = arith.constant 1 : index
    %c0_193 = arith.constant 0 : index
    %c0_194 = arith.constant 0 : index
    %467 = vector.load %arg23[%c1_192, %c0_193, %c0_194] : memref<2x1x256xf32, #tpu.memory_space<vmem>>, vector<1x1x256xf32>
    %468 = vector.shape_cast %467 : vector<1x1x256xf32> to vector<1x256xf32>
    %469 = vector.broadcast %468 : vector<1x256xf32> to vector<8x256xf32>
    %470 = arith.addf %466, %469 : vector<8x256xf32>
    %471 = arith.mulf %470, %470 : vector<8x256xf32>
    %472 = arith.mulf %470, %471 : vector<8x256xf32>
    %cst_195 = arith.constant 4.471500e-02 : f32
    %473 = vector.broadcast %cst_195 : f32 to vector<8x256xf32>
    %474 = arith.mulf %473, %472 : vector<8x256xf32>
    %475 = arith.addf %470, %474 : vector<8x256xf32>
    %cst_196 = arith.constant 0.797884583 : f32
    %476 = vector.broadcast %cst_196 : f32 to vector<8x256xf32>
    %477 = arith.mulf %476, %475 : vector<8x256xf32>
    %478 = math.tanh %477 : vector<8x256xf32>
    %cst_197 = arith.constant 1.000000e+00 : f32
    %479 = vector.broadcast %cst_197 : f32 to vector<8x256xf32>
    %480 = arith.addf %479, %478 : vector<8x256xf32>
    %cst_198 = arith.constant 5.000000e-01 : f32
    %481 = vector.broadcast %cst_198 : f32 to vector<8x256xf32>
    %482 = arith.mulf %481, %480 : vector<8x256xf32>
    %483 = arith.mulf %470, %482 : vector<8x256xf32>
    %c1_199 = arith.constant 1 : index
    %c0_200 = arith.constant 0 : index
    %c0_201 = arith.constant 0 : index
    %484 = vector.load %arg24[%c1_199, %c0_200, %c0_201] : memref<2x256x128xf32, #tpu.memory_space<vmem>>, vector<1x256x128xf32>
    %485 = vector.shape_cast %484 : vector<1x256x128xf32> to vector<256x128xf32>
    %cst_202 = arith.constant dense<0.000000e+00> : vector<8x128xf32>
    %486 = tpu.matmul %483, %485, %cst_202 {dimension_numbers = #tpu.dot_dimension_numbers<[1], [0], [0], [1], [0, 0, 1, 1], [], []>} : vector<8x256xf32>, vector<256x128xf32>, vector<8x128xf32> -> vector<8x128xf32>
    %c1_203 = arith.constant 1 : index
    %c0_204 = arith.constant 0 : index
    %c0_205 = arith.constant 0 : index
    %487 = vector.load %arg25[%c1_203, %c0_204, %c0_205] : memref<2x1x128xf32, #tpu.memory_space<vmem>>, vector<1x1x128xf32>
    %488 = vector.shape_cast %487 : vector<1x1x128xf32> to vector<1x128xf32>
    %489 = vector.broadcast %488 : vector<1x128xf32> to vector<8x128xf32>
    %490 = arith.addf %486, %489 : vector<8x128xf32>
    %491 = arith.addf %463, %490 : vector<8x128xf32>
    %c1_206 = arith.constant 1 : index
    %c0_207 = arith.constant 0 : index
    %c0_208 = arith.constant 0 : index
    %492 = vector.load %arg26[%c1_206, %c0_207, %c0_208] : memref<2x1x128xf32, #tpu.memory_space<vmem>>, vector<1x1x128xf32>
    %493 = vector.shape_cast %492 : vector<1x1x128xf32> to vector<1x128xf32>
    %c1_209 = arith.constant 1 : index
    %c0_210 = arith.constant 0 : index
    %c0_211 = arith.constant 0 : index
    %494 = vector.load %arg27[%c1_209, %c0_210, %c0_211] : memref<2x1x128xf32, #tpu.memory_space<vmem>>, vector<1x1x128xf32>
    %495 = vector.shape_cast %494 : vector<1x1x128xf32> to vector<1x128xf32>
    %cst_212 = arith.constant dense<0.000000e+00> : vector<8xf32>
    %496 = vector.multi_reduction <add>, %491, %cst_212 [1] : vector<8x128xf32> to vector<8xf32>
    %497 = vector.shape_cast %496 : vector<8xf32> to vector<8x1xf32>
    %cst_213 = arith.constant 1.280000e+02 : f32
    %498 = vector.broadcast %cst_213 : f32 to vector<8x1xf32>
    %499 = arith.divf %497, %498 : vector<8x1xf32>
    %500 = vector.broadcast %499 : vector<8x1xf32> to vector<8x128xf32>
    %501 = arith.subf %491, %500 : vector<8x128xf32>
    %502 = arith.mulf %501, %501 : vector<8x128xf32>
    %cst_214 = arith.constant dense<0.000000e+00> : vector<8xf32>
    %503 = vector.multi_reduction <add>, %502, %cst_214 [1] : vector<8x128xf32> to vector<8xf32>
    %504 = vector.shape_cast %503 : vector<8xf32> to vector<8x1xf32>
    %cst_215 = arith.constant 1.280000e+02 : f32
    %505 = vector.broadcast %cst_215 : f32 to vector<8x1xf32>
    %506 = arith.divf %504, %505 : vector<8x1xf32>
    %507 = vector.broadcast %499 : vector<8x1xf32> to vector<8x128xf32>
    %508 = arith.subf %491, %507 : vector<8x128xf32>
    %cst_216 = arith.constant 9.99999996E-13 : f32
    %509 = vector.broadcast %cst_216 : f32 to vector<8x1xf32>
    %510 = arith.addf %506, %509 : vector<8x1xf32>
    %511 = math.rsqrt %510 : vector<8x1xf32>
    %512 = vector.broadcast %511 : vector<8x1xf32> to vector<8x128xf32>
    %513 = arith.mulf %508, %512 : vector<8x128xf32>
    %514 = vector.broadcast %493 : vector<1x128xf32> to vector<8x128xf32>
    %515 = arith.mulf %513, %514 : vector<8x128xf32>
    %516 = vector.broadcast %495 : vector<1x128xf32> to vector<8x128xf32>
    %517 = arith.addf %515, %516 : vector<8x128xf32>
    %c0_217 = arith.constant 0 : index
    %c0_218 = arith.constant 0 : index
    %518 = vector.load %arg28[%c0_217, %c0_218] : memref<128x256xf32, #tpu.memory_space<vmem>>, vector<128x256xf32>
    %cst_219 = arith.constant dense<0.000000e+00> : vector<8x256xf32>
    %519 = tpu.matmul %517, %518, %cst_219 {dimension_numbers = #tpu.dot_dimension_numbers<[1], [0], [0], [1], [0, 0, 1, 1], [], []>} : vector<8x128xf32>, vector<128x256xf32>, vector<8x256xf32> -> vector<8x256xf32>
    %c0_220 = arith.constant 0 : index
    %c0_221 = arith.constant 0 : index
    %520 = vector.load %arg29[%c0_220, %c0_221] : memref<1x256xf32, #tpu.memory_space<vmem>>, vector<1x256xf32>
    %521 = vector.broadcast %520 : vector<1x256xf32> to vector<8x256xf32>
    %522 = arith.addf %519, %521 : vector<8x256xf32>
    %523 = vector.extract_strided_slice %522 {offsets = [0, 0], sizes = [8, 128], strides = [1, 1]} : vector<8x256xf32> to vector<8x128xf32>
    %524 = vector.extract_strided_slice %522 {offsets = [0, 128], sizes = [8, 128], strides = [1, 1]} : vector<8x256xf32> to vector<8x128xf32>
    %c0_222 = arith.constant 0 : index
    %c0_223 = arith.constant 0 : index
    %525 = vector.load %arg30[%c0_222, %c0_223] : memref<4x128xf32, #tpu.memory_space<vmem>>, vector<4x128xf32>
    %cst_224 = arith.constant dense<0.000000e+00> : vector<4x8xf32>
    %526 = tpu.matmul %525, %523, %cst_224 {dimension_numbers = #tpu.dot_dimension_numbers<[1], [1], [0], [0], [0, 0, 1, 0], [], []>} : vector<4x128xf32>, vector<8x128xf32>, vector<4x8xf32> -> vector<4x8xf32>
    %cst_225 = arith.constant 0.0883883461 : f32
    %527 = vector.broadcast %cst_225 : f32 to vector<4x8xf32>
    %528 = arith.mulf %526, %527 : vector<4x8xf32>
    %cst_226 = arith.constant dense<0xFF800000> : vector<4xf32>
    %529 = vector.multi_reduction <maximumf>, %528, %cst_226 [1] : vector<4x8xf32> to vector<4xf32>
    %cst_227 = arith.constant 0xFF800000 : f32
    %530 = vector.broadcast %cst_227 : f32 to vector<4xf32>
    %531 = arith.maximumf %530, %529 : vector<4xf32>
    %532 = vector.shape_cast %531 : vector<4xf32> to vector<4x1xf32>
    %533 = vector.broadcast %532 : vector<4x1xf32> to vector<4x8xf32>
    %534 = arith.subf %528, %533 : vector<4x8xf32>
    %535 = math.exp %534 : vector<4x8xf32>
    %cst_228 = arith.constant dense<0.000000e+00> : vector<4xf32>
    %536 = vector.multi_reduction <add>, %535, %cst_228 [1] : vector<4x8xf32> to vector<4xf32>
    %537 = vector.shape_cast %536 : vector<4xf32> to vector<4x1xf32>
    %538 = vector.broadcast %537 : vector<4x1xf32> to vector<4x8xf32>
    %539 = arith.divf %535, %538 : vector<4x8xf32>
    %cst_229 = arith.constant dense<0.000000e+00> : vector<4x128xf32>
    %540 = tpu.matmul %539, %524, %cst_229 {dimension_numbers = #tpu.dot_dimension_numbers<[1], [0], [0], [1], [0, 0, 1, 1], [], []>} : vector<4x8xf32>, vector<8x128xf32>, vector<4x128xf32> -> vector<4x128xf32>
    %c0_230 = arith.constant 0 : index
    %c0_231 = arith.constant 0 : index
    %c0_232 = arith.constant 0 : index
    %541 = vector.load %arg3[%c0_230, %c0_231, %c0_232] : memref<1x2x128xf32, #tpu.memory_space<vmem>>, vector<1x2x128xf32>
    %542 = vector.shape_cast %541 : vector<1x2x128xf32> to vector<2x128xf32>
    %543 = vector.extract_strided_slice %542 {offsets = [0, 0], sizes = [1, 128], strides = [1, 1]} : vector<2x128xf32> to vector<1x128xf32>
    %544 = vector.extract_strided_slice %542 {offsets = [1, 0], sizes = [1, 128], strides = [1, 1]} : vector<2x128xf32> to vector<1x128xf32>
    %c0_233 = arith.constant 0 : index
    %c0_234 = arith.constant 0 : index
    %c0_235 = arith.constant 0 : index
    %545 = vector.load %arg34[%c0_233, %c0_234, %c0_235] : memref<2x1x384xf32, #tpu.memory_space<vmem>>, vector<1x1x384xf32>
    %546 = vector.shape_cast %545 : vector<1x1x384xf32> to vector<1x384xf32>
    %547 = vector.extract_strided_slice %540 {offsets = [0, 0], sizes = [1, 128], strides = [1, 1]} : vector<4x128xf32> to vector<1x128xf32>
    %c0_236 = arith.constant 0 : index
    %c0_237 = arith.constant 0 : index
    %c0_238 = arith.constant 0 : index
    %548 = vector.load %arg31[%c0_236, %c0_237, %c0_238] : memref<4x128x384xf32, #tpu.memory_space<vmem>>, vector<1x128x384xf32>
    %549 = vector.shape_cast %548 : vector<1x128x384xf32> to vector<128x384xf32>
    %cst_239 = arith.constant dense<0.000000e+00> : vector<1x384xf32>
    %550 = tpu.matmul %547, %549, %cst_239 {dimension_numbers = #tpu.dot_dimension_numbers<[1], [0], [0], [1], [0, 0, 1, 1], [], []>} : vector<1x128xf32>, vector<128x384xf32>, vector<1x384xf32> -> vector<1x384xf32>
    %551 = arith.addf %546, %550 : vector<1x384xf32>
    %552 = vector.extract_strided_slice %540 {offsets = [1, 0], sizes = [1, 128], strides = [1, 1]} : vector<4x128xf32> to vector<1x128xf32>
    %c1_240 = arith.constant 1 : index
    %c0_241 = arith.constant 0 : index
    %c0_242 = arith.constant 0 : index
    %553 = vector.load %arg31[%c1_240, %c0_241, %c0_242] : memref<4x128x384xf32, #tpu.memory_space<vmem>>, vector<1x128x384xf32>
    %554 = vector.shape_cast %553 : vector<1x128x384xf32> to vector<128x384xf32>
    %cst_243 = arith.constant dense<0.000000e+00> : vector<1x384xf32>
    %555 = tpu.matmul %552, %554, %cst_243 {dimension_numbers = #tpu.dot_dimension_numbers<[1], [0], [0], [1], [0, 0, 1, 1], [], []>} : vector<1x128xf32>, vector<128x384xf32>, vector<1x384xf32> -> vector<1x384xf32>
    %556 = arith.addf %551, %555 : vector<1x384xf32>
    %557 = vector.extract_strided_slice %540 {offsets = [2, 0], sizes = [1, 128], strides = [1, 1]} : vector<4x128xf32> to vector<1x128xf32>
    %c2 = arith.constant 2 : index
    %c0_244 = arith.constant 0 : index
    %c0_245 = arith.constant 0 : index
    %558 = vector.load %arg31[%c2, %c0_244, %c0_245] : memref<4x128x384xf32, #tpu.memory_space<vmem>>, vector<1x128x384xf32>
    %559 = vector.shape_cast %558 : vector<1x128x384xf32> to vector<128x384xf32>
    %cst_246 = arith.constant dense<0.000000e+00> : vector<1x384xf32>
    %560 = tpu.matmul %557, %559, %cst_246 {dimension_numbers = #tpu.dot_dimension_numbers<[1], [0], [0], [1], [0, 0, 1, 1], [], []>} : vector<1x128xf32>, vector<128x384xf32>, vector<1x384xf32> -> vector<1x384xf32>
    %561 = arith.addf %556, %560 : vector<1x384xf32>
    %562 = vector.extract_strided_slice %540 {offsets = [3, 0], sizes = [1, 128], strides = [1, 1]} : vector<4x128xf32> to vector<1x128xf32>
    %c3 = arith.constant 3 : index
    %c0_247 = arith.constant 0 : index
    %c0_248 = arith.constant 0 : index
    %563 = vector.load %arg31[%c3, %c0_247, %c0_248] : memref<4x128x384xf32, #tpu.memory_space<vmem>>, vector<1x128x384xf32>
    %564 = vector.shape_cast %563 : vector<1x128x384xf32> to vector<128x384xf32>
    %cst_249 = arith.constant dense<0.000000e+00> : vector<1x384xf32>
    %565 = tpu.matmul %562, %564, %cst_249 {dimension_numbers = #tpu.dot_dimension_numbers<[1], [0], [0], [1], [0, 0, 1, 1], [], []>} : vector<1x128xf32>, vector<128x384xf32>, vector<1x384xf32> -> vector<1x384xf32>
    %566 = arith.addf %561, %565 : vector<1x384xf32>
    %c0_250 = arith.constant 0 : index
    %c0_251 = arith.constant 0 : index
    %c0_252 = arith.constant 0 : index
    %567 = vector.load %arg33[%c0_250, %c0_251, %c0_252] : memref<2x128x384xf32, #tpu.memory_space<vmem>>, vector<1x128x384xf32>
    %568 = vector.shape_cast %567 : vector<1x128x384xf32> to vector<128x384xf32>
    %cst_253 = arith.constant dense<0.000000e+00> : vector<1x384xf32>
    %569 = tpu.matmul %543, %568, %cst_253 {dimension_numbers = #tpu.dot_dimension_numbers<[1], [0], [0], [1], [0, 0, 1, 1], [], []>} : vector<1x128xf32>, vector<128x384xf32>, vector<1x384xf32> -> vector<1x384xf32>
    %c0_254 = arith.constant 0 : index
    %c0_255 = arith.constant 0 : index
    %c0_256 = arith.constant 0 : index
    %570 = vector.load %arg35[%c0_254, %c0_255, %c0_256] : memref<2x1x384xf32, #tpu.memory_space<vmem>>, vector<1x1x384xf32>
    %571 = vector.shape_cast %570 : vector<1x1x384xf32> to vector<1x384xf32>
    %572 = arith.addf %569, %571 : vector<1x384xf32>
    %573 = vector.extract_strided_slice %566 {offsets = [0, 0], sizes = [1, 128], strides = [1, 1]} : vector<1x384xf32> to vector<1x128xf32>
    %574 = vector.extract_strided_slice %572 {offsets = [0, 0], sizes = [1, 128], strides = [1, 1]} : vector<1x384xf32> to vector<1x128xf32>
    %575 = arith.addf %573, %574 : vector<1x128xf32>
    %576 = arith.negf %575 : vector<1x128xf32>
    %577 = math.exp %576 : vector<1x128xf32>
    %cst_257 = arith.constant 1.000000e+00 : f32
    %578 = vector.broadcast %cst_257 : f32 to vector<1x128xf32>
    %579 = arith.addf %578, %577 : vector<1x128xf32>
    %580 = arith.divf %578, %579 : vector<1x128xf32>
    %581 = vector.extract_strided_slice %566 {offsets = [0, 128], sizes = [1, 128], strides = [1, 1]} : vector<1x384xf32> to vector<1x128xf32>
    %582 = vector.extract_strided_slice %572 {offsets = [0, 128], sizes = [1, 128], strides = [1, 1]} : vector<1x384xf32> to vector<1x128xf32>
    %583 = arith.addf %581, %582 : vector<1x128xf32>
    %584 = arith.negf %583 : vector<1x128xf32>
    %585 = math.exp %584 : vector<1x128xf32>
    %cst_258 = arith.constant 1.000000e+00 : f32
    %586 = vector.broadcast %cst_258 : f32 to vector<1x128xf32>
    %587 = arith.addf %586, %585 : vector<1x128xf32>
    %588 = arith.divf %586, %587 : vector<1x128xf32>
    %589 = vector.extract_strided_slice %566 {offsets = [0, 256], sizes = [1, 128], strides = [1, 1]} : vector<1x384xf32> to vector<1x128xf32>
    %590 = vector.extract_strided_slice %572 {offsets = [0, 256], sizes = [1, 128], strides = [1, 1]} : vector<1x384xf32> to vector<1x128xf32>
    %591 = arith.mulf %580, %590 : vector<1x128xf32>
    %592 = arith.addf %589, %591 : vector<1x128xf32>
    %593 = math.tanh %592 : vector<1x128xf32>
    %cst_259 = arith.constant 1.000000e+00 : f32
    %594 = vector.broadcast %cst_259 : f32 to vector<1x128xf32>
    %595 = arith.subf %594, %588 : vector<1x128xf32>
    %596 = arith.mulf %595, %593 : vector<1x128xf32>
    %597 = arith.mulf %588, %543 : vector<1x128xf32>
    %598 = arith.addf %596, %597 : vector<1x128xf32>
    %c0_260 = arith.constant 0 : index
    %c0_261 = arith.constant 0 : index
    %599 = vector.load %arg32[%c0_260, %c0_261] : memref<128x384xf32, #tpu.memory_space<vmem>>, vector<128x384xf32>
    %cst_262 = arith.constant dense<0.000000e+00> : vector<1x384xf32>
    %600 = tpu.matmul %598, %599, %cst_262 {dimension_numbers = #tpu.dot_dimension_numbers<[1], [0], [0], [1], [0, 0, 1, 1], [], []>} : vector<1x128xf32>, vector<128x384xf32>, vector<1x384xf32> -> vector<1x384xf32>
    %c1_263 = arith.constant 1 : index
    %c0_264 = arith.constant 0 : index
    %c0_265 = arith.constant 0 : index
    %601 = vector.load %arg34[%c1_263, %c0_264, %c0_265] : memref<2x1x384xf32, #tpu.memory_space<vmem>>, vector<1x1x384xf32>
    %602 = vector.shape_cast %601 : vector<1x1x384xf32> to vector<1x384xf32>
    %603 = arith.addf %600, %602 : vector<1x384xf32>
    %c1_266 = arith.constant 1 : index
    %c0_267 = arith.constant 0 : index
    %c0_268 = arith.constant 0 : index
    %604 = vector.load %arg33[%c1_266, %c0_267, %c0_268] : memref<2x128x384xf32, #tpu.memory_space<vmem>>, vector<1x128x384xf32>
    %605 = vector.shape_cast %604 : vector<1x128x384xf32> to vector<128x384xf32>
    %cst_269 = arith.constant dense<0.000000e+00> : vector<1x384xf32>
    %606 = tpu.matmul %544, %605, %cst_269 {dimension_numbers = #tpu.dot_dimension_numbers<[1], [0], [0], [1], [0, 0, 1, 1], [], []>} : vector<1x128xf32>, vector<128x384xf32>, vector<1x384xf32> -> vector<1x384xf32>
    %c1_270 = arith.constant 1 : index
    %c0_271 = arith.constant 0 : index
    %c0_272 = arith.constant 0 : index
    %607 = vector.load %arg35[%c1_270, %c0_271, %c0_272] : memref<2x1x384xf32, #tpu.memory_space<vmem>>, vector<1x1x384xf32>
    %608 = vector.shape_cast %607 : vector<1x1x384xf32> to vector<1x384xf32>
    %609 = arith.addf %606, %608 : vector<1x384xf32>
    %610 = vector.extract_strided_slice %603 {offsets = [0, 0], sizes = [1, 128], strides = [1, 1]} : vector<1x384xf32> to vector<1x128xf32>
    %611 = vector.extract_strided_slice %609 {offsets = [0, 0], sizes = [1, 128], strides = [1, 1]} : vector<1x384xf32> to vector<1x128xf32>
    %612 = arith.addf %610, %611 : vector<1x128xf32>
    %613 = arith.negf %612 : vector<1x128xf32>
    %614 = math.exp %613 : vector<1x128xf32>
    %cst_273 = arith.constant 1.000000e+00 : f32
    %615 = vector.broadcast %cst_273 : f32 to vector<1x128xf32>
    %616 = arith.addf %615, %614 : vector<1x128xf32>
    %617 = arith.divf %615, %616 : vector<1x128xf32>
    %618 = vector.extract_strided_slice %603 {offsets = [0, 128], sizes = [1, 128], strides = [1, 1]} : vector<1x384xf32> to vector<1x128xf32>
    %619 = vector.extract_strided_slice %609 {offsets = [0, 128], sizes = [1, 128], strides = [1, 1]} : vector<1x384xf32> to vector<1x128xf32>
    %620 = arith.addf %618, %619 : vector<1x128xf32>
    %621 = arith.negf %620 : vector<1x128xf32>
    %622 = math.exp %621 : vector<1x128xf32>
    %cst_274 = arith.constant 1.000000e+00 : f32
    %623 = vector.broadcast %cst_274 : f32 to vector<1x128xf32>
    %624 = arith.addf %623, %622 : vector<1x128xf32>
    %625 = arith.divf %623, %624 : vector<1x128xf32>
    %626 = vector.extract_strided_slice %603 {offsets = [0, 256], sizes = [1, 128], strides = [1, 1]} : vector<1x384xf32> to vector<1x128xf32>
    %627 = vector.extract_strided_slice %609 {offsets = [0, 256], sizes = [1, 128], strides = [1, 1]} : vector<1x384xf32> to vector<1x128xf32>
    %628 = arith.mulf %617, %627 : vector<1x128xf32>
    %629 = arith.addf %626, %628 : vector<1x128xf32>
    %630 = math.tanh %629 : vector<1x128xf32>
    %cst_275 = arith.constant 1.000000e+00 : f32
    %631 = vector.broadcast %cst_275 : f32 to vector<1x128xf32>
    %632 = arith.subf %631, %625 : vector<1x128xf32>
    %633 = arith.mulf %632, %630 : vector<1x128xf32>
    %634 = arith.mulf %625, %544 : vector<1x128xf32>
    %635 = arith.addf %633, %634 : vector<1x128xf32>
    %c0_276 = arith.constant 0 : index
    %c0_277 = arith.constant 0 : index
    %636 = vector.load %arg36[%c0_276, %c0_277] : memref<128x256xf32, #tpu.memory_space<vmem>>, vector<128x256xf32>
    %cst_278 = arith.constant dense<0.000000e+00> : vector<1x256xf32>
    %637 = tpu.matmul %635, %636, %cst_278 {dimension_numbers = #tpu.dot_dimension_numbers<[1], [0], [0], [1], [0, 0, 1, 1], [], []>} : vector<1x128xf32>, vector<128x256xf32>, vector<1x256xf32> -> vector<1x256xf32>
    %c0_279 = arith.constant 0 : index
    %c0_280 = arith.constant 0 : index
    %638 = vector.load %arg37[%c0_279, %c0_280] : memref<1x256xf32, #tpu.memory_space<vmem>>, vector<1x256xf32>
    %639 = arith.addf %637, %638 : vector<1x256xf32>
    %c0_281 = arith.constant 0 : index
    %c0_282 = arith.constant 0 : index
    %c0_283 = arith.constant 0 : index
    %640 = vector.load %arg38[%c0_281, %c0_282, %c0_283] : memref<1x1x256xf32, #tpu.memory_space<vmem>>, vector<1x1x256xf32>
    %641 = vector.shape_cast %640 : vector<1x1x256xf32> to vector<1x256xf32>
    %642 = vector.shape_cast %639 : vector<1x256xf32> to vector<1x1x256xf32>
    tpu.vector_store %arg38[%c0_281, %c0_282, %c0_283], %642 {strides = array<i32>} : memref<1x1x256xf32, #tpu.memory_space<vmem>>, vector<1x1x256xf32>,
    %643 = tpu.concatenate %598, %635 in 0 : vector<1x128xf32>, vector<1x128xf32> -> vector<2x128xf32>
    %c0_284 = arith.constant 0 : index
    %c0_285 = arith.constant 0 : index
    %c0_286 = arith.constant 0 : index
    %644 = vector.load %arg39[%c0_284, %c0_285, %c0_286] : memref<1x2x128xf32, #tpu.memory_space<vmem>>, vector<1x2x128xf32>
    %645 = vector.shape_cast %644 : vector<1x2x128xf32> to vector<2x128xf32>
    %646 = vector.shape_cast %643 : vector<2x128xf32> to vector<1x2x128xf32>
    tpu.vector_store %arg39[%c0_284, %c0_285, %c0_286], %646 {strides = array<i32>} : memref<1x2x128xf32, #tpu.memory_space<vmem>>, vector<1x2x128xf32>,
    return
  }
  func.func @transform_0(%arg0: i32) -> (i32, i32, i32) {
    %c0_i32 = arith.constant 0 : i32
    %c0_i32_0 = arith.constant 0 : i32
    %c0_i32_1 = arith.constant 0 : i32
    return %arg0, %c0_i32, %c0_i32_0 : i32, i32, i32
  }
  func.func @transform_1(%arg0: i32) -> (i32, i32, i32) {
    %c0_i32 = arith.constant 0 : i32
    %c0_i32_0 = arith.constant 0 : i32
    %c0_i32_1 = arith.constant 0 : i32
    return %arg0, %c0_i32, %c0_i32_0 : i32, i32, i32
  }
  func.func @transform_2(%arg0: i32) -> (i32, i32, i32) {
    %c0_i32 = arith.constant 0 : i32
    %c0_i32_0 = arith.constant 0 : i32
    %c0_i32_1 = arith.constant 0 : i32
    return %arg0, %c0_i32, %c0_i32_0 : i32, i32, i32
  }
  func.func @transform_3(%arg0: i32) -> (i32, i32) {
    %c0_i32 = arith.constant 0 : i32
    %c0_i32_0 = arith.constant 0 : i32
    %c0_i32_1 = arith.constant 0 : i32
    return %c0_i32, %c0_i32_0 : i32, i32
  }
  func.func @transform_4(%arg0: i32) -> (i32, i32) {
    %c0_i32 = arith.constant 0 : i32
    %c0_i32_0 = arith.constant 0 : i32
    %c0_i32_1 = arith.constant 0 : i32
    return %c0_i32, %c0_i32_0 : i32, i32
  }
  func.func @transform_5(%arg0: i32) -> (i32, i32) {
    %c0_i32 = arith.constant 0 : i32
    %c0_i32_0 = arith.constant 0 : i32
    %c0_i32_1 = arith.constant 0 : i32
    return %c0_i32, %c0_i32_0 : i32, i32
  }
  func.func @transform_6(%arg0: i32) -> (i32, i32) {
    %c0_i32 = arith.constant 0 : i32
    %c0_i32_0 = arith.constant 0 : i32
    %c0_i32_1 = arith.constant 0 : i32
    return %c0_i32, %c0_i32_0 : i32, i32
  }
  func.func @transform_7(%arg0: i32) -> (i32, i32) {
    %c0_i32 = arith.constant 0 : i32
    %c0_i32_0 = arith.constant 0 : i32
    %c0_i32_1 = arith.constant 0 : i32
    return %c0_i32, %c0_i32_0 : i32, i32
  }
  func.func @transform_8(%arg0: i32) -> (i32, i32) {
    %c0_i32 = arith.constant 0 : i32
    %c0_i32_0 = arith.constant 0 : i32
    %c0_i32_1 = arith.constant 0 : i32
    return %c0_i32, %c0_i32_0 : i32, i32
  }
  func.func @transform_9(%arg0: i32) -> (i32, i32) {
    %c0_i32 = arith.constant 0 : i32
    %c0_i32_0 = arith.constant 0 : i32
    %c0_i32_1 = arith.constant 0 : i32
    return %c0_i32, %c0_i32_0 : i32, i32
  }
  func.func @transform_10(%arg0: i32) -> (i32, i32) {
    %c0_i32 = arith.constant 0 : i32
    %c0_i32_0 = arith.constant 0 : i32
    %c0_i32_1 = arith.constant 0 : i32
    return %c0_i32, %c0_i32_0 : i32, i32
  }
  func.func @transform_11(%arg0: i32) -> (i32, i32) {
    %c0_i32 = arith.constant 0 : i32
    %c0_i32_0 = arith.constant 0 : i32
    %c0_i32_1 = arith.constant 0 : i32
    return %c0_i32, %c0_i32_0 : i32, i32
  }
  func.func @transform_12(%arg0: i32) -> (i32, i32) {
    %c0_i32 = arith.constant 0 : i32
    %c0_i32_0 = arith.constant 0 : i32
    %c0_i32_1 = arith.constant 0 : i32
    return %c0_i32, %c0_i32_0 : i32, i32
  }
  func.func @transform_13(%arg0: i32) -> (i32, i32) {
    %c0_i32 = arith.constant 0 : i32
    %c0_i32_0 = arith.constant 0 : i32
    %c0_i32_1 = arith.constant 0 : i32
    return %c0_i32, %c0_i32_0 : i32, i32
  }
  func.func @transform_14(%arg0: i32) -> (i32, i32) {
    %c0_i32 = arith.constant 0 : i32
    %c0_i32_0 = arith.constant 0 : i32
    %c0_i32_1 = arith.constant 0 : i32
    return %c0_i32, %c0_i32_0 : i32, i32
  }
  func.func @transform_15(%arg0: i32) -> (i32, i32, i32) {
    %c0_i32 = arith.constant 0 : i32
    %c0_i32_0 = arith.constant 0 : i32
    %c0_i32_1 = arith.constant 0 : i32
    %c0_i32_2 = arith.constant 0 : i32
    return %c0_i32, %c0_i32_0, %c0_i32_1 : i32, i32, i32
  }
  func.func @transform_16(%arg0: i32) -> (i32, i32, i32) {
    %c0_i32 = arith.constant 0 : i32
    %c0_i32_0 = arith.constant 0 : i32
    %c0_i32_1 = arith.constant 0 : i32
    %c0_i32_2 = arith.constant 0 : i32
    return %c0_i32, %c0_i32_0, %c0_i32_1 : i32, i32, i32
  }
  func.func @transform_17(%arg0: i32) -> (i32, i32, i32) {
    %c0_i32 = arith.constant 0 : i32
    %c0_i32_0 = arith.constant 0 : i32
    %c0_i32_1 = arith.constant 0 : i32
    %c0_i32_2 = arith.constant 0 : i32
    return %c0_i32, %c0_i32_0, %c0_i32_1 : i32, i32, i32
  }
  func.func @transform_18(%arg0: i32) -> (i32, i32, i32) {
    %c0_i32 = arith.constant 0 : i32
    %c0_i32_0 = arith.constant 0 : i32
    %c0_i32_1 = arith.constant 0 : i32
    %c0_i32_2 = arith.constant 0 : i32
    return %c0_i32, %c0_i32_0, %c0_i32_1 : i32, i32, i32
  }
  func.func @transform_19(%arg0: i32) -> (i32, i32, i32) {
    %c0_i32 = arith.constant 0 : i32
    %c0_i32_0 = arith.constant 0 : i32
    %c0_i32_1 = arith.constant 0 : i32
    %c0_i32_2 = arith.constant 0 : i32
    return %c0_i32, %c0_i32_0, %c0_i32_1 : i32, i32, i32
  }
  func.func @transform_20(%arg0: i32) -> (i32, i32, i32) {
    %c0_i32 = arith.constant 0 : i32
    %c0_i32_0 = arith.constant 0 : i32
    %c0_i32_1 = arith.constant 0 : i32
    %c0_i32_2 = arith.constant 0 : i32
    return %c0_i32, %c0_i32_0, %c0_i32_1 : i32, i32, i32
  }
  func.func @transform_21(%arg0: i32) -> (i32, i32, i32) {
    %c0_i32 = arith.constant 0 : i32
    %c0_i32_0 = arith.constant 0 : i32
    %c0_i32_1 = arith.constant 0 : i32
    %c0_i32_2 = arith.constant 0 : i32
    return %c0_i32, %c0_i32_0, %c0_i32_1 : i32, i32, i32
  }
  func.func @transform_22(%arg0: i32) -> (i32, i32, i32) {
    %c0_i32 = arith.constant 0 : i32
    %c0_i32_0 = arith.constant 0 : i32
    %c0_i32_1 = arith.constant 0 : i32
    %c0_i32_2 = arith.constant 0 : i32
    return %c0_i32, %c0_i32_0, %c0_i32_1 : i32, i32, i32
  }
  func.func @transform_23(%arg0: i32) -> (i32, i32, i32) {
    %c0_i32 = arith.constant 0 : i32
    %c0_i32_0 = arith.constant 0 : i32
    %c0_i32_1 = arith.constant 0 : i32
    %c0_i32_2 = arith.constant 0 : i32
    return %c0_i32, %c0_i32_0, %c0_i32_1 : i32, i32, i32
  }
  func.func @transform_24(%arg0: i32) -> (i32, i32, i32) {
    %c0_i32 = arith.constant 0 : i32
    %c0_i32_0 = arith.constant 0 : i32
    %c0_i32_1 = arith.constant 0 : i32
    %c0_i32_2 = arith.constant 0 : i32
    return %c0_i32, %c0_i32_0, %c0_i32_1 : i32, i32, i32
  }
  func.func @transform_25(%arg0: i32) -> (i32, i32, i32) {
    %c0_i32 = arith.constant 0 : i32
    %c0_i32_0 = arith.constant 0 : i32
    %c0_i32_1 = arith.constant 0 : i32
    %c0_i32_2 = arith.constant 0 : i32
    return %c0_i32, %c0_i32_0, %c0_i32_1 : i32, i32, i32
  }
  func.func @transform_26(%arg0: i32) -> (i32, i32, i32) {
    %c0_i32 = arith.constant 0 : i32
    %c0_i32_0 = arith.constant 0 : i32
    %c0_i32_1 = arith.constant 0 : i32
    %c0_i32_2 = arith.constant 0 : i32
    return %c0_i32, %c0_i32_0, %c0_i32_1 : i32, i32, i32
  }
  func.func @transform_27(%arg0: i32) -> (i32, i32) {
    %c0_i32 = arith.constant 0 : i32
    %c0_i32_0 = arith.constant 0 : i32
    %c0_i32_1 = arith.constant 0 : i32
    return %c0_i32, %c0_i32_0 : i32, i32
  }
  func.func @transform_28(%arg0: i32) -> (i32, i32) {
    %c0_i32 = arith.constant 0 : i32
    %c0_i32_0 = arith.constant 0 : i32
    %c0_i32_1 = arith.constant 0 : i32
    return %c0_i32, %c0_i32_0 : i32, i32
  }
  func.func @transform_29(%arg0: i32) -> (i32, i32) {
    %c0_i32 = arith.constant 0 : i32
    %c0_i32_0 = arith.constant 0 : i32
    %c0_i32_1 = arith.constant 0 : i32
    return %c0_i32, %c0_i32_0 : i32, i32
  }
  func.func @transform_30(%arg0: i32) -> (i32, i32, i32) {
    %c0_i32 = arith.constant 0 : i32
    %c0_i32_0 = arith.constant 0 : i32
    %c0_i32_1 = arith.constant 0 : i32
    %c0_i32_2 = arith.constant 0 : i32
    return %c0_i32, %c0_i32_0, %c0_i32_1 : i32, i32, i32
  }
  func.func @transform_31(%arg0: i32) -> (i32, i32) {
    %c0_i32 = arith.constant 0 : i32
    %c0_i32_0 = arith.constant 0 : i32
    %c0_i32_1 = arith.constant 0 : i32
    return %c0_i32, %c0_i32_0 : i32, i32
  }
  func.func @transform_32(%arg0: i32) -> (i32, i32, i32) {
    %c0_i32 = arith.constant 0 : i32
    %c0_i32_0 = arith.constant 0 : i32
    %c0_i32_1 = arith.constant 0 : i32
    %c0_i32_2 = arith.constant 0 : i32
    return %c0_i32, %c0_i32_0, %c0_i32_1 : i32, i32, i32
  }
  func.func @transform_33(%arg0: i32) -> (i32, i32, i32) {
    %c0_i32 = arith.constant 0 : i32
    %c0_i32_0 = arith.constant 0 : i32
    %c0_i32_1 = arith.constant 0 : i32
    %c0_i32_2 = arith.constant 0 : i32
    return %c0_i32, %c0_i32_0, %c0_i32_1 : i32, i32, i32
  }
  func.func @transform_34(%arg0: i32) -> (i32, i32, i32) {
    %c0_i32 = arith.constant 0 : i32
    %c0_i32_0 = arith.constant 0 : i32
    %c0_i32_1 = arith.constant 0 : i32
    %c0_i32_2 = arith.constant 0 : i32
    return %c0_i32, %c0_i32_0, %c0_i32_1 : i32, i32, i32
  }
  func.func @transform_35(%arg0: i32) -> (i32, i32) {
    %c0_i32 = arith.constant 0 : i32
    %c0_i32_0 = arith.constant 0 : i32
    %c0_i32_1 = arith.constant 0 : i32
    return %c0_i32, %c0_i32_0 : i32, i32
  }
  func.func @transform_36(%arg0: i32) -> (i32, i32) {
    %c0_i32 = arith.constant 0 : i32
    %c0_i32_0 = arith.constant 0 : i32
    %c0_i32_1 = arith.constant 0 : i32
    return %c0_i32, %c0_i32_0 : i32, i32
  }
  func.func @transform_37(%arg0: i32) -> (i32, i32, i32) {
    %c0_i32 = arith.constant 0 : i32
    %c0_i32_0 = arith.constant 0 : i32
    %c0_i32_1 = arith.constant 0 : i32
    return %arg0, %c0_i32, %c0_i32_0 : i32, i32, i32
  }
  func.func @transform_38(%arg0: i32) -> (i32, i32, i32) {
    %c0_i32 = arith.constant 0 : i32
    %c0_i32_0 = arith.constant 0 : i32
    %c0_i32_1 = arith.constant 0 : i32
    return %arg0, %c0_i32, %c0_i32_0 : i32, i32, i32
  }
}

</mosaic_0001>

<bundles_post_ra>
// kernel: forward.1
= control target key start
LH: loop header
LB: loop body
LE: loop exit
PB: predicated region body
PF: predicated region fallthrough
CT: control target
= control target key end

     0   :  { %s10970_s6 = smov 1   ;;  %s10971_s10 = smov 2   ;;  %s12510_s0 = inlined_call_operand.smem [shape: u32[39], index: -1, kind: input, shape index: {}] }
   0x1   :  { %s11058_s5 = sld [smem:[%s12510_s0]]   ;;  %s10972_s14 = smov 3  }
   0x2   :  { %s11063_s9 = sld [smem:[%s12510_s0 + %s10970_s6]]   ;;  %s10973_s18 = smov 4  }
   0x3   :  { %s11068_s13 = sld [smem:[%s12510_s0 + %s10971_s10]]   ;;  %s10974_s22 = smov 5  }
   0x4   :  { %s11073_s17 = sld [smem:[%s12510_s0 + %s10972_s14]]   ;;  %s10975_s26 = smov 6  }
   0x5   :  { %s11078_s21 = sld [smem:[%s12510_s0 + %s10973_s18]]   ;;  %s10976_s30 = smov 7  }
   0x6   :  { %s11083_s25 = sld [smem:[%s12510_s0 + %s10974_s22]]   ;;  %s10977_s4 = smov 8  }
   0x7   :  { %12546 = sst [smem:[#allocation48_spill]] %s11058_s5  ;;  %s10978_s10 = smov 9  }
   0x8   :  { %12547 = sst [smem:[#allocation49_spill]] %s11063_s9  ;;  %s10979_s15 = smov 10  }
   0x9   :  { %12548 = sst [smem:[#allocation50_spill]] %s11068_s13  ;;  %s10980_s20 = smov 11  }
   0xa   :  { %s11088_s29 = sld [smem:[%s12510_s0 + %s10975_s26]]   ;;  %s10981_s26 = smov 12  }
   0xb   :  { %12549 = sst [smem:[#allocation51_spill]] %s11078_s21  ;;  %s10982_s1 = smov 13  }
   0xc   :  { %s11093_s3 = sld [smem:[%s12510_s0 + %s10976_s30]]   ;;  %s10983_s7 = smov 14  }
   0xd   :  { %s11098_s8 = sld [smem:[%s12510_s0 + %s10977_s4]]   ;;  %s10985_s22 = smov 16  }
   0xe   :  { %s11103_s14 = sld [smem:[%s12510_s0 + %s10978_s10]]   ;;  %s10986_s28 = smov 17  }
   0xf   :  { %s11108_s19 = sld [smem:[%s12510_s0 + %s10979_s15]]   ;;  %s10984_s15 = smov 15  }
  0x10   :  { %s11113_s24 = sld [smem:[%s12510_s0 + %s10980_s20]]  }
  0x11   :  { %s11118_s30 = sld [smem:[%s12510_s0 + %s10981_s26]]  }
  0x12   :  { %12550 = sst [smem:[#allocation52_spill]] %s11093_s3 }
  0x13   :  { %12551 = sst [smem:[#allocation53_spill]] %s11098_s8 }
  0x14   :  { %12552 = sst [smem:[#allocation54_spill]] %s11103_s14 }
  0x15   :  { %12553 = sst [smem:[#allocation55_spill]] %s11108_s19 }
  0x16   :  { %12554 = sst [smem:[#allocation56_spill]] %s11113_s24 }
  0x17   :  { %12555 = sst [smem:[#allocation57_spill]] %s11118_s30 }
  0x18   :  { %s11123_s6 = sld [smem:[%s12510_s0 + %s10982_s1]]  }
  0x19   :  { %s11128_s12 = sld [smem:[%s12510_s0 + %s10983_s7]]   ;;  %s10987_s7 = smov 18  }
  0x1a   :  { %s11133_s20 = sld [smem:[%s12510_s0 + %s10984_s15]]   ;;  %s10988_s15 = smov 19  }
  0x1b   :  { %s11138_s27 = sld [smem:[%s12510_s0 + %s10985_s22]]   ;;  %s10989_s22 = smov 20  }
  0x1c   :  { %s11143_s4 = sld [smem:[%s12510_s0 + %s10986_s28]]   ;;  %s10990_s28 = smov 21  }
  0x1d   :  { %s11148_s13 = sld [smem:[%s12510_s0 + %s10987_s7]]   ;;  %s10991_s7 = smov 22  }
  0x1e   :  { %12556 = sst [smem:[#allocation58_spill]] %s11123_s6 }
  0x1f   :  { %12557 = sst [smem:[#allocation59_spill]] %s11128_s12 }
  0x20   :  { %s11153_s12 = sld [smem:[%s12510_s0 + %s10988_s15]]   ;;  %s10992_s15 = smov 23  }
  0x21   :  { %12558 = sst [smem:[#allocation60_spill]] %s11138_s27 }
  0x22   :  { %12559 = sst [smem:[#allocation61_spill]] %s11143_s4 }
  0x23   :  { %12560 = sst [smem:[#allocation62_spill]] %s11148_s13 }
  0x24   :  { %s11158_s27 = sld [smem:[%s12510_s0 + %s10989_s22]]   ;;  %s10993_s22 = smov 24  }
  0x25   :  { %s11163_s4 = sld [smem:[%s12510_s0 + %s10990_s28]]   ;;  %s10994_s28 = smov 25  }
  0x26   :  { %12561 = sst [smem:[#allocation63_spill]] %s11153_s12 }
  0x27   :  { %s11168_s19 = sld [smem:[%s12510_s0 + %s10991_s7]]   ;;  %s10995_s7 = smov 26  }
  0x28   :  { %s11173_s30 = sld [smem:[%s12510_s0 + %s10992_s15]]   ;;  %s10996_s15 = smov 27  }
  0x29   :  { %s11178_s24 = sld [smem:[%s12510_s0 + %s10993_s22]]   ;;  %s10997_s22 = smov 28  }
  0x2a   :  { %12562 = sst [smem:[#allocation64_spill]] %s11158_s27 }
  0x2b   :  { %12563 = sst [smem:[#allocation65_spill]] %s11163_s4 }
  0x2c   :  { %s11183_s21 = sld [smem:[%s12510_s0 + %s10994_s28]]   ;;  %s10998_s28 = smov 29  }
  0x2d   :  { %12564 = sst [smem:[#allocation66_spill]] %s11168_s19 }
  0x2e   :  { %s11188_s6 = sld [smem:[%s12510_s0 + %s10995_s7]]   ;;  %s10999_s7 = smov 30  }
  0x2f   :  { %12565 = sst [smem:[#allocation67_spill]] %s11178_s24 }
  0x30   :  { %s11193_s3 = sld [smem:[%s12510_s0 + %s10996_s15]]   ;;  %s11000_s15 = smov 31  }
  0x31   :  { %s11198_s5 = sld [smem:[%s12510_s0 + %s10997_s22]]   ;;  %s11001_s22 = smov 32  }
  0x32   :  { %s11203_s9 = sld [smem:[%s12510_s0 + %s10998_s28]]   ;;  %s11002_s28 = smov 33  }
  0x33   :  { %s11213_s24 = sld [smem:[%s12510_s0 + %s11000_s15]]   ;;  %s11004_s15 = smov 35  }
  0x34   :  { %12566 = sst [smem:[#allocation68_spill]] %s11188_s6 }
  0x35   :  { %s11208_s6 = sld [smem:[%s12510_s0 + %s10999_s7]]   ;;  %s11003_s7 = smov 34  }
  0x36   :  { %12567 = sst [smem:[#allocation69_spill]] %s11193_s3 }
  0x37   :  { %12568 = sst [smem:[#allocation70_spill]] %s11198_s5 }
  0x38   :  { %12569 = sst [smem:[#allocation71_spill]] %s11203_s9 }
  0x39   :  { %12571 = sst [smem:[#allocation73_spill]] %s11213_s24 }
  0x3a   :  { %s11218_s5 = sld [smem:[%s12510_s0 + %s11001_s22]]   ;;  %s11005_s22 = smov 36  }
  0x3b   :  { %12570 = sst [smem:[#allocation72_spill]] %s11208_s6 }
  0x3c   :  { %s11223_s9 = sld [smem:[%s12510_s0 + %s11002_s28]]   ;;  %s11006_s28 = smov 37  }
  0x3d   :  { %s11228_s19 = sld [smem:[%s12510_s0 + %s11003_s7]]   ;;  %s11007_s7 = smov 38  }
  0x3e   :  { %s11233_s24 = sld [smem:[%s12510_s0 + %s11004_s15]]  }
  0x3f   :  { %s11238_s27 = sld [smem:[%s12510_s0 + %s11005_s22]]  }
  0x40   :  { %12572 = sst [smem:[#allocation74_spill]] %s11218_s5 }
  0x42   :  { %12573 = sst [smem:[#allocation75_spill]] %s11223_s9 }
  0x43   :  { %12574 = sst [smem:[#allocation76_spill]] %s11228_s19 }
  0x44   :  { %s11243_s9 = sld [smem:[%s12510_s0 + %s11006_s28]]  }
  0x45   :  { %s11248_s19 = sld [smem:[%s12510_s0 + %s11007_s7]]  }
  0x46   :  { %83 = vsyncpa [#allocation3], 0 }
  0x47   :  { %84 = vsyncpa [#allocation5], 0 }
  0x48   :  { %85 = vsyncpa [#allocation8], 0 }
  0x49   :  { %86 = vsyncpa [#allocation11], 0 }
  0x4a   :  { %87 = vsyncpa [#allocation14], 0 }
  0x4b   :  { %88 = vsyncpa [#allocation17], 0 }
  0x4c   :  { %89 = vsyncpa [#allocation20], 0 }
  0x4d   :  { %90 = vsyncpa [#allocation23], 0 }
  0x4e   :  { %91 = vsyncpa [#allocation26], 0 }
  0x4f   :  { %92 = vsyncpa [#allocation29], 0 }
  0x50   :  { %93 = vsyncpa [#allocation32], 0 }
  0x51   :  { %94 = vsyncpa [#allocation35], 0  ;;  %s11250_s15 = smov 0  }
  0x52 LB: > { %s12575_s14 = sld [smem:[#allocation54_spill]]  ;;  %s12577_s12 = sld [smem:[#allocation63_spill]]  ;;  %s10968_s15 = sphi %s11250_s15, %s100_s15  }
  0x53   : > { %s12576_s13 = sld [smem:[#allocation62_spill]]  ;;  %s12578_s6 = sld [smem:[#allocation72_spill]] }
  0x54   : > { %s12579_s5 = sld [smem:[#allocation74_spill]]  ;;  %s12580_s4 = sld [smem:[#allocation65_spill]] }
  0x55   : > { %s12581_s3 = sld [smem:[#allocation69_spill]]  ;;  %s11008_s0 = smov [#allocation4]  }
  0x56   : > { %s12582_s8 = sld [smem:[#allocation53_spill]]  ;;  %s978_s16 = sshll.u32 %s11008_s0, 4  ;;  %s979_s16 = int_to_ptr.vmem [resolvable:$true] %s978_s16 }
  0x57   : > { %s11256_s18 = sadd.s32 4294967295, %s10968_s15   ;;  %p7979_p0 = scmp.ge.s32.totalorder %s10968_s15, 1 }
  0x58   : > { %p949_p1 = scmp.lt.s32.totalorder %s10968_s15, 3  ;;  %p12522_p2 = scmp.eq.s32.totalorder %s11256_s18, 0 }
  0x59   : > { %s11009_s23 = smov [#allocation7]   ;;  %s11010_s28 = smov [#allocation10]  }
  0x5a   : > { %p11261_p3 = pnand %p7979_p0, %p949_p1  ;;  %s1003_s26 = sshll.u32 %s11009_s23, 4  ;;  %s11267_s26 = int_to_ptr.vmem [resolvable:$true] %s1003_s26 }
  0x5b   : > { %s1041_s1 = sshll.u32 %s11010_s28, 4  ;;  %s10298_s7 = scalar_lea.hbm %s11083_s25, 64  ;;  %s11275_s1 = int_to_ptr.vmem [resolvable:$true] %s1041_s1 }
  0x5c   : > { %s12583_s22 = scalar_select %p11261_p3, 1, 0 }
  0x5d   : > { %p9961_p4 = pneg %p11261_p3  ;;  %p10299_p6 = scmp.ne.s32.totalorder %s11083_s25, %s10298_s7 }
  0x5e   : > { %p10305_p10 = scmp.lt.u32.totalorder %s10298_s7, %s11083_s25 }
  0x5f   : > { %p11271_p5 = pnand %p12522_p2, %p9961_p4 }
  0x61   : > { %p11281_p7 = pneg %p11271_p5 }
  0x63   : > { %p10301_p8 = pnand %p11281_p7, %p10299_p6 }
  0x65   : > { %p10302_p9 = pneg %p10301_p8 }
  0x67   : > { %p10307_p11 = pnand %p10305_p10, %p10302_p9 }
  0x69   : > { %10310 = shalt.err (!%p10307_p11)
}
  0x6a   : > { %s10311_s11 = scalar_lea.vmem %s979_s16, 64  ;;  %p10319_p1 = scmp.lt.s32.totalorder %s979_s16, %s979_s16 }
  0x6b   : > { %p10312_p12 = scmp.ne.s32.totalorder %s979_s16, %s10311_s11  ;;  %p10320_p4 = scmp.lt.s32.totalorder %s10311_s11, %s10311_s11 }
  0x6d   : > { %p10314_p13 = pnand %p10312_p12, %p11281_p7  ;;  %p10321_p2 = por %p10320_p4, %p10319_p1 }
  0x6f   : > { %p10315_p0 = pneg %p10314_p13 }
  0x71   : > { %p10322_p3 = pnand %p10321_p2, %p10315_p0 }
  0x73   : > { %10325 = shalt.err (!%p10322_p3)
}
  0x74   : > { %9967 = dma.hbm_to_vmem [thread:$0]  (!%p11271_p5), %s11083_s25, 64, %s979_s16, [#allocation5]  }
  0x75   : > { %s10326_s0 = scalar_lea.hbm %s12582_s8, 16 }
  0x76   : > { %p10327_p6 = scmp.ne.s32.totalorder %s12582_s8, %s10326_s0  ;;  %p10333_p10 = scmp.lt.u32.totalorder %s10326_s0, %s12582_s8 }
  0x78   : > { %p10329_p8 = pnand %p10327_p6, %p11281_p7 }
  0x7a   : > { %p10330_p9 = pneg %p10329_p8 }
  0x7c   : > { %p10335_p11 = pnand %p10333_p10, %p10330_p9 }
  0x7e   : > { %10338 = shalt.err (!%p10335_p11)
}
  0x7f   : > { %s10339_s23 = scalar_lea.vmem %s11267_s26, 16  ;;  %s10346_s28 = scalar_lea.vmem %s11267_s26, 32 }
  0x80   : > { %p10340_p2 = scmp.ne.s32.totalorder %s11267_s26, %s10339_s23  ;;  %p10347_p13 = scmp.lt.s32.totalorder %s11267_s26, %s11267_s26 }
  0x81   : > { %p10348_p0 = scmp.lt.s32.totalorder %s10346_s28, %s10339_s23 }
  0x82   : > { %p10342_p3 = pnand %p10340_p2, %p11281_p7 }
  0x83   : > { %p10349_p1 = por %p10348_p0, %p10347_p13 }
  0x84   : > { %p10343_p12 = pneg %p10342_p3 }
  0x86   : > { %p10350_p4 = pnand %p10349_p1, %p10343_p12 }
  0x88   : > { %10353 = shalt.err (!%p10350_p4)
}
  0x89   : > { %9973 = dma.hbm_to_vmem [thread:$0]  (!%p11271_p5), %s12582_s8, 16, %s11267_s26, [#allocation8]  }
  0x8a   : > { %s10354_s16 = scalar_lea.hbm %s11133_s20, 12288 }
  0x8b   : > { %p10355_p6 = scmp.ne.s32.totalorder %s11133_s20, %s10354_s16  ;;  %p10361_p10 = scmp.lt.u32.totalorder %s10354_s16, %s11133_s20 }
  0x8d   : > { %p10357_p8 = pnand %p10355_p6, %p11281_p7 }
  0x8f   : > { %p10358_p9 = pneg %p10357_p8 }
  0x91   : > { %p10363_p11 = pnand %p10361_p10, %p10358_p9 }
  0x93   : > { %10366 = shalt.err (!%p10363_p11)
}
  0x94   : > { %s10367_s7 = scalar_lea.vmem %s11275_s1, 12288  ;;  %p10375_p13 = scmp.lt.s32.totalorder %s11275_s1, %s11275_s1 }
  0x95   : > { %p10368_p2 = scmp.ne.s32.totalorder %s11275_s1, %s10367_s7  ;;  %p10376_p0 = scmp.lt.s32.totalorder %s10367_s7, %s10367_s7 }
  0x97   : > { %p10370_p3 = pnand %p10368_p2, %p11281_p7  ;;  %p10377_p1 = por %p10376_p0, %p10375_p13 }
  0x99   : > { %p10371_p12 = pneg %p10370_p3 }
  0x9b   : > { %p10378_p4 = pnand %p10377_p1, %p10371_p12 }
  0x9d   : > { %10381 = shalt.err (!%p10378_p4)
}
  0x9e   : > { %s12525_s26 = smov 384   ;;  %s12527_s11 = smov 24  }
  0x9f   : > { %9979 = dma.hbm_to_vmem [thread:$0]  (!%p11271_p5), %s11133_s20, 12288, %s11275_s1, [#allocation11], %s12525_s26, %s12525_s26, %s12527_s11  }
  0xa0   : > { %s11013_s0 = smov [#allocation13]   ;;  %s11014_s28 = smov [#allocation16]  }
  0xa1   : > { %s1073_s23 = sshll.u32 %s11013_s0, 4  ;;  %s1099_s16 = sshll.u32 %s11014_s28, 4  ;;  %s1074_s23 = int_to_ptr.vmem [resolvable:$true] %s1073_s23  ;;  %s11327_s16 = int_to_ptr.vmem [resolvable:$true] %s1099_s16 }
  0xa2   : > { %s10382_s7 = scalar_lea.hbm %s12577_s12, 32 }
  0xa3   : > { %p10383_p6 = scmp.ne.s32.totalorder %s12577_s12, %s10382_s7  ;;  %p10389_p10 = scmp.lt.u32.totalorder %s10382_s7, %s12577_s12 }
  0xa5   : > { %p10385_p8 = pnand %p10383_p6, %p11281_p7 }
  0xa7   : > { %p10386_p9 = pneg %p10385_p8 }
  0xa9   : > { %p10391_p11 = pnand %p10389_p10, %p10386_p9 }
  0xab   : > { %10394 = shalt.err (!%p10391_p11)
}
  0xac   : > { %s10395_s8 = scalar_lea.vmem %s1074_s23, 32  ;;  %p10403_p13 = scmp.lt.s32.totalorder %s1074_s23, %s1074_s23 }
  0xad   : > { %p10396_p2 = scmp.ne.s32.totalorder %s1074_s23, %s10395_s8  ;;  %p10404_p0 = scmp.lt.s32.totalorder %s10395_s8, %s10395_s8 }
  0xaf   : > { %p10398_p3 = pnand %p10396_p2, %p11281_p7  ;;  %p10405_p1 = por %p10404_p0, %p10403_p13 }
  0xb1   : > { %p10399_p12 = pneg %p10398_p3 }
  0xb3   : > { %p10406_p4 = pnand %p10405_p1, %p10399_p12 }
  0xb5   : > { %10409 = shalt.err (!%p10406_p4)
}
  0xb6   : > { %s12535_s1 = smov 16   ;;  %s12529_s0 = smov 1  }
  0xb7   : > { %9985 = dma.hbm_to_vmem [thread:$0]  (!%p11271_p5), %s12577_s12, 32, %s1074_s23, [#allocation14], %s12535_s1, %s12535_s1, %s12529_s0  }
  0xb8   : > { %s10410_s28 = scalar_lea.hbm %s12580_s4, 8192 }
  0xb9   : > { %p10411_p6 = scmp.ne.s32.totalorder %s12580_s4, %s10410_s28  ;;  %p10417_p10 = scmp.lt.u32.totalorder %s10410_s28, %s12580_s4 }
  0xbb   : > { %p10413_p8 = pnand %p10411_p6, %p11281_p7 }
  0xbd   : > { %p10414_p9 = pneg %p10413_p8 }
  0xbf   : > { %p10419_p11 = pnand %p10417_p10, %p10414_p9 }
  0xc1   : > { %10422 = shalt.err (!%p10419_p11)
}
  0xc2   : > { %s10423_s8 = scalar_lea.vmem %s11327_s16, 8192  ;;  %p10431_p13 = scmp.lt.s32.totalorder %s11327_s16, %s11327_s16 }
  0xc3   : > { %p10424_p2 = scmp.ne.s32.totalorder %s11327_s16, %s10423_s8  ;;  %p10432_p0 = scmp.lt.s32.totalorder %s10423_s8, %s10423_s8 }
  0xc5   : > { %p10426_p3 = pnand %p10424_p2, %p11281_p7  ;;  %p10433_p1 = por %p10432_p0, %p10431_p13 }
  0xc7   : > { %p10427_p12 = pneg %p10426_p3 }
  0xc9   : > { %p10434_p4 = pnand %p10433_p1, %p10427_p12 }
  0xcb   : > { %10437 = shalt.err (!%p10434_p4)
}
  0xcc   : > { %s12533_s23 = smov 256   ;;  %s11018_s7 = smov [#allocation19]  }
  0xcd   : > { %9991 = dma.hbm_to_vmem [thread:$0]  (!%p11271_p5), %s12580_s4, 8192, %s11327_s16, [#allocation17], %s12533_s23, %s12533_s23, %s12535_s1  }
  0xce   : > { %s1125_s28 = sshll.u32 %s11018_s7, 4  ;;  %s11019_s8 = smov [#allocation22]   ;;  %s1126_s28 = int_to_ptr.vmem [resolvable:$true] %s1125_s28 }
  0xcf   : > { %s1151_s26 = sshll.u32 %s11019_s8, 4  ;;  %s10438_s11 = scalar_lea.hbm %s11173_s30, 8192  ;;  %s1152_s26 = int_to_ptr.vmem [resolvable:$true] %s1151_s26 }
  0xd0   : > { %p10439_p6 = scmp.ne.s32.totalorder %s11173_s30, %s10438_s11  ;;  %p10445_p10 = scmp.lt.u32.totalorder %s10438_s11, %s11173_s30 }
  0xd2   : > { %p10441_p8 = pnand %p10439_p6, %p11281_p7 }
  0xd4   : > { %p10442_p9 = pneg %p10441_p8 }
  0xd6   : > { %p10447_p11 = pnand %p10445_p10, %p10442_p9 }
  0xd8   : > { %10450 = shalt.err (!%p10447_p11)
}
  0xd9   : > { %s10451_s0 = scalar_lea.vmem %s1126_s28, 8192  ;;  %p10459_p13 = scmp.lt.s32.totalorder %s1126_s28, %s1126_s28 }
  0xda   : > { %p10452_p2 = scmp.ne.s32.totalorder %s1126_s28, %s10451_s0  ;;  %p10460_p0 = scmp.lt.s32.totalorder %s10451_s0, %s10451_s0 }
  0xdc   : > { %p10454_p3 = pnand %p10452_p2, %p11281_p7  ;;  %p10461_p1 = por %p10460_p0, %p10459_p13 }
  0xde   : > { %p10455_p12 = pneg %p10454_p3 }
  0xe0   : > { %p10462_p4 = pnand %p10461_p1, %p10455_p12 }
  0xe2   : > { %10465 = shalt.err (!%p10462_p4)
}
  0xe3   : > { %s12531_s16 = smov 128   ;;  %s12532_s11 = smov 8  }
  0xe4   : > { %9997 = dma.hbm_to_vmem [thread:$0]  (!%p11271_p5), %s11173_s30, 8192, %s1126_s28, [#allocation20], %s12531_s16, %s12531_s16, %s12532_s11  }
  0xe5   : > { %s10466_s7 = scalar_lea.hbm %s11183_s21, 32 }
  0xe6   : > { %p10467_p6 = scmp.ne.s32.totalorder %s11183_s21, %s10466_s7  ;;  %p10473_p10 = scmp.lt.u32.totalorder %s10466_s7, %s11183_s21 }
  0xe8   : > { %p10469_p8 = pnand %p10467_p6, %p11281_p7 }
  0xea   : > { %p10470_p9 = pneg %p10469_p8 }
  0xec   : > { %p10475_p11 = pnand %p10473_p10, %p10470_p9 }
  0xee   : > { %10478 = shalt.err (!%p10475_p11)
}
  0xef   : > { %s10479_s0 = scalar_lea.vmem %s1152_s26, 32  ;;  %p10487_p13 = scmp.lt.s32.totalorder %s1152_s26, %s1152_s26 }
  0xf0   : > { %p10480_p2 = scmp.ne.s32.totalorder %s1152_s26, %s10479_s0  ;;  %p10488_p0 = scmp.lt.s32.totalorder %s10479_s0, %s10479_s0 }
  0xf2   : > { %p10482_p3 = pnand %p10480_p2, %p11281_p7  ;;  %p10489_p1 = por %p10488_p0, %p10487_p13 }
  0xf4   : > { %p10483_p12 = pneg %p10482_p3 }
  0xf6   : > { %p10490_p4 = pnand %p10489_p1, %p10483_p12 }
  0xf8   : > { %10493 = shalt.err (!%p10490_p4)
}
  0xf9   : > { %s12586_s28 = smov 1   ;;  %s11022_s8 = smov [#allocation25]  }
  0xfa   : > { %10003 = dma.hbm_to_vmem [thread:$0]  (!%p11271_p5), %s11183_s21, 32, %s1152_s26, [#allocation23], %s12535_s1, %s12535_s1, %s12586_s28  }
  0xfb   : > { %s1177_s7 = sshll.u32 %s11022_s8, 4  ;;  %s11023_s16 = smov [#allocation28]   ;;  %s1178_s7 = int_to_ptr.vmem [resolvable:$true] %s1177_s7 }
  0xfc   : > { %s1204_s11 = sshll.u32 %s11023_s16, 4  ;;  %s10494_s0 = scalar_lea.hbm %s12581_s3, 4096  ;;  %s1205_s11 = int_to_ptr.vmem [resolvable:$true] %s1204_s11 }
  0xfd   : > { %p10495_p6 = scmp.ne.s32.totalorder %s12581_s3, %s10494_s0  ;;  %p10501_p10 = scmp.lt.u32.totalorder %s10494_s0, %s12581_s3 }
  0xff   : > { %p10497_p8 = pnand %p10495_p6, %p11281_p7 }
 0x101   : > { %p10498_p9 = pneg %p10497_p8 }
 0x103   : > { %p10503_p11 = pnand %p10501_p10, %p10498_p9 }
 0x105   : > { %10506 = shalt.err (!%p10503_p11)
}
 0x106   : > { %s10507_s23 = scalar_lea.vmem %s1178_s7, 4096  ;;  %p10515_p13 = scmp.lt.s32.totalorder %s1178_s7, %s1178_s7 }
 0x107   : > { %p10508_p2 = scmp.ne.s32.totalorder %s1178_s7, %s10507_s23  ;;  %p10516_p0 = scmp.lt.s32.totalorder %s10507_s23, %s10507_s23 }
 0x109   : > { %p10510_p3 = pnand %p10508_p2, %p11281_p7  ;;  %p10517_p1 = por %p10516_p0, %p10515_p13 }
 0x10b   : > { %p10511_p12 = pneg %p10510_p3 }
 0x10d   : > { %p10518_p4 = pnand %p10517_p1, %p10511_p12 }
 0x10f   : > { %10521 = shalt.err (!%p10518_p4)
}
 0x110   : > { %s12587_s26 = smov 256   ;;  %s10522_s16 = scalar_lea.hbm %s12578_s6, 24576 }
 0x111   : > { %10009 = dma.hbm_to_vmem [thread:$0]  (!%p11271_p5), %s12581_s3, 4096, %s1178_s7, [#allocation26], %s12587_s26, %s12587_s26, %s12535_s1  }
 0x112   : > { %p10523_p6 = scmp.ne.s32.totalorder %s12578_s6, %s10522_s16  ;;  %p10529_p10 = scmp.lt.u32.totalorder %s10522_s16, %s12578_s6 }
 0x114   : > { %p10525_p8 = pnand %p10523_p6, %p11281_p7 }
 0x116   : > { %p10526_p9 = pneg %p10525_p8 }
 0x118   : > { %p10531_p11 = pnand %p10529_p10, %p10526_p9 }
 0x11a   : > { %10534 = shalt.err (!%p10531_p11)
}
 0x11b   : > { %s10535_s23 = scalar_lea.vmem %s1205_s11, 24576  ;;  %p10543_p13 = scmp.lt.s32.totalorder %s1205_s11, %s1205_s11 }
 0x11c   : > { %p10536_p2 = scmp.ne.s32.totalorder %s1205_s11, %s10535_s23  ;;  %p10544_p0 = scmp.lt.s32.totalorder %s10535_s23, %s10535_s23 }
 0x11e   : > { %p10538_p3 = pnand %p10536_p2, %p11281_p7  ;;  %p10545_p1 = por %p10544_p0, %p10543_p13 }
 0x120   : > { %p10539_p12 = pneg %p10538_p3 }
 0x122   : > { %p10546_p4 = pnand %p10545_p1, %p10539_p12 }
 0x124   : > { %10549 = shalt.err (!%p10546_p4)
}
 0x125   : > { %s12588_s8 = smov 24   ;;  %s12589_s7 = smov 384  }
 0x126   : > { %10015 = dma.hbm_to_vmem [thread:$0]  (!%p11271_p5), %s12578_s6, 24576, %s1205_s11, [#allocation29], %s12589_s7, %s12589_s7, %s12588_s8  }
 0x127   : > { %s11024_s0 = smov [#allocation31]   ;;  %s11025_s1 = smov [#allocation2]  }
 0x128   : > { %s1230_s16 = sshll.u32 %s11024_s0, 4  ;;  %s961_s3 = sshll.u32 %s11025_s1, 4  ;;  %s1231_s16 = int_to_ptr.vmem [resolvable:$true] %s1230_s16  ;;  %s962_s3 = int_to_ptr.vmem [resolvable:$true] %s961_s3 }
 0x129   : > { %s10550_s23 = scalar_lea.hbm %s12579_s5, 12288 }
 0x12a   : > { %p10551_p6 = scmp.ne.s32.totalorder %s12579_s5, %s10550_s23  ;;  %p10557_p10 = scmp.lt.u32.totalorder %s10550_s23, %s12579_s5 }
 0x12c   : > { %p10553_p8 = pnand %p10551_p6, %p11281_p7 }
 0x12e   : > { %p10554_p9 = pneg %p10553_p8 }
 0x130   : > { %p10559_p11 = pnand %p10557_p10, %p10554_p9 }
 0x132   : > { %10562 = shalt.err (!%p10559_p11)
}
 0x133   : > { %s10563_s4 = scalar_lea.vmem %s1231_s16, 12288  ;;  %p10571_p13 = scmp.lt.s32.totalorder %s1231_s16, %s1231_s16 }
 0x134   : > { %p10564_p2 = scmp.ne.s32.totalorder %s1231_s16, %s10563_s4  ;;  %p10572_p0 = scmp.lt.s32.totalorder %s10563_s4, %s10563_s4 }
 0x136   : > { %p10566_p3 = pnand %p10564_p2, %p11281_p7  ;;  %p10573_p1 = por %p10572_p0, %p10571_p13 }
 0x138   : > { %p10567_p12 = pneg %p10566_p3 }
 0x13a   : > { %p10574_p4 = pnand %p10573_p1, %p10567_p12 }
 0x13c   : > { %10577 = shalt.err (!%p10574_p4)
}
 0x13d   : > { %10021 = dma.hbm_to_vmem [thread:$0]  (!%p11271_p5), %s12579_s5, 12288, %s1231_s16, [#allocation32], %s12589_s7, %s12589_s7, %s12588_s8  }
 0x13e   : > { %s10578_s1 = scalar_lea.hbm %s11073_s17, 8192 }
 0x13f   : > { %p10579_p6 = scmp.ne.s32.totalorder %s11073_s17, %s10578_s1  ;;  %p10585_p10 = scmp.lt.u32.totalorder %s10578_s1, %s11073_s17 }
 0x141   : > { %p10581_p8 = pnand %p10579_p6, %p11281_p7 }
 0x143   : > { %p10582_p9 = pneg %p10581_p8 }
 0x145   : > { %p10587_p11 = pnand %p10585_p10, %p10582_p9 }
 0x147   : > { %10590 = shalt.err (!%p10587_p11)
}
 0x148   : > { %s10591_s4 = scalar_lea.vmem %s962_s3, 8192  ;;  %p10599_p13 = scmp.lt.s32.totalorder %s962_s3, %s962_s3 }
 0x149   : > { %p10592_p2 = scmp.ne.s32.totalorder %s962_s3, %s10591_s4  ;;  %p10600_p0 = scmp.lt.s32.totalorder %s10591_s4, %s10591_s4 }
 0x14b   : > { %p10594_p3 = pnand %p10592_p2, %p11281_p7  ;;  %p10601_p1 = por %p10600_p0, %p10599_p13 }
 0x14d   : > { %p10595_p12 = pneg %p10594_p3 }
 0x14f   : > { %p10602_p4 = pnand %p10601_p1, %p10595_p12 }
 0x151   : > { %10605 = shalt.err (!%p10602_p4)
}
 0x152   : > { %s11026_s11 = smov 512   ;;  %s12541_s0 = smov 32  }
 0x153   : > { %9964 = dma.hbm_to_vmem [thread:$0]  (!%p11271_p5), %s11073_s17, 8192, %s962_s3, [#allocation3], %s11026_s11, %s11026_s11, %s12541_s0  }
 0x154   : > { %s11028_s16 = smov [#allocation6]   ;;  %s11029_s1 = smov [#allocation9]  }
 0x155   : > { %s989_s23 = sshll.u32 %s11028_s16, 4  ;;  %s1013_s5 = sshll.u32 %s11029_s1, 4  ;;  %s990_s23 = int_to_ptr.vmem [resolvable:$true] %s989_s23  ;;  %s1014_s5 = int_to_ptr.vmem [resolvable:$true] %s1013_s5 }
 0x156   : > { %s10606_s4 = scalar_lea.hbm %s11088_s29, 64 }
 0x157   : > { %p10607_p6 = scmp.ne.s32.totalorder %s11088_s29, %s10606_s4  ;;  %p10613_p10 = scmp.lt.u32.totalorder %s10606_s4, %s11088_s29 }
 0x159   : > { %p10609_p8 = pnand %p10607_p6, %p11281_p7 }
 0x15b   : > { %p10610_p9 = pneg %p10609_p8 }
 0x15d   : > { %p10615_p11 = pnand %p10613_p10, %p10610_p9 }
 0x15f   : > { %10618 = shalt.err (!%p10615_p11)
}
 0x160   : > { %s10619_s6 = scalar_lea.vmem %s990_s23, 64  ;;  %p10627_p13 = scmp.lt.s32.totalorder %s990_s23, %s990_s23 }
 0x161   : > { %p10620_p2 = scmp.ne.s32.totalorder %s990_s23, %s10619_s6  ;;  %p10628_p0 = scmp.lt.s32.totalorder %s10619_s6, %s10619_s6 }
 0x163   : > { %p10622_p3 = pnand %p10620_p2, %p11281_p7  ;;  %p10629_p1 = por %p10628_p0, %p10627_p13 }
 0x165   : > { %p10623_p12 = pneg %p10622_p3 }
 0x167   : > { %p10630_p4 = pnand %p10629_p1, %p10623_p12 }
 0x169   : > { %10633 = shalt.err (!%p10630_p4)
}
 0x16a   : > { %9970 = dma.hbm_to_vmem [thread:$0]  (!%p11271_p5), %s11088_s29, 64, %s990_s23, [#allocation5]  }
 0x16b   : > { %s10634_s3 = scalar_lea.hbm %s12575_s14, 2048 }
 0x16c   : > { %p10635_p6 = scmp.ne.s32.totalorder %s12575_s14, %s10634_s3  ;;  %p10641_p10 = scmp.lt.u32.totalorder %s10634_s3, %s12575_s14 }
 0x16e   : > { %p10637_p8 = pnand %p10635_p6, %p11281_p7 }
 0x170   : > { %p10638_p9 = pneg %p10637_p8 }
 0x172   : > { %p10643_p11 = pnand %p10641_p10, %p10638_p9 }
 0x174   : > { %10646 = shalt.err (!%p10643_p11)
}
 0x175   : > { %s10647_s6 = scalar_lea.vmem %s1014_s5, 2048  ;;  %p10655_p13 = scmp.lt.s32.totalorder %s1014_s5, %s1014_s5 }
 0x176   : > { %p10648_p2 = scmp.ne.s32.totalorder %s1014_s5, %s10647_s6  ;;  %p10656_p0 = scmp.lt.s32.totalorder %s10647_s6, %s10647_s6 }
 0x178   : > { %p10650_p3 = pnand %p10648_p2, %p11281_p7  ;;  %p10657_p1 = por %p10656_p0, %p10655_p13 }
 0x17a   : > { %p10651_p12 = pneg %p10650_p3 }
 0x17c   : > { %p10658_p4 = pnand %p10657_p1, %p10651_p12 }
 0x17e   : > { %10661 = shalt.err (!%p10658_p4)
}
 0x17f   : > { %s12590_s11 = smov 8   ;;  %s12591_s16 = smov 128  }
 0x180   : > { %9976 = dma.hbm_to_vmem [thread:$0]  (!%p11271_p5), %s12575_s14, 2048, %s1014_s5, [#allocation8], %s12591_s16, %s12591_s16, %s12590_s11  }
 0x181   : > { %s11030_s23 = smov [#allocation12]   ;;  %s11031_s4 = smov [#allocation15]  }
 0x182   : > { %s1060_s1 = sshll.u32 %s11030_s23, 4  ;;  %s1086_s3 = sshll.u32 %s11031_s4, 4  ;;  %s1061_s1 = int_to_ptr.vmem [resolvable:$true] %s1060_s1  ;;  %s1087_s3 = int_to_ptr.vmem [resolvable:$true] %s1086_s3 }
 0x183   : > { %s10662_s6 = scalar_lea.hbm %s12576_s13, 32 }
 0x184   : > { %p10663_p6 = scmp.ne.s32.totalorder %s12576_s13, %s10662_s6  ;;  %p10669_p10 = scmp.lt.u32.totalorder %s10662_s6, %s12576_s13 }
 0x186   : > { %p10665_p8 = pnand %p10663_p6, %p11281_p7 }
 0x188   : > { %p10666_p9 = pneg %p10665_p8 }
 0x18a   : > { %p10671_p11 = pnand %p10669_p10, %p10666_p9 }
 0x18c   : > { %10674 = shalt.err (!%p10671_p11)
}
 0x18d   : > { %s10675_s0 = scalar_lea.vmem %s1061_s1, 32  ;;  %p10683_p13 = scmp.lt.s32.totalorder %s1061_s1, %s1061_s1 }
 0x18e   : > { %p10676_p2 = scmp.ne.s32.totalorder %s1061_s1, %s10675_s0  ;;  %p10684_p0 = scmp.lt.s32.totalorder %s10675_s0, %s10675_s0 }
 0x190   : > { %p10678_p3 = pnand %p10676_p2, %p11281_p7  ;;  %p10685_p1 = por %p10684_p0, %p10683_p13 }
 0x192   : > { %p10679_p12 = pneg %p10678_p3 }
 0x194   : > { %p10686_p4 = pnand %p10685_p1, %p10679_p12 }
 0x196   : > { %10689 = shalt.err (!%p10686_p4)
}
 0x197   : > { %s12592_s5 = smov 16   ;;  %s12593_s11 = sld [smem:[#allocation64_spill]] }
 0x198   : > { %9982 = dma.hbm_to_vmem [thread:$0]  (!%p11271_p5), %s12576_s13, 32, %s1061_s1, [#allocation11], %s12592_s5, %s12592_s5, %s12586_s28  }
 0x19d   : > { %s10690_s16 = scalar_lea.hbm %s12593_s11, 32 }
 0x19e   : > { %p10691_p6 = scmp.ne.s32.totalorder %s12593_s11, %s10690_s16  ;;  %p10697_p10 = scmp.lt.u32.totalorder %s10690_s16, %s12593_s11 }
 0x1a0   : > { %p10693_p8 = pnand %p10691_p6, %p11281_p7 }
 0x1a2   : > { %p10694_p9 = pneg %p10693_p8 }
 0x1a4   : > { %p10699_p11 = pnand %p10697_p10, %p10694_p9 }
 0x1a6   : > { %10702 = shalt.err (!%p10699_p11)
}
 0x1a7   : > { %s10703_s0 = scalar_lea.vmem %s1087_s3, 32  ;;  %p10711_p13 = scmp.lt.s32.totalorder %s1087_s3, %s1087_s3 }
 0x1a8   : > { %p10704_p2 = scmp.ne.s32.totalorder %s1087_s3, %s10703_s0  ;;  %p10712_p0 = scmp.lt.s32.totalorder %s10703_s0, %s10703_s0 }
 0x1aa   : > { %p10706_p3 = pnand %p10704_p2, %p11281_p7  ;;  %p10713_p1 = por %p10712_p0, %p10711_p13 }
 0x1ac   : > { %p10707_p12 = pneg %p10706_p3 }
 0x1ae   : > { %p10714_p4 = pnand %p10713_p1, %p10707_p12 }
 0x1b0   : > { %10717 = shalt.err (!%p10714_p4)
}
 0x1b1   : > { %s12594_s23 = sld [smem:[#allocation66_spill]]  ;;  %s11032_s1 = smov [#allocation18]  }
 0x1b2   : > { %9988 = dma.hbm_to_vmem [thread:$0]  (!%p11271_p5), %s12593_s11, 32, %s1087_s3, [#allocation14], %s12592_s5, %s12592_s5, %s12586_s28  }
 0x1b3   : > { %s1112_s4 = sshll.u32 %s11032_s1, 4  ;;  %s1113_s4 = int_to_ptr.vmem [resolvable:$true] %s1112_s4 }
 0x1b7   : > { %s10718_s6 = scalar_lea.hbm %s12594_s23, 64 }
 0x1b8   : > { %p10719_p6 = scmp.ne.s32.totalorder %s12594_s23, %s10718_s6  ;;  %p10725_p10 = scmp.lt.u32.totalorder %s10718_s6, %s12594_s23 }
 0x1ba   : > { %p10721_p8 = pnand %p10719_p6, %p11281_p7 }
 0x1bc   : > { %p10722_p9 = pneg %p10721_p8 }
 0x1be   : > { %p10727_p11 = pnand %p10725_p10, %p10722_p9 }
 0x1c0   : > { %10730 = shalt.err (!%p10727_p11)
}
 0x1c1   : > { %s10731_s16 = scalar_lea.vmem %s1113_s4, 64  ;;  %p10739_p13 = scmp.lt.s32.totalorder %s1113_s4, %s1113_s4 }
 0x1c2   : > { %p10732_p2 = scmp.ne.s32.totalorder %s1113_s4, %s10731_s16  ;;  %p10740_p0 = scmp.lt.s32.totalorder %s10731_s16, %s10731_s16 }
 0x1c4   : > { %p10734_p3 = pnand %p10732_p2, %p11281_p7  ;;  %p10741_p1 = por %p10740_p0, %p10739_p13 }
 0x1c6   : > { %p10735_p12 = pneg %p10734_p3 }
 0x1c8   : > { %p10742_p4 = pnand %p10741_p1, %p10735_p12 }
 0x1ca   : > { %10745 = shalt.err (!%p10742_p4)
}
 0x1cb   : > { %s11033_s3 = smov 2   ;;  %s12595_s0 = smov 32  }
 0x1cc   : > { %s12596_s1 = sld [smem:[#allocation67_spill]]  ;;  %s11034_s6 = smov [#allocation21]  }
 0x1cd   : > { %9994 = dma.hbm_to_vmem [thread:$0]  (!%p11271_p5), %s12594_s23, 64, %s1113_s4, [#allocation17], %s12595_s0, %s12595_s0, %s11033_s3  }
 0x1ce   : > { %s1138_s11 = sshll.u32 %s11034_s6, 4  ;;  %s11035_s12 = smov [#allocation24]   ;;  %s1139_s11 = int_to_ptr.vmem [resolvable:$true] %s1138_s11 }
 0x1cf   : > { %s1164_s13 = sshll.u32 %s11035_s12, 4  ;;  %s1165_s13 = int_to_ptr.vmem [resolvable:$true] %s1164_s13 }
 0x1d2   : > { %s10746_s16 = scalar_lea.hbm %s12596_s1, 32 }
 0x1d3   : > { %p10747_p6 = scmp.ne.s32.totalorder %s12596_s1, %s10746_s16  ;;  %p10753_p10 = scmp.lt.u32.totalorder %s10746_s16, %s12596_s1 }
 0x1d5   : > { %p10749_p8 = pnand %p10747_p6, %p11281_p7 }
 0x1d7   : > { %p10750_p9 = pneg %p10749_p8 }
 0x1d9   : > { %p10755_p11 = pnand %p10753_p10, %p10750_p9 }
 0x1db   : > { %10758 = shalt.err (!%p10755_p11)
}
 0x1dc   : > { %s10759_s14 = scalar_lea.vmem %s1139_s11, 32  ;;  %p10767_p13 = scmp.lt.s32.totalorder %s1139_s11, %s1139_s11 }
 0x1dd   : > { %p10760_p2 = scmp.ne.s32.totalorder %s1139_s11, %s10759_s14  ;;  %p10768_p0 = scmp.lt.s32.totalorder %s10759_s14, %s10759_s14 }
 0x1df   : > { %p10762_p3 = pnand %p10760_p2, %p11281_p7  ;;  %p10769_p1 = por %p10768_p0, %p10767_p13 }
 0x1e1   : > { %p10763_p12 = pneg %p10762_p3 }
 0x1e3   : > { %p10770_p4 = pnand %p10769_p1, %p10763_p12 }
 0x1e5   : > { %10773 = shalt.err (!%p10770_p4)
}
 0x1e6   : > { %s12597_s12 = sld [smem:[#allocation68_spill]] }
 0x1e7   : > { %10000 = dma.hbm_to_vmem [thread:$0]  (!%p11271_p5), %s12596_s1, 32, %s1139_s11, [#allocation20], %s12592_s5, %s12592_s5, %s12586_s28  }
 0x1ec   : > { %s10774_s4 = scalar_lea.hbm %s12597_s12, 32 }
 0x1ed   : > { %p10775_p6 = scmp.ne.s32.totalorder %s12597_s12, %s10774_s4  ;;  %p10781_p10 = scmp.lt.u32.totalorder %s10774_s4, %s12597_s12 }
 0x1ef   : > { %p10777_p8 = pnand %p10775_p6, %p11281_p7 }
 0x1f1   : > { %p10778_p9 = pneg %p10777_p8 }
 0x1f3   : > { %p10783_p11 = pnand %p10781_p10, %p10778_p9 }
 0x1f5   : > { %10786 = shalt.err (!%p10783_p11)
}
 0x1f6   : > { %s10787_s14 = scalar_lea.vmem %s1165_s13, 32  ;;  %p10795_p13 = scmp.lt.s32.totalorder %s1165_s13, %s1165_s13 }
 0x1f7   : > { %p10788_p2 = scmp.ne.s32.totalorder %s1165_s13, %s10787_s14  ;;  %p10796_p0 = scmp.lt.s32.totalorder %s10787_s14, %s10787_s14 }
 0x1f9   : > { %p10790_p3 = pnand %p10788_p2, %p11281_p7  ;;  %p10797_p1 = por %p10796_p0, %p10795_p13 }
 0x1fb   : > { %p10791_p12 = pneg %p10790_p3 }
 0x1fd   : > { %p10798_p4 = pnand %p10797_p1, %p10791_p12 }
 0x1ff   : > { %10801 = shalt.err (!%p10798_p4)
}
 0x200   : > { %s12598_s11 = sld [smem:[#allocation70_spill]]  ;;  %s11036_s3 = smov [#allocation27]  }
 0x201   : > { %10006 = dma.hbm_to_vmem [thread:$0]  (!%p11271_p5), %s12597_s12, 32, %s1165_s13, [#allocation23], %s12592_s5, %s12592_s5, %s12586_s28  }
 0x202   : > { %s1191_s0 = sshll.u32 %s11036_s3, 4  ;;  %s11037_s6 = smov [#allocation30]   ;;  %s1192_s0 = int_to_ptr.vmem [resolvable:$true] %s1191_s0 }
 0x203   : > { %s1217_s16 = sshll.u32 %s11037_s6, 4  ;;  %s1218_s16 = int_to_ptr.vmem [resolvable:$true] %s1217_s16 }
 0x206   : > { %s10802_s4 = scalar_lea.hbm %s12598_s11, 32 }
 0x207   : > { %p10803_p6 = scmp.ne.s32.totalorder %s12598_s11, %s10802_s4  ;;  %p10809_p10 = scmp.lt.u32.totalorder %s10802_s4, %s12598_s11 }
 0x209   : > { %p10805_p8 = pnand %p10803_p6, %p11281_p7 }
 0x20b   : > { %p10806_p9 = pneg %p10805_p8 }
 0x20d   : > { %p10811_p11 = pnand %p10809_p10, %p10806_p9 }
 0x20f   : > { %10814 = shalt.err (!%p10811_p11)
}
 0x210   : > { %s10815_s14 = scalar_lea.vmem %s1192_s0, 32  ;;  %p10823_p13 = scmp.lt.s32.totalorder %s1192_s0, %s1192_s0 }
 0x211   : > { %p10816_p2 = scmp.ne.s32.totalorder %s1192_s0, %s10815_s14  ;;  %p10824_p0 = scmp.lt.s32.totalorder %s10815_s14, %s10815_s14 }
 0x213   : > { %p10818_p3 = pnand %p10816_p2, %p11281_p7  ;;  %p10825_p1 = por %p10824_p0, %p10823_p13 }
 0x215   : > { %p10819_p12 = pneg %p10818_p3 }
 0x217   : > { %p10826_p4 = pnand %p10825_p1, %p10819_p12 }
 0x219   : > { %10829 = shalt.err (!%p10826_p4)
}
 0x21a   : > { %s12599_s13 = sld [smem:[#allocation73_spill]] }
 0x21b   : > { %10012 = dma.hbm_to_vmem [thread:$0]  (!%p11271_p5), %s12598_s11, 32, %s1192_s0, [#allocation26]  }
 0x220   : > { %s10830_s28 = scalar_lea.hbm %s12599_s13, 6144 }
 0x221   : > { %p10831_p6 = scmp.ne.s32.totalorder %s12599_s13, %s10830_s28  ;;  %p10837_p10 = scmp.lt.u32.totalorder %s10830_s28, %s12599_s13 }
 0x223   : > { %p10833_p8 = pnand %p10831_p6, %p11281_p7 }
 0x225   : > { %p10834_p9 = pneg %p10833_p8 }
 0x227   : > { %p10839_p11 = pnand %p10837_p10, %p10834_p9 }
 0x229   : > { %10842 = shalt.err (!%p10839_p11)
}
 0x22a   : > { %s10843_s3 = scalar_lea.vmem %s1218_s16, 6144  ;;  %p10851_p13 = scmp.lt.s32.totalorder %s1218_s16, %s1218_s16 }
 0x22b   : > { %p10844_p2 = scmp.ne.s32.totalorder %s1218_s16, %s10843_s3  ;;  %p10852_p0 = scmp.lt.s32.totalorder %s10843_s3, %s10843_s3 }
 0x22d   : > { %p10846_p3 = pnand %p10844_p2, %p11281_p7  ;;  %p10853_p1 = por %p10852_p0, %p10851_p13 }
 0x22f   : > { %p10847_p12 = pneg %p10846_p3 }
 0x231   : > { %p10854_p4 = pnand %p10853_p1, %p10847_p12 }
 0x233   : > { %10857 = shalt.err (!%p10854_p4)
}
 0x234   : > { %10018 = dma.hbm_to_vmem [thread:$0]  (!%p11271_p5), %s12599_s13, 6144, %s1218_s16, [#allocation29], %s12589_s7, %s12589_s7, %s12588_s8  }
 0x235   : > { %s11038_s0 = smov [#allocation33]   ;;  %s11039_s4 = smov [#allocation34]  }
 0x236   : > { %s1249_s6 = sshll.u32 %s11038_s0, 4  ;;  %s1263_s14 = sshll.u32 %s11039_s4, 4  ;;  %s1250_s6 = int_to_ptr.vmem [resolvable:$true] %s1249_s6  ;;  %s1264_s14 = int_to_ptr.vmem [resolvable:$true] %s1263_s14 }
 0x237   : > { %s10858_s28 = scalar_lea.hbm %s11233_s24, 4096 }
 0x238   : > { %p10859_p6 = scmp.ne.s32.totalorder %s11233_s24, %s10858_s28  ;;  %p10865_p10 = scmp.lt.u32.totalorder %s10858_s28, %s11233_s24 }
 0x23a   : > { %p10861_p8 = pnand %p10859_p6, %p11281_p7 }
 0x23c   : > { %p10862_p9 = pneg %p10861_p8 }
 0x23e   : > { %p10867_p11 = pnand %p10865_p10, %p10862_p9 }
 0x240   : > { %10870 = shalt.err (!%p10867_p11)
}
 0x241   : > { %s10871_s3 = scalar_lea.vmem %s1250_s6, 4096  ;;  %p10879_p13 = scmp.lt.s32.totalorder %s1250_s6, %s1250_s6 }
 0x242   : > { %p10872_p2 = scmp.ne.s32.totalorder %s1250_s6, %s10871_s3  ;;  %p10880_p0 = scmp.lt.s32.totalorder %s10871_s3, %s10871_s3 }
 0x244   : > { %p10874_p3 = pnand %p10872_p2, %p11281_p7  ;;  %p10881_p1 = por %p10880_p0, %p10879_p13 }
 0x246   : > { %p10875_p12 = pneg %p10874_p3 }
 0x248   : > { %p10882_p4 = pnand %p10881_p1, %p10875_p12 }
 0x24a   : > { %10885 = shalt.err (!%p10882_p4)
}
 0x24b   : > { %10024 = dma.hbm_to_vmem [thread:$0]  (!%p11271_p5), %s11233_s24, 4096, %s1250_s6, [#allocation32], %s12587_s26, %s12587_s26, %s12592_s5  }
 0x24c   : > { %s10886_s8 = scalar_lea.hbm %s11238_s27, 32 }
 0x24d   : > { %p10887_p6 = scmp.ne.s32.totalorder %s11238_s27, %s10886_s8  ;;  %p10893_p10 = scmp.lt.u32.totalorder %s10886_s8, %s11238_s27 }
 0x24f   : > { %p10889_p8 = pnand %p10887_p6, %p11281_p7 }
 0x251   : > { %p10890_p9 = pneg %p10889_p8 }
 0x253   : > { %p10895_p11 = pnand %p10893_p10, %p10890_p9 }
 0x255   : > { %10898 = shalt.err (!%p10895_p11)
}
 0x256   : > { %s10899_s7 = scalar_lea.vmem %s1264_s14, 32  ;;  %p10907_p13 = scmp.lt.s32.totalorder %s1264_s14, %s1264_s14 }
 0x257   : > { %p10900_p2 = scmp.ne.s32.totalorder %s1264_s14, %s10899_s7  ;;  %p10908_p0 = scmp.lt.s32.totalorder %s10899_s7, %s10899_s7 }
 0x259   : > { %p10902_p3 = pnand %p10900_p2, %p11281_p7  ;;  %p10909_p1 = por %p10908_p0, %p10907_p13 }
 0x25b   : > { %p10903_p12 = pneg %p10902_p3 }
 0x25d   : > { %p10910_p4 = pnand %p10909_p1, %p10903_p12 }
 0x25f   : > { %10913 = shalt.err (!%p10910_p4)
}
 0x260   : > { %10027 = dma.hbm_to_vmem [thread:$0]  (!%p11271_p5), %s11238_s27, 32, %s1264_s14, [#allocation35]  }
 0x261   : > { %p12600_p6 = scmp.ne.s32.totalorder %s12583_s22, 0 }
 0x262   : > { %p12601_p8 = scmp.eq.s32.totalorder (!%p12600_p6), %s11256_s18, 0 }
 0x263   : > { %1297 = sbr.rel (%p12600_p6) target bundleno = 10295 (0x2837), region = 168 }
 0x26a   : > { %10919 = dma.done.wait (%p12601_p8), [#allocation3], 8192   ;;  %p12602_p9 = pmov %p12601_p8 }
 0x26b   : > { %p12603_p7 = pmov %p12601_p8 }
 0x26c   : > { %10921 = vsyncadd (%p12602_p9), [#allocation3], 4294959104 }
 0x26d   : > { %10923 = dma.done.wait (%p12603_p7), [#allocation5], 128   ;;  %p12604_p10 = pmov %p12603_p7 }
 0x26e   : > { %p12605_p11 = pmov %p12603_p7 }
 0x26f   : > { %10925 = vsyncadd (%p12604_p10), [#allocation5], 4294967168 }
 0x270   : > { %10927 = dma.done.wait (%p12605_p11), [#allocation8], 2064   ;;  %p12606_p5 = pmov %p12603_p7 }
 0x272   : > { %10929 = vsyncadd (%p12606_p5), [#allocation8], 4294965232  ;;  %p12607_p2 = pmov %p12606_p5 }
 0x274   : > { %10931 = dma.done.wait (%p12607_p2), [#allocation11], 12320   ;;  %p12608_p3 = pmov %p12607_p2 }
 0x275   : > { %p12609_p12 = pmov %p12607_p2 }
 0x276   : > { %10933 = vsyncadd (%p12608_p3), [#allocation11], 4294954976 }
 0x277   : > { %10935 = dma.done.wait (%p12609_p12), [#allocation14], 64   ;;  %p12610_p13 = pmov %p12607_p2 }
 0x278   : > { %p12611_p0 = pmov %p12607_p2 }
 0x279   : > { %10937 = vsyncadd (%p12610_p13), [#allocation14], 4294967232 }
 0x27a   : > { %10939 = dma.done.wait (%p12611_p0), [#allocation17], 8256   ;;  %p12612_p1 = pmov %p12611_p0 }
 0x27b   : > { %p12613_p4 = pmov %p12611_p0 }
 0x27c   : > { %10941 = vsyncadd (%p12612_p1), [#allocation17], 4294959040 }
 0x27d   : > { %10943 = dma.done.wait (%p12613_p4), [#allocation20], 8224   ;;  %p12614_p6 = pmov %p12611_p0 }
 0x27e   : > { %p12615_p8 = pmov %p12611_p0 }
 0x27f   : > { %10945 = vsyncadd (%p12614_p6), [#allocation20], 4294959072 }
 0x280   : > { %10947 = dma.done.wait (%p12615_p8), [#allocation23], 64   ;;  %p12616_p9 = pmov %p12611_p0 }
 0x281   : > { %p12617_p7 = pmov %p12611_p0 }
 0x282   : > { %10949 = vsyncadd (%p12616_p9), [#allocation23], 4294967232 }
 0x283   : > { %10951 = dma.done.wait (%p12617_p7), [#allocation26], 4128   ;;  %p12618_p10 = pmov %p12611_p0 }
 0x284   : > { %p12619_p11 = pmov %p12611_p0 }
 0x285   : > { %10953 = vsyncadd (%p12618_p10), [#allocation26], 4294963168 }
 0x286   : > { %10955 = dma.done.wait (%p12619_p11), [#allocation29], 30720   ;;  %p12620_p5 = pmov %p12611_p0 }
 0x287   : > { %p12621_p2 = pmov %p12611_p0 }
 0x288   : > { %10957 = vsyncadd (%p12620_p5), [#allocation29], 4294936576 }
 0x289   : > { %10959 = dma.done.wait (%p12621_p2), [#allocation32], 16384   ;;  %p12622_p3 = pmov %p12611_p0 }
 0x28a   : > { %p12623_p12 = pmov %p12611_p0 }
 0x28b   : > { %10961 = vsyncadd (%p12622_p3), [#allocation32], 4294950912 }
 0x28c   : > { %10963 = dma.done.wait (%p12623_p12), [#allocation35], 32   ;;  %p12624_p13 = pmov %p12611_p0 }
 0x28d   : > { %v11040_v0 = vmov 0   ;;  %v11041_v1 = vmov 0.0   ;;  %v1507_v2 = vld [vmem:[#allocation2 + $0x8] sm:$0xff]  ;;  %v1506_v4 = vld [vmem:[#allocation2] sm:$0xff]  ;;  %p1485_p0 = scmp.lt.s32.totalorder %s11256_s18, 1  ;;  %v1509_v7 = vld [vmem:[#allocation2 + $0x18] sm:$0xff] }
 0x28e   : > { %10965 = vsyncadd (%p12624_p13), [#allocation35], 4294967264  ;;  %10162 = vset.pattern.permute.xlu1 %v11040_v0  ;;  %10160 = vset.pattern.permute.xlu0 %v11040_v0  ;;  %v1511_v3 = vld [vmem:[#allocation2 + $0x28] sm:$0xff]  ;;  %v1510_v6 = vld [vmem:[#allocation2 + $0x20] sm:$0xff]  ;;  %s12625_s2 = sld [smem:[#allocation49_spill]]  ;;  %vm1784_vm0 = vcmask 23552  }
 0x28f   : > { %1656 = vmatprep.mubr.f32.mxu0 %v11041_v1  ;;  %1727 = vmatprep.mubr.f32.mxu1 %v11041_v1  ;;  %v9015_v5 = vpack.c.bf16 %v1511_v3, %v1507_v2  ;;  %v1513_v8 = vld [vmem:[#allocation2 + $0x38] sm:$0xff]  ;;  %v9017_v9 = vpack.c.bf16 %v1510_v6, %v1506_v4  ;;  %v1508_v11 = vld [vmem:[#allocation2 + $0x10] sm:$0xff]  ;;  %v1515_v13 = vld [vmem:[#allocation2 + $0x48] sm:$0xff]  ;;  %s12641_s18 = smov (!%p1485_p0, %s11256_s18), 1  ;;  %s12626_s26 = sld [smem:[#allocation48_spill]]  ;;  %vm1743_vm1 = vcmask 1040384  }
 0x290   : > { %v9047_v10 = vpack.c.bf16 %v1513_v8, %v1509_v7  ;;  %v1512_v12 = vld [vmem:[#allocation2 + $0x30] sm:$0xff]  ;;  %v1519_v15 = vld [vmem:[#allocation2 + $0x68] sm:$0xff]  ;;  %v1514_v16 = vld [vmem:[#allocation2 + $0x40] sm:$0xff]  ;;  %s8106_s22 = sshll.u32 %s12641_s18, 7  ;;  %vm1745_vm2 = vcmask 1041408   ;;  %vm1747_vm3 = vcmask 1042432  }
 0x291   : > { %9016 = vmatprep.subr.bf16.mxu0 %v9015_v5  ;;  %v9049_v14 = vpack.c.bf16 %v1512_v12, %v1508_v11  ;;  %v1518_v17 = vld [vmem:[#allocation2 + $0x60] sm:$0xff]  ;;  %v9019_v18 = vpack.c.bf16 %v1519_v15, %v1515_v13  ;;  %v1517_v20 = vld [vmem:[#allocation2 + $0x58] sm:$0xff]  ;;  %v1516_v22 = vld [vmem:[#allocation2 + $0x50] sm:$0xff]  ;;  %s12627_s16 = sld [smem:[#allocation52_spill]]  ;;  %s12628_s0 = sld [smem:[#allocation58_spill]]  ;;  %vm11045_vm4 = vmmov 0  }
 0x292   : > { %9018 = vmatpush1.bf16.msra.mxu0 %v9017_v9  ;;  %9048 = vmatprep.subr.bf16.mxu1 %v9047_v10  ;;  %v9021_v19 = vpack.c.bf16 %v1518_v17, %v1514_v16  ;;  %v1521_v21 = vld [vmem:[#allocation2 + $0x78] sm:$0xff]  ;;  %v1520_v24 = vld [vmem:[#allocation2 + $0x70] sm:$0xff]  ;;  %v1523_v25 = vld [vmem:[#allocation2 + $0x88] sm:$0xff]  ;;  %s12629_s6 = sld [smem:[#allocation51_spill]]  ;;  %vm1751_vm5 = vcmask 1043456   ;;  %s12630_s4 = sld [smem:[#allocation56_spill]] }
 0x293   : > { %9050 = vmatpush1.bf16.msra.mxu1 %v9049_v14  ;;  %v9051_v23 = vpack.c.bf16 %v1521_v21, %v1517_v20  ;;  %v1527_v26 = vld [vmem:[#allocation2 + $0xa8] sm:$0xff]  ;;  %9020 = vmatprep.subr.bf16.mxu0 %v9019_v18  ;;  %v9053_v27 = vpack.c.bf16 %v1520_v24, %v1516_v22  ;;  %v1522_v29 = vld [vmem:[#allocation2 + $0x80] sm:$0xff]  ;;  %v1525_v31 = vld [vmem:[#allocation2 + $0x98] sm:$0xff]  ;;  %s12631_s14 = sld [smem:[#allocation57_spill]]  ;;  %vm2599_vm6 = vcmask 523264   ;;  %s12632_s28 = sld [smem:[#allocation55_spill]] }
 0x294   : > { %v9023_v28 = vpack.c.bf16 %v1527_v26, %v1523_v25  ;;  %v1526_v30 = vld [vmem:[#allocation2 + $0xa0] sm:$0xff]  ;;  %v1529_v32 = vld [vmem:[#allocation2 + $0xb8] sm:$0xff]  ;;  %v1524_v33 = vld [vmem:[#allocation2 + $0x90] sm:$0xff]  ;;  %s11631_s10 = scalar_lea.vmem %s12625_s2, %s8106_s22  ;;  %s12633_s3 = sld [smem:[#allocation59_spill]]  ;;  %vm2900_vm7 = vcmask 261120   ;;  %vm2978_vm8 = vcmask 64512  }
 0x295   : > { %9052 = vmatprep.subr.bf16.mxu1 %v9051_v23  ;;  %v1528_v34 = vld [vmem:[#allocation2 + $0xb0] sm:$0xff]  ;;  %v9025_v35 = vpack.c.bf16 %v1526_v30, %v1522_v29  ;;  %v9055_v36 = vpack.c.bf16 %v1529_v32, %v1525_v31  ;;  %v1531_v37 = vld [vmem:[#allocation2 + $0xc8] sm:$0xff]  ;;  %v1530_v39 = vld [vmem:[#allocation2 + $0xc0] sm:$0xff]  ;;  %s1487_s5 = scalar_lea.vmem %s12626_s26, %s12641_s18  ;;  %s12634_s8 = sld [smem:[#allocation60_spill]]  ;;  %vm5843_vm9 = vcmask 60416  }
 0x296   : > { %9022 = vmatpush1.bf16.msra.mxu0 %v9021_v19  ;;  %v1535_v38 = vld [vmem:[#allocation2 + $0xe8] sm:$0xff]  ;;  %v9057_v40 = vpack.c.bf16 %v1528_v34, %v1524_v33  ;;  %v1534_v42 = vld [vmem:[#allocation2 + $0xe0] sm:$0xff]  ;;  %v1533_v43 = vld [vmem:[#allocation2 + $0xd8] sm:$0xff]  ;;  %s11046_s7 = smov 96   ;;  %s11047_s22 = smov 64  }
 0x297   : > { %9054 = vmatpush1.bf16.msra.mxu1 %v9053_v27  ;;  %9024 = vmatprep.subr.bf16.mxu0 %v9023_v28  ;;  %v9027_v41 = vpack.c.bf16 %v1535_v38, %v1531_v37  ;;  %v1537_v44 = vld [vmem:[#allocation2 + $0xf8] sm:$0xff]  ;;  %v1532_v46 = vld [vmem:[#allocation2 + $0xd0] sm:$0xff]  ;;  %v1539_v48 = vld [vmem:[#allocation2 + $0x108] sm:$0xff]  ;;  %v9029_v52 = vpack.c.bf16 %v1534_v42, %v1530_v39  ;;  %s12635_s2 = sld [smem:[#allocation61_spill]]  ;;  %s12636_s26 = sld [smem:[#allocation71_spill]] }
 0x298   : > { %9056 = vmatprep.subr.bf16.mxu1 %v9055_v36  ;;  %v9059_v45 = vpack.c.bf16 %v1537_v44, %v1533_v43  ;;  %v1536_v47 = vld [vmem:[#allocation2 + $0xf0] sm:$0xff]  ;;  %v1543_v49 = vld [vmem:[#allocation2 + $0x128] sm:$0xff]  ;;  %v1538_v50 = vld [vmem:[#allocation2 + $0x100] sm:$0xff] }
 0x299   : > { %v1542_v51 = vld [vmem:[#allocation2 + $0x120] sm:$0xff]  ;;  %v1541_v53 = vld [vmem:[#allocation2 + $0x118] sm:$0xff]  ;;  %v1540_v55 = vld [vmem:[#allocation2 + $0x110] sm:$0xff]  ;;  %v9061_v56 = vpack.c.bf16 %v1536_v47, %v1532_v46  ;;  %v9031_v57 = vpack.c.bf16 %v1543_v49, %v1539_v48 }
 0x29a   : > { %9026 = vmatpush1.bf16.msra.mxu0 %v9025_v35  ;;  %v1545_v54 = vld [vmem:[#allocation2 + $0x138] sm:$0xff]  ;;  %v1544_v58 = vld [vmem:[#allocation2 + $0x130] sm:$0xff]  ;;  %v1547_v59 = vld [vmem:[#allocation2 + $0x148] sm:$0xff]  ;;  %v9033_v8 = vpack.c.bf16 %v1542_v51, %v1538_v50 }
 0x29b   : > { %9058 = vmatpush1.bf16.msra.mxu1 %v9057_v40  ;;  %9028 = vmatprep.subr.bf16.mxu0 %v9027_v41  ;;  %v1551_v60 = vld [vmem:[#allocation2 + $0x168] sm:$0xff]  ;;  %v9063_v61 = vpack.c.bf16 %v1545_v54, %v1541_v53  ;;  %v11634_v62 = vld [vmem:[%s11631_s10] sm:$0xff]  ;;  %v11640_v2 = vld [vmem:[%s11631_s10 + $0x10] sm:$0xff]  ;;  %v9065_v13 = vpack.c.bf16 %v1544_v58, %v1540_v55 }
 0x29c   : > { %9060 = vmatprep.subr.bf16.mxu1 %v9059_v45  ;;  %v11637_v63 = vld [vmem:[%s11631_s10 + $0x8] sm:$0xff]  ;;  %v11643_v3 = vld [vmem:[%s11631_s10 + $0x18] sm:$0xff]  ;;  %v1785_v4 = vsel %vm1784_vm0, %v11634_v62, 0.0  ;;  %v1788_v6 = vsel %vm1784_vm0, %v11640_v2, 0.0  ;;  %v1546_v7 = vld [vmem:[#allocation2 + $0x140] sm:$0xff]  ;;  %v9035_v14 = vpack.c.bf16 %v1551_v60, %v1547_v59 }
 0x29d   : > { %v1786_v5 = vsel %vm1784_vm0, %v11637_v63, 0.0  ;;  %v1550_v10 = vld [vmem:[#allocation2 + $0x160] sm:$0xff]  ;;  %v1549_v11 = vld [vmem:[#allocation2 + $0x158] sm:$0xff]  ;;  %v1790_v15 = vsel %vm1784_vm0, %v11643_v3, 0.0  ;;  %v1548_v16 = vld [vmem:[#allocation2 + $0x150] sm:$0xff] }
 0x29e   : > { %9030 = vmatpush1.bf16.msra.mxu0 %v9029_v52  ;;  %v1787_v9 = vadd.f32 %v1786_v5, %v1785_v4  ;;  %v1553_v12 = vld [vmem:[#allocation2 + $0x178] sm:$0xff]  ;;  %v1552_v17 = vld [vmem:[#allocation2 + $0x170] sm:$0xff]  ;;  %v1555_v18 = vld [vmem:[#allocation2 + $0x188] sm:$0xff]  ;;  %v9037_v28 = vpack.c.bf16 %v1550_v10, %v1546_v7 }
 0x29f   : > { %9062 = vmatpush1.bf16.msra.mxu1 %v9061_v56  ;;  %9032 = vmatprep.subr.bf16.mxu0 %v9031_v57  ;;  %v9067_v20 = vpack.c.bf16 %v1553_v12, %v1549_v11  ;;  %v1559_v21 = vld [vmem:[#allocation2 + $0x1a8] sm:$0xff]  ;;  %v1554_v22 = vld [vmem:[#allocation2 + $0x180] sm:$0xff]  ;;  %v1557_v24 = vld [vmem:[#allocation2 + $0x198] sm:$0xff]  ;;  %v9069_v32 = vpack.c.bf16 %v1552_v17, %v1548_v16 }
 0x2a0   : > { %9064 = vmatprep.subr.bf16.mxu1 %v9063_v61  ;;  %v1789_v19 = vadd.f32 %v1788_v6, %v1787_v9  ;;  %v1558_v23 = vld [vmem:[#allocation2 + $0x1a0] sm:$0xff]  ;;  %v1561_v25 = vld [vmem:[#allocation2 + $0x1b8] sm:$0xff]  ;;  %v1556_v26 = vld [vmem:[#allocation2 + $0x190] sm:$0xff]  ;;  %v9039_v33 = vpack.c.bf16 %v1559_v21, %v1555_v18 }
 0x2a1   : > { %v1560_v29 = vld [vmem:[#allocation2 + $0x1b0] sm:$0xff]  ;;  %v1563_v30 = vld [vmem:[#allocation2 + $0x1c8] sm:$0xff]  ;;  %v1565_v34 = vld [vmem:[#allocation2 + $0x1d8] sm:$0xff]  ;;  %v9071_v37 = vpack.c.bf16 %v1561_v25, %v1557_v24  ;;  %v9041_v38 = vpack.c.bf16 %v1558_v23, %v1554_v22 }
 0x2a2   : > { %9034 = vmatpush1.bf16.msra.mxu0 %v9033_v8  ;;  %v1791_v27 = vadd.f32 %v1790_v15, %v1789_v19  ;;  %v1567_v31 = vld [vmem:[#allocation2 + $0x1e8] sm:$0xff]  ;;  %v1569_v35 = vld [vmem:[#allocation2 + $0x1f8] sm:$0xff]  ;;  %v9073_v39 = vpack.c.bf16 %v1560_v29, %v1556_v26  ;;  %v1562_v41 = vld [vmem:[#allocation2 + $0x1c0] sm:$0xff] }
 0x2a3   : > { %9066 = vmatpush1.bf16.msra.mxu1 %v9065_v13  ;;  %9036 = vmatprep.subr.bf16.mxu0 %v9035_v14  ;;  %v9043_v40 = vpack.c.bf16 %v1567_v31, %v1563_v30  ;;  %v1566_v42 = vld [vmem:[#allocation2 + $0x1e0] sm:$0xff]  ;;  %v9075_v43 = vpack.c.bf16 %v1569_v35, %v1565_v34  ;;  %v11657_v45 = vld [vmem:[%s11631_s10 + $0x28] sm:$0xff]  ;;  %v11660_v46 = vld [vmem:[%s11631_s10 + $0x30] sm:$0xff] }
 0x2a4   : > { %v1792_v36 = vrot.slane %v1791_v27, 4  ;;  %9068 = vmatprep.subr.bf16.mxu1 %v9067_v20  ;;  %v11654_v44 = vld [vmem:[%s11631_s10 + $0x20] sm:$0xff]  ;;  %v1564_v48 = vld [vmem:[#allocation2 + $0x1d0] sm:$0xff]  ;;  %v11663_v50 = vld [vmem:[%s11631_s10 + $0x38] sm:$0xff]  ;;  %v1805_v52 = vsel %vm1784_vm0, %v11657_v45, 0.0  ;;  %v1807_v53 = vsel %vm1784_vm0, %v11660_v46, 0.0  ;;  %v9045_v17 = vpack.c.bf16 %v1566_v42, %v1562_v41 }
 0x2a5   : > { %v1568_v49 = vld [vmem:[#allocation2 + $0x1f0] sm:$0xff]  ;;  %v1804_v51 = vsel %vm1784_vm0, %v11654_v44, 0.0  ;;  %v11672_v54 = vld [vmem:[%s11631_s10 + $0x40] sm:$0xff]  ;;  %v11675_v55 = vld [vmem:[%s11631_s10 + $0x48] sm:$0xff]  ;;  %v1809_v57 = vsel %vm1784_vm0, %v11663_v50, 0.0 }
 0x2a6   : > { %v1793_v47 = vadd.f32 %v1792_v36, %v1791_v27  ;;  %9038 = vmatpush1.bf16.msra.mxu0 %v9037_v28  ;;  %v1806_v56 = vadd.f32 %v1805_v52, %v1804_v51  ;;  %v11680_v58 = vld [vmem:[%s11631_s10 + $0x50] sm:$0xff]  ;;  %v11683_v59 = vld [vmem:[%s11631_s10 + $0x58] sm:$0xff]  ;;  %v1822_v60 = vsel %vm1784_vm0, %v11672_v54, 0.0  ;;  %v1823_v61 = vsel %vm1784_vm0, %v11675_v55, 0.0  ;;  %v11690_v4 = vld [vmem:[%s11631_s10 + $0x60] sm:$0xff] }
 0x2a7   : > { %9070 = vmatpush1.bf16.msra.mxu1 %v9069_v32  ;;  %9040 = vmatprep.subr.bf16.mxu0 %v9039_v33  ;;  %v1824_v6 = vadd.f32 %v1823_v61, %v1822_v60  ;;  %v1825_v7 = vsel %vm1784_vm0, %v11680_v58, 0.0  ;;  %v1827_v8 = vsel %vm1784_vm0, %v11683_v59, 0.0  ;;  %v11697_v9 = vld [vmem:[%s11631_s10 + $0x68] sm:$0xff]  ;;  %v11700_v10 = vld [vmem:[%s11631_s10 + $0x70] sm:$0xff]  ;;  %v11703_v11 = vld [vmem:[%s11631_s10 + $0x78] sm:$0xff]  ;;  %v1840_v13 = vsel %vm1784_vm0, %v11690_v4, 0.0 }
 0x2a8   : > { %v1794_v5 = vrot.slane %v1793_v47, 2  ;;  %9072 = vmatprep.subr.bf16.mxu1 %v9071_v37  ;;  %v1808_v12 = vadd.f32 %v1807_v53, %v1806_v56  ;;  %v1841_v14 = vsel %vm1784_vm0, %v11697_v9, 0.0  ;;  %v1843_v15 = vsel %vm1784_vm0, %v11700_v10, 0.0  ;;  %v1505_v28 = vld [vmem:[%s1487_s5] sm:$0x1]  ;;  %s11048_s10 = smov 32  }
 0x2a9   : > { %v1826_v18 = vadd.f32 %v1825_v7, %v1824_v6  ;;  %v1842_v19 = vadd.f32 %v1841_v14, %v1840_v13  ;;  %v9077_v20 = vpack.c.bf16 %v1568_v49, %v1564_v48  ;;  %v1845_v22 = vsel %vm1784_vm0, %v11703_v11, 0.0  ;;  %v2333_v13 = vld [vmem:[#allocation9 + $0x20] sm:$0xff]  ;;  %v2334_v14 = vld [vmem:[#allocation9 + $0x28] sm:$0xff]  ;;  %s12637_s5 = sld [smem:[#allocation50_spill]] }
 0x2aa   : > { %v1795_v16 = vadd.f32 %v1794_v5, %v1793_v47  ;;  %9042 = vmatpush1.bf16.msra.mxu0 %v9041_v38  ;;  %v1810_v21 = vadd.f32 %v1809_v57, %v1808_v12  ;;  %v11042_v51 = vmov 1   ;;  %v11043_v60 = vmov 2   ;;  %v2332_v12 = vld [vmem:[#allocation9 + $0x18] sm:$0xff] }
 0x2ab   : > { %9074 = vmatpush1.bf16.msra.mxu1 %v9073_v39  ;;  %9044 = vmatprep.subr.bf16.mxu0 %v9043_v40  ;;  %v1828_v24 = vadd.f32 %v1827_v8, %v1826_v18  ;;  %v1844_v25 = vadd.f32 %v1843_v15, %v1842_v19  ;;  %v9087_v15 = vpack.c.bf16 %v2334_v14, %v2333_v13  ;;  %v2336_v18 = vld [vmem:[#allocation9 + $0x38] sm:$0xff] }
 0x2ac   : > { %v1796_v23 = vrot.slane %v1795_v16, 1  ;;  %9076 = vmatprep.subr.bf16.mxu1 %v9075_v43  ;;  %v1811_v26 = vrot.slane %v1810_v21, 4 }
 0x2ad   : > { %v1829_v29 = vrot.slane %v1828_v24, 4  ;;  %v1846_v30 = vadd.f32 %v1845_v22, %v1844_v25  ;;  %v2341_v25 = vld [vmem:[#allocation9 + $0x60] sm:$0xff] }
 0x2ae   : > { %v1797_v27 = vadd.f32 %v1796_v23, %v1795_v16  ;;  %9046 = vmatpush1.bf16.msra.mxu0 %v9045_v17  ;;  %v1812_v31 = vadd.f32 %v1811_v26, %v1810_v21  ;;  %v2335_v17 = vld [vmem:[#allocation9 + $0x30] sm:$0xff]  ;;  %v2338_v21 = vld [vmem:[#allocation9 + $0x48] sm:$0xff]  ;;  %v2340_v23 = vld [vmem:[#allocation9 + $0x58] sm:$0xff] }
 0x2af   : > { %9078 = vmatpush1.bf16.msra.mxu1 %v9077_v20  ;;  %v1830_v33 = vadd.f32 %v1829_v29, %v1828_v24  ;;  %v1847_v34 = vrot.slane %v1846_v30, 4  ;;  %v9091_v19 = vpack.c.bf16 %v2336_v18, %v2335_v17  ;;  %v2337_v20 = vld [vmem:[#allocation9 + $0x40] sm:$0xff]  ;;  %v2342_v26 = vld [vmem:[#allocation9 + $0x68] sm:$0xff] }
 0x2b0   : > { %v11715_v32 = vmul.f32 0.03125, %v1797_v27  ;;  %v1813_v35 = vrot.slane %v1812_v31, 2  ;;  %v9095_v22 = vpack.c.bf16 %v2338_v21, %v2337_v20 }
 0x2b1   : > { %1657 = vmatmul.mubr.f32.vlgmr.msra.gmra.mrb[0].mxu0 %v1505_v28  ;;  %v1831_v39 = vrot.slane %v1830_v33, 2  ;;  %v1848_v40 = vadd.f32 %v1847_v34, %v1846_v30  ;;  %v2343_v30 = vld [vmem:[#allocation9 + $0x70] sm:$0xff] }
 0x2b2   : > { %v1801_v36 = vsub.f32 %v11637_v63, %v11715_v32  ;;  %v1800_v37 = vsub.f32 %v11634_v62, %v11715_v32  ;;  %1728 = vmatmul.mubr.f32.vlgmr.msra.gmra.mrb[0].mxu1 %v1505_v28  ;;  %v1814_v38 = vadd.f32 %v1813_v35, %v1812_v31  ;;  %v1803_v52 = vsub.f32 %v11643_v3, %v11715_v32  ;;  %v2344_v31 = vld [vmem:[#allocation9 + $0x78] sm:$0xff] }
 0x2b3   : > { %v1832_v42 = vadd.f32 %v1831_v39, %v1830_v33  ;;  %v1849_v43 = vrot.slane %v1848_v40, 2  ;;  %v1802_v6 = vsub.f32 %v11640_v2, %v11715_v32  ;;  %v9103_v28 = vpack.c.bf16 %v2342_v26, %v2341_v25  ;;  %8519 = vmatprep.mubr.msk.f32.mxu1 %vm11045_vm4, %v11041_v1 }
 0x2b4   : > { %1869 = vperm.xlu1 %10162, %v1801_v36   ;;  %1864 = vperm.xlu0 %10160, %v1800_v37   ;;  %v1815_v41 = vrot.slane %v1814_v38, 1  ;;  %v9107_v33 = vpack.c.bf16 %v2344_v31, %v2343_v30 }
 0x2b5   : > { %v1833_v48 = vrot.slane %v1832_v42, 1  ;;  %v1850_v49 = vadd.f32 %v1849_v43, %v1848_v40 }
 0x2b6   : > { %v1816_v47 = vadd.f32 %v1815_v41, %v1814_v38 }
 0x2b7   : > { %v1834_v62 = vadd.f32 %v1833_v48, %v1832_v42  ;;  %v1851_v63 = vrot.slane %v1850_v49, 1 }
 0x2b8   : > { %10163 = vset.pattern.permute.xlu1 %v11042_v51  ;;  %10161 = vset.pattern.permute.xlu0 %v11042_v51  ;;  %v11725_v53 = vmul.f32 0.03125, %v1816_v47 }
 0x2b9   : > { %1967 = vperm.xlu1 %10163, %v1801_v36   ;;  %1963 = vperm.xlu0 %10161, %v1800_v37   ;;  %v1852_v56 = vadd.f32 %v1851_v63, %v1850_v49  ;;  %v11727_v57 = vmul.f32 0.03125, %v1834_v62 }
 0x2ba   : > { %v1819_v5 = vsub.f32 %v11657_v45, %v11725_v53  ;;  %v11752_v45 = vsub.f32 %v11663_v50, %v11725_v53  ;;  %v1820_v16 = vsub.f32 %v11660_v46, %v11725_v53  ;;  %v2339_v46 = vld [vmem:[#allocation9 + $0x50] sm:$0xff]  ;;  %v1858_v27 = vsel %vm1743_vm1, %v11715_v32, %v11725_v53 }
 0x2bb   : > { %v11731_v61 = vmul.f32 0.03125, %v1852_v56  ;;  %v11737_v3 = vsub.f32 %v11680_v58, %v11727_v57  ;;  %v11757_v2 = vsub.f32 %v11675_v55, %v11727_v57  ;;  %v11763_v58 = vsub.f32 %v11683_v59, %v11727_v57  ;;  %v2329_v59 = vld [vmem:[#allocation9] sm:$0xff] }
 0x2bc   : > { %v1818_v55 = vsub.f32 %v11654_v44, %v11725_v53  ;;  %v2331_v44 = vld [vmem:[#allocation9 + $0x10] sm:$0xff]  ;;  %v9099_v24 = vpack.c.bf16 %v2340_v23, %v2339_v46  ;;  %v1859_v29 = vsel %vm1745_vm2, %v1858_v27, %v11727_v57  ;;  %v1836_v32 = vsub.f32 %v11672_v54, %v11727_v57 }
 0x2bd   : > { %10164 = vset.pattern.permute.xlu1 %v11043_v60  ;;  %10167 = vset.pattern.permute.xlu0 %v11040_v0  ;;  %v11743_v7 = vsub.f32 %v11690_v4, %v11731_v61  ;;  %v11747_v8 = vsub.f32 %v11700_v10, %v11731_v61  ;;  %v11768_v50 = vsub.f32 %v11697_v9, %v11731_v61  ;;  %v2330_v9 = vld [vmem:[#allocation9 + $0x8] sm:$0xff]  ;;  %v1572_v54 = vlaneseq }
 0x2be   : > { %2063 = vperm.xlu1 %10164, %v1800_v37   ;;  %1879 = vperm.xlu0 %10167, %v1803_v52   ;;  %v11776_v4 = vsub.f32 %v11703_v11, %v11731_v61  ;;  %v9079_v10 = vpack.c.bf16 %v2330_v9, %v2329_v59  ;;  %v9083_v11 = vpack.c.bf16 %v2332_v12, %v2331_v44  ;;  %v1861_v37 = vld [vmem:[%s12627_s16] sm:$0x7]  ;;  %s12422_s16 = sshll.u32 %s12641_s18, 1  ;;  %s12638_s18 = sld [smem:[#allocation75_spill]] }
 0x2bf   : > { %v11803_v34 = vsel %vm1747_vm3, %v1859_v29, %v11731_v61  ;;  %v11823_v35 = vshrl.u32 %v1572_v54, 7  ;;  %v11854_v61 = vld [vmem:[#allocation7] ss:$0 sm:$0xff]  ;;  %vm7614_vm10 = vcmp.lt.s32.totalorder %v1572_v54, 256 }
 0x2c0   : > { %9080 = vmatprep.subr.bf16.mxu0 %v9079_v10 }
 0x2c1   : > { %9082 = vmatpush3.bf16.msra.mxu0 %v9079_v10  ;;  %v11832_v40 = vsub.s32 1, %v11823_v35  ;;  %v11840_v42 = vsub.s32 2, %v11823_v35 }
 0x2c2   : > { %10165 = vset.pattern.permute.xlu1 %v11040_v0  ;;  %1889 = vperm.xlu0 %10167, %v1819_v5  }
 0x2c3   : > { %1874 = vperm.xlu1 %10165, %v1802_v6   ;;  %9084 = vmatprep.subr.bf16.mxu0 %v9083_v11  ;;  %v11843_v43 = vrot.slane %v1861_v37, %v11832_v40  ;;  %v11850_v63 = vrot.slane %v1861_v37, %v11840_v42 }
 0x2c5   : > { %9086 = vmatpush3.bf16.msra.mxu0 %v9083_v11 }
 0x2c6   : > { %1899 = vperm.xlu0 %10167, %v11752_v45   ;;  %9088 = vmatprep.subr.bf16.mxu0 %v9087_v15 }
 0x2c7   : > { %10166 = vset.pattern.permute.xlu1 %v11042_v51 }
 0x2c8   : > { %1971 = vperm.xlu1 %10166, %v1802_v6  }
 0x2c9   : > { %9090 = vmatpush3.bf16.msra.mxu0 %v9087_v15 }
 0x2ca   : > { %1909 = vperm.xlu0 %10167, %v11757_v2   ;;  %9092 = vmatprep.subr.bf16.mxu0 %v9091_v19 }
 0x2cc   : > { %1975 = vperm.xlu1 %10166, %v1803_v52  }
 0x2cd   : > { %9094 = vmatpush3.bf16.msra.mxu0 %v9091_v19 }
 0x2ce   : > { %1919 = vperm.xlu0 %10167, %v11763_v58   ;;  %9096 = vmatprep.subr.bf16.mxu0 %v9095_v22 }
 0x2d0   : > { %10168 = vset.pattern.permute.xlu1 %v11043_v60 }
 0x2d1   : > { %2071 = vperm.xlu1 %10168, %v1802_v6   ;;  %9098 = vmatpush3.bf16.msra.mxu0 %v9095_v22 }
 0x2d2   : > { %1929 = vperm.xlu0 %10167, %v11768_v50   ;;  %9100 = vmatprep.subr.bf16.mxu0 %v9099_v24 }
 0x2d5   : > { %10169 = vset.pattern.permute.xlu1 %v11040_v0  ;;  %9102 = vmatpush3.bf16.msra.mxu0 %v9099_v24 }
 0x2d6   : > { %1884 = vperm.xlu1 %10169, %v1818_v55   ;;  %1939 = vperm.xlu0 %10167, %v11776_v4  }
 0x2d7   : > { %9104 = vmatprep.subr.bf16.mxu0 %v9103_v28 }
 0x2d9   : > { %9106 = vmatpush3.bf16.msra.mxu0 %v9103_v28 }
 0x2da   : > { %10170 = vset.pattern.permute.xlu1 %v11042_v51  ;;  %10186 = vset.pattern.permute.xlu0 %v11043_v60 }
 0x2db   : > { %1979 = vperm.xlu1 %10170, %v1818_v55   ;;  %2067 = vperm.xlu0 %10186, %v1801_v36   ;;  %v11828_v36 = vsub.s32 0, %v11823_v35 }
 0x2dc   : > { %9108 = vmatprep.subr.bf16.mxu0 %v9107_v33 }
 0x2dd   : > { %9110 = vmatpush3.bf16.msra.mxu0 %v9107_v33  ;;  %v11837_v41 = vrot.slane %v1861_v37, %v11828_v36 }
 0x2df   : > { %1983 = vperm.xlu1 %10170, %v1819_v5   ;;  %2075 = vperm.xlu0 %10186, %v1803_v52  }
 0x2e3   : > { %10171 = vset.pattern.permute.xlu1 %v11043_v60  ;;  %2083 = vperm.xlu0 %10186, %v1819_v5  }
 0x2e4   : > { %2079 = vperm.xlu1 %10171, %v1818_v55  }
 0x2e7   : > { %2091 = vperm.xlu0 %10186, %v11752_v45  }
 0x2e8   : > { %10172 = vset.pattern.permute.xlu1 %v11040_v0 }
 0x2e9   : > { %1894 = vperm.xlu1 %10172, %v1820_v16  }
 0x2eb   : > { %2099 = vperm.xlu0 %10186, %v11757_v2  }
 0x2ed   : > { %10173 = vset.pattern.permute.xlu1 %v11042_v51 }
 0x2ee   : > { %1987 = vperm.xlu1 %10173, %v1820_v16  }
 0x2ef   : > { %2107 = vperm.xlu0 %10186, %v11763_v58  }
 0x2f2   : > { %1991 = vperm.xlu1 %10173, %v11752_v45  }
 0x2f3   : > { %2115 = vperm.xlu0 %10186, %v11768_v50  }
 0x2f6   : > { %10174 = vset.pattern.permute.xlu1 %v11043_v60 }
 0x2f7   : > { %2087 = vperm.xlu1 %10174, %v1820_v16   ;;  %2123 = vperm.xlu0 %10186, %v11776_v4  }
 0x2fb   : > { %10175 = vset.pattern.permute.xlu1 %v11040_v0  ;;  %2558 = vperm.xlu0 %10186, %v11803_v34  }
 0x2fc   : > { %1904 = vperm.xlu1 %10175, %v1836_v32  }
 0x300   : > { %10176 = vset.pattern.permute.xlu1 %v11042_v51 }
 0x301   : > { %1995 = vperm.xlu1 %10176, %v1836_v32  }
 0x305   : > { %1999 = vperm.xlu1 %10176, %v11757_v2  }
 0x309   : > { %10177 = vset.pattern.permute.xlu1 %v11043_v60 }
 0x30a   : > { %2095 = vperm.xlu1 %10177, %v1836_v32  }
 0x30e   : > { %10178 = vset.pattern.permute.xlu1 %v11040_v0 }
 0x30f   : > { %1914 = vperm.xlu1 %10178, %v11737_v3  }
 0x313   : > { %10179 = vset.pattern.permute.xlu1 %v11042_v51 }
 0x314   : > { %2003 = vperm.xlu1 %10179, %v11737_v3  }
 0x318   : > { %2007 = vperm.xlu1 %10179, %v11763_v58  }
 0x31c   : > { %10180 = vset.pattern.permute.xlu1 %v11043_v60 }
 0x31d   : > { %2103 = vperm.xlu1 %10180, %v11737_v3  }
 0x321   : > { %10181 = vset.pattern.permute.xlu1 %v11040_v0 }
 0x322   : > { %1924 = vperm.xlu1 %10181, %v11743_v7  }
 0x326   : > { %10182 = vset.pattern.permute.xlu1 %v11042_v51 }
 0x327   : > { %2011 = vperm.xlu1 %10182, %v11743_v7  }
 0x32b   : > { %2015 = vperm.xlu1 %10182, %v11768_v50  }
 0x32f   : > { %10183 = vset.pattern.permute.xlu1 %v11043_v60 }
 0x330   : > { %2111 = vperm.xlu1 %10183, %v11743_v7  }
 0x333   : > { %v1870_v38 = vpop.permute.xlu1 %1869  ;;  %v1865_v39 = vpop.permute.xlu0 %1864 }
 0x334   : > { %10184 = vset.pattern.permute.xlu1 %v11040_v0  ;;  %v1946_v47 = vmul.f32 %v11837_v41, %v1865_v39  ;;  %v1947_v20 = vmul.f32 %v11837_v41, %v1870_v38  ;;  %v2584_v38 = vld [vmem:[%s12628_s0] sm:$0xff]  ;;  %v2585_v39 = vld [vmem:[%s12628_s0 + $0x8] sm:$0xff] }
 0x335   : > { %1934 = vperm.xlu1 %10184, %v11747_v8  }
 0x338   : > { %v1968_v48 = vpop.permute.xlu1 %1967  ;;  %v1964_v49 = vpop.permute.xlu0 %1963 }
 0x339   : > { %10185 = vset.pattern.permute.xlu1 %v11042_v51  ;;  %v2030_v62 = vmul.f32 %v11843_v43, %v1964_v49  ;;  %v2031_v17 = vmul.f32 %v11843_v43, %v1968_v48 }
 0x33a   : > { %2019 = vperm.xlu1 %10185, %v11747_v8  }
 0x33b   : > { %v2046_v52 = vadd.f32 %v2030_v62, %v1946_v47  ;;  %v2047_v46 = vadd.f32 %v2031_v17, %v1947_v20  ;;  %v2589_v17 = vld [vmem:[%s12628_s0 + $0x28] sm:$0xff] }
 0x33d   : > { %v2064_v53 = vpop.permute.xlu1 %2063  ;;  %v1880_v56 = vpop.permute.xlu0 %1879 }
 0x33e   : > { %v2130_v57 = vmul.f32 %v11850_v63, %v2064_v53  ;;  %2023 = vperm.xlu1 %10185, %v11776_v4   ;;  %v1949_v23 = vmul.f32 %v11837_v41, %v1880_v56  ;;  %v9112_v53 = vpack.c.bf16 %v2585_v39, %v2584_v38 }
 0x340   : > { %v2146_v5 = vadd.f32 %v2130_v57, %v2046_v52 }
 0x341   : > { %v1890_v3 = vpop.permute.xlu0 %1889 }
 0x342   : > { %v2169_v6 = vadd.f32 %v11854_v61, %v2146_v5  ;;  %10187 = vset.pattern.permute.xlu1 %v11043_v60  ;;  %v1875_v7 = vpop.permute.xlu1 %1874  ;;  %v1951_v33 = vmul.f32 %v11837_v41, %v1890_v3  ;;  %v11044_v5 = vmov 0.0|0.0  }
 0x343   : > { %2119 = vperm.xlu1 %10187, %v11747_v8   ;;  %9111 = vmatprep.subr.bf16.mxu1 %v11044_v5 }
 0x344   : > { %v2185_v45 = vmul.f32 %v2169_v6, %v2169_v6  ;;  %9155 = vmatprep.subr.bf16.mxu0 %v11044_v5  ;;  %9113 = vmatpush3.bf16.msra.mxu1 %v9112_v53 }
 0x345   : > { %v11859_v2 = vpop.permute.xlu0 %1899  ;;  %9114 = vmatprep.subr.bf16.mxu1 %v11044_v5 }
 0x346   : > { %v2201_v58 = vmul.f32 %v2185_v45, %v2169_v6 }
 0x347   : > { %10188 = vset.pattern.permute.xlu1 %v11040_v0  ;;  %v1972_v50 = vpop.permute.xlu1 %1971  ;;  %v1948_v0 = vmul.f32 %v11837_v41, %v1875_v7 }
 0x348   : > { %2539 = vperm.xlu1 %10188, %v11803_v34   ;;  %v2217_v55 = vmul.f32 0.044715, %v2201_v58  ;;  %v2032_v10 = vmul.f32 %v11843_v43, %v1972_v50  ;;  %v2586_v58 = vld [vmem:[%s12628_s0 + $0x10] sm:$0xff]  ;;  %v2587_v50 = vld [vmem:[%s12628_s0 + $0x18] sm:$0xff] }
 0x349   : > { %v11863_v4 = vpop.permute.xlu0 %1909 }
 0x34a   : > { %v2233_v59 = vadd.f32 %v2217_v55, %v2169_v6  ;;  %v2048_v12 = vadd.f32 %v2032_v10, %v1948_v0  ;;  %v9115_v10 = vpack.c.bf16 %v2587_v50, %v2586_v58 }
 0x34b   : > { %v1976_v9 = vpop.permute.xlu1 %1975 }
 0x34c   : > { %10189 = vset.pattern.permute.xlu1 %v11042_v51  ;;  %v2249_v60 = vmul.f32 0.7978846, %v2233_v59  ;;  %v2033_v26 = vmul.f32 %v11843_v43, %v1976_v9  ;;  %9116 = vmatpush3.bf16.msra.mxu1 %v9115_v10 }
 0x34d   : > { %2548 = vperm.xlu1 %10189, %v11803_v34   ;;  %v11868_v8 = vpop.permute.xlu0 %1919  ;;  %9117 = vmatprep.subr.bf16.mxu1 %v11044_v5 }
 0x34e   : > { %10190 = vtanh.f32 %v2249_v60  ;;  %v2049_v47 = vadd.f32 %v2033_v26, %v1949_v23  ;;  %v2591_v23 = vld [vmem:[%s12628_s0 + $0x38] sm:$0xff] }
 0x350   : > { %v2072_v44 = vpop.permute.xlu1 %2071 }
 0x351   : > { %v2132_v11 = vmul.f32 %v11850_v63, %v2072_v44  ;;  %v11872_v13 = vpop.permute.xlu0 %1929 }
 0x353   : > { %v2148_v14 = vadd.f32 %v2132_v11, %v2048_v12 }
 0x355   : > { %v11875_v15 = vadd.f32 %v11854_v61, %v2148_v14  ;;  %v1885_v51 = vpop.permute.xlu1 %1884  ;;  %v11877_v16 = vpop.permute.xlu0 %1939 }
 0x356   : > { %v1950_v3 = vmul.f32 %v11837_v41, %v1885_v51  ;;  %v2588_v51 = vld [vmem:[%s12628_s0 + $0x20] sm:$0xff] }
 0x357   : > { %v2187_v18 = vmul.f32 %v11875_v15, %v11875_v15 }
 0x358   : > { %v10191_v19 = vpop.eup %10190 }
 0x359   : > { %v2281_v21 = vadd.f32 1.0, %v10191_v19  ;;  %v2203_v22 = vmul.f32 %v2187_v18, %v11875_v15  ;;  %v9118_v19 = vpack.c.bf16 %v2589_v17, %v2588_v51 }
 0x35a   : > { %v1980_v24 = vpop.permute.xlu1 %1979  ;;  %v2068_v25 = vpop.permute.xlu0 %2067 }
 0x35b   : > { %v2131_v27 = vmul.f32 %v11850_v63, %v2068_v25  ;;  %v2297_v28 = vmul.f32 0.5, %v2281_v21  ;;  %v2219_v29 = vmul.f32 0.044715, %v2203_v22  ;;  %v2034_v52 = vmul.f32 %v11843_v43, %v1980_v24  ;;  %9119 = vmatpush3.bf16.msra.mxu1 %v9118_v19 }
 0x35c   : > { %9120 = vmatprep.subr.bf16.mxu1 %v11044_v5 }
 0x35d   : > { %v2147_v30 = vadd.f32 %v2131_v27, %v2047_v46  ;;  %v2313_v31 = vmul.f32 %v2297_v28, %v2169_v6  ;;  %v2235_v37 = vadd.f32 %v2219_v29, %v11875_v15  ;;  %v2050_v0 = vadd.f32 %v2034_v52, %v1950_v3  ;;  %v2590_v46 = vld [vmem:[%s12628_s0 + $0x30] sm:$0xff] }
 0x35e   : > { %v1984_v32 = vpop.permute.xlu1 %1983  ;;  %v2076_v34 = vpop.permute.xlu0 %2075  ;;  %v1953_v52 = vmul.f32 %v11837_v41, %v11859_v2 }
 0x35f   : > { %v11892_v48 = vadd.f32 %v11854_v61, %v2147_v30  ;;  %v2035_v49 = vmul.f32 %v11843_v43, %v1984_v32  ;;  %v2133_v62 = vmul.f32 %v11850_v63, %v2076_v34  ;;  %8479 = vmatprep.mubr.f32.mxu0 %v2313_v31  ;;  %v2251_v45 = vmul.f32 0.7978846, %v2235_v37 }
 0x360   : > { %v9121_v30 = vpack.c.bf16 %v2591_v23, %v2590_v46 }
 0x361   : > { %v2186_v56 = vmul.f32 %v11892_v48, %v11892_v48  ;;  %v2149_v57 = vadd.f32 %v2133_v62, %v2049_v47  ;;  %v2051_v6 = vadd.f32 %v2035_v49, %v1951_v33  ;;  %10192 = vtanh.f32 %v2251_v45 }
 0x362   : > { %v2084_v7 = vpop.permute.xlu0 %2083  ;;  %9122 = vmatpush3.bf16.msra.mxu1 %v9121_v30 }
 0x363   : > { %v2202_v55 = vmul.f32 %v2186_v56, %v11892_v48  ;;  %v11906_v59 = vadd.f32 %v11854_v61, %v2149_v57  ;;  %v2135_v9 = vmul.f32 %v11850_v63, %v2084_v7  ;;  %v2080_v60 = vpop.permute.xlu1 %2079 }
 0x364   : > { %v2134_v44 = vmul.f32 %v11850_v63, %v2080_v60 }
 0x365   : > { %v2218_v12 = vmul.f32 0.044715, %v2202_v55  ;;  %v2188_v11 = vmul.f32 %v11906_v59, %v11906_v59  ;;  %v2151_v14 = vadd.f32 %v2135_v9, %v2051_v6 }
 0x366   : > { %v2150_v18 = vadd.f32 %v2134_v44, %v2050_v0  ;;  %v2092_v47 = vpop.permute.xlu0 %2091 }
 0x367   : > { %v2234_v20 = vadd.f32 %v2218_v12, %v11892_v48  ;;  %v2204_v21 = vmul.f32 %v2188_v11, %v11906_v59  ;;  %v11920_v22 = vadd.f32 %v11854_v61, %v2151_v14  ;;  %v2137_v6 = vmul.f32 %v11850_v63, %v2092_v47 }
 0x368   : > { %v11926_v24 = vadd.f32 %v11854_v61, %v2150_v18  ;;  %v1895_v25 = vpop.permute.xlu1 %1894 }
 0x369   : > { %v2250_v26 = vmul.f32 0.7978846, %v2234_v20  ;;  %v2190_v27 = vmul.f32 %v11920_v22, %v11920_v22  ;;  %v2220_v28 = vmul.f32 0.044715, %v2204_v21  ;;  %v1952_v9 = vmul.f32 %v11837_v41, %v1895_v25 }
 0x36a   : > { %v2189_v29 = vmul.f32 %v11926_v24, %v11926_v24 }
 0x36b   : > { %v2206_v31 = vmul.f32 %v2190_v27, %v11920_v22  ;;  %10194 = vtanh.f32 %v2250_v26  ;;  %v2236_v33 = vadd.f32 %v2220_v28, %v11906_v59  ;;  %v10193_v62 = vpop.eup %10192 }
 0x36c   : > { %v2205_v32 = vmul.f32 %v2189_v29, %v11926_v24  ;;  %v2283_v58 = vadd.f32 1.0, %v10193_v62  ;;  %v2100_v62 = vpop.permute.xlu0 %2099 }
 0x36d   : > { %v1988_v34 = vpop.permute.xlu1 %1987  ;;  %v2252_v37 = vmul.f32 0.7978846, %v2236_v33  ;;  %v2222_v38 = vmul.f32 0.044715, %v2206_v31 }
 0x36e   : > { %v2221_v39 = vmul.f32 0.044715, %v2205_v32  ;;  %v2036_v45 = vmul.f32 %v11843_v43, %v1988_v34  ;;  %v2299_v12 = vmul.f32 0.5, %v2283_v58  ;;  %v1570_v34 = vld [vmem:[%s12629_s6] sm:$0xf]  ;;  %s1496_s6 = scalar_lea.vmem %s12637_s5, %s12422_s16 }
 0x36f   : > { %10196 = vtanh.f32 %v2252_v37  ;;  %v2238_v49 = vadd.f32 %v2222_v38, %v11920_v22  ;;  %v1575_v58 = vrot.slane %v1570_v34, %v11828_v36 }
 0x370   : > { %v2237_v53 = vadd.f32 %v2221_v39, %v11926_v24  ;;  %v2052_v0 = vadd.f32 %v2036_v45, %v1952_v9  ;;  %v2315_v23 = vmul.f32 %v2299_v12, %v11875_v15  ;;  %v1586_v15 = vsub.s32 3, %v11823_v35 }
 0x371   : > { %v1992_v56 = vpop.permute.xlu1 %1991  ;;  %v2254_v57 = vmul.f32 0.7978846, %v2238_v49  ;;  %v2139_v9 = vmul.f32 %v11850_v63, %v2100_v62 }
 0x372   : > { %v2037_v3 = vmul.f32 %v11843_v43, %v1992_v56  ;;  %v2253_v7 = vmul.f32 0.7978846, %v2237_v53  ;;  %v1955_v56 = vmul.f32 %v11837_v41, %v11863_v4 }
 0x373   : > { %10198 = vtanh.f32 %v2254_v57 }
 0x374   : > { %v2053_v50 = vadd.f32 %v2037_v3, %v1953_v52  ;;  %10200 = vtanh.f32 %v2253_v7  ;;  %v1579_v52 = vrot.slane %v1570_v34, %v11832_v40  ;;  %v1587_v3 = vrot.slane %v1570_v34, %v1586_v15 }
 0x375   : > { %v10195_v55 = vpop.eup %10194 }
 0x376   : > { %v2153_v60 = vadd.f32 %v2137_v6, %v2053_v50  ;;  %v2088_v2 = vpop.permute.xlu1 %2087  ;;  %v2282_v10 = vadd.f32 1.0, %v10195_v55 }
 0x377   : > { %v2136_v44 = vmul.f32 %v11850_v63, %v2088_v2 }
 0x378   : > { %v11946_v11 = vadd.f32 %v11854_v61, %v2153_v60  ;;  %v2298_v14 = vmul.f32 0.5, %v2282_v10 }
 0x379   : > { %v10197_v51 = vpop.eup %10196  ;;  %v2152_v17 = vadd.f32 %v2136_v44, %v2052_v0 }
 0x37a   : > { %v2192_v18 = vmul.f32 %v11946_v11, %v11946_v11  ;;  %v2314_v19 = vmul.f32 %v2298_v14, %v11892_v48  ;;  %v2284_v20 = vadd.f32 1.0, %v10197_v51 }
 0x37b   : > { %v11952_v21 = vadd.f32 %v11854_v61, %v2152_v17  ;;  %v1905_v46 = vpop.permute.xlu1 %1904 }
 0x37c   : > { %v2208_v25 = vmul.f32 %v2192_v18, %v11946_v11  ;;  %8480 = vmatmul.mubr.f32.vlgmr.msra.gmra.mrb[2].mxu0 %v2314_v19  ;;  %v2300_v26 = vmul.f32 0.5, %v2284_v20  ;;  %v1954_v14 = vmul.f32 %v11837_v41, %v1905_v46 }
 0x37d   : > { %v10199_v27 = vpop.eup %10198  ;;  %v2191_v28 = vmul.f32 %v11952_v21, %v11952_v21  ;;  %8482 = vmatprep.mubr.f32.mxu0 %v2315_v23 }
 0x37e   : > { %v10201_v29 = vpop.eup %10200  ;;  %v2316_v48 = vmul.f32 %v2300_v26, %v11906_v59  ;;  %v2286_v30 = vadd.f32 1.0, %v10199_v27  ;;  %v2224_v31 = vmul.f32 0.044715, %v2208_v25  ;;  %v1583_v59 = vrot.slane %v1570_v34, %v11840_v42 }
 0x37f   : > { %v2207_v33 = vmul.f32 %v2191_v28, %v11952_v21  ;;  %v2285_v32 = vadd.f32 1.0, %v10201_v29 }
 0x380   : > { %v1996_v37 = vpop.permute.xlu1 %1995  ;;  %8483 = vmatmul.mubr.f32.gmra.mrb[4].mxu0 %v2316_v48  ;;  %v2302_v38 = vmul.f32 0.5, %v2286_v30  ;;  %v2240_v39 = vadd.f32 %v2224_v31, %v11946_v11 }
 0x381   : > { %v2301_v47 = vmul.f32 0.5, %v2285_v32  ;;  %v2223_v49 = vmul.f32 0.044715, %v2207_v33 }
 0x382   : > { %v2256_v53 = vmul.f32 0.7978846, %v2240_v39  ;;  %v2318_v45 = vmul.f32 %v2302_v38, %v11920_v22 }
 0x383   : > { %v2317_v57 = vmul.f32 %v2301_v47, %v11926_v24  ;;  %v2239_v6 = vadd.f32 %v2223_v49, %v11952_v21  ;;  %v2038_v24 = vmul.f32 %v11843_v43, %v1996_v37 }
 0x384   : > { %v2000_v7 = vpop.permute.xlu1 %1999  ;;  %v1658_v50 = vpop.f32.mrb[0].mxu0  ;;  %10202 = vtanh.f32 %v2256_v53 }
 0x385   : > { %v2039_v55 = vmul.f32 %v11843_v43, %v2000_v7  ;;  %8485 = vmatprep.mubr.f32.mxu0 %v2317_v57  ;;  %v1660_v60 = vpop.f32.mrb[1].mxu0  ;;  %v1729_v2 = vpop.f32.mrb[0].mxu1  ;;  %v2255_v4 = vmul.f32 0.7978846, %v2239_v6  ;;  %v1659_v51 = vadd.f32 %v1658_v50, %v1575_v58  ;;  %v2054_v25 = vadd.f32 %v2038_v24, %v1954_v14 }
 0x386   : > { %8486 = vmatmul.mubr.f32.gmra.mrb[6].mxu0 %v2318_v45  ;;  %v1661_v10 = vadd.f32 %v1660_v60, %v1579_v52  ;;  %v1730_v0 = vadd.f32 %v1729_v2, %v1583_v59  ;;  %v1731_v44 = vpop.f32.mrb[1].mxu1 }
 0x387   : > { %v2055_v12 = vadd.f32 %v2039_v55, %v1955_v56  ;;  %v1732_v22 = vadd.f32 %v1731_v44, %v1587_v3  ;;  %10204 = vtanh.f32 %v2255_v4  ;;  %v2108_v3 = vpop.permute.xlu0 %2107  ;;  %v1957_v55 = vmul.f32 %v11837_v41, %v11868_v8 }
 0x388   : > { %v1735_v17 = vrot.slane %v1661_v10, 7  ;;  %v1738_v18 = vrot.slane %v1730_v0, 6  ;;  %v2141_v60 = vmul.f32 %v11850_v63, %v2108_v3 }
 0x389   : > { %v2155_v19 = vadd.f32 %v2139_v9, %v2055_v12  ;;  %v2096_v20 = vpop.permute.xlu1 %2095  ;;  %v1741_v23 = vrot.slane %v1732_v22, 5 }
 0x38a   : > { %v2138_v26 = vmul.f32 %v11850_v63, %v2096_v20  ;;  %v1744_v27 = vsel %vm1743_vm1, %v1659_v51, %v1735_v17 }
 0x38b   : > { %v11978_v28 = vadd.f32 %v11854_v61, %v2155_v19  ;;  %v1746_v29 = vsel %vm1745_vm2, %v1744_v27, %v1738_v18 }
 0x38c   : > { %v2154_v48 = vadd.f32 %v2138_v26, %v2054_v25  ;;  %v11982_v46 = vsel %vm1747_vm3, %v1746_v29, %v1741_v23 }
 0x38d   : > { %v2194_v30 = vmul.f32 %v11978_v28, %v11978_v28  ;;  %v1752_v31 = vsel %vm1751_vm5, %v11982_v46, 0.0 }
 0x38e   : > { %v10203_v33 = vpop.eup %10202  ;;  %v2177_v32 = vadd.f32 %v11854_v61, %v2154_v48  ;;  %v1915_v34 = vpop.permute.xlu1 %1914  ;;  %1753 = vadd.xlane.f32.xlu1 %v1752_v31 }
 0x38f   : > { %v2210_v15 = vmul.f32 %v2194_v30, %v11978_v28  ;;  %v2288_v37 = vadd.f32 1.0, %v10203_v33 }
 0x390   : > { %v2193_v38 = vmul.f32 %v2177_v32, %v2177_v32 }
 0x391   : > { %v10205_v39 = vpop.eup %10204  ;;  %v2226_v47 = vmul.f32 0.044715, %v2210_v15  ;;  %v2304_v59 = vmul.f32 0.5, %v2288_v37 }
 0x392   : > { %v2209_v49 = vmul.f32 %v2193_v38, %v2177_v32  ;;  %v2287_v62 = vadd.f32 1.0, %v10205_v39 }
 0x393   : > { %v2004_v52 = vpop.permute.xlu1 %2003  ;;  %v2242_v53 = vadd.f32 %v2226_v47, %v11978_v28  ;;  %v2320_v50 = vmul.f32 %v2304_v59, %v11946_v11  ;;  %v1959_v47 = vmul.f32 %v11837_v41, %v11872_v13 }
 0x394   : > { %v2303_v56 = vmul.f32 0.5, %v2287_v62  ;;  %v2225_v57 = vmul.f32 0.044715, %v2209_v49  ;;  %v2040_v4 = vmul.f32 %v11843_v43, %v2004_v52  ;;  %v2116_v52 = vpop.permute.xlu0 %2115 }
 0x395   : > { %v2258_v6 = vmul.f32 0.7978846, %v2242_v53  ;;  %v2143_v53 = vmul.f32 %v11850_v63, %v2116_v52 }
 0x396   : > { %v2319_v7 = vmul.f32 %v2303_v56, %v11952_v21  ;;  %v2241_v45 = vadd.f32 %v2225_v57, %v2177_v32  ;;  %v1956_v21 = vmul.f32 %v11837_v41, %v1915_v34 }
 0x397   : > { %v2008_v58 = vpop.permute.xlu1 %2007  ;;  %10206 = vtanh.f32 %v2258_v6 }
 0x398   : > { %v2041_v9 = vmul.f32 %v11843_v43, %v2008_v58  ;;  %8488 = vmatprep.mubr.f32.mxu0 %v2319_v7  ;;  %v2257_v2 = vmul.f32 0.7978846, %v2241_v45  ;;  %v2056_v11 = vadd.f32 %v2040_v4, %v1956_v21 }
 0x399   : > { %8489 = vmatmul.mubr.f32.gmra.mrb[8].mxu0 %v2320_v50 }
 0x39a   : > { %v2057_v24 = vadd.f32 %v2041_v9, %v1957_v55  ;;  %10208 = vtanh.f32 %v2257_v2 }
 0x39c   : > { %v2157_v10 = vadd.f32 %v2141_v60, %v2057_v24  ;;  %v2104_v0 = vpop.permute.xlu1 %2103 }
 0x39d   : > { %v2140_v44 = vmul.f32 %v11850_v63, %v2104_v0 }
 0x39e   : > { %v2180_v8 = vadd.f32 %v11854_v61, %v2157_v10 }
 0x39f   : > { %v2156_v12 = vadd.f32 %v2140_v44, %v2056_v11 }
 0x3a0   : > { %v2196_v22 = vmul.f32 %v2180_v8, %v2180_v8 }
 0x3a1   : > { %v10207_v14 = vpop.eup %10206  ;;  %v2179_v51 = vadd.f32 %v11854_v61, %v2156_v12  ;;  %v1925_v17 = vpop.permute.xlu1 %1924 }
 0x3a2   : > { %v2212_v18 = vmul.f32 %v2196_v22, %v2180_v8  ;;  %v2290_v19 = vadd.f32 1.0, %v10207_v14 }
 0x3a3   : > { %v2195_v20 = vmul.f32 %v2179_v51, %v2179_v51 }
 0x3a4   : > { %v10209_v23 = vpop.eup %10208  ;;  %v2228_v25 = vmul.f32 0.044715, %v2212_v18  ;;  %v2306_v48 = vmul.f32 0.5, %v2290_v19 }
 0x3a5   : > { %v2211_v26 = vmul.f32 %v2195_v20, %v2179_v51  ;;  %v2289_v27 = vadd.f32 1.0, %v10209_v23  ;;  %v1961_v23 = vmul.f32 %v11837_v41, %v11877_v16 }
 0x3a6   : > { %v2012_v29 = vpop.permute.xlu1 %2011  ;;  %v2244_v30 = vadd.f32 %v2228_v25, %v2180_v8  ;;  %v2322_v39 = vmul.f32 %v2306_v48, %v11978_v28 }
 0x3a7   : > { %v2305_v31 = vmul.f32 0.5, %v2289_v27  ;;  %v2227_v33 = vmul.f32 0.044715, %v2211_v26  ;;  %v2042_v59 = vmul.f32 %v11843_v43, %v2012_v29  ;;  %v2124_v27 = vpop.permute.xlu0 %2123 }
 0x3a8   : > { %v2260_v34 = vmul.f32 0.7978846, %v2244_v30  ;;  %v2145_v48 = vmul.f32 %v11850_v63, %v2124_v27 }
 0x3a9   : > { %v2321_v15 = vmul.f32 %v2305_v31, %v2177_v32  ;;  %v2243_v37 = vadd.f32 %v2227_v33, %v2179_v51  ;;  %v1958_v32 = vmul.f32 %v11837_v41, %v1925_v17 }
 0x3aa   : > { %v2016_v38 = vpop.permute.xlu1 %2015  ;;  %10210 = vtanh.f32 %v2260_v34 }
 0x3ab   : > { %v2043_v49 = vmul.f32 %v11843_v43, %v2016_v38  ;;  %8491 = vmatprep.mubr.f32.mxu0 %v2321_v15  ;;  %v2259_v62 = vmul.f32 0.7978846, %v2243_v37  ;;  %v2058_v3 = vadd.f32 %v2042_v59, %v1958_v32  ;;  %v2536_v37 = vld [vmem:[%s12630_s4] sm:$0x7]  ;;  %s12639_s4 = sld [smem:[#allocation76_spill]] }
 0x3ac   : > { %8492 = vmatmul.mubr.f32.gmra.mrb[10].mxu0 %v2322_v39 }
 0x3ad   : > { %v2059_v56 = vadd.f32 %v2043_v49, %v1959_v47  ;;  %10212 = vtanh.f32 %v2259_v62  ;;  %v2545_v47 = vrot.slane %v2536_v37, %v11828_v36 }
 0x3af   : > { %v2159_v57 = vadd.f32 %v2143_v53, %v2059_v56  ;;  %v2112_v28 = vpop.permute.xlu1 %2111 }
 0x3b0   : > { %v2142_v6 = vmul.f32 %v11850_v63, %v2112_v28 }
 0x3b1   : > { %v12011_v13 = vadd.f32 %v11854_v61, %v2159_v57 }
 0x3b2   : > { %v2158_v7 = vadd.f32 %v2142_v6, %v2058_v3  ;;  %v2559_v3 = vpop.permute.xlu0 %2558 }
 0x3b3   : > { %v2198_v45 = vmul.f32 %v12011_v13, %v12011_v13 }
 0x3b4   : > { %v10211_v58 = vpop.eup %10210  ;;  %v12016_v50 = vadd.f32 %v11854_v61, %v2158_v7  ;;  %v1935_v55 = vpop.permute.xlu1 %1934 }
 0x3b5   : > { %v2292_v9 = vadd.f32 1.0, %v10211_v58  ;;  %v2214_v60 = vmul.f32 %v2198_v45, %v12011_v13  ;;  %v1960_v30 = vmul.f32 %v11837_v41, %v1935_v55  ;;  %v2554_v41 = vrot.slane %v2536_v37, %v11832_v40 }
 0x3b6   : > { %v2197_v2 = vmul.f32 %v12016_v50, %v12016_v50 }
 0x3b7   : > { %v10213_v4 = vpop.eup %10212  ;;  %v2230_v24 = vmul.f32 0.044715, %v2214_v60  ;;  %v2308_v11 = vmul.f32 0.5, %v2292_v9 }
 0x3b8   : > { %v2213_v21 = vmul.f32 %v2197_v2, %v12016_v50  ;;  %v2291_v10 = vadd.f32 1.0, %v10213_v4 }
 0x3b9   : > { %v2020_v0 = vpop.permute.xlu1 %2019  ;;  %v2246_v44 = vadd.f32 %v2230_v24, %v12011_v13  ;;  %v2324_v20 = vmul.f32 %v2308_v11, %v2180_v8 }
 0x3ba   : > { %v2307_v12 = vmul.f32 0.5, %v2291_v10  ;;  %v2229_v22 = vmul.f32 0.044715, %v2213_v21  ;;  %v2044_v29 = vmul.f32 %v11843_v43, %v2020_v0  ;;  %v8033_v21 = vld [vmem:[%s12631_s14] ss:$0 sm:$0xff]  ;;  %s1504_s14 = scalar_lea.vmem %s11248_s19, %s12422_s16 }
 0x3bb   : > { %v2262_v14 = vmul.f32 0.7978846, %v2246_v44 }
 0x3bc   : > { %v2323_v17 = vmul.f32 %v2307_v12, %v2179_v51  ;;  %v2245_v18 = vadd.f32 %v2229_v22, %v12016_v50  ;;  %v2060_v33 = vadd.f32 %v2044_v29, %v1960_v30 }
 0x3bd   : > { %v2024_v19 = vpop.permute.xlu1 %2023  ;;  %10214 = vtanh.f32 %v2262_v14 }
 0x3be   : > { %v2045_v25 = vmul.f32 %v11843_v43, %v2024_v19  ;;  %8494 = vmatprep.mubr.f32.mxu0 %v2323_v17  ;;  %v2261_v26 = vmul.f32 0.7978846, %v2245_v18 }
 0x3bf   : > { %8495 = vmatmul.mubr.f32.gmra.mrb[12].mxu0 %v2324_v20 }
 0x3c0   : > { %v2061_v51 = vadd.f32 %v2045_v25, %v1961_v23  ;;  %10216 = vtanh.f32 %v2261_v26 }
 0x3c2   : > { %v2161_v8 = vadd.f32 %v2145_v48, %v2061_v51  ;;  %v2120_v31 = vpop.permute.xlu1 %2119 }
 0x3c3   : > { %v2144_v16 = vmul.f32 %v11850_v63, %v2120_v31  ;;  %v2564_v63 = vrot.slane %v2536_v37, %v11840_v42  ;;  %v2682_v37 = vld [vmem:[#allocation10 + $0x20] sm:$0xff] }
 0x3c4   : > { %v2184_v34 = vadd.f32 %v11854_v61, %v2161_v8 }
 0x3c5   : > { %v2160_v15 = vadd.f32 %v2144_v16, %v2060_v33  ;;  %v2565_v60 = vmul.f32 %v2564_v63, %v2559_v3  ;;  %v2686_v63 = vld [vmem:[#allocation10 + $0x40] sm:$0xff]  ;;  %v2691_v3 = vld [vmem:[#allocation10 + $0x68] sm:$0xff] }
 0x3c6   : > { %v2200_v38 = vmul.f32 %v2184_v34, %v2184_v34 }
 0x3c7   : > { %v10215_v39 = vpop.eup %10214  ;;  %v2183_v43 = vadd.f32 %v11854_v61, %v2160_v15  ;;  %v2540_v49 = vpop.permute.xlu1 %2539  ;;  %v2679_v15 = vld [vmem:[#allocation10 + $0x8] sm:$0xff] }
 0x3c8   : > { %v2294_v62 = vadd.f32 1.0, %v10215_v39  ;;  %v2216_v52 = vmul.f32 %v2200_v38, %v2184_v34  ;;  %v2546_v57 = vmul.f32 %v2545_v47, %v2540_v49  ;;  %v2678_v38 = vld [vmem:[#allocation10] sm:$0xff]  ;;  %v9123_v39 = vpack.c.bf16 %v2682_v37, %v2679_v15  ;;  %v2680_v47 = vld [vmem:[#allocation10 + $0x10] sm:$0xff]  ;;  %v2683_v49 = vld [vmem:[#allocation10 + $0x28] sm:$0xff] }
 0x3c9   : > { %v2199_v59 = vmul.f32 %v2183_v43, %v2183_v43  ;;  %v2714_v37 = vld [vmem:[#allocation10 + $0x120] sm:$0xff] }
 0x3ca   : > { %v10217_v53 = vpop.eup %10216  ;;  %v2232_v56 = vmul.f32 0.044715, %v2216_v52  ;;  %v2310_v7 = vmul.f32 0.5, %v2294_v62  ;;  %v9156_v52 = vpack.c.bf16 %v2683_v49, %v2680_v47  ;;  %9124 = vmatprep.subr.bf16.mxu1 %v9123_v39  ;;  %v2716_v39 = vld [vmem:[#allocation10 + $0x130] sm:$0xff]  ;;  %v2719_v47 = vld [vmem:[#allocation10 + $0x148] sm:$0xff] }
 0x3cb   : > { %v2215_v32 = vmul.f32 %v2199_v59, %v2183_v43  ;;  %v2293_v28 = vadd.f32 1.0, %v10217_v53  ;;  %v2688_v59 = vld [vmem:[#allocation10 + $0x50] sm:$0xff] }
 0x3cc   : > { %v2549_v6 = vpop.permute.xlu1 %2548  ;;  %v2248_v61 = vadd.f32 %v2232_v56, %v2184_v34  ;;  %v2326_v10 = vmul.f32 %v2310_v7, %v12011_v13  ;;  %9157 = vmatpush3.bf16.msra.mxu0 %v9156_v52  ;;  %v2684_v53 = vld [vmem:[#allocation10 + $0x30] sm:$0xff]  ;;  %v2687_v56 = vld [vmem:[#allocation10 + $0x48] sm:$0xff]  ;;  %v2721_v52 = vld [vmem:[#allocation10 + $0x158] sm:$0xff] }
 0x3cd   : > { %v2555_v45 = vmul.f32 %v2554_v41, %v2549_v6  ;;  %v2309_v58 = vmul.f32 0.5, %v2293_v28  ;;  %v2231_v55 = vmul.f32 0.044715, %v2215_v32  ;;  %9158 = vmatprep.subr.bf16.mxu0 %v11044_v5  ;;  %v9129_v32 = vpack.c.bf16 %v2687_v56, %v2684_v53  ;;  %v2694_v6 = vld [vmem:[#allocation10 + $0x80] sm:$0xff]  ;;  %v12056_v49 = vld [vmem:[%s12632_s28] ss:$0 sm:$0xff]  ;;  %s1500_s28 = scalar_lea.vmem %s11243_s9, %s12422_s16 }
 0x3ce   : > { %v2264_v9 = vmul.f32 0.7978846, %v2248_v61  ;;  %v9131_v7 = vpack.c.bf16 %v2694_v6, %v2691_v3  ;;  %v2690_v61 = vld [vmem:[#allocation10 + $0x60] sm:$0xff]  ;;  %v2720_v53 = vld [vmem:[#allocation10 + $0x150] sm:$0xff]  ;;  %v2723_v56 = vld [vmem:[#allocation10 + $0x168] sm:$0xff] }
 0x3cf   : > { %v2556_v2 = vadd.f32 %v2555_v45, %v2546_v57  ;;  %v2325_v4 = vmul.f32 %v2309_v58, %v12016_v50  ;;  %v2247_v24 = vadd.f32 %v2231_v55, %v2183_v43  ;;  %v2689_v57 = vld [vmem:[#allocation10 + $0x58] sm:$0xff]  ;;  %v2692_v58 = vld [vmem:[#allocation10 + $0x70] sm:$0xff] }
 0x3d0   : > { %10218 = vtanh.f32 %v2264_v9  ;;  %v9159_v28 = vpack.c.bf16 %v2689_v57, %v2686_v63  ;;  %v2693_v45 = vld [vmem:[#allocation10 + $0x78] sm:$0xff]  ;;  %v2695_v9 = vld [vmem:[#allocation10 + $0x88] sm:$0xff]  ;;  %v2722_v63 = vld [vmem:[#allocation10 + $0x160] sm:$0xff] }
 0x3d1   : > { %v2566_v0 = vadd.f32 %v2565_v60, %v2556_v2  ;;  %8497 = vmatprep.mubr.f32.mxu0 %v2325_v4  ;;  %v2263_v11 = vmul.f32 0.7978846, %v2247_v24  ;;  %v9133_v55 = vpack.c.bf16 %v2693_v45, %v2690_v61  ;;  %v9162_v60 = vpack.c.bf16 %v2695_v9, %v2692_v58  ;;  %v2697_v2 = vld [vmem:[#allocation10 + $0x98] sm:$0xff]  ;;  %v2700_v4 = vld [vmem:[#allocation10 + $0xb0] sm:$0xff] }
 0x3d2   : > { %8498 = vmatmul.mubr.f32.gmra.mrb[14].mxu0 %v2326_v10  ;;  %v9135_v24 = vpack.c.bf16 %v2700_v4, %v2697_v2  ;;  %v2699_v10 = vld [vmem:[#allocation10 + $0xa8] sm:$0xff]  ;;  %v2725_v3 = vld [vmem:[#allocation10 + $0x178] sm:$0xff] }
 0x3d3   : > { %v2574_v44 = vadd.f32 %v8033_v21, %v2566_v0  ;;  %10220 = vtanh.f32 %v2263_v11  ;;  %9160 = vmatpush3.bf16.msra.mxu0 %v9159_v28  ;;  %v2696_v21 = vld [vmem:[#allocation10 + $0x90] sm:$0xff]  ;;  %v2698_v0 = vld [vmem:[#allocation10 + $0xa0] sm:$0xff]  ;;  %v9153_v28 = vpack.c.bf16 %v2723_v56, %v2720_v53 }
 0x3d4   : > { %9161 = vmatprep.subr.bf16.mxu0 %v11044_v5  ;;  %v9137_v11 = vpack.c.bf16 %v2699_v10, %v2696_v21 }
 0x3d5   : > { %v2575_v12 = vmul.f32 %v2574_v44, %v2574_v44 }
 0x3d7   : > { %v2576_v22 = vmul.f32 %v2575_v12, %v2574_v44  ;;  %9163 = vmatpush3.bf16.msra.mxu0 %v9162_v60 }
 0x3d8   : > { %9164 = vmatprep.subr.bf16.mxu0 %v11044_v5 }
 0x3d9   : > { %v2577_v14 = vmul.f32 0.044715, %v2576_v22  ;;  %v2703_v22 = vld [vmem:[#allocation10 + $0xc8] sm:$0xff] }
 0x3da   : > { %v10219_v17 = vpop.eup %10218 }
 0x3db   : > { %v2578_v18 = vadd.f32 %v2577_v14, %v2574_v44  ;;  %v2296_v19 = vadd.f32 1.0, %v10219_v17  ;;  %v2706_v14 = vld [vmem:[#allocation10 + $0xe0] sm:$0xff] }
 0x3dc   : > { %v9139_v17 = vpack.c.bf16 %v2706_v14, %v2703_v22 }
 0x3dd   : > { %v10221_v20 = vpop.eup %10220  ;;  %v2579_v23 = vmul.f32 0.7978846, %v2578_v18  ;;  %v2312_v25 = vmul.f32 0.5, %v2296_v19  ;;  %v2702_v18 = vld [vmem:[#allocation10 + $0xc0] sm:$0xff]  ;;  %v2705_v19 = vld [vmem:[#allocation10 + $0xd8] sm:$0xff] }
 0x3de   : > { %v2295_v50 = vadd.f32 1.0, %v10221_v20  ;;  %v9141_v20 = vpack.c.bf16 %v2705_v19, %v2702_v18 }
 0x3df   : > { %10222 = vtanh.f32 %v2579_v23  ;;  %v2328_v27 = vmul.f32 %v2312_v25, %v2184_v34  ;;  %v2704_v23 = vld [vmem:[#allocation10 + $0xd0] sm:$0xff] }
 0x3e0   : > { %v2311_v26 = vmul.f32 0.5, %v2295_v50  ;;  %v2707_v50 = vld [vmem:[#allocation10 + $0xe8] sm:$0xff] }
 0x3e1   : > { %v9168_v25 = vpack.c.bf16 %v2707_v50, %v2704_v23 }
 0x3e2   : > { %v2327_v13 = vmul.f32 %v2311_v26, %v2183_v43  ;;  %v2681_v43 = vld [vmem:[#allocation10 + $0x18] sm:$0xff] }
 0x3e3   : > { %v9125_v62 = vpack.c.bf16 %v2681_v43, %v2678_v38  ;;  %v2709_v26 = vld [vmem:[#allocation10 + $0xf8] sm:$0xff] }
 0x3e4   : > { %8500 = vmatprep.mubr.f32.mxu0 %v2327_v13  ;;  %v2712_v13 = vld [vmem:[#allocation10 + $0x110] sm:$0xff]  ;;  %v2717_v38 = vld [vmem:[#allocation10 + $0x138] sm:$0xff] }
 0x3e5   : > { %8501 = vmatmul.mubr.f32.gmra.mrb[16].mxu0 %v2328_v27  ;;  %v9143_v27 = vpack.c.bf16 %v2712_v13, %v2709_v26  ;;  %v9149_v43 = vpack.c.bf16 %v2717_v38, %v2714_v37 }
 0x3e6   : > { %8554 = vmatprep.mubr.msk.f32.mxu0 %vm11045_vm4, %v11041_v1 }
 0x3e9   : > { %v10223_v29 = vpop.eup %10222 }
 0x3ea   : > { %v2581_v48 = vadd.f32 1.0, %v10223_v29  ;;  %v2708_v29 = vld [vmem:[#allocation10 + $0xf0] sm:$0xff] }
 0x3ec   : > { %v2582_v51 = vmul.f32 0.5, %v2581_v48  ;;  %v2711_v48 = vld [vmem:[#allocation10 + $0x108] sm:$0xff] }
 0x3ee   : > { %v2583_v30 = vmul.f32 %v2582_v51, %v2574_v44  ;;  %v2701_v44 = vld [vmem:[#allocation10 + $0xb8] sm:$0xff]  ;;  %v2710_v51 = vld [vmem:[#allocation10 + $0x100] sm:$0xff] }
 0x3ef   : > { %v9165_v12 = vpack.c.bf16 %v2701_v44, %v2698_v0 }
 0x3f0   : > { %8520 = vmatmul.mubr.msk.f32.vlgmr.msra.gmra.mrb[2].mxu1 %vm2599_vm6, %v2583_v30  ;;  %v9145_v30 = vpack.c.bf16 %v2711_v48, %v2708_v29 }
 0x3f1   : > { %2823 = vmatprep.mubr.f32.mxu1 %v11041_v1  ;;  %9126 = vmatpush1.bf16.msra.mxu1 %v9125_v62  ;;  %v9174_v62 = vpack.c.bf16 %v2719_v47, %v2716_v39 }
 0x3f2   : > { %9166 = vmatpush3.bf16.msra.mxu0 %v9165_v12 }
 0x3f3   : > { %9167 = vmatprep.subr.bf16.mxu0 %v11044_v5 }
 0x3f6   : > { %9169 = vmatpush3.bf16.msra.mxu0 %v9168_v25 }
 0x3f7   : > { %9170 = vmatprep.subr.bf16.mxu0 %v11044_v5 }
 0x41b   : > { %v1754_v8 = vpop.xlane.xlu1 %1753 }
 0x41c   : > { %v1756_v31 = vmul.f32 0.0078125, %v1754_v8  ;;  %v2713_v8 = vld [vmem:[#allocation10 + $0x118] sm:$0xff] }
 0x41e   : > { %v12044_v33 = vsub.f32 %v11982_v46, %v1756_v31  ;;  %v2685_v46 = vld [vmem:[#allocation10 + $0x38] sm:$0xff]  ;;  %v9171_v31 = vpack.c.bf16 %v2713_v8, %v2710_v51 }
 0x41f   : > { %v9127_v41 = vpack.c.bf16 %v2688_v59, %v2685_v46  ;;  %v2724_v46 = vld [vmem:[#allocation10 + $0x170] sm:$0xff] }
 0x420   : > { %v1758_v16 = vmul.f32 %v12044_v33, %v12044_v33  ;;  %9172 = vmatpush3.bf16.msra.mxu0 %v9171_v31 }
 0x421   : > { %9128 = vmatprep.subr.bf16.mxu1 %v9127_v41  ;;  %9173 = vmatprep.subr.bf16.mxu0 %v11044_v5  ;;  %v9151_v41 = vpack.c.bf16 %v2724_v46, %v2721_v52 }
 0x422   : > { %v1759_v34 = vsel %vm1751_vm5, %v1758_v16, 0.0  ;;  %9130 = vmatpush1.bf16.msra.mxu1 %v9129_v32  ;;  %v2715_v16 = vld [vmem:[#allocation10 + $0x128] sm:$0xff] }
 0x423   : > { %1760 = vadd.xlane.f32.xlu0 %v1759_v34  ;;  %9132 = vmatprep.subr.bf16.mxu1 %v9131_v7  ;;  %v2718_v34 = vld [vmem:[#allocation10 + $0x140] sm:$0xff]  ;;  %v9177_v7 = vpack.c.bf16 %v2725_v3, %v2722_v63 }
 0x424   : > { %v9147_v15 = vpack.c.bf16 %v2718_v34, %v2715_v16  ;;  %9175 = vmatpush3.bf16.msra.mxu0 %v9174_v62 }
 0x425   : > { %9176 = vmatprep.subr.bf16.mxu0 %v11044_v5 }
 0x426   : > { %9134 = vmatpush1.bf16.msra.mxu1 %v9133_v55 }
 0x427   : > { %9136 = vmatprep.subr.bf16.mxu1 %v9135_v24 }
 0x428   : > { %9178 = vmatpush3.bf16.msra.mxu0 %v9177_v7 }
 0x429   : > { %8599 = vmatprep.subr.mxu0 %v11041_v1 }
 0x42a   : > { %9138 = vmatpush1.bf16.msra.mxu1 %v9137_v11 }
 0x42b   : > { %9140 = vmatprep.subr.bf16.mxu1 %v9139_v17 }
 0x42e   : > { %9142 = vmatpush1.bf16.msra.mxu1 %v9141_v20 }
 0x42f   : > { %9144 = vmatprep.subr.bf16.mxu1 %v9143_v27 }
 0x432   : > { %9146 = vmatpush1.bf16.msra.mxu1 %v9145_v30 }
 0x433   : > { %9148 = vmatprep.subr.bf16.mxu1 %v9147_v15 }
 0x436   : > { %9150 = vmatpush1.bf16.msra.mxu1 %v9149_v43 }
 0x437   : > { %9152 = vmatprep.subr.bf16.mxu1 %v9151_v41 }
 0x43a   : > { %9154 = vmatpush1.bf16.msra.mxu1 %v9153_v28 }
 0x43b   : > { %8557 = vmatprep.subr.mxu1 %v11041_v1 }
 0x44f   : > { %v8481_v59 = vpop.f32.mrb[2].mxu0 }
 0x450   : > { %v2424_v32 = vadd.f32 %v8481_v59, %v12056_v49  ;;  %v2418_v57 = vpop.f32.mrb[3].mxu0 }
 0x451   : > { %v2419_v6 = vadd.f32 %v12056_v49, %v2418_v57 }
 0x453   : > { %v2497_v61 = vmax.f32 %v2419_v6, %v2424_v32  ;;  %v8484_v45 = vpop.f32.mrb[4].mxu0 }
 0x454   : > { %v2434_v58 = vadd.f32 %v8484_v45, %v12056_v49  ;;  %v2428_v55 = vpop.f32.mrb[5].mxu0 }
 0x455   : > { %v2429_v9 = vadd.f32 %v12056_v49, %v2428_v55 }
 0x457   : > { %v2498_v60 = vmax.f32 %v2429_v9, %v2434_v58 }
 0x459   : > { %v2499_v2 = vmax.f32 %v2497_v61, %v2498_v60  ;;  %v8487_v4 = vpop.f32.mrb[6].mxu0 }
 0x45a   : > { %v2444_v24 = vadd.f32 %v8487_v4, %v12056_v49  ;;  %v2438_v21 = vpop.f32.mrb[7].mxu0 }
 0x45b   : > { %v2439_v10 = vadd.f32 %v12056_v49, %v2438_v21  ;;  %v2500_v11 = vrot.slane %v2499_v2, 4 }
 0x45d   : > { %v2506_v0 = vmax.f32 %v2439_v10, %v2444_v24  ;;  %v2501_v14 = vmax.f32 %v2499_v2, %v2500_v11 }
 0x45f   : > { %v2502_v19 = vrot.slane %v2501_v14, 2 }
 0x461   : > { %v2503_v50 = vmax.f32 %v2501_v14, %v2502_v19  ;;  %v1749_v14 = vld [vmem:[#allocation4] sm:$0xf] }
 0x463   : > { %v2504_v13 = vrot.slane %v2503_v50, 1 }
 0x465   : > { %v2505_v48 = vmax.f32 %v2503_v50, %v2504_v13 }
 0x46c   : > { %v8490_v44 = vpop.f32.mrb[8].mxu0 }
 0x46d   : > { %v2454_v12 = vadd.f32 %v8490_v44, %v12056_v49  ;;  %v2448_v22 = vpop.f32.mrb[9].mxu0 }
 0x46e   : > { %v2449_v17 = vadd.f32 %v12056_v49, %v2448_v22 }
 0x470   : > { %v2507_v18 = vmax.f32 %v2449_v17, %v2454_v12 }
 0x472   : > { %v2508_v20 = vmax.f32 %v2506_v0, %v2507_v18  ;;  %v8034_v18 = vld [vmem:[%s12633_s3] ss:$0 sm:$0xff] }
 0x474   : > { %v2509_v23 = vrot.slane %v2508_v20, 4 }
 0x476   : > { %v2510_v25 = vmax.f32 %v2508_v20, %v2509_v23  ;;  %v1750_v23 = vld [vmem:[#allocation6] sm:$0xf] }
 0x478   : > { %v2511_v26 = vrot.slane %v2510_v25, 2 }
 0x47a   : > { %v2512_v27 = vmax.f32 %v2510_v25, %v2511_v26 }
 0x47c   : > { %v2513_v29 = vrot.slane %v2512_v27, 1 }
 0x47e   : > { %v2514_v51 = vmax.f32 %v2512_v27, %v2513_v29 }
 0x47f   : > { %v8493_v30 = vpop.f32.mrb[10].mxu0 }
 0x480   : > { %v2464_v8 = vadd.f32 %v8493_v30, %v12056_v49  ;;  %v2458_v31 = vpop.f32.mrb[11].mxu0  ;;  %v2533_v16 = vsel %vm1743_vm1, %v2505_v48, %v2514_v51 }
 0x481   : > { %v2459_v34 = vadd.f32 %v12056_v49, %v2458_v31 }
 0x483   : > { %v2515_v15 = vmax.f32 %v2459_v34, %v2464_v8 }
 0x492   : > { %v8496_v37 = vpop.f32.mrb[12].mxu0 }
 0x493   : > { %v2474_v38 = vadd.f32 %v8496_v37, %v12056_v49  ;;  %v2468_v39 = vpop.f32.mrb[13].mxu0 }
 0x494   : > { %v2469_v43 = vadd.f32 %v12056_v49, %v2468_v39 }
 0x496   : > { %v2516_v47 = vmax.f32 %v2469_v43, %v2474_v38 }
 0x498   : > { %v2517_v62 = vmax.f32 %v2515_v15, %v2516_v47 }
 0x49a   : > { %v2518_v52 = vrot.slane %v2517_v62, 4 }
 0x49c   : > { %v2519_v46 = vmax.f32 %v2517_v62, %v2518_v52 }
 0x49e   : > { %v2520_v59 = vrot.slane %v2519_v46, 2 }
 0x4a0   : > { %v2521_v41 = vmax.f32 %v2519_v46, %v2520_v59 }
 0x4a2   : > { %v2522_v53 = vrot.slane %v2521_v41, 1 }
 0x4a4   : > { %v2523_v56 = vmax.f32 %v2521_v41, %v2522_v53 }
 0x4a5   : > { %v8499_v63 = vpop.f32.mrb[14].mxu0 }
 0x4a6   : > { %v2484_v32 = vadd.f32 %v8499_v63, %v12056_v49  ;;  %v2478_v57 = vpop.f32.mrb[15].mxu0  ;;  %v2534_v28 = vsel %vm1745_vm2, %v2533_v16, %v2523_v56 }
 0x4a7   : > { %v2479_v3 = vadd.f32 %v12056_v49, %v2478_v57 }
 0x4a9   : > { %v2524_v6 = vmax.f32 %v2479_v3, %v2484_v32 }
 0x4b0   : > { %v1761_v7 = vpop.xlane.xlu0 %1760 }
 0x4b1   : > { %v1762_v61 = vmul.f32 0.0078125, %v1761_v7 }
 0x4b3   : > { %v1763_v45 = vadd.f32 1e-05, %v1762_v61 }
 0x4b5   : > { %10224 = vrsqrt.f32 %v1763_v45 }
 0x4b8   : > { %v8502_v58 = vpop.f32.mrb[16].mxu0 }
 0x4b9   : > { %v2494_v55 = vadd.f32 %v8502_v58, %v12056_v49  ;;  %v2488_v9 = vpop.f32.mrb[17].mxu0 }
 0x4ba   : > { %v2489_v60 = vadd.f32 %v12056_v49, %v2488_v9 }
 0x4bc   : > { %v2525_v2 = vmax.f32 %v2489_v60, %v2494_v55 }
 0x4be   : > { %v2526_v4 = vmax.f32 %v2524_v6, %v2525_v2 }
 0x4bf   : > { %v10225_v21 = vpop.eup %10224 }
 0x4c0   : > { %v2527_v24 = vrot.slane %v2526_v4, 4  ;;  %v1765_v12 = vmul.f32 %v10225_v21, %v12044_v33  ;;  %v2742_v33 = vld [vmem:[%s12634_s8] sm:$0x7] }
 0x4c1   : > { %v2751_v29 = vrot.slane %v2742_v33, %v11832_v40  ;;  %v2747_v30 = vrot.slane %v2742_v33, %v11828_v36  ;;  %v2755_v16 = vrot.slane %v2742_v33, %v11840_v42 }
 0x4c2   : > { %v2528_v10 = vmax.f32 %v2526_v4, %v2527_v24  ;;  %v1766_v19 = vmul.f32 %v1765_v12, %v1749_v14 }
 0x4c3   : > { %v2669_v0 = vpop.f32.mrb[2].mxu1 }
 0x4c4   : > { %v2529_v11 = vrot.slane %v2528_v10, 2  ;;  %v8521_v44 = vpop.f32.mrb[3].mxu1  ;;  %v2670_v50 = vadd.f32 %v8034_v18, %v2669_v0  ;;  %v1767_v26 = vadd.f32 %v1766_v19, %v1750_v23  ;;  %v2731_v23 = vld [vmem:[%s12635_s2 + $0x28] sm:$0xff] }
 0x4c6   : > { %v2530_v22 = vmax.f32 %v2528_v10, %v2529_v11 }
 0x4c8   : > { %v2531_v17 = vrot.slane %v2530_v22, 1 }
 0x4ca   : > { %v2532_v20 = vmax.f32 %v2530_v22, %v2531_v17 }
 0x4cc   : > { %v2535_v49 = vsel %vm1747_vm3, %v2534_v28, %v2532_v20  ;;  %v2730_v20 = vld [vmem:[%s12635_s2 + $0x20] sm:$0xff] }
 0x4cd   : > { %v2673_v25 = vadd.f32 %v2670_v50, %v2535_v49  ;;  %v9180_v49 = vpack.c.bf16 %v2731_v23, %v2730_v20 }
 0x4cf   : > { %v2675_v13 = vrot.slane %v2673_v25, 4 }
 0x4d1   : > { %v12083_v27 = vsel %vm1751_vm5, %v1767_v26, %v2675_v13  ;;  %v2732_v26 = vld [vmem:[%s12635_s2 + $0x30] sm:$0xff]  ;;  %v2733_v13 = vld [vmem:[%s12635_s2 + $0x38] sm:$0xff] }
 0x4d2   : > { %2824 = vmatmul.mubr.f32.vlgmr.msra.gmra.mrb[4].mxu1 %v12083_v27  ;;  %8555 = vmatmul.mubr.f32.vlgmr.msra.gmra.mrb[18].mxu0 %v12083_v27  ;;  %v9183_v33 = vpack.c.bf16 %v2733_v13, %v2732_v26 }
 0x4d3   : > { %8559 = vmatprep.mubr.msk.f32.mxu1 %vm11045_vm4, %v11041_v1  ;;  %8601 = vmatprep.mubr.msk.f32.mxu0 %vm11045_vm4, %v11041_v1 }
 0x5a5   : > { %v2825_v48 = vpop.f32.mrb[4].mxu1  ;;  %v2896_v51 = vpop.f32.mrb[18].mxu0 }
 0x5a6   : > { %v2827_v8 = vpop.f32.mrb[5].mxu1  ;;  %v8556_v31 = vpop.f32.mrb[19].mxu0  ;;  %v12099_v15 = vadd.f32 %v2825_v48, %v2747_v30  ;;  %v12102_v37 = vadd.f32 %v2896_v51, %v2755_v16  ;;  %v2726_v48 = vld [vmem:[%s12635_s2] sm:$0xff]  ;;  %v2727_v51 = vld [vmem:[%s12635_s2 + $0x8] sm:$0xff] }
 0x5a7   : > { %v12095_v34 = vadd.f32 %v2827_v8, %v2751_v29  ;;  %v9186_v30 = vpack.c.bf16 %v2727_v51, %v2726_v48  ;;  %v2728_v8 = vld [vmem:[%s12635_s2 + $0x10] sm:$0xff]  ;;  %v2729_v31 = vld [vmem:[%s12635_s2 + $0x18] sm:$0xff]  ;;  %v3895_v51 = vld [vmem:[#allocation16 + $0x18] sm:$0xff] }
 0x5a8   : > { %v3893_v48 = vld [vmem:[#allocation16 + $0x8] sm:$0xff] }
 0x5a9   : > { %8558 = vmatpush3.xpose.msk.msra.mxu1 %vm2900_vm7, %v12095_v34 }
 0x5aa   : > { %8562 = vmatprep.subr.mxu1 %v11041_v1 }
 0x5ac   : > { %8560 = vmatmul.mubr.msk.f32.vlgmr.msra.gmra.mrb[6].mxu1 %vm2900_vm7, %v12099_v15 }
 0x5ad   : > { %8563 = vmatpush3.msra.mxu1 %v12102_v37  ;;  %8564 = vmatprep.mubr.msk.f32.mxu1 %vm11045_vm4, %v11041_v1 }
 0x5ae   : > { %8567 = vmatprep.subr.mxu1 %v11041_v1 }
 0x67f   : > { %v2973_v38 = vpop.f32.mrb[6].mxu1 }
 0x680   : > { %v2977_v39 = vmul.f32 0.17677669, %v2973_v38  ;;  %v8561_v43 = vpop.f32.mrb[7].mxu1 }
 0x682   : > { %v2979_v47 = vsel %vm2978_vm8, %v2977_v39, -inf }
 0x683   : > { %2980 = vmax.xlane.f32.xlu0 %v2979_v47 }
 0x699   : > { %3065 = vrot.lane.b32.xlu0 %v12095_v34, %s11046_s7 }
 0x69d   : > { %3376 = vrot.lane.b32.xlu0 %v12099_v15, %s11047_s22 }
 0x710   : > { %v2981_v62 = vpop.xlane.xlu0 %2980 }
 0x711   : > { %v2982_v52 = vsub.f32 %v2977_v39, %v2981_v62 }
 0x713   : > { %v2983_v46 = vmul.f32 1.442695, %v2982_v52  ;;  %v2734_v52 = vld [vmem:[%s12635_s2 + $0x40] sm:$0xff] }
 0x714   : > { %v3066_v63 = vpop.permute.xlu0 %3065 }
 0x715   : > { %10226 = vpow2.f32 %v2983_v46  ;;  %v2735_v46 = vld [vmem:[%s12635_s2 + $0x48] sm:$0xff] }
 0x718   : > { %v3377_v28 = vpop.permute.xlu0 %3376 }
 0x71f   : > { %v10227_v59 = vpop.eup %10226 }
 0x720   : > { %v2985_v41 = vsel %vm2978_vm8, %v10227_v59, 0.0 }
 0x721   : > { %2986 = vadd.xlane.f32.xlu1 %v2985_v41  ;;  %v2736_v41 = vld [vmem:[%s12635_s2 + $0x50] sm:$0xff] }
 0x732   : > { %3063 = vrot.lane.b32.xlu1 %v12099_v15, %s11046_s7 }
 0x736   : > { %3378 = vrot.lane.b32.xlu1 %v12095_v34, %s11047_s22 }
 0x7ae   : > { %v2987_v53 = vpop.xlane.xlu1 %2986 }
 0x7af   : > { %10228 = vrcp.f32 %v2987_v53  ;;  %v2737_v53 = vld [vmem:[%s12635_s2 + $0x58] sm:$0xff] }
 0x7b2   : > { %v3064_v56 = vpop.permute.xlu1 %3063 }
 0x7b6   : > { %v3379_v32 = vpop.permute.xlu1 %3378 }
 0x7b7   : > { %8600 = vmatpush3.xpose.msk.msra.mxu0 %vm2900_vm7, %v3379_v32 }
 0x7b8   : > { %9191 = vmatprep.subr.bf16.mxu0 %v11044_v5 }
 0x7b9   : > { %v10229_v57 = vpop.eup %10228 }
 0x7ba   : > { %v2989_v3 = vmul.f32 %v10229_v57, %v10227_v59  ;;  %8602 = vmatmul.mubr.msk.f32.vlgmr.msra.gmra.mrb[20].mxu0 %vm2900_vm7, %v3377_v28  ;;  %v9192_v59 = vpack.c.bf16 %v2735_v46, %v2734_v52 }
 0x7bb   : > { %8617 = vmatprep.mubr.msk.f32.mxu0 %vm11045_vm4, %v11041_v1 }
 0x7bc   : > { %8565 = vmatmul.mubr.msk.f32.vlgmr.msra.gmra.mrb[8].mxu1 %vm2978_vm8, %v2989_v3  ;;  %9193 = vmatpush3.bf16.msra.mxu0 %v9192_v59  ;;  %v3902_v59 = vld [vmem:[#allocation16 + $0x50] sm:$0xff] }
 0x7bd   : > { %8568 = vmatpush3.xpose.msk.msra.mxu1 %vm2900_vm7, %v3066_v63  ;;  %8569 = vmatprep.mubr.msk.f32.mxu1 %vm11045_vm4, %v11041_v1 }
 0x7be   : > { %8572 = vmatprep.subr.mxu1 %v11041_v1  ;;  %9194 = vmatprep.subr.bf16.mxu0 %v11044_v5 }
 0x7c0   : > { %8570 = vmatmul.mubr.msk.f32.vlgmr.msra.gmra.mrb[10].mxu1 %vm2900_vm7, %v3064_v56  ;;  %v9195_v56 = vpack.c.bf16 %v2737_v53, %v2736_v41 }
 0x7c1   : > { %8574 = vmatprep.mubr.msk.f32.mxu1 %vm11045_vm4, %v11041_v1 }
 0x7c2   : > { %9196 = vmatpush3.bf16.msra.mxu0 %v9195_v56 }
 0x7c3   : > { %9197 = vmatprep.subr.bf16.mxu0 %v11044_v5 }
 0x88d   : > { %v3450_v6 = vpop.f32.mrb[20].mxu0 }
 0x88e   : > { %v8603_v7 = vpop.f32.mrb[21].mxu0  ;;  %v3454_v60 = vmul.f32 0.17677669, %v3450_v6 }
 0x88f   : > { %v12133_v61 = vpop.f32.mrb[8].mxu1 }
 0x890   : > { %v8566_v45 = vpop.f32.mrb[9].mxu1  ;;  %v3455_v4 = vsel %vm2978_vm8, %v3454_v60, -inf }
 0x893   : > { %v3137_v58 = vpop.f32.mrb[10].mxu1 }
 0x894   : > { %v3141_v55 = vmul.f32 0.17677669, %v3137_v58  ;;  %v8571_v9 = vpop.f32.mrb[11].mxu1 }
 0x896   : > { %v3142_v2 = vsel %vm2978_vm8, %v3141_v55, -inf }
 0x897   : > { %3143 = vmax.xlane.f32.xlu1 %v3142_v2 }
 0x89b   : > { %3456 = vmax.xlane.f32.xlu1 %v3455_v4 }
 0x924   : > { %v3144_v24 = vpop.xlane.xlu1 %3143 }
 0x925   : > { %v3145_v21 = vsub.f32 %v3141_v55, %v3144_v24 }
 0x927   : > { %v3146_v10 = vmul.f32 1.442695, %v3145_v21  ;;  %v2738_v21 = vld [vmem:[%s12635_s2 + $0x60] sm:$0xff] }
 0x928   : > { %v3457_v0 = vpop.xlane.xlu1 %3456 }
 0x929   : > { %10230 = vpow2.f32 %v3146_v10  ;;  %v3458_v11 = vsub.f32 %v3454_v60, %v3457_v0  ;;  %v2739_v10 = vld [vmem:[%s12635_s2 + $0x68] sm:$0xff]  ;;  %v2740_v0 = vld [vmem:[%s12635_s2 + $0x70] sm:$0xff] }
 0x92b   : > { %v3459_v44 = vmul.f32 1.442695, %v3458_v11  ;;  %v9198_v11 = vpack.c.bf16 %v2739_v10, %v2738_v21  ;;  %v3912_v10 = vld [vmem:[#allocation16 + $0xa0] sm:$0xff] }
 0x92d   : > { %10232 = vpow2.f32 %v3459_v44  ;;  %v2741_v44 = vld [vmem:[%s12635_s2 + $0x78] sm:$0xff] }
 0x933   : > { %v10231_v12 = vpop.eup %10230 }
 0x934   : > { %v3148_v22 = vsel %vm2978_vm8, %v10231_v12, 0.0 }
 0x935   : > { %3149 = vadd.xlane.f32.xlu0 %v3148_v22 }
 0x937   : > { %v10233_v14 = vpop.eup %10232 }
 0x938   : > { %v3461_v17 = vsel %vm2978_vm8, %v10233_v14, 0.0 }
 0x939   : > { %3462 = vadd.xlane.f32.xlu1 %v3461_v17 }
 0x94a   : > { %3466 = vrot.lane.b32.xlu1 %v12102_v37, %s11047_s22 }
 0x94b   : > { %3154 = vrot.lane.b32.xlu0 %v12102_v37, %s11046_s7 }
 0x94f   : > { %3618 = vrot.lane.b32.xlu0 %v12095_v34, %s11048_s10 }
 0x953   : > { %3616 = vrot.lane.b32.xlu0 %v12099_v15, %s11048_s10  ;;  %v9189_v15 = vpack.c.bf16 %v2729_v31, %v2728_v8  ;;  %v9203_v8 = vpack.c.bf16 %v3895_v51, %v3893_v48  ;;  %v3894_v31 = vld [vmem:[#allocation16 + $0x10] sm:$0xff]  ;;  %v8054_v51 = vld [vmem:[#allocation15] ss:$0 sm:$0xff] }
 0x9c2   : > { %v3150_v18 = vpop.xlane.xlu0 %3149 }
 0x9c3   : > { %10234 = vrcp.f32 %v3150_v18 }
 0x9c6   : > { %v3155_v19 = vpop.permute.xlu0 %3154  ;;  %v3463_v29 = vpop.xlane.xlu1 %3462 }
 0x9c7   : > { %8573 = vmatpush3.msra.mxu1 %v3155_v19  ;;  %10236 = vrcp.f32 %v3463_v29 }
 0x9c8   : > { %9179 = vmatprep.subr.bf16.mxu1 %v11044_v5 }
 0x9ca   : > { %v3467_v39 = vpop.permute.xlu1 %3466  ;;  %v3619_v47 = vpop.permute.xlu0 %3618 }
 0x9cd   : > { %v10235_v50 = vpop.eup %10234 }
 0x9ce   : > { %v3152_v25 = vmul.f32 %v10235_v50, %v10231_v12  ;;  %v3617_v62 = vpop.permute.xlu0 %3616  ;;  %v9201_v12 = vpack.c.bf16 %v2741_v44, %v2740_v0  ;;  %v3914_v0 = vld [vmem:[#allocation16 + $0xb0] sm:$0xff]  ;;  %v3919_v44 = vld [vmem:[#allocation16 + $0xd8] sm:$0xff] }
 0x9d0   : > { %8575 = vmatmul.mubr.msk.f32.vlgmr.msra.gmra.mrb[12].mxu1 %vm2978_vm8, %v3152_v25  ;;  %v8052_v25 = vld [vmem:[#allocation12] ss:$0 sm:$0xff] }
 0x9d1   : > { %9181 = vmatpush3.bf16.msra.mxu1 %v9180_v49  ;;  %8585 = vmatprep.mubr.msk.f32.mxu1 %vm11045_vm4, %v11041_v1  ;;  %v10237_v38 = vpop.eup %10236 }
 0x9d2   : > { %9182 = vmatprep.subr.bf16.mxu1 %v11044_v5  ;;  %v3465_v43 = vmul.f32 %v10237_v38, %v10233_v14 }
 0x9d5   : > { %9184 = vmatpush3.bf16.msra.mxu1 %v9183_v33 }
 0x9d6   : > { %9185 = vmatprep.subr.bf16.mxu1 %v11044_v5 }
 0xaa3   : > { %v3226_v16 = vpop.f32.mrb[12].mxu1 }
 0xaa4   : > { %v8576_v34 = vpop.f32.mrb[13].mxu1  ;;  %8586 = vmatmul.mubr.msk.f32.vlgmr.msra.gmra.mrb[14].mxu1 %vm2900_vm7, %v3226_v16  ;;  %v3897_v16 = vld [vmem:[#allocation16 + $0x28] sm:$0xff] }
 0xaa5   : > { %9187 = vmatpush3.bf16.msra.mxu1 %v9186_v30  ;;  %8596 = vmatprep.mubr.msk.f32.mxu1 %vm11045_vm4, %v11041_v1  ;;  %v3892_v30 = vld [vmem:[#allocation16] sm:$0xff]  ;;  %v3899_v34 = vld [vmem:[#allocation16 + $0x38] sm:$0xff] }
 0xaa6   : > { %9188 = vmatprep.subr.bf16.mxu1 %v11044_v5  ;;  %v9207_v38 = vpack.c.bf16 %v3899_v34, %v3897_v16  ;;  %v4042_v16 = vld [vmem:[#allocation19 + $0x88] sm:$0xff] }
 0xaa9   : > { %9190 = vmatpush3.bf16.msra.mxu1 %v9189_v15  ;;  %v9205_v15 = vpack.c.bf16 %v3894_v31, %v3892_v30  ;;  %v4041_v31 = vld [vmem:[#allocation19 + $0x80] sm:$0xff] }
 0xaaa   : > { %8604 = vmatprep.subr.mxu1 %v11041_v1  ;;  %v9235_v34 = vpack.c.bf16 %v4042_v16, %v4041_v31 }
 0xaac   : > { %8597 = vmatmul.mubr.msk.f32.vlgmr.msra.gmra.mrb[16].mxu1 %vm2900_vm7, %v12133_v61 }
 0xaad   : > { %8605 = vmatpush3.msra.mxu1 %v3467_v39  ;;  %8606 = vmatprep.mubr.msk.f32.mxu1 %vm11045_vm4, %v11041_v1  ;;  %v3896_v39 = vld [vmem:[#allocation16 + $0x20] sm:$0xff] }
 0xaae   : > { %8620 = vmatprep.subr.mxu1 %v11041_v1 }
 0xab0   : > { %8607 = vmatmul.mubr.msk.f32.vlgmr.msra.gmra.mrb[18].mxu1 %vm2978_vm8, %v3465_v43  ;;  %v3898_v43 = vld [vmem:[#allocation16 + $0x30] sm:$0xff] }
 0xab1   : > { %8622 = vmatprep.mubr.msk.f32.mxu1 %vm11045_vm4, %v11041_v1  ;;  %v9209_v52 = vpack.c.bf16 %v3898_v43, %v3896_v39  ;;  %v4043_v43 = vld [vmem:[#allocation19 + $0x90] sm:$0xff] }
 0xab4   : > { %8621 = vmatpush3.xpose.msk.msra.mxu1 %vm2900_vm7, %v3619_v47  ;;  %v3901_v47 = vld [vmem:[#allocation16 + $0x48] sm:$0xff] }
 0xab5   : > { %8625 = vmatprep.subr.mxu1 %v11041_v1 }
 0xab7   : > { %8623 = vmatmul.mubr.msk.f32.vlgmr.msra.gmra.mrb[20].mxu1 %vm2900_vm7, %v3617_v62  ;;  %v3903_v62 = vld [vmem:[#allocation16 + $0x58] sm:$0xff] }
 0xab8   : > { %8627 = vmatprep.mubr.msk.f32.mxu1 %vm11045_vm4, %v11041_v1  ;;  %v9211_v46 = vpack.c.bf16 %v3903_v62, %v3901_v47  ;;  %v4044_v47 = vld [vmem:[#allocation19 + $0x98] sm:$0xff] }
 0xab9   : > { %v9239_v62 = vpack.c.bf16 %v4044_v47, %v4043_v43 }
 0xb77   : > { %v3299_v63 = vpop.f32.mrb[14].mxu1 }
 0xb78   : > { %v8587_v32 = vpop.f32.mrb[15].mxu1 }
 0xb7f   : > { %v3372_v57 = vpop.f32.mrb[16].mxu1 }
 0xb80   : > { %v3373_v28 = vadd.f32 %v3372_v57, %v3299_v63  ;;  %v8598_v3 = vpop.f32.mrb[17].mxu1  ;;  %v3905_v57 = vld [vmem:[#allocation16 + $0x68] sm:$0xff] }
 0xb83   : > { %v3538_v6 = vpop.f32.mrb[18].mxu1 }
 0xb84   : > { %v8608_v7 = vpop.f32.mrb[19].mxu1  ;;  %8618 = vmatmul.mubr.msk.f32.vlgmr.msra.gmra.mrb[22].mxu0 %vm2900_vm7, %v3538_v6  ;;  %v3904_v6 = vld [vmem:[#allocation16 + $0x60] sm:$0xff] }
 0xb85   : > { %8638 = vmatprep.mubr.msk.f32.mxu0 %vm11045_vm4, %v11041_v1  ;;  %9199 = vmatpush3.bf16.msra.mxu0 %v9198_v11  ;;  %v3906_v7 = vld [vmem:[#allocation16 + $0x70] sm:$0xff]  ;;  %v3917_v11 = vld [vmem:[#allocation16 + $0xc8] sm:$0xff] }
 0xb86   : > { %9200 = vmatprep.subr.bf16.mxu0 %v11044_v5 }
 0xb89   : > { %9202 = vmatpush3.bf16.msra.mxu0 %v9201_v12  ;;  %v9225_v12 = vpack.c.bf16 %v3914_v0, %v3912_v10  ;;  %v4035_v10 = vld [vmem:[#allocation19 + $0x50] sm:$0xff]  ;;  %v4036_v0 = vld [vmem:[#allocation19 + $0x58] sm:$0xff] }
 0xb8a   : > { %v3690_v61 = vpop.f32.mrb[20].mxu1  ;;  %9236 = vmatprep.subr.bf16.mxu0 %v9235_v34 }
 0xb8b   : > { %v3694_v45 = vmul.f32 0.17677669, %v3690_v61  ;;  %v8624_v58 = vpop.f32.mrb[21].mxu1  ;;  %v9217_v61 = vpack.c.bf16 %v3906_v7, %v3904_v6  ;;  %v4031_v6 = vld [vmem:[#allocation19 + $0x30] sm:$0xff]  ;;  %v4032_v7 = vld [vmem:[#allocation19 + $0x38] sm:$0xff] }
 0xb8c   : > { %v3911_v58 = vld [vmem:[#allocation16 + $0x98] sm:$0xff] }
 0xb8d   : > { %v3695_v55 = vsel %vm2978_vm8, %v3694_v45, -inf }
 0xb8e   : > { %3696 = vmax.xlane.f32.xlu1 %v3695_v55  ;;  %v3908_v55 = vld [vmem:[#allocation16 + $0x80] sm:$0xff] }
 0xc1b   : > { %v3697_v9 = vpop.xlane.xlu1 %3696 }
 0xc1c   : > { %v3698_v60 = vsub.f32 %v3694_v45, %v3697_v9  ;;  %v3909_v45 = vld [vmem:[#allocation16 + $0x88] sm:$0xff] }
 0xc1d   : > { %v9219_v9 = vpack.c.bf16 %v3911_v58, %v3909_v45  ;;  %v4049_v45 = vld [vmem:[#allocation19 + $0xc0] sm:$0xff]  ;;  %v4050_v58 = vld [vmem:[#allocation19 + $0xc8] sm:$0xff] }
 0xc1e   : > { %v3699_v2 = vmul.f32 1.442695, %v3698_v60  ;;  %v3910_v60 = vld [vmem:[#allocation16 + $0x90] sm:$0xff] }
 0xc20   : > { %10238 = vpow2.f32 %v3699_v2  ;;  %v3913_v2 = vld [vmem:[#allocation16 + $0xa8] sm:$0xff] }
 0xc2a   : > { %v10239_v4 = vpop.eup %10238 }
 0xc2b   : > { %v3701_v24 = vsel %vm2978_vm8, %v10239_v4, 0.0 }
 0xc2c   : > { %3702 = vadd.xlane.f32.xlu0 %v3701_v24  ;;  %v9221_v24 = vpack.c.bf16 %v3910_v60, %v3908_v55  ;;  %v4033_v55 = vld [vmem:[#allocation19 + $0x40] sm:$0xff]  ;;  %v4034_v60 = vld [vmem:[#allocation19 + $0x48] sm:$0xff] }
 0xc42   : > { %3706 = vrot.lane.b32.xlu0 %v12102_v37, %s11048_s10 }
 0xc57   : > { %v3611_v22 = vpop.f32.mrb[22].mxu0 }
 0xc58   : > { %v3615_v14 = vadd.f32 %v3611_v22, %v3373_v28  ;;  %v8619_v17 = vpop.f32.mrb[23].mxu0  ;;  %v3907_v28 = vld [vmem:[#allocation16 + $0x78] sm:$0xff]  ;;  %v9227_v22 = vpack.c.bf16 %v3919_v44, %v3917_v11  ;;  %v4053_v11 = vld [vmem:[#allocation19 + $0xe0] sm:$0xff]  ;;  %v4054_v44 = vld [vmem:[#allocation19 + $0xe8] sm:$0xff] }
 0xc59   : > { %v9215_v3 = vpack.c.bf16 %v3907_v28, %v3905_v57  ;;  %v3918_v17 = vld [vmem:[#allocation16 + $0xd0] sm:$0xff]  ;;  %v4048_v28 = vld [vmem:[#allocation19 + $0xb8] sm:$0xff] }
 0xc5a   : > { %v4047_v57 = vld [vmem:[#allocation19 + $0xb0] sm:$0xff] }
 0xcb9   : > { %v3703_v18 = vpop.xlane.xlu0 %3702 }
 0xcba   : > { %10240 = vrcp.f32 %v3703_v18  ;;  %v3921_v18 = vld [vmem:[#allocation16 + $0xe8] sm:$0xff] }
 0xcbd   : > { %v3707_v19 = vpop.permute.xlu0 %3706 }
 0xcbe   : > { %8626 = vmatpush3.msra.mxu1 %v3707_v19  ;;  %v3923_v19 = vld [vmem:[#allocation16 + $0xf8] sm:$0xff] }
 0xcbf   : > { %9204 = vmatprep.subr.bf16.mxu1 %v9203_v8 }
 0xcc4   : > { %v10241_v20 = vpop.eup %10240 }
 0xcc5   : > { %v3705_v23 = vmul.f32 %v10241_v20, %v10239_v4  ;;  %v3915_v4 = vld [vmem:[#allocation16 + $0xb8] sm:$0xff] }
 0xcc6   : > { %v9223_v21 = vpack.c.bf16 %v3915_v4, %v3913_v2  ;;  %v4051_v2 = vld [vmem:[#allocation19 + $0xd0] sm:$0xff]  ;;  %v4052_v4 = vld [vmem:[#allocation19 + $0xd8] sm:$0xff] }
 0xcc7   : > { %8628 = vmatmul.mubr.msk.f32.vlgmr.msra.gmra.mrb[22].mxu1 %vm2978_vm8, %v3705_v23  ;;  %v9231_v23 = vpack.c.bf16 %v3923_v19, %v3921_v18  ;;  %v4055_v18 = vld [vmem:[#allocation19 + $0xf0] sm:$0xff]  ;;  %v4056_v19 = vld [vmem:[#allocation19 + $0xf8] sm:$0xff] }
 0xcc8   : > { %4000 = vmatprep.mubr.f32.mxu1 %v11041_v1  ;;  %9206 = vmatpush1.bf16.msra.mxu1 %v9205_v15  ;;  %v4025_v15 = vld [vmem:[#allocation19] sm:$0xff] }
 0xcc9   : > { %9208 = vmatprep.subr.bf16.mxu1 %v9207_v38  ;;  %v4026_v38 = vld [vmem:[#allocation19 + $0x8] sm:$0xff] }
 0xcca   : > { %v9237_v39 = vpack.c.bf16 %v4026_v38, %v4025_v15 }
 0xccc   : > { %9210 = vmatpush1.bf16.msra.mxu1 %v9209_v52  ;;  %v4027_v52 = vld [vmem:[#allocation19 + $0x10] sm:$0xff] }
 0xccd   : > { %9212 = vmatprep.subr.bf16.mxu1 %v9211_v46  ;;  %v4028_v46 = vld [vmem:[#allocation19 + $0x18] sm:$0xff] }
 0xd9a   : > { %v3778_v37 = vpop.f32.mrb[22].mxu1 }
 0xd9b   : > { %v8629_v50 = vpop.f32.mrb[23].mxu1  ;;  %8639 = vmatmul.mubr.msk.f32.vlgmr.msra.gmra.mrb[24].mxu0 %vm2900_vm7, %v3778_v37  ;;  %v3920_v37 = vld [vmem:[#allocation16 + $0xe0] sm:$0xff] }
 0xd9c   : > { %v3922_v50 = vld [vmem:[#allocation16 + $0xf0] sm:$0xff]  ;;  %9238 = vmatpush3.bf16.msra.mxu0 %v9237_v39 }
 0xd9d   : > { %9240 = vmatprep.subr.bf16.mxu0 %v9239_v62 }
 0xe6e   : > { %v3851_v49 = vpop.f32.mrb[24].mxu0 }
 0xe6f   : > { %v3855_v26 = vadd.f32 %v3851_v49, %v3615_v14  ;;  %v8640_v13 = vpop.f32.mrb[25].mxu0  ;;  %v3916_v14 = vld [vmem:[#allocation16 + $0xc0] sm:$0xff]  ;;  %v9233_v49 = vpack.c.bf16 %v3922_v50, %v3920_v37  ;;  %v4039_v37 = vld [vmem:[#allocation19 + $0x70] sm:$0xff] }
 0xe70   : > { %v9229_v20 = vpack.c.bf16 %v3918_v17, %v3916_v14  ;;  %v4037_v14 = vld [vmem:[#allocation19 + $0x60] sm:$0xff]  ;;  %v4038_v17 = vld [vmem:[#allocation19 + $0x68] sm:$0xff]  ;;  %v4040_v50 = vld [vmem:[#allocation19 + $0x78] sm:$0xff] }
 0xe71   : > { %v3863_v33 = vadd.f32 %v8052_v25, %v3855_v26 }
 0xe73   : > { %v3864_v29 = vadd.f32 %v3863_v33, %v12083_v27  ;;  %v3900_v27 = vld [vmem:[#allocation16 + $0x40] sm:$0xff] }
 0xe74   : > { %v9213_v41 = vpack.c.bf16 %v3902_v59, %v3900_v27  ;;  %v9241_v27 = vpack.c.bf16 %v4028_v46, %v4027_v52  ;;  %v4045_v59 = vld [vmem:[#allocation19 + $0xa0] sm:$0xff] }
 0xe75   : > { %3867 = vadd.xlane.f32.xlu1 %v3864_v29 }
 0xe76   : > { %9214 = vmatpush1.bf16.msra.mxu1 %v9213_v41  ;;  %9242 = vmatpush3.bf16.msra.mxu0 %v9241_v27  ;;  %v4046_v41 = vld [vmem:[#allocation19 + $0xa8] sm:$0xff] }
 0xe77   : > { %9216 = vmatprep.subr.bf16.mxu1 %v9215_v3  ;;  %v9247_v3 = vpack.c.bf16 %v4048_v28, %v4047_v57  ;;  %v8055_v57 = vld [vmem:[#allocation21] ss:$0 sm:$0xff] }
 0xe7a   : > { %9218 = vmatpush1.bf16.msra.mxu1 %v9217_v61  ;;  %v9249_v61 = vpack.c.bf16 %v4032_v7, %v4031_v6 }
 0xe7b   : > { %9220 = vmatprep.subr.bf16.mxu1 %v9219_v9  ;;  %v9251_v9 = vpack.c.bf16 %v4050_v58, %v4049_v45  ;;  %v4167_v45 = vld [vmem:[#allocation10 + $0x1a0] sm:$0xff] }
 0xe7c   : > { %v4163_v58 = vld [vmem:[#allocation10 + $0x180] sm:$0xff] }
 0xe7e   : > { %9222 = vmatpush1.bf16.msra.mxu1 %v9221_v24  ;;  %v9253_v24 = vpack.c.bf16 %v4034_v60, %v4033_v55  ;;  %v4165_v60 = vld [vmem:[#allocation10 + $0x190] sm:$0xff] }
 0xe7f   : > { %9224 = vmatprep.subr.bf16.mxu1 %v9223_v21  ;;  %v9255_v21 = vpack.c.bf16 %v4052_v4, %v4051_v2  ;;  %v4168_v2 = vld [vmem:[#allocation10 + $0x1a8] sm:$0xff] }
 0xe82   : > { %9226 = vmatpush1.bf16.msra.mxu1 %v9225_v12  ;;  %v9257_v12 = vpack.c.bf16 %v4036_v0, %v4035_v10  ;;  %v4173_v10 = vld [vmem:[#allocation10 + $0x1d0] sm:$0xff] }
 0xe83   : > { %9228 = vmatprep.subr.bf16.mxu1 %v9227_v22  ;;  %v9259_v22 = vpack.c.bf16 %v4054_v44, %v4053_v11  ;;  %v4169_v0 = vld [vmem:[#allocation10 + $0x1b0] sm:$0xff]  ;;  %v4172_v44 = vld [vmem:[#allocation10 + $0x1c8] sm:$0xff] }
 0xe86   : > { %9230 = vmatpush1.bf16.msra.mxu1 %v9229_v20  ;;  %v9261_v20 = vpack.c.bf16 %v4038_v17, %v4037_v14  ;;  %v4176_v17 = vld [vmem:[#allocation10 + $0x1e8] sm:$0xff] }
 0xe87   : > { %9232 = vmatprep.subr.bf16.mxu1 %v9231_v23  ;;  %v9263_v23 = vpack.c.bf16 %v4056_v19, %v4055_v18  ;;  %v4179_v18 = vld [vmem:[#allocation10 + $0x200] sm:$0xff] }
 0xe88   : > { %v4175_v19 = vld [vmem:[#allocation10 + $0x1e0] sm:$0xff] }
 0xe8a   : > { %9234 = vmatpush1.bf16.msra.mxu1 %v9233_v49  ;;  %v9265_v49 = vpack.c.bf16 %v4040_v50, %v4039_v37  ;;  %v4177_v37 = vld [vmem:[#allocation10 + $0x1f0] sm:$0xff]  ;;  %v4180_v50 = vld [vmem:[#allocation10 + $0x208] sm:$0xff] }
 0xf02   : > { %v3868_v53 = vpop.xlane.xlu1 %3867 }
 0xf03   : > { %v3869_v56 = vmul.f32 0.0078125, %v3868_v53  ;;  %v9243_v53 = vpack.c.bf16 %v4046_v41, %v4045_v59 }
 0xf05   : > { %v3870_v63 = vsub.f32 %v3864_v29, %v3869_v56  ;;  %v8053_v29 = vld [vmem:[#allocation13] ss:$0 sm:$0xff]  ;;  %v4029_v56 = vld [vmem:[#allocation19 + $0x20] sm:$0xff]  ;;  %9244 = vmatprep.subr.bf16.mxu0 %v9243_v53 }
 0xf07   : > { %v3871_v32 = vmul.f32 %v3870_v63, %v3870_v63 }
 0xf09   : > { %3872 = vadd.xlane.f32.xlu1 %v3871_v32 }
 0xf96   : > { %v3873_v25 = vpop.xlane.xlu1 %3872 }
 0xf97   : > { %v3874_v26 = vmul.f32 0.0078125, %v3873_v25  ;;  %v3924_v25 = vld [vmem:[#allocation18] sm:$0x3] }
 0xf99   : > { %v3875_v13 = vadd.f32 1e-12, %v3874_v26  ;;  %v3929_v26 = vrot.slane %v3924_v25, %v11828_v36 }
 0xf9b   : > { %10242 = vrsqrt.f32 %v3875_v13  ;;  %v3933_v13 = vrot.slane %v3924_v25, %v11832_v40  ;;  %v9306_v25 = vpack.c.bf16 %v4180_v50, %v4177_v37  ;;  %v8056_v37 = vld [vmem:[#allocation22] ss:$0 sm:$0xff] }
 0xfa5   : > { %v10243_v33 = vpop.eup %10242 }
 0xfa6   : > { %v3877_v48 = vmul.f32 %v10243_v33, %v3870_v63  ;;  %v4030_v63 = vld [vmem:[#allocation19 + $0x28] sm:$0xff] }
 0xfa7   : > { %v9245_v32 = vpack.c.bf16 %v4030_v63, %v4029_v56 }
 0xfa8   : > { %v3884_v30 = vmul.f32 %v8053_v29, %v3877_v48 }
 0xfa9   : > { %9246 = vmatpush3.bf16.msra.mxu0 %v9245_v32 }
 0xfaa   : > { %v12201_v8 = vadd.f32 %v8054_v51, %v3884_v30  ;;  %9248 = vmatprep.subr.bf16.mxu0 %v9247_v3 }
 0xfac   : > { %4001 = vmatmul.mubr.f32.vlgmr.msra.gmra.mrb[24].mxu1 %v12201_v8 }
 0xfad   : > { %4310 = vmatprep.mubr.f32.mxu1 %v11041_v1  ;;  %9250 = vmatpush3.bf16.msra.mxu0 %v9249_v61  ;;  %v4164_v61 = vld [vmem:[#allocation10 + $0x188] sm:$0xff] }
 0xfae   : > { %9252 = vmatprep.subr.bf16.mxu0 %v9251_v9  ;;  %v9267_v55 = vpack.c.bf16 %v4167_v45, %v4164_v61  ;;  %v4166_v9 = vld [vmem:[#allocation10 + $0x198] sm:$0xff]  ;;  %v4200_v61 = vld [vmem:[#allocation10 + $0x2a8] sm:$0xff]  ;;  %v4203_v45 = vld [vmem:[#allocation10 + $0x2c0] sm:$0xff] }
 0xfaf   : > { %v9269_v4 = vpack.c.bf16 %v4166_v9, %v4163_v58  ;;  %v4199_v9 = vld [vmem:[#allocation10 + $0x2a0] sm:$0xff] }
 0xfb0   : > { %9268 = vmatprep.subr.bf16.mxu1 %v9267_v55  ;;  %v9291_v55 = vpack.c.bf16 %v4203_v45, %v4200_v61 }
 0xfb1   : > { %9254 = vmatpush3.bf16.msra.mxu0 %v9253_v24  ;;  %v9300_v24 = vpack.c.bf16 %v4168_v2, %v4165_v60  ;;  %9270 = vmatpush1.bf16.msra.mxu1 %v9269_v4  ;;  %v4202_v60 = vld [vmem:[#allocation10 + $0x2b8] sm:$0xff]  ;;  %v4201_v2 = vld [vmem:[#allocation10 + $0x2b0] sm:$0xff]  ;;  %v4204_v4 = vld [vmem:[#allocation10 + $0x2c8] sm:$0xff] }
 0xfb2   : > { %9256 = vmatprep.subr.bf16.mxu0 %v9255_v21  ;;  %v4170_v21 = vld [vmem:[#allocation10 + $0x1b8] sm:$0xff] }
 0xfb3   : > { %v9271_v11 = vpack.c.bf16 %v4173_v10, %v4170_v21  ;;  %v4209_v21 = vld [vmem:[#allocation10 + $0x2f0] sm:$0xff]  ;;  %v9293_v10 = vpack.c.bf16 %v4202_v60, %v4199_v9 }
 0xfb4   : > { %v8062_v60 = vld [vmem:[%s12635_s2 + $0xa0] sm:$0xff] }
 0xfb5   : > { %9258 = vmatpush3.bf16.msra.mxu0 %v9257_v12  ;;  %v4171_v12 = vld [vmem:[#allocation10 + $0x1c0] sm:$0xff]  ;;  %9272 = vmatprep.subr.bf16.mxu1 %v9271_v11 }
 0xfb6   : > { %9260 = vmatprep.subr.bf16.mxu0 %v9259_v22  ;;  %v4174_v22 = vld [vmem:[#allocation10 + $0x1d8] sm:$0xff] }
 0xfb7   : > { %v9303_v14 = vpack.c.bf16 %v4174_v22, %v4171_v12  ;;  %v4208_v12 = vld [vmem:[#allocation10 + $0x2e8] sm:$0xff]  ;;  %v4207_v22 = vld [vmem:[#allocation10 + $0x2e0] sm:$0xff] }
 0xfb9   : > { %9262 = vmatpush3.bf16.msra.mxu0 %v9261_v20  ;;  %v9275_v20 = vpack.c.bf16 %v4179_v18, %v4176_v17 }
 0xfba   : > { %9264 = vmatprep.subr.bf16.mxu0 %v9263_v23  ;;  %v4178_v23 = vld [vmem:[#allocation10 + $0x1f8] sm:$0xff] }
 0xfbd   : > { %9266 = vmatpush3.bf16.msra.mxu0 %v9265_v49  ;;  %v9277_v49 = vpack.c.bf16 %v4178_v23, %v4175_v19 }
 0xfbe   : > { %9299 = vmatprep.subr.bf16.mxu0 %v11044_v5 }
0x107f   : > { %v4002_v33 = vpop.f32.mrb[24].mxu1 }
0x1080   : > { %v4003_v29 = vadd.f32 %v4002_v33, %v3929_v26  ;;  %v4004_v48 = vpop.f32.mrb[25].mxu1 }
0x1081   : > { %v4005_v51 = vadd.f32 %v4004_v48, %v3933_v13  ;;  %v4182_v48 = vld [vmem:[#allocation10 + $0x218] sm:$0xff] }
0x1082   : > { %v4007_v30 = vmul.f32 %v4003_v29, %v4003_v29 }
0x1083   : > { %v4008_v31 = vmul.f32 %v4005_v51, %v4005_v51 }
0x1084   : > { %v4009_v16 = vmul.f32 %v4007_v30, %v4003_v29 }
0x1085   : > { %v4010_v34 = vmul.f32 %v4008_v31, %v4005_v51  ;;  %v4181_v31 = vld [vmem:[#allocation10 + $0x210] sm:$0xff] }
0x1086   : > { %v4011_v15 = vmul.f32 0.044715, %v4009_v16  ;;  %v4184_v16 = vld [vmem:[#allocation10 + $0x228] sm:$0xff] }
0x1087   : > { %v4012_v38 = vmul.f32 0.044715, %v4010_v34  ;;  %v4183_v34 = vld [vmem:[#allocation10 + $0x220] sm:$0xff] }
0x1088   : > { %v4013_v39 = vadd.f32 %v4011_v15, %v4003_v29  ;;  %v9281_v15 = vpack.c.bf16 %v4184_v16, %v4181_v31 }
0x1089   : > { %v4014_v43 = vadd.f32 %v4012_v38, %v4005_v51  ;;  %v4186_v38 = vld [vmem:[#allocation10 + $0x238] sm:$0xff] }
0x108a   : > { %v4015_v47 = vmul.f32 0.7978846, %v4013_v39  ;;  %v9309_v39 = vpack.c.bf16 %v4186_v38, %v4183_v34 }
0x108b   : > { %v4016_v62 = vmul.f32 0.7978846, %v4014_v43  ;;  %v4188_v43 = vld [vmem:[#allocation10 + $0x248] sm:$0xff] }
0x108c   : > { %10244 = vtanh.f32 %v4015_v47  ;;  %v4191_v47 = vld [vmem:[#allocation10 + $0x260] sm:$0xff] }
0x108d   : > { %10246 = vtanh.f32 %v4016_v62  ;;  %v4187_v62 = vld [vmem:[#allocation10 + $0x240] sm:$0xff] }
0x1096   : > { %v10245_v52 = vpop.eup %10244 }
0x1097   : > { %v10247_v46 = vpop.eup %10246  ;;  %v4019_v27 = vadd.f32 1.0, %v10245_v52  ;;  %v9283_v52 = vpack.c.bf16 %v4191_v47, %v4188_v43 }
0x1098   : > { %v4020_v59 = vadd.f32 1.0, %v10247_v46  ;;  %v4190_v46 = vld [vmem:[#allocation10 + $0x258] sm:$0xff] }
0x1099   : > { %v4021_v41 = vmul.f32 0.5, %v4019_v27  ;;  %v4189_v27 = vld [vmem:[#allocation10 + $0x250] sm:$0xff] }
0x109a   : > { %v4022_v53 = vmul.f32 0.5, %v4020_v59  ;;  %v4192_v59 = vld [vmem:[#allocation10 + $0x268] sm:$0xff] }
0x109b   : > { %v4023_v63 = vmul.f32 %v4021_v41, %v4003_v29  ;;  %v9285_v41 = vpack.c.bf16 %v4190_v46, %v4187_v62 }
0x109c   : > { %v4024_v56 = vmul.f32 %v4022_v53, %v4005_v51  ;;  %v4185_v51 = vld [vmem:[#allocation10 + $0x230] sm:$0xff]  ;;  %v9312_v53 = vpack.c.bf16 %v4192_v59, %v4189_v27 }
0x109d   : > { %v9279_v30 = vpack.c.bf16 %v4185_v51, %v4182_v48 }
0x109e   : > { %4128 = vmatprep.mubr.f32.mxu0 %v4024_v56  ;;  %v4194_v56 = vld [vmem:[#allocation10 + $0x278] sm:$0xff] }
0x109f   : > { %4129 = vmatmul.mubr.f32.vlgmr.msra.gmra.mrb[26].mxu0 %v4023_v63  ;;  %v4197_v63 = vld [vmem:[#allocation10 + $0x290] sm:$0xff] }
0x10a0   : > { %8673 = vmatprep.mubr.msk.f32.mxu0 %vm11045_vm4, %v11041_v1  ;;  %9301 = vmatpush3.bf16.msra.mxu0 %v9300_v24  ;;  %v4206_v24 = vld [vmem:[#allocation10 + $0x2d8] sm:$0xff] }
0x10a1   : > { %9302 = vmatprep.subr.bf16.mxu0 %v11044_v5  ;;  %v9295_v11 = vpack.c.bf16 %v4209_v21, %v4206_v24  ;;  %v8065_v21 = vld [vmem:[%s12635_s2 + $0xb8] sm:$0xff] }
0x10a4   : > { %9304 = vmatpush3.bf16.msra.mxu0 %v9303_v14 }
0x10a5   : > { %9305 = vmatprep.subr.bf16.mxu0 %v11044_v5 }
0x10a8   : > { %9307 = vmatpush3.bf16.msra.mxu0 %v9306_v25 }
0x10a9   : > { %9308 = vmatprep.subr.bf16.mxu0 %v11044_v5 }
0x10ac   : > { %9310 = vmatpush3.bf16.msra.mxu0 %v9309_v39 }
0x10ad   : > { %9311 = vmatprep.subr.bf16.mxu0 %v11044_v5 }
0x10b0   : > { %9313 = vmatpush3.bf16.msra.mxu0 %v9312_v53 }
0x10b1   : > { %9314 = vmatprep.subr.bf16.mxu0 %v11044_v5 }
0x1172   : > { %v8233_v32 = vpop.f32.mrb[26].mxu0 }
0x1173   : > { %v8234_v28 = vpop.f32.mrb[27].mxu0 }
0x1174   : > { %v8235_v3 = vadd.f32 %v8234_v28, %v8233_v32  ;;  %v4193_v32 = vld [vmem:[#allocation10 + $0x270] sm:$0xff]  ;;  %v4196_v28 = vld [vmem:[#allocation10 + $0x288] sm:$0xff] }
0x1176   : > { %v4131_v6 = vadd.f32 %v8235_v3, %v8055_v57  ;;  %v9287_v57 = vpack.c.bf16 %v4197_v63, %v4194_v56  ;;  %v4195_v3 = vld [vmem:[#allocation10 + $0x280] sm:$0xff] }
0x1178   : > { %v4134_v7 = vadd.f32 %v4131_v6, %v12201_v8  ;;  %v9273_v8 = vpack.c.bf16 %v4172_v44, %v4169_v0  ;;  %v4198_v6 = vld [vmem:[#allocation10 + $0x298] sm:$0xff]  ;;  %v9318_v0 = vpack.c.bf16 %v4204_v4, %v4201_v2  ;;  %v4205_v44 = vld [vmem:[#allocation10 + $0x2d0] sm:$0xff]  ;;  %v8064_v4 = vld [vmem:[%s12635_s2 + $0xb0] sm:$0xff] }
0x1179   : > { %v9315_v58 = vpack.c.bf16 %v4198_v6, %v4195_v3  ;;  %v9297_v14 = vpack.c.bf16 %v4208_v12, %v4205_v44  ;;  %v8063_v2 = vld [vmem:[%s12635_s2 + $0xa8] sm:$0xff]  ;;  %v8058_v44 = vld [vmem:[%s12635_s2 + $0x80] sm:$0xff] }
0x117a   : > { %4137 = vadd.xlane.f32.xlu1 %v4134_v7  ;;  %9274 = vmatpush1.bf16.msra.mxu1 %v9273_v8  ;;  %v4210_v8 = vld [vmem:[#allocation10 + $0x2f8] sm:$0xff]  ;;  %v9324_v24 = vpack.c.bf16 %v8063_v2, %v8062_v60 }
0x117b   : > { %9276 = vmatprep.subr.bf16.mxu1 %v9275_v20  ;;  %9316 = vmatpush3.bf16.msra.mxu0 %v9315_v58  ;;  %v9321_v17 = vpack.c.bf16 %v4210_v8, %v4207_v22  ;;  %v8059_v12 = vld [vmem:[%s12635_s2 + $0x88] sm:$0xff] }
0x117c   : > { %9317 = vmatprep.subr.bf16.mxu0 %v11044_v5  ;;  %v9330_v8 = vpack.c.bf16 %v8059_v12, %v8058_v44  ;;  %v8073_v12 = vld [vmem:[%s12635_s2 + $0xf8] sm:$0xff] }
0x117e   : > { %9278 = vmatpush1.bf16.msra.mxu1 %v9277_v49  ;;  %v8057_v49 = vld [vmem:[#allocation24] ss:$0 sm:$0xff] }
0x117f   : > { %9280 = vmatprep.subr.bf16.mxu1 %v9279_v30  ;;  %9319 = vmatpush3.bf16.msra.mxu0 %v9318_v0 }
0x1180   : > { %9320 = vmatprep.subr.bf16.mxu0 %v11044_v5 }
0x1182   : > { %9282 = vmatpush1.bf16.msra.mxu1 %v9281_v15 }
0x1183   : > { %9284 = vmatprep.subr.bf16.mxu1 %v9283_v52  ;;  %9322 = vmatpush3.bf16.msra.mxu0 %v9321_v17  ;;  %v8060_v17 = vld [vmem:[%s12635_s2 + $0x90] sm:$0xff] }
0x1184   : > { %8686 = vmatprep.subr.mxu0 %v11041_v1 }
0x1186   : > { %9286 = vmatpush1.bf16.msra.mxu1 %v9285_v41 }
0x1187   : > { %9288 = vmatprep.subr.bf16.mxu1 %v9287_v57 }
0x1207   : > { %v4138_v26 = vpop.xlane.xlu1 %4137 }
0x1208   : > { %v4139_v13 = vmul.f32 0.0078125, %v4138_v26 }
0x120a   : > { %v12214_v33 = vsub.f32 %v4134_v7, %v4139_v13  ;;  %v9289_v7 = vpack.c.bf16 %v4196_v28, %v4193_v32  ;;  %v8074_v13 = vld [vmem:[%s12634_s8 + $0x3] sm:$0x7] }
0x120b   : > { %v4238_v48 = vrot.slane %v8074_v13, %v11832_v40  ;;  %v4242_v34 = vrot.slane %v8074_v13, %v11840_v42 }
0x120c   : > { %v4141_v29 = vmul.f32 %v12214_v33, %v12214_v33  ;;  %9290 = vmatpush1.bf16.msra.mxu1 %v9289_v7 }
0x120d   : > { %9292 = vmatprep.subr.bf16.mxu1 %v9291_v55 }
0x120e   : > { %4142 = vadd.xlane.f32.xlu1 %v4141_v29  ;;  %v4234_v29 = vrot.slane %v8074_v13, %v11828_v36 }
0x1210   : > { %9294 = vmatpush1.bf16.msra.mxu1 %v9293_v10  ;;  %v9327_v10 = vpack.c.bf16 %v8065_v21, %v8064_v4 }
0x1211   : > { %9296 = vmatprep.subr.bf16.mxu1 %v9295_v11 }
0x1214   : > { %9298 = vmatpush1.bf16.msra.mxu1 %v9297_v14 }
0x1215   : > { %8676 = vmatprep.subr.mxu1 %v11041_v1 }
0x129b   : > { %v4143_v18 = vpop.xlane.xlu1 %4142 }
0x129c   : > { %v4144_v19 = vmul.f32 0.0078125, %v4143_v18  ;;  %v8061_v18 = vld [vmem:[%s12635_s2 + $0x98] sm:$0xff] }
0x129e   : > { %v4145_v20 = vadd.f32 1e-12, %v4144_v19  ;;  %v9333_v19 = vpack.c.bf16 %v8061_v18, %v8060_v17 }
0x12a0   : > { %10248 = vrsqrt.f32 %v4145_v20 }
0x12aa   : > { %v10249_v23 = vpop.eup %10248 }
0x12ab   : > { %v4147_v50 = vmul.f32 %v10249_v23, %v12214_v33 }
0x12ad   : > { %v4154_v25 = vmul.f32 %v8056_v37, %v4147_v50 }
0x12af   : > { %v12225_v26 = vadd.f32 %v8057_v49, %v4154_v25 }
0x12b1   : > { %4311 = vmatmul.mubr.f32.vlgmr.msra.gmra.mrb[26].mxu1 %v12225_v26  ;;  %8674 = vmatmul.mubr.f32.vlgmr.msra.gmra.mrb[28].mxu0 %v12225_v26 }
0x12b2   : > { %8678 = vmatprep.mubr.msk.f32.mxu1 %vm11045_vm4, %v11041_v1  ;;  %8688 = vmatprep.mubr.msk.f32.mxu0 %vm11045_vm4, %v11041_v1 }
0x1384   : > { %v4312_v33 = vpop.f32.mrb[26].mxu1  ;;  %v4383_v51 = vpop.f32.mrb[28].mxu0 }
0x1385   : > { %v12236_v30 = vadd.f32 %v4312_v33, %v4234_v29  ;;  %v4314_v31 = vpop.f32.mrb[27].mxu1  ;;  %v8675_v16 = vpop.f32.mrb[29].mxu0  ;;  %v12248_v38 = vadd.f32 %v4383_v51, %v4242_v34 }
0x1386   : > { %v12239_v15 = vadd.f32 %v4314_v31, %v4238_v48 }
0x1387   : > { %4548 = vrot.lane.b32.xlu0 %v12236_v30, %s11046_s7 }
0x1388   : > { %4550 = vrot.lane.b32.xlu1 %v12239_v15, %s11046_s7  ;;  %8677 = vmatpush3.xpose.msk.msra.mxu1 %vm2900_vm7, %v12239_v15 }
0x1389   : > { %8681 = vmatprep.subr.mxu1 %v11041_v1 }
0x138b   : > { %8679 = vmatmul.mubr.msk.f32.vlgmr.msra.gmra.mrb[28].mxu1 %vm2900_vm7, %v12236_v30 }
0x138c   : > { %8682 = vmatpush3.msra.mxu1 %v12248_v38  ;;  %8683 = vmatprep.mubr.msk.f32.mxu1 %vm11045_vm4, %v11041_v1 }
0x138d   : > { %8691 = vmatprep.subr.mxu1 %v11041_v1 }
0x13f9   : > { %v4549_v43 = vpop.permute.xlu0 %4548 }
0x13fa   : > { %v4551_v39 = vpop.permute.xlu1 %4550 }
0x13fb   : > { %8687 = vmatpush3.xpose.msk.msra.mxu0 %vm2900_vm7, %v4551_v39 }
0x13fc   : > { %9323 = vmatprep.subr.bf16.mxu0 %v11044_v5 }
0x13fe   : > { %8689 = vmatmul.mubr.msk.f32.vlgmr.msra.gmra.mrb[30].mxu0 %vm2900_vm7, %v4549_v43 }
0x13ff   : > { %8704 = vmatprep.mubr.msk.f32.mxu0 %vm11045_vm4, %v11041_v1  ;;  %9325 = vmatpush3.bf16.msra.mxu0 %v9324_v24 }
0x1400   : > { %9326 = vmatprep.subr.bf16.mxu0 %v11044_v5 }
0x1403   : > { %9328 = vmatpush3.bf16.msra.mxu0 %v9327_v10  ;;  %v8070_v10 = vld [vmem:[%s12635_s2 + $0xe0] sm:$0xff] }
0x1404   : > { %8718 = vmatprep.subr.mxu0 %v11041_v1 }
0x145e   : > { %v4459_v47 = vpop.f32.mrb[28].mxu1 }
0x145f   : > { %v4463_v62 = vmul.f32 0.17677669, %v4459_v47  ;;  %v8680_v52 = vpop.f32.mrb[29].mxu1 }
0x1461   : > { %v4464_v46 = vsel %vm2978_vm8, %v4463_v62, -inf }
0x1462   : > { %4465 = vmax.xlane.f32.xlu0 %v4464_v46 }
0x14d1   : > { %v4622_v27 = vpop.f32.mrb[30].mxu0 }
0x14d2   : > { %v4626_v59 = vmul.f32 0.17677669, %v4622_v27  ;;  %v8690_v41 = vpop.f32.mrb[31].mxu0  ;;  %v8066_v27 = vld [vmem:[%s12635_s2 + $0xc0] sm:$0xff] }
0x14d3   : > { %v8068_v41 = vld [vmem:[%s12635_s2 + $0xd0] sm:$0xff] }
0x14d4   : > { %v4627_v53 = vsel %vm2978_vm8, %v4626_v59, -inf }
0x14d5   : > { %4628 = vmax.xlane.f32.xlu1 %v4627_v53 }
0x14e6   : > { %4863 = vrot.lane.b32.xlu1 %v12239_v15, %s11047_s22 }
0x14ef   : > { %v4466_v56 = vpop.xlane.xlu0 %4465 }
0x14f0   : > { %v4467_v63 = vsub.f32 %v4463_v62, %v4466_v56  ;;  %v8069_v56 = vld [vmem:[%s12635_s2 + $0xd8] sm:$0xff] }
0x14f2   : > { %v4468_v32 = vmul.f32 1.442695, %v4467_v63 }
0x14f4   : > { %10250 = vpow2.f32 %v4468_v32 }
0x14fe   : > { %v10251_v57 = vpop.eup %10250 }
0x14ff   : > { %v4470_v28 = vsel %vm2978_vm8, %v10251_v57, 0.0 }
0x1500   : > { %4471 = vadd.xlane.f32.xlu0 %v4470_v28 }
0x1562   : > { %v4629_v3 = vpop.xlane.xlu1 %4628 }
0x1563   : > { %v4630_v6 = vsub.f32 %v4626_v59, %v4629_v3  ;;  %v8067_v59 = vld [vmem:[%s12635_s2 + $0xc8] sm:$0xff] }
0x1564   : > { %v9336_v53 = vpack.c.bf16 %v8067_v59, %v8066_v27  ;;  %v5392_v27 = vld [vmem:[#allocation16 + $0x158] sm:$0xff] }
0x1565   : > { %v4631_v7 = vmul.f32 1.442695, %v4630_v6 }
0x1566   : > { %v4864_v50 = vpop.permute.xlu1 %4863 }
0x1567   : > { %10252 = vpow2.f32 %v4631_v7 }
0x1571   : > { %v10253_v61 = vpop.eup %10252 }
0x1572   : > { %v4633_v45 = vsel %vm2978_vm8, %v10253_v61, 0.0 }
0x1573   : > { %4634 = vadd.xlane.f32.xlu0 %v4633_v45 }
0x1589   : > { %4639 = vrot.lane.b32.xlu0 %v12248_v38, %s11046_s7 }
0x158d   : > { %4861 = vrot.lane.b32.xlu0 %v12236_v30, %s11047_s22  ;;  %v4472_v58 = vpop.xlane.xlu0 %4471 }
0x158e   : > { %10254 = vrcp.f32 %v4472_v58 }
0x1598   : > { %v10255_v55 = vpop.eup %10254 }
0x1599   : > { %v4474_v9 = vmul.f32 %v10255_v55, %v10251_v57 }
0x159b   : > { %8684 = vmatmul.mubr.msk.f32.vlgmr.msra.gmra.mrb[30].mxu1 %vm2978_vm8, %v4474_v9 }
0x159c   : > { %8693 = vmatprep.mubr.msk.f32.mxu1 %vm11045_vm4, %v11041_v1 }
0x1600   : > { %v4635_v0 = vpop.xlane.xlu0 %4634 }
0x1601   : > { %10256 = vrcp.f32 %v4635_v0  ;;  %v8071_v0 = vld [vmem:[%s12635_s2 + $0xe8] sm:$0xff] }
0x1602   : > { %v9342_v44 = vpack.c.bf16 %v8071_v0, %v8070_v10  ;;  %v5401_v10 = vld [vmem:[#allocation16 + $0x1a0] sm:$0xff]  ;;  %v5403_v0 = vld [vmem:[#allocation16 + $0x1b0] sm:$0xff] }
0x1604   : > { %v4640_v11 = vpop.permute.xlu0 %4639 }
0x1605   : > { %8692 = vmatpush3.msra.mxu1 %v4640_v11  ;;  %v8072_v11 = vld [vmem:[%s12635_s2 + $0xf0] sm:$0xff] }
0x1606   : > { %9329 = vmatprep.subr.bf16.mxu1 %v11044_v5 }
0x1608   : > { %v4862_v25 = vpop.permute.xlu0 %4861 }
0x160b   : > { %v10257_v22 = vpop.eup %10256 }
0x160c   : > { %v4637_v14 = vmul.f32 %v10257_v22, %v10253_v61  ;;  %v9345_v22 = vpack.c.bf16 %v8073_v12, %v8072_v11  ;;  %v5406_v11 = vld [vmem:[#allocation16 + $0x1c8] sm:$0xff]  ;;  %v9369_v12 = vpack.c.bf16 %v5403_v0, %v5401_v10  ;;  %v5526_v10 = vld [vmem:[#allocation19 + $0x150] sm:$0xff]  ;;  %v5527_v0 = vld [vmem:[#allocation19 + $0x158] sm:$0xff] }
0x160e   : > { %8694 = vmatmul.mubr.msk.f32.vlgmr.msra.gmra.mrb[32].mxu1 %vm2978_vm8, %v4637_v14 }
0x160f   : > { %9331 = vmatpush3.bf16.msra.mxu1 %v9330_v8  ;;  %8715 = vmatprep.mubr.msk.f32.mxu1 %vm11045_vm4, %v11041_v1 }
0x1610   : > { %9332 = vmatprep.subr.bf16.mxu1 %v11044_v5 }
0x1613   : > { %9334 = vmatpush3.bf16.msra.mxu1 %v9333_v19 }
0x1614   : > { %8723 = vmatprep.subr.mxu1 %v11041_v1 }
0x166e   : > { %v4544_v20 = vpop.f32.mrb[30].mxu1 }
0x166f   : > { %v8685_v23 = vpop.f32.mrb[31].mxu1  ;;  %8716 = vmatmul.mubr.msk.f32.vlgmr.msra.gmra.mrb[34].mxu1 %vm2900_vm7, %v4544_v20 }
0x1670   : > { %8725 = vmatprep.mubr.msk.f32.mxu1 %vm11045_vm4, %v11041_v1 }
0x16e1   : > { %v4711_v37 = vpop.f32.mrb[32].mxu1 }
0x16e2   : > { %v8695_v49 = vpop.f32.mrb[33].mxu1  ;;  %8705 = vmatmul.mubr.msk.f32.vlgmr.msra.gmra.mrb[32].mxu0 %vm2900_vm7, %v4711_v37 }
0x16e3   : > { %8719 = vmatpush3.xpose.msk.msra.mxu0 %vm2900_vm7, %v4864_v50  ;;  %8720 = vmatprep.mubr.msk.f32.mxu0 %vm11045_vm4, %v11041_v1  ;;  %v8091_v50 = vld [vmem:[#allocation12 + $0x1] ss:$0 sm:$0xff] }
0x16e4   : > { %9335 = vmatprep.subr.bf16.mxu0 %v11044_v5 }
0x16e6   : > { %8721 = vmatmul.mubr.msk.f32.vlgmr.msra.gmra.mrb[34].mxu0 %vm2900_vm7, %v4862_v25 }
0x16e7   : > { %8736 = vmatprep.mubr.msk.f32.mxu0 %vm11045_vm4, %v11041_v1  ;;  %9337 = vmatpush3.bf16.msra.mxu0 %v9336_v53  ;;  %v5391_v53 = vld [vmem:[#allocation16 + $0x150] sm:$0xff] }
0x16e8   : > { %9338 = vmatprep.subr.bf16.mxu0 %v11044_v5 }
0x1742   : > { %v4857_v13 = vpop.f32.mrb[34].mxu1 }
0x1743   : > { %v8717_v29 = vpop.f32.mrb[35].mxu1 }
0x17b5   : > { %v4784_v48 = vpop.f32.mrb[32].mxu0 }
0x17b6   : > { %v12301_v33 = vadd.f32 %v4857_v13, %v4784_v48  ;;  %v8706_v51 = vpop.f32.mrb[33].mxu0  ;;  %v5382_v48 = vld [vmem:[#allocation16 + $0x108] sm:$0xff] }
0x17b7   : > { %v5381_v51 = vld [vmem:[#allocation16 + $0x100] sm:$0xff] }
0x17b9   : > { %v4935_v31 = vpop.f32.mrb[34].mxu0 }
0x17ba   : > { %v4939_v16 = vmul.f32 0.17677669, %v4935_v31  ;;  %v8722_v34 = vpop.f32.mrb[35].mxu0 }
0x17bb   : > { %v5386_v34 = vld [vmem:[#allocation16 + $0x128] sm:$0xff] }
0x17bc   : > { %v4940_v39 = vsel %vm2978_vm8, %v4939_v16, -inf }
0x17bd   : > { %4941 = vmax.xlane.f32.xlu1 %v4940_v39  ;;  %v5388_v39 = vld [vmem:[#allocation16 + $0x138] sm:$0xff] }
0x17ce   : > { %5103 = vrot.lane.b32.xlu1 %v12239_v15, %s11048_s10  ;;  %v9339_v15 = vpack.c.bf16 %v8069_v56, %v8068_v41 }
0x17d0   : > { %9340 = vmatpush3.bf16.msra.mxu0 %v9339_v15 }
0x17d1   : > { %9341 = vmatprep.subr.bf16.mxu0 %v11044_v5 }
0x17d2   : > { %5101 = vrot.lane.b32.xlu1 %v12236_v30, %s11048_s10 }
0x184a   : > { %v4942_v43 = vpop.xlane.xlu1 %4941 }
0x184b   : > { %v4943_v47 = vsub.f32 %v4939_v16, %v4942_v43  ;;  %v5383_v16 = vld [vmem:[#allocation16 + $0x110] sm:$0xff] }
0x184c   : > { %v9349_v43 = vpack.c.bf16 %v5383_v16, %v5381_v51  ;;  %v5532_v16 = vld [vmem:[#allocation19 + $0x180] sm:$0xff] }
0x184d   : > { %v4944_v62 = vmul.f32 1.442695, %v4943_v47  ;;  %v9351_v47 = vpack.c.bf16 %v5388_v39, %v5386_v34  ;;  %v5533_v34 = vld [vmem:[#allocation19 + $0x188] sm:$0xff] }
0x184e   : > { %v5104_v57 = vpop.permute.xlu1 %5103  ;;  %v9379_v39 = vpack.c.bf16 %v5533_v34, %v5532_v16 }
0x184f   : > { %10258 = vpow2.f32 %v4944_v62  ;;  %v5385_v62 = vld [vmem:[#allocation16 + $0x120] sm:$0xff] }
0x1852   : > { %v5102_v3 = vpop.permute.xlu1 %5101 }
0x1859   : > { %v10259_v52 = vpop.eup %10258 }
0x185a   : > { %v4946_v46 = vsel %vm2978_vm8, %v10259_v52, 0.0 }
0x185b   : > { %4947 = vadd.xlane.f32.xlu0 %v4946_v46  ;;  %v5390_v46 = vld [vmem:[#allocation16 + $0x148] sm:$0xff] }
0x185c   : > { %v9355_v41 = vpack.c.bf16 %v5392_v27, %v5390_v46  ;;  %v5535_v46 = vld [vmem:[#allocation19 + $0x198] sm:$0xff] }
0x1871   : > { %4951 = vrot.lane.b32.xlu0 %v12248_v38, %s11047_s22 }
0x18e8   : > { %v4948_v30 = vpop.xlane.xlu0 %4947 }
0x18e9   : > { %10260 = vrcp.f32 %v4948_v30 }
0x18ec   : > { %v4952_v63 = vpop.permute.xlu0 %4951 }
0x18ed   : > { %8724 = vmatpush3.msra.mxu1 %v4952_v63 }
0x18ee   : > { %8739 = vmatprep.subr.mxu1 %v11041_v1 }
0x18f3   : > { %v10261_v32 = vpop.eup %10260 }
0x18f4   : > { %v4950_v28 = vmul.f32 %v10261_v32, %v10259_v52  ;;  %v5387_v52 = vld [vmem:[#allocation16 + $0x130] sm:$0xff] }
0x18f5   : > { %v9353_v59 = vpack.c.bf16 %v5387_v52, %v5385_v62  ;;  %v5534_v52 = vld [vmem:[#allocation19 + $0x190] sm:$0xff] }
0x18f6   : > { %8726 = vmatmul.mubr.msk.f32.vlgmr.msra.gmra.mrb[36].mxu1 %vm2978_vm8, %v4950_v28  ;;  %v5396_v28 = vld [vmem:[#allocation16 + $0x178] sm:$0xff]  ;;  %v9383_v27 = vpack.c.bf16 %v5535_v46, %v5534_v52 }
0x18f7   : > { %8740 = vmatpush3.xpose.msk.msra.mxu1 %vm2900_vm7, %v5104_v57  ;;  %8741 = vmatprep.mubr.msk.f32.mxu1 %vm11045_vm4, %v11041_v1  ;;  %v5394_v57 = vld [vmem:[#allocation16 + $0x168] sm:$0xff] }
0x18f8   : > { %8744 = vmatprep.subr.mxu1 %v11041_v1 }
0x18fa   : > { %8742 = vmatmul.mubr.msk.f32.vlgmr.msra.gmra.mrb[38].mxu1 %vm2900_vm7, %v5102_v3  ;;  %v9359_v3 = vpack.c.bf16 %v5396_v28, %v5394_v57  ;;  %v5538_v57 = vld [vmem:[#allocation19 + $0x1b0] sm:$0xff]  ;;  %v5539_v28 = vld [vmem:[#allocation19 + $0x1b8] sm:$0xff] }
0x18fb   : > { %8746 = vmatprep.mubr.msk.f32.mxu1 %vm11045_vm4, %v11041_v1 }
0x19c9   : > { %v5023_v6 = vpop.f32.mrb[36].mxu1 }
0x19ca   : > { %v8727_v7 = vpop.f32.mrb[37].mxu1  ;;  %8737 = vmatmul.mubr.msk.f32.vlgmr.msra.gmra.mrb[36].mxu0 %vm2900_vm7, %v5023_v6  ;;  %v5393_v6 = vld [vmem:[#allocation16 + $0x160] sm:$0xff] }
0x19cb   : > { %8757 = vmatprep.mubr.msk.f32.mxu0 %vm11045_vm4, %v11041_v1  ;;  %9343 = vmatpush3.bf16.msra.mxu0 %v9342_v44  ;;  %v5395_v7 = vld [vmem:[#allocation16 + $0x170] sm:$0xff]  ;;  %v5408_v44 = vld [vmem:[#allocation16 + $0x1d8] sm:$0xff] }
0x19cc   : > { %9344 = vmatprep.subr.bf16.mxu0 %v11044_v5 }
0x19cd   : > { %v5175_v61 = vpop.f32.mrb[38].mxu1 }
0x19ce   : > { %v5179_v45 = vmul.f32 0.17677669, %v5175_v61  ;;  %v8743_v58 = vpop.f32.mrb[39].mxu1  ;;  %v9361_v61 = vpack.c.bf16 %v5395_v7, %v5393_v6  ;;  %v5522_v6 = vld [vmem:[#allocation19 + $0x130] sm:$0xff]  ;;  %v5523_v7 = vld [vmem:[#allocation19 + $0x138] sm:$0xff] }
0x19cf   : > { %9346 = vmatpush3.bf16.msra.mxu0 %v9345_v22  ;;  %v5400_v58 = vld [vmem:[#allocation16 + $0x198] sm:$0xff]  ;;  %v9371_v22 = vpack.c.bf16 %v5408_v44, %v5406_v11  ;;  %v5544_v11 = vld [vmem:[#allocation19 + $0x1e0] sm:$0xff]  ;;  %v5545_v44 = vld [vmem:[#allocation19 + $0x1e8] sm:$0xff] }
0x19d0   : > { %v5180_v55 = vsel %vm2978_vm8, %v5179_v45, -inf  ;;  %9380 = vmatprep.subr.bf16.mxu0 %v9379_v39 }
0x19d1   : > { %5181 = vmax.xlane.f32.xlu0 %v5180_v55  ;;  %v5397_v55 = vld [vmem:[#allocation16 + $0x180] sm:$0xff] }
0x19e7   : > { %5191 = vrot.lane.b32.xlu0 %v12248_v38, %s11048_s10 }
0x1a5e   : > { %v5182_v9 = vpop.xlane.xlu0 %5181 }
0x1a5f   : > { %v5183_v60 = vsub.f32 %v5179_v45, %v5182_v9  ;;  %v5398_v45 = vld [vmem:[#allocation16 + $0x188] sm:$0xff] }
0x1a60   : > { %v9363_v9 = vpack.c.bf16 %v5400_v58, %v5398_v45  ;;  %v5540_v45 = vld [vmem:[#allocation19 + $0x1c0] sm:$0xff]  ;;  %v5541_v58 = vld [vmem:[#allocation19 + $0x1c8] sm:$0xff] }
0x1a61   : > { %v5184_v2 = vmul.f32 1.442695, %v5183_v60  ;;  %v5399_v60 = vld [vmem:[#allocation16 + $0x190] sm:$0xff] }
0x1a62   : > { %v5192_v4 = vpop.permute.xlu0 %5191 }
0x1a63   : > { %10262 = vpow2.f32 %v5184_v2  ;;  %8745 = vmatpush3.msra.mxu1 %v5192_v4  ;;  %v5402_v2 = vld [vmem:[#allocation16 + $0x1a8] sm:$0xff]  ;;  %v5404_v4 = vld [vmem:[#allocation16 + $0x1b8] sm:$0xff] }
0x1a6d   : > { %v10263_v24 = vpop.eup %10262 }
0x1a6e   : > { %v5186_v21 = vsel %vm2978_vm8, %v10263_v24, 0.0 }
0x1a6f   : > { %5187 = vadd.xlane.f32.xlu1 %v5186_v21  ;;  %v9367_v21 = vpack.c.bf16 %v5404_v4, %v5402_v2  ;;  %v5542_v2 = vld [vmem:[#allocation19 + $0x1d0] sm:$0xff]  ;;  %v5543_v4 = vld [vmem:[#allocation19 + $0x1d8] sm:$0xff] }
0x1a9d   : > { %v5096_v38 = vpop.f32.mrb[36].mxu0 }
0x1a9e   : > { %v5100_v8 = vadd.f32 %v5096_v38, %v12301_v33  ;;  %v8738_v14 = vpop.f32.mrb[37].mxu0  ;;  %v5384_v33 = vld [vmem:[#allocation16 + $0x118] sm:$0xff]  ;;  %v5405_v38 = vld [vmem:[#allocation16 + $0x1c0] sm:$0xff] }
0x1a9f   : > { %v9347_v31 = vpack.c.bf16 %v5384_v33, %v5382_v48  ;;  %v5410_v14 = vld [vmem:[#allocation16 + $0x1e8] sm:$0xff]  ;;  %v8093_v33 = vld [vmem:[#allocation15 + $0x1] ss:$0 sm:$0xff] }
0x1aa1   : > { %9348 = vmatprep.subr.bf16.mxu1 %v9347_v31 }
0x1afc   : > { %v5188_v17 = vpop.xlane.xlu1 %5187 }
0x1afd   : > { %10264 = vrcp.f32 %v5188_v17  ;;  %v5412_v17 = vld [vmem:[#allocation16 + $0x1f8] sm:$0xff] }
0x1b07   : > { %v10265_v18 = vpop.eup %10264 }
0x1b08   : > { %v5190_v19 = vmul.f32 %v10265_v18, %v10263_v24  ;;  %v9365_v24 = vpack.c.bf16 %v5399_v60, %v5397_v55  ;;  %v5524_v55 = vld [vmem:[#allocation19 + $0x140] sm:$0xff]  ;;  %v5525_v60 = vld [vmem:[#allocation19 + $0x148] sm:$0xff] }
0x1b0a   : > { %8747 = vmatmul.mubr.msk.f32.vlgmr.msra.gmra.mrb[40].mxu1 %vm2978_vm8, %v5190_v19  ;;  %v9375_v19 = vpack.c.bf16 %v5412_v17, %v5410_v14  ;;  %v5546_v14 = vld [vmem:[#allocation19 + $0x1f0] sm:$0xff]  ;;  %v5547_v17 = vld [vmem:[#allocation19 + $0x1f8] sm:$0xff] }
0x1b0b   : > { %5490 = vmatprep.mubr.f32.mxu1 %v11041_v1  ;;  %9350 = vmatpush1.bf16.msra.mxu1 %v9349_v43  ;;  %v5516_v43 = vld [vmem:[#allocation19 + $0x100] sm:$0xff] }
0x1b0c   : > { %9352 = vmatprep.subr.bf16.mxu1 %v9351_v47  ;;  %v5517_v47 = vld [vmem:[#allocation19 + $0x108] sm:$0xff] }
0x1b0d   : > { %v9381_v62 = vpack.c.bf16 %v5517_v47, %v5516_v43 }
0x1b0f   : > { %9354 = vmatpush1.bf16.msra.mxu1 %v9353_v59  ;;  %v5518_v59 = vld [vmem:[#allocation19 + $0x110] sm:$0xff] }
0x1b10   : > { %9356 = vmatprep.subr.bf16.mxu1 %v9355_v41  ;;  %v5519_v41 = vld [vmem:[#allocation19 + $0x118] sm:$0xff] }
0x1bdd   : > { %v5263_v20 = vpop.f32.mrb[40].mxu1 }
0x1bde   : > { %v8748_v23 = vpop.f32.mrb[41].mxu1  ;;  %8758 = vmatmul.mubr.msk.f32.vlgmr.msra.gmra.mrb[38].mxu0 %vm2900_vm7, %v5263_v20  ;;  %v5409_v20 = vld [vmem:[#allocation16 + $0x1e0] sm:$0xff] }
0x1bdf   : > { %v5411_v23 = vld [vmem:[#allocation16 + $0x1f0] sm:$0xff]  ;;  %9382 = vmatpush3.bf16.msra.mxu0 %v9381_v62 }
0x1be0   : > { %9384 = vmatprep.subr.bf16.mxu0 %v9383_v27 }
0x1cb1   : > { %v5336_v37 = vpop.f32.mrb[38].mxu0 }
0x1cb2   : > { %v5340_v49 = vadd.f32 %v5336_v37, %v5100_v8  ;;  %v8759_v25 = vpop.f32.mrb[39].mxu0  ;;  %v5407_v8 = vld [vmem:[#allocation16 + $0x1d0] sm:$0xff]  ;;  %v9377_v37 = vpack.c.bf16 %v5411_v23, %v5409_v20  ;;  %v5531_v23 = vld [vmem:[#allocation19 + $0x178] sm:$0xff] }
0x1cb3   : > { %v9373_v18 = vpack.c.bf16 %v5407_v8, %v5405_v38  ;;  %v5528_v38 = vld [vmem:[#allocation19 + $0x160] sm:$0xff]  ;;  %v5529_v8 = vld [vmem:[#allocation19 + $0x168] sm:$0xff]  ;;  %v5530_v20 = vld [vmem:[#allocation19 + $0x170] sm:$0xff] }
0x1cb4   : > { %v5349_v13 = vadd.f32 %v8091_v50, %v5340_v49 }
0x1cb6   : > { %v5350_v29 = vadd.f32 %v5349_v13, %v12225_v26  ;;  %v5389_v26 = vld [vmem:[#allocation16 + $0x140] sm:$0xff] }
0x1cb7   : > { %v9357_v56 = vpack.c.bf16 %v5391_v53, %v5389_v26  ;;  %v9385_v26 = vpack.c.bf16 %v5519_v41, %v5518_v59  ;;  %v5536_v53 = vld [vmem:[#allocation19 + $0x1a0] sm:$0xff] }
0x1cb8   : > { %5355 = vadd.xlane.f32.xlu1 %v5350_v29 }
0x1cb9   : > { %9358 = vmatpush1.bf16.msra.mxu1 %v9357_v56  ;;  %9386 = vmatpush3.bf16.msra.mxu0 %v9385_v26  ;;  %v5537_v56 = vld [vmem:[#allocation19 + $0x1a8] sm:$0xff] }
0x1cba   : > { %9360 = vmatprep.subr.bf16.mxu1 %v9359_v3  ;;  %v9391_v3 = vpack.c.bf16 %v5539_v28, %v5538_v57  ;;  %v8094_v57 = vld [vmem:[#allocation21 + $0x1] ss:$0 sm:$0xff] }
0x1cbd   : > { %9362 = vmatpush1.bf16.msra.mxu1 %v9361_v61  ;;  %v9393_v61 = vpack.c.bf16 %v5523_v7, %v5522_v6 }
0x1cbe   : > { %9364 = vmatprep.subr.bf16.mxu1 %v9363_v9  ;;  %v9395_v9 = vpack.c.bf16 %v5541_v58, %v5540_v45  ;;  %v5659_v45 = vld [vmem:[#allocation25 + $0x18] sm:$0xff]  ;;  %v5656_v58 = vld [vmem:[#allocation25] sm:$0xff] }
0x1cc1   : > { %9366 = vmatpush1.bf16.msra.mxu1 %v9365_v24  ;;  %v9397_v24 = vpack.c.bf16 %v5525_v60, %v5524_v55  ;;  %v5661_v60 = vld [vmem:[#allocation25 + $0x28] sm:$0xff] }
0x1cc2   : > { %9368 = vmatprep.subr.bf16.mxu1 %v9367_v21  ;;  %v9399_v21 = vpack.c.bf16 %v5543_v4, %v5542_v2  ;;  %v5663_v2 = vld [vmem:[#allocation25 + $0x38] sm:$0xff] }
0x1cc5   : > { %9370 = vmatpush1.bf16.msra.mxu1 %v9369_v12  ;;  %v9401_v12 = vpack.c.bf16 %v5527_v0, %v5526_v10  ;;  %v5662_v10 = vld [vmem:[#allocation25 + $0x30] sm:$0xff]  ;;  %v5665_v0 = vld [vmem:[#allocation25 + $0x48] sm:$0xff] }
0x1cc6   : > { %9372 = vmatprep.subr.bf16.mxu1 %v9371_v22  ;;  %v9403_v22 = vpack.c.bf16 %v5545_v44, %v5544_v11  ;;  %v5667_v11 = vld [vmem:[#allocation25 + $0x58] sm:$0xff] }
0x1cc9   : > { %9374 = vmatpush1.bf16.msra.mxu1 %v9373_v18  ;;  %v9405_v18 = vpack.c.bf16 %v5529_v8, %v5528_v38 }
0x1cca   : > { %9376 = vmatprep.subr.bf16.mxu1 %v9375_v19  ;;  %v9407_v19 = vpack.c.bf16 %v5547_v17, %v5546_v14 }
0x1ccd   : > { %9378 = vmatpush1.bf16.msra.mxu1 %v9377_v37  ;;  %v9409_v37 = vpack.c.bf16 %v5531_v23, %v5530_v20  ;;  %v5671_v20 = vld [vmem:[#allocation25 + $0x78] sm:$0xff] }
0x1d45   : > { %v5356_v15 = vpop.xlane.xlu1 %5355 }
0x1d46   : > { %v5357_v30 = vmul.f32 0.0078125, %v5356_v15  ;;  %v9387_v15 = vpack.c.bf16 %v5537_v56, %v5536_v53 }
0x1d48   : > { %v5358_v63 = vsub.f32 %v5350_v29, %v5357_v30  ;;  %v8092_v29 = vld [vmem:[#allocation13 + $0x1] ss:$0 sm:$0xff]  ;;  %v5520_v30 = vld [vmem:[#allocation19 + $0x120] sm:$0xff]  ;;  %9388 = vmatprep.subr.bf16.mxu0 %v9387_v15 }
0x1d4a   : > { %v5359_v32 = vmul.f32 %v5358_v63, %v5358_v63 }
0x1d4c   : > { %5360 = vadd.xlane.f32.xlu1 %v5359_v32 }
0x1dd9   : > { %v5361_v50 = vpop.xlane.xlu1 %5360 }
0x1dda   : > { %v5362_v49 = vmul.f32 0.0078125, %v5361_v50  ;;  %v5414_v50 = vld [vmem:[#allocation18 + $0x2] sm:$0x3] }
0x1ddc   : > { %v5363_v25 = vadd.f32 1e-12, %v5362_v49  ;;  %v5419_v49 = vrot.slane %v5414_v50, %v11828_v36 }
0x1dde   : > { %10266 = vrsqrt.f32 %v5363_v25  ;;  %v5423_v25 = vrot.slane %v5414_v50, %v11832_v40  ;;  %v5670_v50 = vld [vmem:[#allocation25 + $0x70] sm:$0xff] }
0x1de8   : > { %v10267_v13 = vpop.eup %10266 }
0x1de9   : > { %v5365_v48 = vmul.f32 %v10267_v13, %v5358_v63  ;;  %v5521_v63 = vld [vmem:[#allocation19 + $0x128] sm:$0xff] }
0x1dea   : > { %v9389_v32 = vpack.c.bf16 %v5521_v63, %v5520_v30 }
0x1deb   : > { %v5372_v51 = vmul.f32 %v8092_v29, %v5365_v48 }
0x1dec   : > { %9390 = vmatpush3.bf16.msra.mxu0 %v9389_v32 }
0x1ded   : > { %v12343_v31 = vadd.f32 %v8093_v33, %v5372_v51  ;;  %9392 = vmatprep.subr.bf16.mxu0 %v9391_v3 }
0x1def   : > { %5491 = vmatmul.mubr.f32.vlgmr.msra.gmra.mrb[42].mxu1 %v12343_v31 }
0x1df0   : > { %5764 = vmatprep.mubr.f32.mxu1 %v11041_v1  ;;  %9394 = vmatpush3.bf16.msra.mxu0 %v9393_v61  ;;  %v5657_v61 = vld [vmem:[#allocation25 + $0x8] sm:$0xff] }
0x1df1   : > { %9396 = vmatprep.subr.bf16.mxu0 %v9395_v9  ;;  %v9411_v55 = vpack.c.bf16 %v5659_v45, %v5657_v61  ;;  %v5658_v9 = vld [vmem:[#allocation25 + $0x10] sm:$0xff]  ;;  %v8096_v45 = vld [vmem:[#allocation24 + $0x1] ss:$0 sm:$0xff] }
0x1df2   : > { %v9413_v4 = vpack.c.bf16 %v5658_v9, %v5656_v58  ;;  %v5688_v9 = vld [vmem:[#allocation27] sm:$0x3] }
0x1df3   : > { %9412 = vmatprep.subr.bf16.mxu1 %v9411_v55 }
0x1df4   : > { %9398 = vmatpush3.bf16.msra.mxu0 %v9397_v24  ;;  %v9415_v24 = vpack.c.bf16 %v5663_v2, %v5661_v60  ;;  %9414 = vmatpush1.bf16.msra.mxu1 %v9413_v4  ;;  %v5693_v60 = vrot.slane %v5688_v9, %v11828_v36 }
0x1df5   : > { %9400 = vmatprep.subr.bf16.mxu0 %v9399_v21  ;;  %v5660_v21 = vld [vmem:[#allocation25 + $0x20] sm:$0xff] }
0x1df6   : > { %v9417_v44 = vpack.c.bf16 %v5662_v10, %v5660_v21  ;;  %9416 = vmatprep.subr.bf16.mxu1 %v9415_v24  ;;  %v5697_v24 = vrot.slane %v5688_v9, %v11832_v40  ;;  %v5771_v10 = vld [vmem:[%s12636_s26] sm:$0xf] }
0x1df8   : > { %9402 = vmatpush3.bf16.msra.mxu0 %v9401_v12  ;;  %v9419_v12 = vpack.c.bf16 %v5667_v11, %v5665_v0  ;;  %9418 = vmatpush1.bf16.msra.mxu1 %v9417_v44 }
0x1df9   : > { %9404 = vmatprep.subr.bf16.mxu0 %v9403_v22  ;;  %v5666_v22 = vld [vmem:[#allocation25 + $0x50] sm:$0xff] }
0x1dfa   : > { %9420 = vmatprep.subr.bf16.mxu1 %v9419_v12 }
0x1dfc   : > { %9406 = vmatpush3.bf16.msra.mxu0 %v9405_v18 }
0x1dfd   : > { %9408 = vmatprep.subr.bf16.mxu0 %v9407_v19  ;;  %v5669_v19 = vld [vmem:[#allocation25 + $0x68] sm:$0xff] }
0x1dfe   : > { %v9423_v23 = vpack.c.bf16 %v5671_v20, %v5669_v19  ;;  %v5934_v19 = vld [vmem:[#allocation28 + $0x20] sm:$0xff] }
0x1e00   : > { %9410 = vmatpush3.bf16.msra.mxu0 %v9409_v37  ;;  %v5668_v37 = vld [vmem:[#allocation25 + $0x60] sm:$0xff] }
0x1e01   : > { %8760 = vmatprep.subr.mxu0 %v11041_v1 }
0x1ec2   : > { %v5492_v13 = vpop.f32.mrb[42].mxu1 }
0x1ec3   : > { %v5493_v29 = vadd.f32 %v5492_v13, %v5419_v49  ;;  %v5494_v48 = vpop.f32.mrb[43].mxu1  ;;  %v9425_v49 = vpack.c.bf16 %v5670_v50, %v5668_v37  ;;  %v5675_v13 = vld [vmem:[#allocation25 + $0x98] sm:$0xff]  ;;  %v5935_v37 = vld [vmem:[#allocation28 + $0x28] sm:$0xff] }
0x1ec4   : > { %v5495_v33 = vadd.f32 %v5494_v48, %v5423_v25  ;;  %v5673_v25 = vld [vmem:[#allocation25 + $0x88] sm:$0xff] }
0x1ec5   : > { %v5497_v51 = vmul.f32 %v5493_v29, %v5493_v29  ;;  %v9427_v48 = vpack.c.bf16 %v5675_v13, %v5673_v25  ;;  %v5941_v25 = vld [vmem:[#allocation28 + $0x58] sm:$0xff] }
0x1ec6   : > { %v5498_v16 = vmul.f32 %v5495_v33, %v5495_v33 }
0x1ec7   : > { %v5499_v34 = vmul.f32 %v5497_v51, %v5493_v29  ;;  %v5677_v51 = vld [vmem:[#allocation25 + $0xa8] sm:$0xff] }
0x1ec8   : > { %v5500_v39 = vmul.f32 %v5498_v16, %v5495_v33  ;;  %v5679_v16 = vld [vmem:[#allocation25 + $0xb8] sm:$0xff] }
0x1ec9   : > { %v5501_v43 = vmul.f32 0.044715, %v5499_v34 }
0x1eca   : > { %v5502_v47 = vmul.f32 0.044715, %v5500_v39  ;;  %v9431_v39 = vpack.c.bf16 %v5679_v16, %v5677_v51  ;;  %v5950_v51 = vld [vmem:[#allocation28 + $0xa0] sm:$0xff]  ;;  %v5953_v16 = vld [vmem:[#allocation28 + $0xb8] sm:$0xff] }
0x1ecb   : > { %v5503_v62 = vadd.f32 %v5501_v43, %v5493_v29  ;;  %v5676_v43 = vld [vmem:[#allocation25 + $0xa0] sm:$0xff] }
0x1ecc   : > { %v5504_v52 = vadd.f32 %v5502_v47, %v5495_v33  ;;  %v5678_v47 = vld [vmem:[#allocation25 + $0xb0] sm:$0xff] }
0x1ecd   : > { %v5505_v46 = vmul.f32 0.7978846, %v5503_v62  ;;  %v5681_v62 = vld [vmem:[#allocation25 + $0xc8] sm:$0xff] }
0x1ece   : > { %v5506_v27 = vmul.f32 0.7978846, %v5504_v52  ;;  %v5683_v52 = vld [vmem:[#allocation25 + $0xd8] sm:$0xff] }
0x1ecf   : > { %10268 = vtanh.f32 %v5505_v46  ;;  %v9433_v46 = vpack.c.bf16 %v5678_v47, %v5676_v43  ;;  %v5959_v43 = vld [vmem:[#allocation28 + $0xe8] sm:$0xff] }
0x1ed0   : > { %10270 = vtanh.f32 %v5506_v27  ;;  %v9435_v27 = vpack.c.bf16 %v5683_v52, %v5681_v62  ;;  %v5962_v62 = vld [vmem:[#allocation28 + $0x100] sm:$0xff]  ;;  %v5965_v52 = vld [vmem:[#allocation28 + $0x118] sm:$0xff] }
0x1ed9   : > { %v10269_v59 = vpop.eup %10268 }
0x1eda   : > { %v10271_v41 = vpop.eup %10270  ;;  %v5509_v26 = vadd.f32 1.0, %v10269_v59  ;;  %v5680_v59 = vld [vmem:[#allocation25 + $0xc0] sm:$0xff] }
0x1edb   : > { %v5510_v53 = vadd.f32 1.0, %v10271_v41  ;;  %v5682_v41 = vld [vmem:[#allocation25 + $0xd0] sm:$0xff] }
0x1edc   : > { %v5511_v56 = vmul.f32 0.5, %v5509_v26  ;;  %v5685_v26 = vld [vmem:[#allocation25 + $0xe8] sm:$0xff] }
0x1edd   : > { %v5512_v15 = vmul.f32 0.5, %v5510_v53  ;;  %v5687_v53 = vld [vmem:[#allocation25 + $0xf8] sm:$0xff] }
0x1ede   : > { %v5513_v63 = vmul.f32 %v5511_v56, %v5493_v29  ;;  %v5672_v29 = vld [vmem:[#allocation25 + $0x80] sm:$0xff]  ;;  %v9437_v56 = vpack.c.bf16 %v5682_v41, %v5680_v59  ;;  %v5971_v59 = vld [vmem:[#allocation28 + $0x148] sm:$0xff] }
0x1edf   : > { %v5514_v30 = vmul.f32 %v5512_v15, %v5495_v33  ;;  %v5674_v33 = vld [vmem:[#allocation25 + $0x90] sm:$0xff]  ;;  %v9439_v15 = vpack.c.bf16 %v5687_v53, %v5685_v26  ;;  %v5974_v26 = vld [vmem:[#allocation28 + $0x160] sm:$0xff]  ;;  %v5977_v53 = vld [vmem:[#allocation28 + $0x178] sm:$0xff] }
0x1ee0   : > { %v9429_v34 = vpack.c.bf16 %v5674_v33, %v5672_v29  ;;  %v5944_v29 = vld [vmem:[#allocation28 + $0x70] sm:$0xff] }
0x1ee1   : > { %5620 = vmatprep.mubr.f32.mxu0 %v5514_v30  ;;  %v5684_v30 = vld [vmem:[#allocation25 + $0xe0] sm:$0xff] }
0x1ee2   : > { %5621 = vmatmul.mubr.f32.vlgmr.msra.gmra.mrb[40].mxu0 %v5513_v63  ;;  %v5686_v63 = vld [vmem:[#allocation25 + $0xf0] sm:$0xff] }
0x1ee3   : > { %8762 = vmatprep.mubr.msk.f32.mxu0 %vm11045_vm4, %v11041_v1 }
0x1fb5   : > { %v8321_v32 = vpop.f32.mrb[40].mxu0 }
0x1fb6   : > { %v8322_v28 = vpop.f32.mrb[41].mxu0 }
0x1fb7   : > { %v8323_v3 = vadd.f32 %v8322_v28, %v8321_v32  ;;  %v9441_v32 = vpack.c.bf16 %v5686_v63, %v5684_v30  ;;  %v5930_v30 = vld [vmem:[#allocation28] sm:$0xff]  ;;  %v5933_v63 = vld [vmem:[#allocation28 + $0x18] sm:$0xff] }
0x1fb9   : > { %v5623_v6 = vadd.f32 %v8323_v3, %v8094_v57 }
0x1fbb   : > { %v5626_v7 = vadd.f32 %v5623_v6, %v12343_v31  ;;  %v5664_v31 = vld [vmem:[#allocation25 + $0x40] sm:$0xff] }
0x1fbc   : > { %v9421_v38 = vpack.c.bf16 %v5666_v22, %v5664_v31 }
0x1fbd   : > { %5631 = vadd.xlane.f32.xlu1 %v5626_v7 }
0x1fbe   : > { %9422 = vmatpush1.bf16.msra.mxu1 %v9421_v38 }
0x1fbf   : > { %9424 = vmatprep.subr.bf16.mxu1 %v9423_v23  ;;  %v5932_v23 = vld [vmem:[#allocation28 + $0x10] sm:$0xff] }
0x1fc0   : > { %v9476_v50 = vpack.c.bf16 %v5935_v37, %v5932_v23  ;;  %v5960_v23 = vld [vmem:[#allocation28 + $0xf0] sm:$0xff]  ;;  %v5963_v37 = vld [vmem:[#allocation28 + $0x108] sm:$0xff] }
0x1fc2   : > { %9426 = vmatpush1.bf16.msra.mxu1 %v9425_v49  ;;  %v5938_v49 = vld [vmem:[#allocation28 + $0x40] sm:$0xff] }
0x1fc3   : > { %9428 = vmatprep.subr.bf16.mxu1 %v9427_v48  ;;  %v9479_v13 = vpack.c.bf16 %v5941_v25, %v5938_v49  ;;  %v5947_v48 = vld [vmem:[#allocation28 + $0x88] sm:$0xff]  ;;  %v5970_v49 = vld [vmem:[#allocation28 + $0x140] sm:$0xff]  ;;  %v9465_v25 = vpack.c.bf16 %v5963_v37, %v5960_v23  ;;  %v6175_v23 = vld [vmem:[#allocation28 + $0x258] sm:$0xff] }
0x1fc4   : > { %v9482_v33 = vpack.c.bf16 %v5947_v48, %v5944_v29  ;;  %v5966_v29 = vld [vmem:[#allocation28 + $0x120] sm:$0xff]  ;;  %v5969_v48 = vld [vmem:[#allocation28 + $0x138] sm:$0xff]  ;;  %v6174_v37 = vld [vmem:[#allocation28 + $0x250] sm:$0xff] }
0x1fc6   : > { %9430 = vmatpush1.bf16.msra.mxu1 %v9429_v34  ;;  %v9485_v34 = vpack.c.bf16 %v5953_v16, %v5950_v51  ;;  %v5976_v51 = vld [vmem:[#allocation28 + $0x170] sm:$0xff]  ;;  %v9469_v16 = vpack.c.bf16 %v5969_v48, %v5966_v29 }
0x1fc7   : > { %9432 = vmatprep.subr.bf16.mxu1 %v9431_v39  ;;  %v5956_v39 = vld [vmem:[#allocation28 + $0xd0] sm:$0xff] }
0x1fc8   : > { %v9488_v47 = vpack.c.bf16 %v5959_v43, %v5956_v39  ;;  %v5972_v39 = vld [vmem:[#allocation28 + $0x150] sm:$0xff]  ;;  %v5975_v43 = vld [vmem:[#allocation28 + $0x168] sm:$0xff] }
0x1fc9   : > { %v6178_v48 = vld [vmem:[#allocation28 + $0x270] sm:$0xff] }
0x1fca   : > { %9434 = vmatpush1.bf16.msra.mxu1 %v9433_v46  ;;  %v9491_v46 = vpack.c.bf16 %v5965_v52, %v5962_v62  ;;  %v6149_v62 = vld [vmem:[#allocation28 + $0x188] sm:$0xff]  ;;  %v6152_v52 = vld [vmem:[#allocation28 + $0x1a0] sm:$0xff] }
0x1fcb   : > { %9436 = vmatprep.subr.bf16.mxu1 %v9435_v27  ;;  %v5968_v27 = vld [vmem:[#allocation28 + $0x130] sm:$0xff] }
0x1fcc   : > { %v9494_v41 = vpack.c.bf16 %v5971_v59, %v5968_v27  ;;  %v6148_v27 = vld [vmem:[#allocation28 + $0x180] sm:$0xff]  ;;  %v6151_v59 = vld [vmem:[#allocation28 + $0x198] sm:$0xff] }
0x1fce   : > { %9438 = vmatpush1.bf16.msra.mxu1 %v9437_v56  ;;  %v9497_v56 = vpack.c.bf16 %v5977_v53, %v5974_v26  ;;  %v6153_v26 = vld [vmem:[#allocation28 + $0x1a8] sm:$0xff]  ;;  %v6155_v53 = vld [vmem:[#allocation28 + $0x1b8] sm:$0xff] }
0x1fcf   : > { %9440 = vmatprep.subr.bf16.mxu1 %v9439_v15 }
0x1fd2   : > { %9442 = vmatpush1.bf16.msra.mxu1 %v9441_v32  ;;  %v5937_v32 = vld [vmem:[#allocation28 + $0x38] sm:$0xff] }
0x1fd3   : > { %9475 = vmatprep.subr.bf16.mxu1 %v11044_v5 }
0x204a   : > { %v5632_v8 = vpop.xlane.xlu1 %5631 }
0x204b   : > { %v5633_v14 = vmul.f32 0.0078125, %v5632_v8 }
0x204d   : > { %v5634_v17 = vsub.f32 %v5626_v7, %v5633_v14  ;;  %v8095_v7 = vld [vmem:[#allocation22 + $0x1] ss:$0 sm:$0xff] }
0x204f   : > { %v5635_v18 = vmul.f32 %v5634_v17, %v5634_v17 }
0x2051   : > { %5636 = vadd.xlane.f32.xlu1 %v5635_v18  ;;  %v5931_v18 = vld [vmem:[#allocation28 + $0x8] sm:$0xff] }
0x2052   : > { %v9443_v20 = vpack.c.bf16 %v5934_v19, %v5931_v18  ;;  %v5964_v18 = vld [vmem:[#allocation28 + $0x110] sm:$0xff] }
0x20de   : > { %v5637_v57 = vpop.xlane.xlu1 %5636 }
0x20df   : > { %v5638_v28 = vmul.f32 0.0078125, %v5637_v57  ;;  %v5940_v57 = vld [vmem:[#allocation28 + $0x50] sm:$0xff] }
0x20e1   : > { %v5639_v3 = vadd.f32 1e-12, %v5638_v28 }
0x20e3   : > { %10272 = vrsqrt.f32 %v5639_v3  ;;  %v9445_v3 = vpack.c.bf16 %v5933_v63, %v5930_v30  ;;  %v6154_v63 = vld [vmem:[#allocation28 + $0x1b0] sm:$0xff] }
0x20ed   : > { %v10273_v6 = vpop.eup %10272 }
0x20ee   : > { %v5641_v61 = vmul.f32 %v10273_v6, %v5634_v17 }
0x20f0   : > { %v5648_v58 = vmul.f32 %v8095_v7, %v5641_v61  ;;  %v9447_v7 = vpack.c.bf16 %v5940_v57, %v5937_v32  ;;  %v5936_v61 = vld [vmem:[#allocation28 + $0x30] sm:$0xff]  ;;  %v6157_v57 = vld [vmem:[#allocation28 + $0x1c8] sm:$0xff] }
0x20f2   : > { %v5655_v55 = vadd.f32 %v8096_v45, %v5648_v58  ;;  %v5939_v45 = vld [vmem:[#allocation28 + $0x48] sm:$0xff] }
0x20f3   : > { %v5943_v58 = vld [vmem:[#allocation28 + $0x68] sm:$0xff]  ;;  %v9449_v9 = vpack.c.bf16 %v5939_v45, %v5936_v61  ;;  %v6164_v61 = vld [vmem:[#allocation28 + $0x200] sm:$0xff] }
0x20f4   : > { %5765 = vmatmul.mubr.f32.vlgmr.msra.gmra.mrb[44].mxu1 %v5655_v55  ;;  %v5946_v55 = vld [vmem:[#allocation28 + $0x80] sm:$0xff] }
0x20f5   : > { %8802 = vmatprep.mubr.msk.f32.mxu1 %vm11045_vm4, %v11041_v1  ;;  %9477 = vmatpush3.bf16.msra.mxu1 %v9476_v50  ;;  %v5967_v50 = vld [vmem:[#allocation28 + $0x128] sm:$0xff] }
0x20f6   : > { %9478 = vmatprep.subr.bf16.mxu1 %v11044_v5 }
0x20f9   : > { %9480 = vmatpush3.bf16.msra.mxu1 %v9479_v13  ;;  %v9467_v13 = vpack.c.bf16 %v5970_v49, %v5967_v50  ;;  %v6177_v50 = vld [vmem:[#allocation28 + $0x268] sm:$0xff]  ;;  %v6179_v49 = vld [vmem:[#allocation28 + $0x278] sm:$0xff] }
0x20fa   : > { %9481 = vmatprep.subr.bf16.mxu1 %v11044_v5  ;;  %v9544_v29 = vpack.c.bf16 %v6177_v50, %v6174_v37  ;;  %v6386_v37 = vld [vmem:[#allocation28 + $0x388] sm:$0xff]  ;;  %v6388_v50 = vld [vmem:[#allocation28 + $0x398] sm:$0xff] }
0x20fd   : > { %9483 = vmatpush3.bf16.msra.mxu1 %v9482_v33  ;;  %v5973_v33 = vld [vmem:[#allocation28 + $0x158] sm:$0xff] }
0x20fe   : > { %9484 = vmatprep.subr.bf16.mxu1 %v11044_v5 }
0x2101   : > { %9486 = vmatpush3.bf16.msra.mxu1 %v9485_v34  ;;  %v9471_v34 = vpack.c.bf16 %v5976_v51, %v5973_v33  ;;  %v6181_v51 = vld [vmem:[#allocation28 + $0x288] sm:$0xff] }
0x2102   : > { %9487 = vmatprep.subr.bf16.mxu1 %v11044_v5 }
0x2105   : > { %9489 = vmatpush3.bf16.msra.mxu1 %v9488_v47  ;;  %v9473_v47 = vpack.c.bf16 %v5975_v43, %v5972_v39  ;;  %v6185_v39 = vld [vmem:[#allocation28 + $0x2a8] sm:$0xff]  ;;  %v6188_v43 = vld [vmem:[#allocation28 + $0x2c0] sm:$0xff] }
0x2106   : > { %9490 = vmatprep.subr.bf16.mxu1 %v11044_v5 }
0x2109   : > { %9492 = vmatpush3.bf16.msra.mxu1 %v9491_v46  ;;  %v9499_v46 = vpack.c.bf16 %v6152_v52, %v6149_v62  ;;  %v6184_v52 = vld [vmem:[#allocation28 + $0x2a0] sm:$0xff] }
0x210a   : > { %9493 = vmatprep.subr.bf16.mxu1 %v11044_v5 }
0x210d   : > { %9495 = vmatpush3.bf16.msra.mxu1 %v9494_v41  ;;  %v6150_v41 = vld [vmem:[#allocation28 + $0x190] sm:$0xff] }
0x210e   : > { %9496 = vmatprep.subr.bf16.mxu1 %v11044_v5  ;;  %v9532_v30 = vpack.c.bf16 %v6153_v26, %v6150_v41  ;;  %v6189_v41 = vld [vmem:[#allocation28 + $0x2c8] sm:$0xff]  ;;  %v6191_v26 = vld [vmem:[#allocation28 + $0x2d8] sm:$0xff] }
0x2111   : > { %9498 = vmatpush3.bf16.msra.mxu1 %v9497_v56  ;;  %v6158_v56 = vld [vmem:[#allocation28 + $0x1d0] sm:$0xff] }
0x2112   : > { %9531 = vmatprep.subr.bf16.mxu1 %v11044_v5  ;;  %v9503_v32 = vpack.c.bf16 %v6158_v56, %v6155_v53  ;;  %v6194_v53 = vld [vmem:[#allocation28 + $0x2f0] sm:$0xff] }
0x21c7   : > { %v5766_v2 = vpop.f32.mrb[44].mxu1 }
0x21c8   : > { %v5767_v4 = vadd.f32 %v5766_v2, %v5693_v60  ;;  %v5768_v21 = vpop.f32.mrb[45].mxu1  ;;  %v9451_v60 = vpack.c.bf16 %v5946_v55, %v5943_v58  ;;  %v5942_v2 = vld [vmem:[#allocation28 + $0x60] sm:$0xff]  ;;  %v9505_v58 = vpack.c.bf16 %v6157_v57, %v6154_v63  ;;  %v9527_v63 = vpack.c.bf16 %v6194_v53, %v6191_v26  ;;  %v6403_v26 = vld [vmem:[#allocation28 + $0x410] sm:$0xff] }
0x21c9   : > { %v5769_v0 = vadd.f32 %v5768_v21, %v5697_v24  ;;  %v5949_v24 = vld [vmem:[#allocation28 + $0x98] sm:$0xff]  ;;  %v5952_v21 = vld [vmem:[#allocation28 + $0xb0] sm:$0xff]  ;;  %v6192_v57 = vld [vmem:[#allocation28 + $0x2e0] sm:$0xff] }
0x21ca   : > { %8761 = vmatpush3.xpose.msra.mxu0 %v5767_v4  ;;  %v5945_v4 = vld [vmem:[#allocation28 + $0x78] sm:$0xff] }
0x21cb   : > { %8765 = vmatprep.subr.mxu0 %v11041_v1 }
0x21cd   : > { %8763 = vmatmul.mubr.f32.vlgmr.msra.gmra.mrb[42].mxu0 %v5771_v10  ;;  %v9453_v10 = vpack.c.bf16 %v5945_v4, %v5942_v2  ;;  %v6163_v2 = vld [vmem:[#allocation28 + $0x1f8] sm:$0xff]  ;;  %v6162_v4 = vld [vmem:[#allocation28 + $0x1f0] sm:$0xff] }
0x21ce   : > { %8766 = vmatpush3.msra.mxu0 %v5769_v0  ;;  %8767 = vmatprep.mubr.msk.f32.mxu0 %vm11045_vm4, %v11041_v1  ;;  %v9455_v0 = vpack.c.bf16 %v5952_v21, %v5949_v24  ;;  %v6165_v24 = vld [vmem:[#allocation28 + $0x208] sm:$0xff]  ;;  %v6167_v21 = vld [vmem:[#allocation28 + $0x218] sm:$0xff] }
0x21cf   : > { %9444 = vmatprep.subr.bf16.mxu0 %v9443_v20 }
0x22a0   : > { %v5838_v11 = vpop.f32.mrb[42].mxu0 }
0x22a1   : > { %v5842_v44 = vmul.f32 0.088388346, %v5838_v11  ;;  %v8764_v12 = vpop.f32.mrb[43].mxu0  ;;  %v5948_v11 = vld [vmem:[#allocation28 + $0x90] sm:$0xff] }
0x22a2   : > { %v5955_v12 = vld [vmem:[#allocation28 + $0xc8] sm:$0xff] }
0x22a3   : > { %v5844_v31 = vsel %vm5843_vm9, %v5842_v44, -inf }
0x22a4   : > { %5845 = vmax.xlane.f32.xlu1 %v5844_v31  ;;  %v5958_v31 = vld [vmem:[#allocation28 + $0xe0] sm:$0xff] }
0x2331   : > { %v5846_v22 = vpop.xlane.xlu1 %5845 }
0x2332   : > { %v5847_v38 = vsub.f32 %v5842_v44, %v5846_v22  ;;  %v5951_v44 = vld [vmem:[#allocation28 + $0xa8] sm:$0xff] }
0x2333   : > { %v9457_v22 = vpack.c.bf16 %v5951_v44, %v5948_v11  ;;  %v9538_v11 = vpack.c.bf16 %v6165_v24, %v6162_v4  ;;  %v6166_v44 = vld [vmem:[#allocation28 + $0x210] sm:$0xff]  ;;  %v6376_v4 = vld [vmem:[#allocation28 + $0x338] sm:$0xff] }
0x2334   : > { %v5848_v8 = vmul.f32 1.442695, %v5847_v38  ;;  %v9459_v38 = vpack.c.bf16 %v5958_v31, %v5955_v12  ;;  %v6169_v31 = vld [vmem:[#allocation28 + $0x228] sm:$0xff]  ;;  %v6379_v24 = vld [vmem:[#allocation28 + $0x350] sm:$0xff] }
0x2336   : > { %10274 = vpow2.f32 %v5848_v8  ;;  %v5954_v8 = vld [vmem:[#allocation28 + $0xc0] sm:$0xff] }
0x2340   : > { %v10275_v14 = vpop.eup %10274 }
0x2341   : > { %v5850_v17 = vsel %vm5843_vm9, %v10275_v14, 0.0 }
0x2342   : > { %5851 = vadd.xlane.f32.xlu0 %v5850_v17  ;;  %v5961_v17 = vld [vmem:[#allocation28 + $0xf8] sm:$0xff] }
0x2343   : > { %v9463_v20 = vpack.c.bf16 %v5964_v18, %v5961_v17  ;;  %v9513_v17 = vpack.c.bf16 %v6169_v31, %v6166_v44  ;;  %v9559_v44 = vpack.c.bf16 %v6379_v24, %v6376_v4  ;;  %v6377_v31 = vld [vmem:[#allocation28 + $0x340] sm:$0xff]  ;;  %v6415_v4 = vld [vmem:[#allocation28 + $0x470] sm:$0xff] }
0x23cf   : > { %v5852_v15 = vpop.xlane.xlu0 %5851 }
0x23d0   : > { %10276 = vrcp.f32 %v5852_v15  ;;  %v9501_v15 = vpack.c.bf16 %v6151_v59, %v6148_v27  ;;  %v6187_v27 = vld [vmem:[#allocation28 + $0x2b8] sm:$0xff]  ;;  %v6186_v59 = vld [vmem:[#allocation28 + $0x2b0] sm:$0xff] }
0x23d1   : > { %v9525_v56 = vpack.c.bf16 %v6187_v27, %v6184_v52  ;;  %v6395_v27 = vld [vmem:[#allocation28 + $0x3d0] sm:$0xff] }
0x23da   : > { %v10277_v28 = vpop.eup %10276 }
0x23db   : > { %v5854_v6 = vmul.f32 %v10277_v28, %v10275_v14  ;;  %v5957_v14 = vld [vmem:[#allocation28 + $0xd8] sm:$0xff]  ;;  %v6156_v28 = vld [vmem:[#allocation28 + $0x1c0] sm:$0xff] }
0x23dc   : > { %v9461_v19 = vpack.c.bf16 %v5957_v14, %v5954_v8  ;;  %v6173_v8 = vld [vmem:[#allocation28 + $0x248] sm:$0xff]  ;;  %v6176_v14 = vld [vmem:[#allocation28 + $0x260] sm:$0xff] }
0x23dd   : > { %8768 = vmatmul.mubr.msk.f32.vlgmr.msra.gmra.mrb[44].mxu0 %vm2978_vm8, %v5854_v6 }
0x23de   : > { %9446 = vmatpush1.bf16.msra.mxu0 %v9445_v3  ;;  %6042 = vmatprep.mubr.f32.mxu0 %v11041_v1  ;;  %v6159_v3 = vld [vmem:[#allocation28 + $0x1d8] sm:$0xff] }
0x23df   : > { %9448 = vmatprep.subr.bf16.mxu0 %v9447_v7  ;;  %v6161_v7 = vld [vmem:[#allocation28 + $0x1e8] sm:$0xff]  ;;  %v9535_v55 = vpack.c.bf16 %v6159_v3, %v6156_v28  ;;  %v6195_v28 = vld [vmem:[#allocation28 + $0x2f8] sm:$0xff] }
0x23e0   : > { %v6370_v3 = vld [vmem:[#allocation28 + $0x308] sm:$0xff] }
0x23e2   : > { %9450 = vmatpush1.bf16.msra.mxu0 %v9449_v9  ;;  %v6160_v9 = vld [vmem:[#allocation28 + $0x1e0] sm:$0xff] }
0x23e3   : > { %9452 = vmatprep.subr.bf16.mxu0 %v9451_v60  ;;  %v9507_v60 = vpack.c.bf16 %v6164_v61, %v6161_v7  ;;  %v6373_v7 = vld [vmem:[#allocation28 + $0x320] sm:$0xff] }
0x23e6   : > { %9454 = vmatpush1.bf16.msra.mxu0 %v9453_v10  ;;  %v6170_v10 = vld [vmem:[#allocation28 + $0x230] sm:$0xff] }
0x23e7   : > { %9456 = vmatprep.subr.bf16.mxu0 %v9455_v0  ;;  %v9509_v0 = vpack.c.bf16 %v6163_v2, %v6160_v9  ;;  %v9511_v12 = vpack.c.bf16 %v6170_v10, %v6167_v21  ;;  %v6372_v9 = vld [vmem:[#allocation28 + $0x318] sm:$0xff]  ;;  %v6374_v2 = vld [vmem:[#allocation28 + $0x328] sm:$0xff] }
0x23ea   : > { %9458 = vmatpush1.bf16.msra.mxu0 %v9457_v22  ;;  %v6168_v22 = vld [vmem:[#allocation28 + $0x220] sm:$0xff] }
0x23eb   : > { %9460 = vmatprep.subr.bf16.mxu0 %v9459_v38  ;;  %v6171_v38 = vld [vmem:[#allocation28 + $0x238] sm:$0xff] }
0x23ec   : > { %v9541_v18 = vpack.c.bf16 %v6171_v38, %v6168_v22  ;;  %v6380_v22 = vld [vmem:[#allocation28 + $0x358] sm:$0xff]  ;;  %v6382_v38 = vld [vmem:[#allocation28 + $0x368] sm:$0xff] }
0x23ee   : > { %9462 = vmatpush1.bf16.msra.mxu0 %v9461_v19  ;;  %v6172_v19 = vld [vmem:[#allocation28 + $0x240] sm:$0xff] }
0x23ef   : > { %9464 = vmatprep.subr.bf16.mxu0 %v9463_v20  ;;  %v9515_v20 = vpack.c.bf16 %v6176_v14, %v6173_v8  ;;  %v6385_v8 = vld [vmem:[#allocation28 + $0x380] sm:$0xff] }
0x23f2   : > { %9466 = vmatpush1.bf16.msra.mxu0 %v9465_v25  ;;  %v6182_v25 = vld [vmem:[#allocation28 + $0x290] sm:$0xff] }
0x23f3   : > { %9468 = vmatprep.subr.bf16.mxu0 %v9467_v13  ;;  %v9517_v13 = vpack.c.bf16 %v6175_v23, %v6172_v19  ;;  %v9519_v33 = vpack.c.bf16 %v6182_v25, %v6179_v49  ;;  %v9563_v19 = vpack.c.bf16 %v6385_v8, %v6382_v38  ;;  %v6383_v23 = vld [vmem:[#allocation28 + $0x370] sm:$0xff] }
0x23f4   : > { %v6391_v49 = vld [vmem:[#allocation28 + $0x3b0] sm:$0xff] }
0x23f6   : > { %9470 = vmatpush1.bf16.msra.mxu0 %v9469_v16  ;;  %v6180_v16 = vld [vmem:[#allocation28 + $0x280] sm:$0xff] }
0x23f7   : > { %9472 = vmatprep.subr.bf16.mxu0 %v9471_v34  ;;  %v6183_v34 = vld [vmem:[#allocation28 + $0x298] sm:$0xff] }
0x23f8   : > { %v9547_v62 = vpack.c.bf16 %v6183_v34, %v6180_v16  ;;  %v6392_v16 = vld [vmem:[#allocation28 + $0x3b8] sm:$0xff]  ;;  %v6394_v34 = vld [vmem:[#allocation28 + $0x3c8] sm:$0xff] }
0x23fa   : > { %9474 = vmatpush1.bf16.msra.mxu0 %v9473_v47  ;;  %v9521_v47 = vpack.c.bf16 %v6181_v51, %v6178_v48  ;;  %v9567_v48 = vpack.c.bf16 %v6391_v49, %v6388_v50  ;;  %v6389_v51 = vld [vmem:[#allocation28 + $0x3a0] sm:$0xff] }
0x23fb   : > { %9500 = vmatprep.subr.bf16.mxu0 %v9499_v46  ;;  %v9523_v46 = vpack.c.bf16 %v6188_v43, %v6185_v39  ;;  %v6397_v39 = vld [vmem:[#allocation28 + $0x3e0] sm:$0xff] }
0x23fc   : > { %v9571_v52 = vpack.c.bf16 %v6397_v39, %v6394_v34  ;;  %v6605_v34 = vld [vmem:[#allocation28 + $0x500] sm:$0xff] }
0x24b0   : > { %v12372_v6 = vpop.f32.mrb[44].mxu0 }
0x24b1   : > { %v8769_v45 = vpop.f32.mrb[45].mxu0  ;;  %6043 = vmatmul.mubr.f32.vlgmr.msra.gmra.mrb[46].mxu0 %v12372_v6  ;;  %8803 = vmatmul.mubr.f32.vlgmr.msra.gmra.mrb[46].mxu1 %v12372_v6 }
0x24b2   : > { %9502 = vmatpush1.bf16.msra.mxu0 %v9501_v15  ;;  %9533 = vmatpush3.bf16.msra.mxu1 %v9532_v30  ;;  %v9550_v15 = vpack.c.bf16 %v6189_v41, %v6186_v59  ;;  %v6190_v30 = vld [vmem:[#allocation28 + $0x2d0] sm:$0xff]  ;;  %v9553_v45 = vpack.c.bf16 %v6195_v28, %v6192_v57  ;;  %v6398_v59 = vld [vmem:[#allocation28 + $0x3e8] sm:$0xff]  ;;  %v6400_v41 = vld [vmem:[#allocation28 + $0x3f8] sm:$0xff] }
0x24b3   : > { %9504 = vmatprep.subr.bf16.mxu0 %v9503_v32  ;;  %9534 = vmatprep.subr.bf16.mxu1 %v11044_v5  ;;  %v6193_v32 = vld [vmem:[#allocation28 + $0x2e8] sm:$0xff]  ;;  %v6404_v57 = vld [vmem:[#allocation28 + $0x418] sm:$0xff] }
0x24b4   : > { %6263 = vmatprep.mubr.f32.mxu0 %v11041_v1  ;;  %8837 = vmatprep.mubr.msk.f32.mxu1 %vm11045_vm4, %v11041_v1  ;;  %v9529_v61 = vpack.c.bf16 %v6193_v32, %v6190_v30  ;;  %v9575_v30 = vpack.c.bf16 %v6403_v26, %v6400_v41  ;;  %v6401_v32 = vld [vmem:[#allocation28 + $0x400] sm:$0xff]  ;;  %v6406_v28 = vld [vmem:[#allocation28 + $0x428] sm:$0xff]  ;;  %v6611_v41 = vld [vmem:[#allocation28 + $0x530] sm:$0xff] }
0x24b6   : > { %9506 = vmatpush1.bf16.msra.mxu0 %v9505_v58  ;;  %9536 = vmatpush3.bf16.msra.mxu1 %v9535_v55  ;;  %v6369_v58 = vld [vmem:[#allocation28 + $0x300] sm:$0xff]  ;;  %v9555_v55 = vpack.c.bf16 %v6373_v7, %v6370_v3 }
0x24b7   : > { %9508 = vmatprep.subr.bf16.mxu0 %v9507_v60  ;;  %9537 = vmatprep.subr.bf16.mxu1 %v11044_v5  ;;  %v6371_v60 = vld [vmem:[#allocation28 + $0x310] sm:$0xff]  ;;  %v9557_v21 = vpack.c.bf16 %v6372_v9, %v6369_v58  ;;  %v6409_v3 = vld [vmem:[#allocation28 + $0x440] sm:$0xff] }
0x24b8   : > { %v9588_v10 = vpack.c.bf16 %v6374_v2, %v6371_v60  ;;  %v9579_v58 = vpack.c.bf16 %v6409_v3, %v6406_v28  ;;  %v6407_v9 = vld [vmem:[#allocation28 + $0x430] sm:$0xff]  ;;  %v6410_v60 = vld [vmem:[#allocation28 + $0x448] sm:$0xff]  ;;  %v6412_v2 = vld [vmem:[#allocation28 + $0x458] sm:$0xff] }
0x24b9   : > { %v6617_v28 = vld [vmem:[#allocation28 + $0x560] sm:$0xff] }
0x24ba   : > { %9510 = vmatpush1.bf16.msra.mxu0 %v9509_v0  ;;  %9539 = vmatpush3.bf16.msra.mxu1 %v9538_v11  ;;  %v6375_v0 = vld [vmem:[#allocation28 + $0x330] sm:$0xff]  ;;  %v6197_v11 = vrot.slane %v12372_v6, 1 }
0x24bb   : > { %9512 = vmatprep.subr.bf16.mxu0 %v9511_v12  ;;  %9540 = vmatprep.subr.bf16.mxu1 %v11044_v5  ;;  %v6378_v12 = vld [vmem:[#allocation28 + $0x348] sm:$0xff] }
0x24bc   : > { %v9561_v14 = vpack.c.bf16 %v6378_v12, %v6375_v0  ;;  %v9583_v0 = vpack.c.bf16 %v6415_v4, %v6412_v2  ;;  %v6416_v12 = vld [vmem:[#allocation28 + $0x478] sm:$0xff]  ;;  %v6623_v2 = vld [vmem:[#allocation28 + $0x590] sm:$0xff] }
0x24be   : > { %9514 = vmatpush1.bf16.msra.mxu0 %v9513_v17  ;;  %9542 = vmatpush3.bf16.msra.mxu1 %v9541_v18  ;;  %v9591_v17 = vpack.c.bf16 %v6380_v22, %v6377_v31  ;;  %v6381_v18 = vld [vmem:[#allocation28 + $0x360] sm:$0xff]  ;;  %v6590_v31 = vld [vmem:[#allocation28 + $0x488] sm:$0xff] }
0x24bf   : > { %9516 = vmatprep.subr.bf16.mxu0 %v9515_v20  ;;  %9543 = vmatprep.subr.bf16.mxu1 %v11044_v5  ;;  %v6384_v20 = vld [vmem:[#allocation28 + $0x378] sm:$0xff]  ;;  %v6593_v22 = vld [vmem:[#allocation28 + $0x4a0] sm:$0xff] }
0x24c0   : > { %v9565_v25 = vpack.c.bf16 %v6384_v20, %v6381_v18  ;;  %v6592_v18 = vld [vmem:[#allocation28 + $0x498] sm:$0xff]  ;;  %v6594_v20 = vld [vmem:[#allocation28 + $0x4a8] sm:$0xff] }
0x24c2   : > { %9518 = vmatpush1.bf16.msra.mxu0 %v9517_v13  ;;  %9545 = vmatpush3.bf16.msra.mxu1 %v9544_v29  ;;  %v9594_v13 = vpack.c.bf16 %v6386_v37, %v6383_v23  ;;  %v6387_v29 = vld [vmem:[#allocation28 + $0x390] sm:$0xff]  ;;  %v6596_v23 = vld [vmem:[#allocation28 + $0x4b8] sm:$0xff] }
0x24c3   : > { %9520 = vmatprep.subr.bf16.mxu0 %v9519_v33  ;;  %9546 = vmatprep.subr.bf16.mxu1 %v11044_v5  ;;  %v6390_v33 = vld [vmem:[#allocation28 + $0x3a8] sm:$0xff]  ;;  %v6599_v37 = vld [vmem:[#allocation28 + $0x4d0] sm:$0xff] }
0x24c4   : > { %v9569_v43 = vpack.c.bf16 %v6390_v33, %v6387_v29  ;;  %v9615_v29 = vpack.c.bf16 %v6599_v37, %v6596_v23  ;;  %v6597_v33 = vld [vmem:[#allocation28 + $0x4c0] sm:$0xff]  ;;  %v6635_v23 = vld [vmem:[#allocation28 + $0x5f0] sm:$0xff] }
0x24c6   : > { %9522 = vmatpush1.bf16.msra.mxu0 %v9521_v47  ;;  %9548 = vmatpush3.bf16.msra.mxu1 %v9547_v62  ;;  %v9597_v47 = vpack.c.bf16 %v6392_v16, %v6389_v51  ;;  %v6393_v62 = vld [vmem:[#allocation28 + $0x3c0] sm:$0xff]  ;;  %v6600_v51 = vld [vmem:[#allocation28 + $0x4d8] sm:$0xff]  ;;  %v6602_v16 = vld [vmem:[#allocation28 + $0x4e8] sm:$0xff] }
0x24c7   : > { %9524 = vmatprep.subr.bf16.mxu0 %v9523_v46  ;;  %9549 = vmatprep.subr.bf16.mxu1 %v11044_v5  ;;  %v6396_v46 = vld [vmem:[#allocation28 + $0x3d8] sm:$0xff] }
0x24c8   : > { %v9573_v53 = vpack.c.bf16 %v6396_v46, %v6393_v62  ;;  %v9619_v62 = vpack.c.bf16 %v6605_v34, %v6602_v16  ;;  %v6603_v46 = vld [vmem:[#allocation28 + $0x4f0] sm:$0xff] }
0x24ca   : > { %9526 = vmatpush1.bf16.msra.mxu0 %v9525_v56  ;;  %9551 = vmatpush3.bf16.msra.mxu1 %v9550_v15  ;;  %v9600_v56 = vpack.c.bf16 %v6398_v59, %v6395_v27  ;;  %v6399_v15 = vld [vmem:[#allocation28 + $0x3f0] sm:$0xff]  ;;  %v6606_v27 = vld [vmem:[#allocation28 + $0x508] sm:$0xff]  ;;  %v6608_v59 = vld [vmem:[#allocation28 + $0x518] sm:$0xff] }
0x24cb   : > { %9528 = vmatprep.subr.bf16.mxu0 %v9527_v63  ;;  %9552 = vmatprep.subr.bf16.mxu1 %v11044_v5  ;;  %v6402_v63 = vld [vmem:[#allocation28 + $0x408] sm:$0xff] }
0x24cc   : > { %v9577_v7 = vpack.c.bf16 %v6402_v63, %v6399_v15  ;;  %v9623_v15 = vpack.c.bf16 %v6611_v41, %v6608_v59  ;;  %v6609_v63 = vld [vmem:[#allocation28 + $0x520] sm:$0xff]  ;;  %v6814_v41 = vld [vmem:[#allocation31 + $0x30] sm:$0xff] }
0x24ce   : > { %9530 = vmatpush1.bf16.msra.mxu0 %v9529_v61  ;;  %9554 = vmatpush3.bf16.msra.mxu1 %v9553_v45  ;;  %v9603_v61 = vpack.c.bf16 %v6404_v57, %v6401_v32  ;;  %v6405_v45 = vld [vmem:[#allocation28 + $0x420] sm:$0xff]  ;;  %v6612_v32 = vld [vmem:[#allocation28 + $0x538] sm:$0xff]  ;;  %v6614_v57 = vld [vmem:[#allocation28 + $0x548] sm:$0xff] }
0x24cf   : > { %9556 = vmatprep.subr.bf16.mxu0 %v9555_v55  ;;  %9587 = vmatprep.subr.bf16.mxu1 %v11044_v5  ;;  %v6408_v55 = vld [vmem:[#allocation28 + $0x438] sm:$0xff] }
0x24d0   : > { %v9581_v24 = vpack.c.bf16 %v6408_v55, %v6405_v45  ;;  %v9627_v45 = vpack.c.bf16 %v6617_v28, %v6614_v57  ;;  %v6615_v55 = vld [vmem:[#allocation28 + $0x550] sm:$0xff]  ;;  %v6824_v57 = vld [vmem:[#allocation31 + $0x80] sm:$0xff] }
0x24d1   : > { %6264 = vmatmul.mubr.f32.vlgmr.msra.gmra.mrb[48].mxu0 %v6197_v11  ;;  %8838 = vmatmul.mubr.f32.vlgmr.msra.gmra.mrb[48].mxu1 %v6197_v11  ;;  %v6414_v11 = vld [vmem:[#allocation28 + $0x468] sm:$0xff] }
0x24d2   : > { %9558 = vmatpush1.bf16.msra.mxu0 %v9557_v21  ;;  %9589 = vmatpush3.bf16.msra.mxu1 %v9588_v10  ;;  %v9606_v21 = vpack.c.bf16 %v6410_v60, %v6407_v9  ;;  %v6411_v10 = vld [vmem:[#allocation28 + $0x450] sm:$0xff]  ;;  %v6618_v9 = vld [vmem:[#allocation28 + $0x568] sm:$0xff]  ;;  %v6620_v60 = vld [vmem:[#allocation28 + $0x578] sm:$0xff] }
0x24d3   : > { %9560 = vmatprep.subr.bf16.mxu0 %v9559_v44  ;;  %9590 = vmatprep.subr.bf16.mxu1 %v11044_v5  ;;  %v6413_v44 = vld [vmem:[#allocation28 + $0x460] sm:$0xff]  ;;  %v9585_v38 = vpack.c.bf16 %v6414_v11, %v6411_v10  ;;  %v9631_v10 = vpack.c.bf16 %v6623_v2, %v6620_v60  ;;  %v6826_v2 = vld [vmem:[#allocation31 + $0x90] sm:$0xff] }
0x24d4   : > { %6483 = vmatprep.mubr.f32.mxu0 %v11041_v1  ;;  %8872 = vmatprep.mubr.msk.f32.mxu1 %vm11045_vm4, %v11041_v1  ;;  %v9609_v8 = vpack.c.bf16 %v6416_v12, %v6413_v44  ;;  %v6621_v11 = vld [vmem:[#allocation28 + $0x580] sm:$0xff]  ;;  %v6624_v44 = vld [vmem:[#allocation28 + $0x598] sm:$0xff]  ;;  %v6626_v12 = vld [vmem:[#allocation28 + $0x5a8] sm:$0xff] }
0x24d6   : > { %9562 = vmatpush1.bf16.msra.mxu0 %v9561_v14  ;;  %9592 = vmatpush3.bf16.msra.mxu1 %v9591_v17  ;;  %v6589_v14 = vld [vmem:[#allocation28 + $0x480] sm:$0xff]  ;;  %v9611_v17 = vpack.c.bf16 %v6593_v22, %v6590_v31 }
0x24d7   : > { %9564 = vmatprep.subr.bf16.mxu0 %v9563_v19  ;;  %9593 = vmatprep.subr.bf16.mxu1 %v11044_v5  ;;  %v6591_v19 = vld [vmem:[#allocation28 + $0x490] sm:$0xff]  ;;  %v9613_v50 = vpack.c.bf16 %v6592_v18, %v6589_v14  ;;  %v6629_v31 = vld [vmem:[#allocation28 + $0x5c0] sm:$0xff] }
0x24d8   : > { %v9644_v49 = vpack.c.bf16 %v6594_v20, %v6591_v19  ;;  %v9635_v14 = vpack.c.bf16 %v6629_v31, %v6626_v12  ;;  %v6627_v18 = vld [vmem:[#allocation28 + $0x5b0] sm:$0xff]  ;;  %v6630_v19 = vld [vmem:[#allocation28 + $0x5c8] sm:$0xff]  ;;  %v6632_v20 = vld [vmem:[#allocation28 + $0x5d8] sm:$0xff] }
0x24d9   : > { %v6832_v31 = vld [vmem:[#allocation31 + $0xc0] sm:$0xff] }
0x24da   : > { %9566 = vmatpush1.bf16.msra.mxu0 %v9565_v25  ;;  %9595 = vmatpush3.bf16.msra.mxu1 %v9594_v13  ;;  %v6595_v25 = vld [vmem:[#allocation28 + $0x4b0] sm:$0xff]  ;;  %v6417_v13 = vrot.slane %v12372_v6, 2 }
0x24db   : > { %9568 = vmatprep.subr.bf16.mxu0 %v9567_v48  ;;  %9596 = vmatprep.subr.bf16.mxu1 %v11044_v5  ;;  %v6598_v48 = vld [vmem:[#allocation28 + $0x4c8] sm:$0xff] }
0x24dc   : > { %v9617_v39 = vpack.c.bf16 %v6598_v48, %v6595_v25  ;;  %v9639_v25 = vpack.c.bf16 %v6635_v23, %v6632_v20  ;;  %v6636_v48 = vld [vmem:[#allocation28 + $0x5f8] sm:$0xff]  ;;  %v6838_v23 = vld [vmem:[#allocation31 + $0xf0] sm:$0xff] }
0x24de   : > { %9570 = vmatpush1.bf16.msra.mxu0 %v9569_v43  ;;  %9598 = vmatpush3.bf16.msra.mxu1 %v9597_v47  ;;  %v9647_v43 = vpack.c.bf16 %v6600_v51, %v6597_v33  ;;  %v6601_v47 = vld [vmem:[#allocation28 + $0x4e0] sm:$0xff]  ;;  %v6809_v33 = vld [vmem:[#allocation31 + $0x8] sm:$0xff] }
0x24df   : > { %9572 = vmatprep.subr.bf16.mxu0 %v9571_v52  ;;  %9599 = vmatprep.subr.bf16.mxu1 %v11044_v5  ;;  %v6604_v52 = vld [vmem:[#allocation28 + $0x4f8] sm:$0xff]  ;;  %v6812_v51 = vld [vmem:[#allocation31 + $0x20] sm:$0xff] }
0x24e0   : > { %v9621_v26 = vpack.c.bf16 %v6604_v52, %v6601_v47  ;;  %v6811_v47 = vld [vmem:[#allocation31 + $0x18] sm:$0xff]  ;;  %v6813_v52 = vld [vmem:[#allocation31 + $0x28] sm:$0xff] }
0x24e2   : > { %9574 = vmatpush1.bf16.msra.mxu0 %v9573_v53  ;;  %9601 = vmatpush3.bf16.msra.mxu1 %v9600_v56  ;;  %v9650_v53 = vpack.c.bf16 %v6606_v27, %v6603_v46  ;;  %v6607_v56 = vld [vmem:[#allocation28 + $0x510] sm:$0xff]  ;;  %v6815_v46 = vld [vmem:[#allocation31 + $0x38] sm:$0xff] }
0x24e3   : > { %9576 = vmatprep.subr.bf16.mxu0 %v9575_v30  ;;  %9602 = vmatprep.subr.bf16.mxu1 %v11044_v5  ;;  %v6610_v30 = vld [vmem:[#allocation28 + $0x528] sm:$0xff]  ;;  %v6818_v27 = vld [vmem:[#allocation31 + $0x50] sm:$0xff] }
0x24e4   : > { %v9625_v3 = vpack.c.bf16 %v6610_v30, %v6607_v56  ;;  %v9671_v56 = vpack.c.bf16 %v6818_v27, %v6815_v46  ;;  %v6816_v30 = vld [vmem:[#allocation31 + $0x40] sm:$0xff]  ;;  %v6850_v27 = vld [vmem:[#allocation31 + $0x150] sm:$0xff] }
0x24e6   : > { %9578 = vmatpush1.bf16.msra.mxu0 %v9577_v7  ;;  %9604 = vmatpush3.bf16.msra.mxu1 %v9603_v61  ;;  %v9653_v7 = vpack.c.bf16 %v6612_v32, %v6609_v63  ;;  %v6613_v61 = vld [vmem:[#allocation28 + $0x540] sm:$0xff]  ;;  %v6819_v63 = vld [vmem:[#allocation31 + $0x58] sm:$0xff]  ;;  %v6821_v32 = vld [vmem:[#allocation31 + $0x68] sm:$0xff] }
0x24e7   : > { %9580 = vmatprep.subr.bf16.mxu0 %v9579_v58  ;;  %9605 = vmatprep.subr.bf16.mxu1 %v11044_v5  ;;  %v6616_v58 = vld [vmem:[#allocation28 + $0x558] sm:$0xff] }
0x24e8   : > { %v9629_v4 = vpack.c.bf16 %v6616_v58, %v6613_v61  ;;  %v9675_v61 = vpack.c.bf16 %v6824_v57, %v6821_v32  ;;  %v6825_v58 = vld [vmem:[#allocation31 + $0x88] sm:$0xff]  ;;  %v11049_v32 = vmov 1966171168  }
0x24e9   : > { %v6124_v57 = vunpack.c.l.s4 %v11049_v32 }
0x24ea   : > { %9582 = vmatpush1.bf16.msra.mxu0 %v9581_v24  ;;  %9607 = vmatpush3.bf16.msra.mxu1 %v9606_v21  ;;  %v9656_v24 = vpack.c.bf16 %v6618_v9, %v6615_v55  ;;  %v6619_v21 = vld [vmem:[#allocation28 + $0x570] sm:$0xff]  ;;  %v6827_v55 = vld [vmem:[#allocation31 + $0x98] sm:$0xff] }
0x24eb   : > { %9584 = vmatprep.subr.bf16.mxu0 %v9583_v0  ;;  %9608 = vmatprep.subr.bf16.mxu1 %v11044_v5  ;;  %v6622_v0 = vld [vmem:[#allocation28 + $0x588] sm:$0xff]  ;;  %v6830_v9 = vld [vmem:[#allocation31 + $0xb0] sm:$0xff] }
0x24ec   : > { %v9633_v22 = vpack.c.bf16 %v6622_v0, %v6619_v21  ;;  %v6829_v21 = vld [vmem:[#allocation31 + $0xa8] sm:$0xff]  ;;  %v6831_v0 = vld [vmem:[#allocation31 + $0xb8] sm:$0xff] }
0x24ed   : > { %v9681_v12 = vpack.c.bf16 %v6829_v21, %v6826_v2  ;;  %v7041_v2 = vld [vmem:[#allocation30 + $0x8] sm:$0xff]  ;;  %v7040_v21 = vld [vmem:[#allocation30] sm:$0xff] }
0x24ee   : > { %9586 = vmatpush1.bf16.msra.mxu0 %v9585_v38  ;;  %9610 = vmatpush3.bf16.msra.mxu1 %v9609_v8  ;;  %v9659_v38 = vpack.c.bf16 %v6624_v44, %v6621_v11  ;;  %v6625_v8 = vld [vmem:[#allocation28 + $0x5a0] sm:$0xff]  ;;  %v6833_v11 = vld [vmem:[#allocation31 + $0xc8] sm:$0xff] }
0x24ef   : > { %9612 = vmatprep.subr.bf16.mxu0 %v9611_v17  ;;  %9643 = vmatprep.subr.bf16.mxu1 %v11044_v5  ;;  %v6628_v17 = vld [vmem:[#allocation28 + $0x5b8] sm:$0xff]  ;;  %v6836_v44 = vld [vmem:[#allocation31 + $0xe0] sm:$0xff] }
0x24f0   : > { %v9637_v37 = vpack.c.bf16 %v6628_v17, %v6625_v8  ;;  %v6835_v8 = vld [vmem:[#allocation31 + $0xd8] sm:$0xff]  ;;  %v6837_v17 = vld [vmem:[#allocation31 + $0xe8] sm:$0xff] }
0x24f1   : > { %6484 = vmatmul.mubr.f32.vlgmr.msra.gmra.mrb[50].mxu0 %v6417_v13  ;;  %8873 = vmatmul.mubr.f32.vlgmr.msra.gmra.mrb[50].mxu1 %v6417_v13  ;;  %v6634_v13 = vld [vmem:[#allocation28 + $0x5e8] sm:$0xff]  ;;  %v9685_v20 = vpack.c.bf16 %v6835_v8, %v6832_v31  ;;  %v7050_v31 = vld [vmem:[#allocation30 + $0x50] sm:$0xff] }
0x24f2   : > { %9614 = vmatpush1.bf16.msra.mxu0 %v9613_v50  ;;  %9645 = vmatpush3.bf16.msra.mxu1 %v9644_v49  ;;  %v9662_v50 = vpack.c.bf16 %v6630_v19, %v6627_v18  ;;  %v6631_v49 = vld [vmem:[#allocation28 + $0x5d0] sm:$0xff]  ;;  %v6839_v18 = vld [vmem:[#allocation31 + $0xf8] sm:$0xff]  ;;  %v7049_v8 = vld [vmem:[#allocation30 + $0x48] sm:$0xff] }
0x24f3   : > { %9616 = vmatprep.subr.bf16.mxu0 %v9615_v29  ;;  %9646 = vmatprep.subr.bf16.mxu1 %v11044_v5  ;;  %v6633_v29 = vld [vmem:[#allocation28 + $0x5e0] sm:$0xff]  ;;  %v9641_v16 = vpack.c.bf16 %v6634_v13, %v6631_v49  ;;  %v6842_v19 = vld [vmem:[#allocation31 + $0x110] sm:$0xff]  ;;  %v6841_v49 = vld [vmem:[#allocation31 + $0x108] sm:$0xff] }
0x24f4   : > { %6703 = vmatprep.mubr.f32.mxu0 %v11041_v1  ;;  %8907 = vmatprep.mubr.msk.f32.mxu1 %vm11045_vm4, %v11041_v1  ;;  %v9665_v34 = vpack.c.bf16 %v6636_v48, %v6633_v29  ;;  %v6843_v13 = vld [vmem:[#allocation31 + $0x118] sm:$0xff]  ;;  %v6845_v29 = vld [vmem:[#allocation31 + $0x128] sm:$0xff]  ;;  %v6848_v48 = vld [vmem:[#allocation31 + $0x140] sm:$0xff] }
0x24f6   : > { %9618 = vmatpush1.bf16.msra.mxu0 %v9617_v39  ;;  %9648 = vmatpush3.bf16.msra.mxu1 %v9647_v43  ;;  %v6808_v39 = vld [vmem:[#allocation31] sm:$0xff]  ;;  %v9667_v43 = vpack.c.bf16 %v6812_v51, %v6809_v33  ;;  %v9689_v33 = vpack.c.bf16 %v6841_v49, %v6838_v23 }
0x24f7   : > { %9620 = vmatprep.subr.bf16.mxu0 %v9619_v62  ;;  %9649 = vmatprep.subr.bf16.mxu1 %v11044_v5  ;;  %v6810_v62 = vld [vmem:[#allocation31 + $0x10] sm:$0xff]  ;;  %v9669_v59 = vpack.c.bf16 %v6811_v47, %v6808_v39  ;;  %v6844_v51 = vld [vmem:[#allocation31 + $0x120] sm:$0xff]  ;;  %v6847_v39 = vld [vmem:[#allocation31 + $0x138] sm:$0xff] }
0x24f8   : > { %v6849_v47 = vld [vmem:[#allocation31 + $0x148] sm:$0xff]  ;;  %v9693_v46 = vpack.c.bf16 %v6847_v39, %v6844_v51  ;;  %v7056_v23 = vld [vmem:[#allocation30 + $0x80] sm:$0xff]  ;;  %v7062_v51 = vld [vmem:[#allocation30 + $0xb0] sm:$0xff] }
0x24f9   : > { %v7061_v39 = vld [vmem:[#allocation30 + $0xa8] sm:$0xff] }
0x24fa   : > { %9622 = vmatpush1.bf16.msra.mxu0 %v9621_v26  ;;  %9651 = vmatpush3.bf16.msra.mxu1 %v9650_v53  ;;  %v9700_v26 = vpack.c.bf16 %v6813_v52, %v6810_v62  ;;  %v6637_v53 = vrot.slane %v12372_v6, 3  ;;  %v6822_v6 = vld [vmem:[#allocation31 + $0x70] sm:$0xff]  ;;  %v6851_v62 = vld [vmem:[#allocation31 + $0x158] sm:$0xff] }
0x24fb   : > { %9624 = vmatprep.subr.bf16.mxu0 %v9623_v15  ;;  %9652 = vmatprep.subr.bf16.mxu1 %v11044_v5  ;;  %v6817_v15 = vld [vmem:[#allocation31 + $0x48] sm:$0xff]  ;;  %v6854_v52 = vld [vmem:[#allocation31 + $0x170] sm:$0xff] }
0x24fc   : > { %v9673_v28 = vpack.c.bf16 %v6817_v15, %v6814_v41  ;;  %v9695_v41 = vpack.c.bf16 %v6854_v52, %v6851_v62  ;;  %v7063_v62 = vld [vmem:[#allocation30 + $0xb8] sm:$0xff] }
0x24fe   : > { %9626 = vmatpush1.bf16.msra.mxu0 %v9625_v3  ;;  %9654 = vmatpush3.bf16.msra.mxu1 %v9653_v7  ;;  %v6820_v3 = vld [vmem:[#allocation31 + $0x60] sm:$0xff]  ;;  %v9703_v7 = vpack.c.bf16 %v6819_v63, %v6816_v30 }
0x24ff   : > { %9628 = vmatprep.subr.bf16.mxu0 %v9627_v45  ;;  %9655 = vmatprep.subr.bf16.mxu1 %v11044_v5  ;;  %v6823_v45 = vld [vmem:[#allocation31 + $0x78] sm:$0xff]  ;;  %v12427_v63 = vld [vmem:[%s1496_s6] sm:$0x3] }
0x2500   : > { %v9677_v60 = vpack.c.bf16 %v6823_v45, %v6820_v3 }
0x2502   : > { %9630 = vmatpush1.bf16.msra.mxu0 %v9629_v4  ;;  %9657 = vmatpush3.bf16.msra.mxu1 %v9656_v24  ;;  %v9706_v4 = vpack.c.bf16 %v6825_v58, %v6822_v6  ;;  %v9679_v24 = vpack.c.bf16 %v6830_v9, %v6827_v55 }
0x2503   : > { %9632 = vmatprep.subr.bf16.mxu0 %v9631_v10  ;;  %9658 = vmatprep.subr.bf16.mxu1 %v11044_v5  ;;  %v6828_v10 = vld [vmem:[#allocation31 + $0xa0] sm:$0xff] }
0x2506   : > { %9634 = vmatpush1.bf16.msra.mxu0 %v9633_v22  ;;  %9660 = vmatpush3.bf16.msra.mxu1 %v9659_v38  ;;  %v9709_v22 = vpack.c.bf16 %v6831_v0, %v6828_v10  ;;  %v9683_v38 = vpack.c.bf16 %v6836_v44, %v6833_v11  ;;  %v7043_v10 = vld [vmem:[#allocation30 + $0x18] sm:$0xff]  ;;  %v7042_v11 = vld [vmem:[#allocation30 + $0x10] sm:$0xff]  ;;  %v7045_v44 = vld [vmem:[#allocation30 + $0x28] sm:$0xff] }
0x2507   : > { %9636 = vmatprep.subr.bf16.mxu0 %v9635_v14  ;;  %9661 = vmatprep.subr.bf16.mxu1 %v11044_v5  ;;  %v6834_v14 = vld [vmem:[#allocation31 + $0xd0] sm:$0xff]  ;;  %v9725_v0 = vpack.c.bf16 %v7043_v10, %v7040_v21  ;;  %v7073_v21 = vld [vmem:[#allocation30 + $0x108] sm:$0xff]  ;;  %v7072_v10 = vld [vmem:[#allocation30 + $0x100] sm:$0xff] }
0x250a   : > { %9638 = vmatpush1.bf16.msra.mxu0 %v9637_v37  ;;  %9663 = vmatpush3.bf16.msra.mxu1 %v9662_v50  ;;  %v9712_v37 = vpack.c.bf16 %v6837_v17, %v6834_v14  ;;  %v9687_v50 = vpack.c.bf16 %v6842_v19, %v6839_v18  ;;  %v7048_v17 = vld [vmem:[#allocation30 + $0x40] sm:$0xff]  ;;  %v7051_v18 = vld [vmem:[#allocation30 + $0x58] sm:$0xff]  ;;  %v7053_v19 = vld [vmem:[#allocation30 + $0x68] sm:$0xff] }
0x250b   : > { %9640 = vmatprep.subr.bf16.mxu0 %v9639_v25  ;;  %9664 = vmatprep.subr.bf16.mxu1 %v11044_v5  ;;  %v6840_v25 = vld [vmem:[#allocation31 + $0x100] sm:$0xff]  ;;  %v9731_v49 = vpack.c.bf16 %v7056_v23, %v7053_v19  ;;  %v7083_v19 = vld [vmem:[#allocation30 + $0x158] sm:$0xff] }
0x250e   : > { %9642 = vmatpush1.bf16.msra.mxu0 %v9641_v16  ;;  %9666 = vmatpush3.bf16.msra.mxu1 %v9665_v34  ;;  %v9715_v16 = vpack.c.bf16 %v6843_v13, %v6840_v25  ;;  %v9691_v34 = vpack.c.bf16 %v6848_v48, %v6845_v29  ;;  %v7054_v13 = vld [vmem:[#allocation30 + $0x70] sm:$0xff]  ;;  %v7057_v29 = vld [vmem:[#allocation30 + $0x88] sm:$0xff] }
0x250f   : > { %9668 = vmatprep.subr.bf16.mxu0 %v9667_v43  ;;  %9699 = vmatprep.subr.bf16.mxu1 %v11044_v5  ;;  %v6846_v43 = vld [vmem:[#allocation31 + $0x130] sm:$0xff]  ;;  %v9762_v48 = vpack.c.bf16 %v7057_v29, %v7054_v13  ;;  %v7084_v13 = vld [vmem:[#allocation30 + $0x160] sm:$0xff]  ;;  %v7087_v29 = vld [vmem:[#allocation30 + $0x178] sm:$0xff] }
0x2511   : > { %6704 = vmatmul.mubr.f32.vlgmr.msra.gmra.mrb[52].mxu0 %v6637_v53  ;;  %8908 = vmatmul.mubr.f32.vlgmr.msra.gmra.mrb[52].mxu1 %v6637_v53  ;;  %v6852_v53 = vld [vmem:[#allocation31 + $0x160] sm:$0xff] }
0x2512   : > { %9670 = vmatpush1.bf16.msra.mxu0 %v9669_v59  ;;  %9701 = vmatpush3.bf16.msra.mxu1 %v9700_v26  ;;  %v9718_v59 = vpack.c.bf16 %v6849_v47, %v6846_v43  ;;  %v6853_v26 = vld [vmem:[#allocation31 + $0x168] sm:$0xff]  ;;  %v7060_v47 = vld [vmem:[#allocation30 + $0xa0] sm:$0xff] }
0x2513   : > { %9672 = vmatprep.subr.bf16.mxu0 %v9671_v56  ;;  %6937 = vmatprep.mubr.f32.mxu0 %v11041_v1  ;;  %v6855_v56 = vld [vmem:[#allocation31 + $0x178] sm:$0xff]  ;;  %v9697_v15 = vpack.c.bf16 %v6853_v26, %v6850_v27  ;;  %v9765_v52 = vpack.c.bf16 %v7063_v62, %v7060_v47  ;;  %v7068_v27 = vld [vmem:[#allocation30 + $0xe0] sm:$0xff] }
0x2514   : > { %9702 = vmatprep.subr.bf16.mxu1 %v11044_v5  ;;  %8942 = vmatprep.mubr.msk.f32.mxu1 %vm11045_vm4, %v11041_v1  ;;  %v9721_v30 = vpack.c.bf16 %v6855_v56, %v6852_v53  ;;  %v7064_v53 = vld [vmem:[#allocation30 + $0xc0] sm:$0xff]  ;;  %v7067_v56 = vld [vmem:[#allocation30 + $0xd8] sm:$0xff] }
0x2515   : > { %v9741_v32 = vpack.c.bf16 %v7067_v56, %v7064_v53 }
0x2516   : > { %9674 = vmatpush1.bf16.msra.mxu0 %v9673_v28  ;;  %9704 = vmatpush3.bf16.msra.mxu1 %v9703_v7  ;;  %v6125_v28 = vunpack.c.0.s8 %v6124_v57  ;;  %v7066_v57 = vld [vmem:[#allocation30 + $0xd0] sm:$0xff] }
0x2517   : > { %9676 = vmatprep.subr.bf16.mxu0 %v9675_v61  ;;  %9705 = vmatprep.subr.bf16.mxu1 %v11044_v5 }
0x2518   : > { %v12436_v61 = vsub.s32 %v6125_v28, %v11823_v35  ;;  %v9756_v35 = vpack.c.bf16 %v7045_v44, %v7042_v11  ;;  %v7069_v28 = vld [vmem:[#allocation30 + $0xe8] sm:$0xff] }
0x251a   : > { %9678 = vmatpush1.bf16.msra.mxu0 %v9677_v60  ;;  %9707 = vmatpush3.bf16.msra.mxu1 %v9706_v4  ;;  %v7044_v4 = vld [vmem:[#allocation30 + $0x20] sm:$0xff] }
0x251b   : > { %9680 = vmatprep.subr.bf16.mxu0 %v9679_v24  ;;  %9708 = vmatprep.subr.bf16.mxu1 %v11044_v5  ;;  %v9723_v24 = vpack.c.bf16 %v7044_v4, %v7041_v2 }
0x251e   : > { %9682 = vmatpush1.bf16.msra.mxu0 %v9681_v12  ;;  %9710 = vmatpush3.bf16.msra.mxu1 %v9709_v22  ;;  %v7047_v12 = vld [vmem:[#allocation30 + $0x38] sm:$0xff] }
0x251f   : > { %9684 = vmatprep.subr.bf16.mxu0 %v9683_v38  ;;  %9711 = vmatprep.subr.bf16.mxu1 %v11044_v5  ;;  %v9727_v22 = vpack.c.bf16 %v7050_v31, %v7047_v12  ;;  %v7046_v38 = vld [vmem:[#allocation30 + $0x30] sm:$0xff]  ;;  %v7080_v12 = vld [vmem:[#allocation30 + $0x140] sm:$0xff] }
0x2520   : > { %v9729_v14 = vpack.c.bf16 %v7049_v8, %v7046_v38  ;;  %v7079_v38 = vld [vmem:[#allocation30 + $0x138] sm:$0xff]  ;;  %v7078_v8 = vld [vmem:[#allocation30 + $0x130] sm:$0xff] }
0x2522   : > { %9686 = vmatpush1.bf16.msra.mxu0 %v9685_v20  ;;  %9713 = vmatpush3.bf16.msra.mxu1 %v9712_v37  ;;  %v9759_v20 = vpack.c.bf16 %v7051_v18, %v7048_v17  ;;  %v7052_v37 = vld [vmem:[#allocation30 + $0x60] sm:$0xff] }
0x2523   : > { %9688 = vmatprep.subr.bf16.mxu0 %v9687_v50  ;;  %9714 = vmatprep.subr.bf16.mxu1 %v11044_v5  ;;  %v7055_v50 = vld [vmem:[#allocation30 + $0x78] sm:$0xff] }
0x2524   : > { %v9733_v25 = vpack.c.bf16 %v7055_v50, %v7052_v37 }
0x2526   : > { %9690 = vmatpush1.bf16.msra.mxu0 %v9689_v33  ;;  %9716 = vmatpush3.bf16.msra.mxu1 %v9715_v16  ;;  %v7059_v33 = vld [vmem:[#allocation30 + $0x98] sm:$0xff] }
0x2527   : > { %9692 = vmatprep.subr.bf16.mxu0 %v9691_v34  ;;  %9717 = vmatprep.subr.bf16.mxu1 %v11044_v5  ;;  %v9735_v16 = vpack.c.bf16 %v7062_v51, %v7059_v33  ;;  %v7058_v34 = vld [vmem:[#allocation30 + $0x90] sm:$0xff]  ;;  %v7252_v33 = vld [vmem:[#allocation31 + $0x1a0] sm:$0xff] }
0x2528   : > { %v9737_v43 = vpack.c.bf16 %v7061_v39, %v7058_v34  ;;  %v9777_v34 = vpack.c.bf16 %v7087_v29, %v7084_v13  ;;  %v7250_v13 = vld [vmem:[#allocation31 + $0x190] sm:$0xff]  ;;  %v7253_v29 = vld [vmem:[#allocation31 + $0x1a8] sm:$0xff] }
0x252a   : > { %9694 = vmatpush1.bf16.msra.mxu0 %v9693_v46  ;;  %9719 = vmatpush3.bf16.msra.mxu1 %v9718_v59  ;;  %v7065_v46 = vld [vmem:[#allocation30 + $0xc8] sm:$0xff] }
0x252b   : > { %9696 = vmatprep.subr.bf16.mxu0 %v9695_v41  ;;  %9720 = vmatprep.subr.bf16.mxu1 %v11044_v5  ;;  %v9739_v26 = vpack.c.bf16 %v7068_v27, %v7065_v46 }
0x252e   : > { %9698 = vmatpush1.bf16.msra.mxu0 %v9697_v15  ;;  %9722 = vmatpush3.bf16.msra.mxu1 %v9721_v30 }
0x252f   : > { %9755 = vmatprep.subr.bf16.mxu1 %v11044_v5  ;;  %9724 = vmatprep.subr.bf16.mxu0 %v9723_v24 }
0x2531   : > { %6938 = vmatmul.mubr.f32.vlgmr.msra.gmra.mrb[54].mxu0 %v12427_v63  ;;  %8943 = vmatmul.mubr.f32.vlgmr.msra.gmra.mrb[54].mxu1 %v12427_v63 }
0x2532   : > { %7170 = vmatprep.mubr.f32.mxu0 %v11041_v1  ;;  %8977 = vmatprep.mubr.msk.f32.mxu1 %vm11045_vm4, %v11041_v1 }
0x2533   : > { %9726 = vmatpush1.bf16.msra.mxu0 %v9725_v0  ;;  %9757 = vmatpush3.bf16.msra.mxu1 %v9756_v35  ;;  %v7075_v0 = vld [vmem:[#allocation30 + $0x118] sm:$0xff]  ;;  %v7077_v35 = vld [vmem:[#allocation30 + $0x128] sm:$0xff] }
0x2534   : > { %9758 = vmatprep.subr.bf16.mxu1 %v11044_v5  ;;  %9728 = vmatprep.subr.bf16.mxu0 %v9727_v22  ;;  %v9771_v44 = vpack.c.bf16 %v7075_v0, %v7072_v10  ;;  %v9747_v22 = vpack.c.bf16 %v7080_v12, %v7077_v35 }
0x2537   : > { %9730 = vmatpush1.bf16.msra.mxu0 %v9729_v14  ;;  %9760 = vmatpush3.bf16.msra.mxu1 %v9759_v20  ;;  %v7081_v14 = vld [vmem:[#allocation30 + $0x148] sm:$0xff]  ;;  %v7086_v20 = vld [vmem:[#allocation30 + $0x170] sm:$0xff] }
0x2538   : > { %9732 = vmatprep.subr.bf16.mxu0 %v9731_v49  ;;  %9761 = vmatprep.subr.bf16.mxu1 %v11044_v5  ;;  %v9774_v37 = vpack.c.bf16 %v7081_v14, %v7078_v8  ;;  %v9751_v50 = vpack.c.bf16 %v7086_v20, %v7083_v19  ;;  %v7082_v49 = vld [vmem:[#allocation30 + $0x150] sm:$0xff] }
0x253b   : > { %9734 = vmatpush1.bf16.msra.mxu0 %v9733_v25  ;;  %9763 = vmatpush3.bf16.msra.mxu1 %v9762_v48  ;;  %v7085_v25 = vld [vmem:[#allocation30 + $0x168] sm:$0xff] }
0x253c   : > { %9764 = vmatprep.subr.bf16.mxu1 %v11044_v5  ;;  %9736 = vmatprep.subr.bf16.mxu0 %v9735_v16  ;;  %v7249_v48 = vld [vmem:[#allocation31 + $0x188] sm:$0xff]  ;;  %v9753_v16 = vpack.c.bf16 %v7085_v25, %v7082_v49  ;;  %v7251_v25 = vld [vmem:[#allocation31 + $0x198] sm:$0xff] }
0x253d   : > { %v9779_v39 = vpack.c.bf16 %v7252_v33, %v7249_v48  ;;  %v7255_v33 = vld [vmem:[#allocation31 + $0x1b8] sm:$0xff] }
0x253f   : > { %9738 = vmatpush1.bf16.msra.mxu0 %v9737_v43  ;;  %9766 = vmatpush3.bf16.msra.mxu1 %v9765_v52 }
0x2540   : > { %9767 = vmatprep.subr.bf16.mxu1 %v11044_v5  ;;  %9740 = vmatprep.subr.bf16.mxu0 %v9739_v26 }
0x2543   : > { %9742 = vmatpush1.bf16.msra.mxu0 %v9741_v32 }
0x2584   : > { %v6044_v3 = vpop.f32.mrb[46].mxu0  ;;  %v6115_v7 = vpop.f32.mrb[46].mxu1 }
0x2585   : > { %v6046_v45 = vpop.f32.mrb[47].mxu0  ;;  %v8804_v6 = vpop.f32.mrb[47].mxu1  ;;  %v6136_v55 = vrot.slane %v6115_v7, %v12436_v61 }
0x2586   : > { %v6122_v58 = vcombine.low %v6044_v3, %v6046_v45  ;;  %v5929_v3 = vld [vmem:[%s12638_s18] sm:$0x7]  ;;  %v9768_v45 = vpack.c.bf16 %v7069_v28, %v7066_v57 }
0x2588   : > { %v6129_v9 = vrot.slane %v6122_v58, %v12436_v61  ;;  %v7071_v58 = vld [vmem:[#allocation30 + $0xf8] sm:$0xff]  ;;  %9769 = vmatpush3.bf16.msra.mxu1 %v9768_v45 }
0x2589   : > { %9770 = vmatprep.subr.bf16.mxu1 %v11044_v5 }
0x258a   : > { %v12440_v60 = vcombine.low %v6129_v9, %v6136_v55  ;;  %v7074_v55 = vld [vmem:[#allocation30 + $0x110] sm:$0xff] }
0x258b   : > { %v7070_v9 = vld [vmem:[#allocation30 + $0xf0] sm:$0xff]  ;;  %v9743_v24 = vpack.c.bf16 %v7074_v55, %v7071_v58  ;;  %v6856_v58 = vld [vmem:[%s12639_s4] sm:$0x7] }
0x258c   : > { %v6144_v6 = vrot.slane %v12440_v60, %v12436_v61  ;;  %v9745_v11 = vpack.c.bf16 %v7073_v21, %v7070_v9  ;;  %v7076_v60 = vld [vmem:[#allocation30 + $0x120] sm:$0xff]  ;;  %9772 = vmatpush3.bf16.msra.mxu1 %v9771_v44  ;;  %v6861_v55 = vrot.slane %v6856_v58, %v11828_v36  ;;  %v6865_v9 = vrot.slane %v6856_v58, %v11832_v40 }
0x258d   : > { %9744 = vmatprep.subr.bf16.mxu0 %v9743_v24  ;;  %v9749_v18 = vpack.c.bf16 %v7079_v38, %v7076_v60  ;;  %9773 = vmatprep.subr.bf16.mxu1 %v11044_v5  ;;  %v6869_v38 = vrot.slane %v6856_v58, %v11840_v42 }
0x258e   : > { %v6146_v17 = vadd.f32 %v6144_v6, %v5929_v3  ;;  %9746 = vmatpush1.bf16.msra.mxu0 %v9745_v11 }
0x258f   : > { %9748 = vmatprep.subr.bf16.mxu0 %v9747_v22 }
0x2590   : > { %9775 = vmatpush3.bf16.msra.mxu1 %v9774_v37 }
0x2591   : > { %9776 = vmatprep.subr.bf16.mxu1 %v11044_v5 }
0x2592   : > { %9750 = vmatpush1.bf16.msra.mxu0 %v9749_v18 }
0x2593   : > { %9752 = vmatprep.subr.bf16.mxu0 %v9751_v50  ;;  %v7248_v50 = vld [vmem:[#allocation31 + $0x180] sm:$0xff] }
0x2594   : > { %9778 = vmatpush3.bf16.msra.mxu1 %v9777_v34 }
0x2595   : > { %9811 = vmatprep.subr.bf16.mxu1 %v11044_v5 }
0x2596   : > { %9754 = vmatpush1.bf16.msra.mxu0 %v9753_v16 }
0x2597   : > { %9780 = vmatprep.subr.bf16.mxu0 %v9779_v39  ;;  %v9781_v39 = vpack.c.bf16 %v7251_v25, %v7248_v50 }
0x25a4   : > { %v6265_v59 = vpop.f32.mrb[48].mxu0  ;;  %v6336_v41 = vpop.f32.mrb[48].mxu1 }
0x25a5   : > { %v6267_v15 = vpop.f32.mrb[49].mxu0  ;;  %v8839_v30 = vpop.f32.mrb[49].mxu1  ;;  %v6357_v2 = vrot.slane %v6336_v41, %v12436_v61 }
0x25a6   : > { %v6343_v7 = vcombine.low %v6265_v59, %v6267_v15 }
0x25a8   : > { %v6350_v4 = vrot.slane %v6343_v7, %v12436_v61 }
0x25aa   : > { %v6358_v31 = vcombine.low %v6350_v4, %v6357_v2 }
0x25ac   : > { %v6365_v23 = vrot.slane %v6358_v31, %v12436_v61 }
0x25ae   : > { %v6367_v51 = vadd.f32 %v6365_v23, %v6146_v17 }
0x25c4   : > { %v6485_v43 = vpop.f32.mrb[50].mxu0  ;;  %v6556_v47 = vpop.f32.mrb[50].mxu1 }
0x25c5   : > { %v6487_v62 = vpop.f32.mrb[51].mxu0  ;;  %v8874_v52 = vpop.f32.mrb[51].mxu1  ;;  %v6577_v27 = vrot.slane %v6556_v47, %v12436_v61  ;;  %v9812_v47 = vpack.c.bf16 %v7253_v29, %v7250_v13  ;;  %v7287_v29 = vld [vmem:[#allocation31 + $0x2b8] sm:$0xff] }
0x25c6   : > { %v6563_v46 = vcombine.low %v6485_v43, %v6487_v62  ;;  %v7254_v43 = vld [vmem:[#allocation31 + $0x1b0] sm:$0xff] }
0x25c8   : > { %v6570_v59 = vrot.slane %v6563_v46, %v12436_v61  ;;  %v7257_v46 = vld [vmem:[#allocation31 + $0x1c8] sm:$0xff] }
0x25ca   : > { %v6578_v41 = vcombine.low %v6570_v59, %v6577_v27  ;;  %v7256_v27 = vld [vmem:[#allocation31 + $0x1c0] sm:$0xff]  ;;  %v7259_v59 = vld [vmem:[#allocation31 + $0x1d8] sm:$0xff] }
0x25cc   : > { %v6585_v26 = vrot.slane %v6578_v41, %v12436_v61  ;;  %v7261_v41 = vld [vmem:[#allocation31 + $0x1e8] sm:$0xff] }
0x25ce   : > { %v6587_v53 = vadd.f32 %v6585_v26, %v6367_v51  ;;  %v7258_v51 = vld [vmem:[#allocation31 + $0x1d0] sm:$0xff]  ;;  %v7264_v26 = vld [vmem:[#allocation31 + $0x200] sm:$0xff] }
0x25cf   : > { %v9783_v52 = vpack.c.bf16 %v7258_v51, %v7255_v33  ;;  %v7289_v33 = vld [vmem:[#allocation31 + $0x2c8] sm:$0xff]  ;;  %v7291_v51 = vld [vmem:[#allocation31 + $0x2d8] sm:$0xff] }
0x25e4   : > { %v6705_v56 = vpop.f32.mrb[52].mxu0  ;;  %v6776_v15 = vpop.f32.mrb[52].mxu1 }
0x25e5   : > { %v6707_v30 = vpop.f32.mrb[53].mxu0  ;;  %v8909_v32 = vpop.f32.mrb[53].mxu1  ;;  %v6797_v28 = vrot.slane %v6776_v15, %v12436_v61  ;;  %v9815_v15 = vpack.c.bf16 %v7259_v59, %v7256_v27  ;;  %v7295_v27 = vld [vmem:[#allocation31 + $0x2f8] sm:$0xff] }
0x25e6   : > { %v6783_v57 = vcombine.low %v6705_v56, %v6707_v30  ;;  %v7260_v56 = vld [vmem:[#allocation31 + $0x1e0] sm:$0xff]  ;;  %v9787_v30 = vpack.c.bf16 %v7264_v26, %v7261_v41  ;;  %v7263_v32 = vld [vmem:[#allocation31 + $0x1f8] sm:$0xff]  ;;  %v12482_v26 = vrot.slane %v12427_v63, 1 }
0x25e8   : > { %v6790_v3 = vrot.slane %v6783_v57, %v12436_v61  ;;  %v7262_v57 = vld [vmem:[#allocation31 + $0x1f0] sm:$0xff] }
0x25ea   : > { %v6798_v7 = vcombine.low %v6790_v3, %v6797_v28  ;;  %v7265_v28 = vld [vmem:[#allocation31 + $0x208] sm:$0xff]  ;;  %v7267_v3 = vld [vmem:[#allocation31 + $0x218] sm:$0xff] }
0x25eb   : > { %v9818_v58 = vpack.c.bf16 %v7265_v28, %v7262_v57  ;;  %v7486_v28 = vld [vmem:[#allocation33 + $0x38] sm:$0xff] }
0x25ec   : > { %v6805_v45 = vrot.slane %v6798_v7, %v12436_v61  ;;  %v7270_v7 = vld [vmem:[#allocation31 + $0x230] sm:$0xff] }
0x25ee   : > { %v6807_v6 = vadd.f32 %v6805_v45, %v6587_v53  ;;  %v9785_v53 = vpack.c.bf16 %v7257_v46, %v7254_v43  ;;  %v9789_v45 = vpack.c.bf16 %v7263_v32, %v7260_v56  ;;  %v7292_v46 = vld [vmem:[#allocation31 + $0x2e0] sm:$0xff]  ;;  %v7482_v56 = vld [vmem:[#allocation33 + $0x18] sm:$0xff]  ;;  %v7481_v32 = vld [vmem:[#allocation33 + $0x10] sm:$0xff] }
0x25ef   : > { %v9833_v41 = vpack.c.bf16 %v7295_v27, %v7292_v46 }
0x25f0   : > { %v7022_v11 = vrot.slane %v6807_v6, 1  ;;  %v7032_v20 = vrot.slane %v6807_v6, 2 }
0x2604   : > { %v6939_v2 = vpop.f32.mrb[54].mxu0  ;;  %v7010_v4 = vpop.f32.mrb[54].mxu1 }
0x2605   : > { %v6940_v24 = vadd.f32 %v6939_v2, %v6861_v55  ;;  %v6941_v21 = vpop.f32.mrb[55].mxu0  ;;  %v8944_v10 = vpop.f32.mrb[55].mxu1  ;;  %v7011_v17 = vadd.f32 %v7010_v4, %v6869_v38  ;;  %v9791_v55 = vpack.c.bf16 %v7270_v7, %v7267_v3  ;;  %v7268_v2 = vld [vmem:[#allocation31 + $0x220] sm:$0xff]  ;;  %v7271_v4 = vld [vmem:[#allocation31 + $0x238] sm:$0xff]  ;;  %v7485_v7 = vld [vmem:[#allocation33 + $0x30] sm:$0xff] }
0x2606   : > { %v6942_v0 = vadd.f32 %v6941_v21, %v6865_v9  ;;  %v7269_v9 = vld [vmem:[#allocation31 + $0x228] sm:$0xff]  ;;  %v7276_v21 = vld [vmem:[#allocation31 + $0x260] sm:$0xff] }
0x2607   : > { %v7014_v44 = vadd.f32 %v6940_v24, %v6807_v6  ;;  %v7266_v6 = vld [vmem:[#allocation31 + $0x210] sm:$0xff]  ;;  %v7273_v24 = vld [vmem:[#allocation31 + $0x248] sm:$0xff]  ;;  %v7483_v3 = vld [vmem:[#allocation33 + $0x20] sm:$0xff] }
0x2608   : > { %v7024_v35 = vadd.f32 %v7022_v11, %v6942_v0  ;;  %v9793_v10 = vpack.c.bf16 %v7269_v9, %v7266_v6  ;;  %v7272_v0 = vld [vmem:[#allocation31 + $0x240] sm:$0xff]  ;;  %v9821_v11 = vpack.c.bf16 %v7271_v4, %v7268_v2  ;;  %v7488_v6 = vld [vmem:[#allocation33 + $0x48] sm:$0xff] }
0x2609   : > { %v8098_v12 = vmul.f32 -1.442695, %v7014_v44  ;;  %v9795_v44 = vpack.c.bf16 %v7276_v21, %v7273_v24  ;;  %v7492_v4 = vld [vmem:[#allocation33 + $0x68] sm:$0xff]  ;;  %v7494_v24 = vld [vmem:[#allocation33 + $0x78] sm:$0xff] }
0x260a   : > { %v8099_v60 = vmul.f32 -1.442695, %v7024_v35  ;;  %v7275_v35 = vld [vmem:[#allocation31 + $0x258] sm:$0xff]  ;;  %v9847_v21 = vpack.c.bf16 %v7494_v24, %v7492_v4 }
0x260b   : > { %10278 = vpow2.f32 %v8098_v12  ;;  %v7274_v12 = vld [vmem:[#allocation31 + $0x250] sm:$0xff]  ;;  %v9797_v38 = vpack.c.bf16 %v7275_v35, %v7272_v0  ;;  %v7498_v35 = vld [vmem:[#allocation33 + $0x98] sm:$0xff] }
0x260c   : > { %10280 = vpow2.f32 %v8099_v60  ;;  %v7277_v60 = vld [vmem:[#allocation31 + $0x268] sm:$0xff]  ;;  %v7493_v0 = vld [vmem:[#allocation33 + $0x70] sm:$0xff] }
0x2615   : > { %v10279_v31 = vpop.eup %10278 }
0x2616   : > { %v7018_v22 = vadd.f32 1.0, %v10279_v31  ;;  %v10281_v8 = vpop.eup %10280  ;;  %v7279_v31 = vld [vmem:[#allocation31 + $0x278] sm:$0xff] }
0x2617   : > { %v7028_v14 = vadd.f32 1.0, %v10281_v8  ;;  %v7278_v8 = vld [vmem:[#allocation31 + $0x270] sm:$0xff] }
0x2618   : > { %10282 = vrcp.f32 %v7018_v22  ;;  %v7282_v22 = vld [vmem:[#allocation31 + $0x290] sm:$0xff] }
0x2619   : > { %10284 = vrcp.f32 %v7028_v14  ;;  %v9824_v14 = vpack.c.bf16 %v7277_v60, %v7274_v12  ;;  %v7495_v60 = vld [vmem:[#allocation33 + $0x80] sm:$0xff] }
0x2622   : > { %v10283_v18 = vpop.eup %10282 }
0x2623   : > { %v7031_v19 = vmul.f32 %v10283_v18, %v7011_v17  ;;  %v10285_v37 = vpop.eup %10284  ;;  %v9799_v17 = vpack.c.bf16 %v7282_v22, %v7279_v31  ;;  %v7281_v18 = vld [vmem:[#allocation31 + $0x288] sm:$0xff]  ;;  %v7497_v31 = vld [vmem:[#allocation33 + $0x90] sm:$0xff] }
0x2624   : > { %v7036_v49 = vsub.f32 1.0, %v10285_v37  ;;  %v7038_v34 = vmul.f32 %v10285_v37, %v12427_v63  ;;  %v7288_v37 = vld [vmem:[#allocation31 + $0x2c0] sm:$0xff]  ;;  %v9801_v50 = vpack.c.bf16 %v7281_v18, %v7278_v8  ;;  %v9853_v22 = vpack.c.bf16 %v7497_v31, %v7495_v60  ;;  %v7502_v8 = vld [vmem:[#allocation33 + $0xb8] sm:$0xff]  ;;  %v7501_v18 = vld [vmem:[#allocation33 + $0xb0] sm:$0xff] }
0x2625   : > { %v7034_v23 = vadd.f32 %v7032_v20, %v7031_v19  ;;  %v7280_v19 = vld [vmem:[#allocation31 + $0x280] sm:$0xff]  ;;  %v7283_v20 = vld [vmem:[#allocation31 + $0x298] sm:$0xff] }
0x2626   : > { %v9827_v25 = vpack.c.bf16 %v7283_v20, %v7280_v19  ;;  %v7504_v19 = vld [vmem:[#allocation33 + $0xc8] sm:$0xff]  ;;  %v7506_v20 = vld [vmem:[#allocation33 + $0xd8] sm:$0xff]  ;;  %v7511_v60 = vld [vmem:[#allocation34] sm:$0x3] }
0x2627   : > { %10286 = vtanh.f32 %v7034_v23  ;;  %v7285_v23 = vld [vmem:[#allocation31 + $0x2a8] sm:$0xff]  ;;  %v7516_v31 = vrot.slane %v7511_v60, %v11828_v36 }
0x2628   : > { %v9803_v13 = vpack.c.bf16 %v7288_v37, %v7285_v23  ;;  %v9859_v37 = vpack.c.bf16 %v7506_v20, %v7504_v19 }
0x2631   : > { %v10287_v48 = vpop.eup %10286 }
0x2632   : > { %v7037_v16 = vmul.f32 %v10287_v48, %v7036_v49  ;;  %v7284_v49 = vld [vmem:[#allocation31 + $0x2a0] sm:$0xff]  ;;  %v7286_v48 = vld [vmem:[#allocation31 + $0x2b0] sm:$0xff] }
0x2633   : > { %v9830_v43 = vpack.c.bf16 %v7289_v33, %v7286_v48  ;;  %v7507_v33 = vld [vmem:[#allocation33 + $0xe0] sm:$0xff] }
0x2634   : > { %v12467_v62 = vadd.f32 %v7038_v34, %v7037_v16  ;;  %v7294_v16 = vld [vmem:[#allocation31 + $0x2f0] sm:$0xff]  ;;  %v9805_v34 = vpack.c.bf16 %v7287_v29, %v7284_v49 }
0x2635   : > { %v7505_v49 = vld [vmem:[#allocation33 + $0xd0] sm:$0xff] }
0x2636   : > { %7171 = vmatmul.mubr.f32.vlgmr.msra.gmra.mrb[56].mxu0 %v12467_v62  ;;  %8978 = vmatmul.mubr.f32.vlgmr.msra.gmra.mrb[56].mxu1 %v12467_v62 }
0x2637   : > { %9782 = vmatpush1.bf16.msra.mxu0 %v9781_v39  ;;  %9813 = vmatpush3.bf16.msra.mxu1 %v9812_v47  ;;  %v7290_v39 = vld [vmem:[#allocation31 + $0x2d0] sm:$0xff]  ;;  %v9807_v47 = vpack.c.bf16 %v7294_v16, %v7291_v51 }
0x2638   : > { %9784 = vmatprep.subr.bf16.mxu0 %v9783_v52  ;;  %9814 = vmatprep.subr.bf16.mxu1 %v11044_v5  ;;  %v7293_v52 = vld [vmem:[#allocation31 + $0x2e8] sm:$0xff]  ;;  %v7509_v51 = vld [vmem:[#allocation33 + $0xf0] sm:$0xff] }
0x2639   : > { %7381 = vmatprep.mubr.f32.mxu0 %v11041_v1  ;;  %9012 = vmatprep.mubr.msk.f32.mxu1 %vm11045_vm4, %v11041_v1  ;;  %v9809_v59 = vpack.c.bf16 %v7293_v52, %v7290_v39  ;;  %v9865_v16 = vpack.c.bf16 %v7509_v51, %v7507_v33 }
0x263b   : > { %9786 = vmatpush1.bf16.msra.mxu0 %v9785_v53  ;;  %9816 = vmatpush3.bf16.msra.mxu1 %v9815_v15  ;;  %v7480_v53 = vld [vmem:[#allocation33 + $0x8] sm:$0xff] }
0x263c   : > { %9788 = vmatprep.subr.bf16.mxu0 %v9787_v30  ;;  %9817 = vmatprep.subr.bf16.mxu1 %v11044_v5  ;;  %v9835_v15 = vpack.c.bf16 %v7482_v56, %v7480_v53  ;;  %v7479_v30 = vld [vmem:[#allocation33] sm:$0xff] }
0x263d   : > { %v9837_v57 = vpack.c.bf16 %v7481_v32, %v7479_v30 }
0x263f   : > { %9790 = vmatpush1.bf16.msra.mxu0 %v9789_v45  ;;  %9819 = vmatpush3.bf16.msra.mxu1 %v9818_v58  ;;  %v9841_v45 = vpack.c.bf16 %v7485_v7, %v7483_v3  ;;  %v7490_v58 = vld [vmem:[#allocation33 + $0x58] sm:$0xff] }
0x2640   : > { %9792 = vmatprep.subr.bf16.mxu0 %v9791_v55  ;;  %9820 = vmatprep.subr.bf16.mxu1 %v11044_v5  ;;  %v7487_v55 = vld [vmem:[#allocation33 + $0x40] sm:$0xff]  ;;  %v9843_v9 = vpack.c.bf16 %v7490_v58, %v7488_v6 }
0x2643   : > { %9794 = vmatpush1.bf16.msra.mxu0 %v9793_v10  ;;  %9822 = vmatpush3.bf16.msra.mxu1 %v9821_v11  ;;  %v7491_v10 = vld [vmem:[#allocation33 + $0x60] sm:$0xff] }
0x2644   : > { %9796 = vmatprep.subr.bf16.mxu0 %v9795_v44  ;;  %9823 = vmatprep.subr.bf16.mxu1 %v11044_v5  ;;  %v9849_v11 = vpack.c.bf16 %v7493_v0, %v7491_v10  ;;  %v7496_v44 = vld [vmem:[#allocation33 + $0x88] sm:$0xff] }
0x2645   : > { %v9851_v12 = vpack.c.bf16 %v7498_v35, %v7496_v44 }
0x2647   : > { %9798 = vmatpush1.bf16.msra.mxu0 %v9797_v38  ;;  %9825 = vmatpush3.bf16.msra.mxu1 %v9824_v14  ;;  %v7500_v38 = vld [vmem:[#allocation33 + $0xa8] sm:$0xff]  ;;  %v7499_v14 = vld [vmem:[#allocation33 + $0xa0] sm:$0xff] }
0x2648   : > { %9800 = vmatprep.subr.bf16.mxu0 %v9799_v17  ;;  %9826 = vmatprep.subr.bf16.mxu1 %v11044_v5  ;;  %v9855_v17 = vpack.c.bf16 %v7502_v8, %v7500_v38  ;;  %v9857_v23 = vpack.c.bf16 %v7501_v18, %v7499_v14 }
0x264b   : > { %9802 = vmatpush1.bf16.msra.mxu0 %v9801_v50  ;;  %9828 = vmatpush3.bf16.msra.mxu1 %v9827_v25  ;;  %v7503_v50 = vld [vmem:[#allocation33 + $0xc0] sm:$0xff]  ;;  %v7508_v25 = vld [vmem:[#allocation33 + $0xe8] sm:$0xff] }
0x264c   : > { %9804 = vmatprep.subr.bf16.mxu0 %v9803_v13  ;;  %9829 = vmatprep.subr.bf16.mxu1 %v11044_v5  ;;  %v7510_v13 = vld [vmem:[#allocation33 + $0xf8] sm:$0xff]  ;;  %v9861_v29 = vpack.c.bf16 %v7505_v49, %v7503_v50 }
0x264d   : > { %v9863_v48 = vpack.c.bf16 %v7510_v13, %v7508_v25 }
0x264f   : > { %9806 = vmatpush1.bf16.msra.mxu0 %v9805_v34  ;;  %9831 = vmatpush3.bf16.msra.mxu1 %v9830_v43  ;;  %v8101_v43 = vld [vmem:[%s12639_s4 + $0x3] sm:$0x7] }
0x2650   : > { %9808 = vmatprep.subr.bf16.mxu0 %v9807_v47  ;;  %9832 = vmatprep.subr.bf16.mxu1 %v11044_v5  ;;  %v7484_v5 = vld [vmem:[#allocation33 + $0x28] sm:$0xff]  ;;  %v7305_v46 = vrot.slane %v8101_v43, %v11828_v36 }
0x2651   : > { %v9839_v63 = vpack.c.bf16 %v7486_v28, %v7484_v5  ;;  %v8100_v47 = vld [vmem:[%s12638_s18 + $0x3] sm:$0x7] }
0x2652   : > { %v7094_v52 = vrot.slane %v8100_v47, %v11828_v36  ;;  %v7098_v27 = vrot.slane %v8100_v47, %v11832_v40  ;;  %v7102_v58 = vrot.slane %v8100_v47, %v11840_v42 }
0x2653   : > { %9810 = vmatpush1.bf16.msra.mxu0 %v9809_v59  ;;  %9834 = vmatpush3.bf16.msra.mxu1 %v9833_v41  ;;  %v7309_v59 = vrot.slane %v8101_v43, %v11832_v40 }
0x2654   : > { %9836 = vmatprep.subr.bf16.mxu0 %v9835_v15  ;;  %v9867_v41 = vadd.f32 %v7305_v46, %v7094_v52 }
0x2655   : > { %v9869_v56 = vadd.f32 %v7309_v59, %v7098_v27 }
0x2656   : > { %7382 = vmatmul.mubr.f32.vlgmr.msra.gmra.mrb[56].mxu0 %v12482_v26  ;;  %9013 = vmatmul.mubr.f32.vlgmr.msra.gmra.mrb[58].mxu1 %v12482_v26 }
0x2657   : > { %7587 = vmatprep.mubr.f32.mxu0 %v11041_v1  ;;  %9838 = vmatpush1.bf16.msra.mxu0 %v9837_v57  ;;  %v7489_v1 = vld [vmem:[#allocation33 + $0x50] sm:$0xff] }
0x2658   : > { %9840 = vmatprep.subr.bf16.mxu0 %v9839_v63  ;;  %v9845_v2 = vpack.c.bf16 %v7489_v1, %v7487_v55 }
0x265b   : > { %9842 = vmatpush1.bf16.msra.mxu0 %v9841_v45  ;;  %v7313_v45 = vrot.slane %v8101_v43, %v11840_v42 }
0x265c   : > { %9844 = vmatprep.subr.bf16.mxu0 %v9843_v9 }
0x265f   : > { %9846 = vmatpush1.bf16.msra.mxu0 %v9845_v2 }
0x2660   : > { %9848 = vmatprep.subr.bf16.mxu0 %v9847_v21 }
0x2663   : > { %9850 = vmatpush1.bf16.msra.mxu0 %v9849_v11 }
0x2664   : > { %9852 = vmatprep.subr.bf16.mxu0 %v9851_v12 }
0x2667   : > { %9854 = vmatpush1.bf16.msra.mxu0 %v9853_v22  ;;  %v7520_v22 = vrot.slane %v7511_v60, %v11832_v40 }
0x2668   : > { %9856 = vmatprep.subr.bf16.mxu0 %v9855_v17 }
0x266b   : > { %9858 = vmatpush1.bf16.msra.mxu0 %v9857_v23 }
0x266c   : > { %9860 = vmatprep.subr.bf16.mxu0 %v9859_v37 }
0x266f   : > { %9862 = vmatpush1.bf16.msra.mxu0 %v9861_v29 }
0x2670   : > { %9864 = vmatprep.subr.bf16.mxu0 %v9863_v48 }
0x2673   : > { %9866 = vmatpush1.bf16.msra.mxu0 %v9865_v16 }
0x2709   : > { %v7243_v34 = vpop.f32.mrb[56].mxu1 }
0x270a   : > { %v8979_v39 = vpop.f32.mrb[57].mxu1  ;;  %v7244_v2 = vadd.f32 %v7243_v34, %v7102_v58 }
0x2729   : > { %v7383_v53 = vpop.f32.mrb[56].mxu0  ;;  %v7454_v15 = vpop.f32.mrb[58].mxu1 }
0x272a   : > { %v9868_v30 = vadd.f32 %v9867_v41, %v7383_v53  ;;  %v7385_v32 = vpop.f32.mrb[57].mxu0  ;;  %v9014_v57 = vpop.f32.mrb[59].mxu1  ;;  %v7455_v9 = vadd.f32 %v7454_v15, %v7313_v45 }
0x272b   : > { %v9870_v28 = vadd.f32 %v9869_v56, %v7385_v32 }
0x272c   : > { %v8102_v5 = vmul.f32 -1.442695, %v9868_v30 }
0x272d   : > { %v8103_v63 = vmul.f32 -1.442695, %v9870_v28 }
0x272e   : > { %10288 = vpow2.f32 %v8102_v5 }
0x272f   : > { %10290 = vpow2.f32 %v8103_v63 }
0x2738   : > { %v10289_v3 = vpop.eup %10288 }
0x2739   : > { %v7462_v7 = vadd.f32 1.0, %v10289_v3  ;;  %v10291_v6 = vpop.eup %10290 }
0x273a   : > { %v7469_v55 = vadd.f32 1.0, %v10291_v6 }
0x273b   : > { %10292 = vrcp.f32 %v7462_v7 }
0x273c   : > { %10294 = vrcp.f32 %v7469_v55 }
0x2745   : > { %v10293_v1 = vpop.eup %10292 }
0x2746   : > { %v7472_v4 = vmul.f32 %v10293_v1, %v7455_v9  ;;  %v10295_v21 = vpop.eup %10294 }
0x2747   : > { %v7475_v10 = vsub.f32 1.0, %v10295_v21  ;;  %v7477_v44 = vmul.f32 %v10295_v21, %v12482_v26 }
0x2748   : > { %v7473_v24 = vadd.f32 %v7472_v4, %v7244_v2 }
0x274a   : > { %10296 = vtanh.f32 %v7473_v24 }
0x2754   : > { %v10297_v0 = vpop.eup %10296 }
0x2755   : > { %v7476_v11 = vmul.f32 %v10297_v0, %v7475_v10 }
0x2757   : > { %v7478_v35 = vadd.f32 %v7477_v44, %v7476_v11 }
0x2759   : > { %7588 = vmatmul.mubr.f32.vlgmr.msra.gmra.mrb[58].mxu0 %v7478_v35  ;;  %v7618_v42 = vrot.slane %v7478_v35, 7 }
0x275b   : > { %v7620_v12 = vsel %vm1743_vm1, %v12467_v62, %v7618_v42 }
0x275c   : > { %7621 = vst [vmem:[%s1504_s14] sm:$0x3] %v7620_v12 }
0x282c   : > { %v7589_v38 = vpop.f32.mrb[58].mxu0 }
0x282d   : > { %v7590_v8 = vadd.f32 %v7589_v38, %v7516_v31  ;;  %v7591_v14 = vpop.f32.mrb[59].mxu0 }
0x282e   : > { %v7592_v17 = vadd.f32 %v7591_v14, %v7520_v22 }
0x2830   : > { %v7596_v26 = vcombine.low %v7590_v8, %v7592_v17 }
0x2832   : > { %v7603_v18 = vrot.slane %v7596_v26, %v12436_v61 }
0x2834   : > { %v7610_v19 = vrot.slane %v7603_v18, %v12436_v61 }
0x2836   : > { %7616 = vst.msk [vmem:[%s1500_s28] sm:$0x3] %vm7614_vm10, %v7610_v19 }
0x2837 PF: > { %s100_s15 = sadd.s32 1, %s10968_s15  }
0x2838   : > { %p97_p1 = scmp.ge.s32.totalorder %s100_s15, 4  }
0x283a   :  { %99 = sbr.rel (!%p97_p1) target bundleno = 82 (0x52), region = 361 }
0x2841   :  { %7655 = vsyncpa [#allocation3], 1 }
0x2842   :  { %7657 = vsyncpa [#allocation3 + $0x1], 1 }
0x2843   :  { %7658 = vsyncpa [#allocation5], 1 }
0x2844   :  { %7659 = vsyncpa [#allocation8], 1 }
0x2845   :  { %7660 = vsyncpa [#allocation11], 1 }
0x2846   :  { %7661 = vsyncpa [#allocation14], 1 }
0x2847   :  { %7662 = vsyncpa [#allocation17], 1 }
0x2848   :  { %7663 = vsyncpa [#allocation20], 1 }
0x2849   :  { %7664 = vsyncpa [#allocation23], 1 }
0x284a   :  { %7665 = vsyncpa [#allocation26], 1 }
0x284b   :  { %7666 = vsyncpa [#allocation29], 1 }
0x284c   :  { %7667 = vsyncpa [#allocation32], 1 }
0x284d   :  { %7668 = vsyncpa [#allocation35], 1 }

</bundles_post_ra>
